<compile_context>
chip_gen: v6e
topology: v6e:2x2x1
jax: 0.10.0
libtpu: 0.0.40
codegen_flags: <defaults>
</compile_context>

<pallas_src>
import functools

import jax
import jax.numpy as jnp
from jax import lax
from jax.experimental import pallas as pl
from jax.experimental.pallas import tpu as pltpu


# Matmul operand dtype.  jnp.float32 keeps close parity with the PyTorch
# reference; set to jnp.bfloat16 on v6e/v7x for ~2x MXU throughput once
# d_model grows (accumulation stays f32 either way).
MXU_DTYPE = jnp.float32


def _mx(x):
    return x.astype(MXU_DTYPE)


def _rep(shape):
    """BlockSpec for a small operand replicated across every grid step."""
    zeros = (0,) * len(shape)
    return pl.BlockSpec(shape, lambda i: zeros)


def _batch_block(total, per_item_cost, budget):
    """Largest legal batch block (multiple of 8 or == total) within budget."""
    bb = max(1, budget // max(per_item_cost, 1))
    if bb >= total:
        return total
    return min(total, max(8, (bb // 8) * 8))


# --------------------------- fused attention block ---------------------------

def _attn_block_kernel(src_ref, wqkv_ref, bqkv_ref, wo_ref, bo_ref,
                       lnw_ref, lnb_ref, o_ref, *, nhead, eps):
    T, Bb, d = src_ref.shape
    hd = d // nhead
    N = T * Bb

    src = src_ref[...].astype(jnp.float32)            # (T, Bb, d)
    x2 = src.reshape(N, d)                             # row index = t*Bb + b

    # Q columns of wqkv / bqkv were pre-scaled by head_dim**-0.5.
    qkv = jnp.dot(_mx(x2), _mx(wqkv_ref[...]),
                  preferred_element_type=jnp.float32) + bqkv_ref[...]  # (N, 3d)

    # Block-diagonal additive bias: rows only attend to rows of the same batch
    # element.  Built once, shared by every head (pure VPU add inside loop).
    rows = lax.broadcasted_iota(jnp.int32, (N, N), 0) % Bb
    cols = lax.broadcasted_iota(jnp.int32, (N, N), 1) % Bb
    bias = jnp.where(rows == cols, jnp.float32(0.0), jnp.float32(-1e30))

    heads = []
    for h in range(nhead):
        q = qkv[:, h * hd:(h + 1) * hd]
        k = qkv[:, d + h * hd:d + (h + 1) * hd]
        v = qkv[:, 2 * d + h * hd:2 * d + (h + 1) * hd]
        s = jnp.dot(_mx(q), _mx(k).T,
                    preferred_element_type=jnp.float32) + bias           # (N, N)
        s = s - jnp.max(s, axis=-1, keepdims=True)
        p = jnp.exp(s)
        p = p * pl.reciprocal(jnp.sum(p, axis=-1, keepdims=True), approx=True)
        heads.append(jnp.dot(_mx(p), _mx(v),
                             preferred_element_type=jnp.float32))        # (N, hd)
    attn = jnp.concatenate(heads, axis=-1)                               # (N, d)

    y = jnp.dot(_mx(attn), _mx(wo_ref[...]),
                preferred_element_type=jnp.float32) + bo_ref[...]
    y = x2 + y                                                           # residual
    mu = jnp.mean(y, axis=-1, keepdims=True)
    var = jnp.mean(jnp.square(y - mu), axis=-1, keepdims=True)
    y = (y - mu) * lax.rsqrt(var + eps)
    y = y * lnw_ref[...] + lnb_ref[...]
    o_ref[...] = y.reshape(T, Bb, d).astype(o_ref.dtype)


def attn_block(src, p, nhead, eps=1e-5):
    T, B, d = src.shape
    Bb = _batch_block(B, T, 512)          # keep the (T*Bb, T*Bb) scores bounded
    grid = (pl.cdiv(B, Bb),)
    blk = pl.BlockSpec((T, Bb, d), lambda i: (0, i, 0))
    return pl.pallas_call(
        functools.partial(_attn_block_kernel, nhead=nhead, eps=float(eps)),
        out_shape=jax.ShapeDtypeStruct((T, B, d), jnp.float32),
        grid=grid,
        in_specs=[blk, _rep(p["wqkv"].shape), _rep(p["bqkv"].shape),
                  _rep(p["wo"].shape), _rep(p["bo"].shape),
                  _rep(p["ln1_w"].shape), _rep(p["ln1_b"].shape)],
        out_specs=blk,
        compiler_params=pltpu.CompilerParams(dimension_semantics=("parallel",)),
    )(src, p["wqkv"], p["bqkv"], p["wo"], p["bo"], p["ln1_w"], p["ln1_b"])


# ------------------- fused bidirectional-GRU feed-forward --------------------

def _gru_ffn_kernel(src_ref,
                    wihf_ref, whhf_ref, bihf_ref, bhhf_ref,
                    wihb_ref, whhb_ref, bihb_ref, bhhb_ref,
                    wih2f_ref, wih2b_ref, whh2_ref, bih2_ref, bhh2_ref,
                    lnw_ref, lnb_ref,
                    o_ref,
                    gxf, gxb, gx2, outf, outb, src2, *, eps):
    T, Bb, H = src_ref.shape
    H3 = 3 * H
    unroll = bool(T <= 32)

    src = src_ref[...].astype(jnp.float32)             # (T, Bb, H)
    x2 = src.reshape(T * Bb, H)

    # Gate-concatenated input projections (gate order r, z, n along lanes) for
    # both directions -- ONE matmul each, done once outside the time loop.
    gxf[...] = (jnp.dot(_mx(x2), _mx(wihf_ref[...]),
                        preferred_element_type=jnp.float32)
                + bihf_ref[...]).reshape(T, Bb, H3)
    gxb[...] = (jnp.dot(_mx(x2), _mx(wihb_ref[...]),
                        preferred_element_type=jnp.float32)
                + bihb_ref[...]).reshape(T, Bb, H3)

    # Hoist all recurrent weights out of the loops (loaded once).
    whh_f = whhf_ref[...]
    bhh_f = bhhf_ref[...]
    whh_b = whhb_ref[...]
    bhh_b = bhhb_ref[...]
    whh_2 = whh2_ref[...]
    bhh_2 = bhh2_ref[...]

    def cell(h, gx, whh, bhh):
        # Single (Bb,H) @ (H,3H) matmul per step; gates via static lane slices.
        gh = jnp.dot(_mx(h), _mx(whh), preferred_element_type=jnp.float32) + bhh
        r = jax.nn.sigmoid(gx[:, :H] + gh[:, :H])
        z = jax.nn.sigmoid(gx[:, H:2 * H] + gh[:, H:2 * H])
        n = jnp.tanh(gx[:, 2 * H:] + r * gh[:, 2 * H:])   # b_hn inside r*(.)
        return (1.0 - z) * n + z * h

    # Both GRU directions advance in the same loop; the backward direction is
    # indexed with T-1-t so no wrapper-side reversal copies are needed.
    def bi_step(t, carry):
        h_f, h_b = carry
        h_f = cell(h_f, gxf[t], whh_f, bhh_f)
        outf[t] = h_f
        tb = T - 1 - t
        h_b = cell(h_b, gxb[tb], whh_b, bhh_b)
        outb[tb] = h_b
        return (h_f, h_b)

    h0 = jnp.zeros((Bb, H), jnp.float32)
    lax.fori_loop(0, T, bi_step, (h0, h0), unroll=unroll)

    # GELU (exact, erf-based) on both direction outputs; linear2 (a
    # unidirectional GRU on the concatenated features) -- the concat is
    # replaced by a split weight:  concat([f, b]) @ W == f @ W_top + b @ W_bot.
    c = 0.7071067811865476
    gf = outf[...]
    gf = (0.5 * gf * (1.0 + lax.erf(gf * c))).reshape(T * Bb, H)
    gb = outb[...]
    gb = (0.5 * gb * (1.0 + lax.erf(gb * c))).reshape(T * Bb, H)
    gx2[...] = (jnp.dot(_mx(gf), _mx(wih2f_ref[...]),
                        preferred_element_type=jnp.float32)
                + jnp.dot(_mx(gb), _mx(wih2b_ref[...]),
                          preferred_element_type=jnp.float32)
                + bih2_ref[...]).reshape(T, Bb, H3)

    def step2(t, h):
        h = cell(h, gx2[t], whh_2, bhh_2)
        src2[t] = h
        return h

    lax.fori_loop(0, T, step2, h0, unroll=unroll)

    # residual + LayerNorm (norm2), single full-block store.
    y = (src + src2[...]).reshape(T * Bb, H)
    mu = jnp.mean(y, axis=-1, keepdims=True)
    var = jnp.mean(jnp.square(y - mu), axis=-1, keepdims=True)
    y = (y - mu) * lax.rsqrt(var + eps)
    y = y * lnw_ref[...] + lnb_ref[...]
    o_ref[...] = y.reshape(T, Bb, H).astype(o_ref.dtype)


def gru_ffn_block(src, p, eps=1e-5):
    T, B, H = src.shape
    Bb = _batch_block(B, 16 * T * H * 4, 8 << 20)   # keep VMEM scratch bounded
    grid = (pl.cdiv(B, Bb),)
    blk = pl.BlockSpec((T, Bb, H), lambda i: (0, i, 0))
    return pl.pallas_call(
        functools.partial(_gru_ffn_kernel, eps=float(eps)),
        out_shape=jax.ShapeDtypeStruct((T, B, H), jnp.float32),
        grid=grid,
        in_specs=[blk,
                  _rep(p["wih_f"].shape), _rep(p["whh_f"].shape),
                  _rep(p["bih_f"].shape), _rep(p["bhh_f"].shape),
                  _rep(p["wih_b"].shape), _rep(p["whh_b"].shape),
                  _rep(p["bih_b"].shape), _rep(p["bhh_b"].shape),
                  _rep(p["wih2_f"].shape), _rep(p["wih2_b"].shape),
                  _rep(p["whh_2"].shape), _rep(p["bih_2"].shape),
                  _rep(p["bhh_2"].shape),
                  _rep(p["ln2_w"].shape), _rep(p["ln2_b"].shape)],
        out_specs=blk,
        scratch_shapes=[
            pltpu.VMEM((T, Bb, 3 * H), jnp.float32),   # gxf (r|z|n along lanes)
            pltpu.VMEM((T, Bb, 3 * H), jnp.float32),   # gxb
            pltpu.VMEM((T, Bb, 3 * H), jnp.float32),   # gx2
            pltpu.VMEM((T, Bb, H), jnp.float32),       # outf
            pltpu.VMEM((T, Bb, H), jnp.float32),       # outb
            pltpu.VMEM((T, Bb, H), jnp.float32),       # src2
        ],
        compiler_params=pltpu.CompilerParams(dimension_semantics=("parallel",)),
    )(src, p["wih_f"], p["whh_f"], p["bih_f"], p["bhh_f"],
      p["wih_b"], p["whh_b"], p["bih_b"], p["bhh_b"],
      p["wih2_f"], p["wih2_b"], p["whh_2"], p["bih_2"], p["bhh_2"],
      p["ln2_w"], p["ln2_b"])


def transformer_encoder_layer(src, p, nhead):
    """Matches TransformerEncoderLayer.forward (dropout=0).  src: (T, B, d)."""
    src = attn_block(src, p, nhead)
    return gru_ffn_block(src, p)


# --------------------------- GroupNorm + residual ----------------------------

def _gn_res_kernel(x_ref, res_ref, w_ref, b_ref, o_ref, *, eps):
    # GroupNorm(num_groups=1): normalize over (C, HW) per sample, residual add.
    x = x_ref[...].astype(jnp.float32)                 # (1, C, HW)
    mu = jnp.mean(x, axis=(1, 2), keepdims=True)
    var = jnp.mean(jnp.square(x - mu), axis=(1, 2), keepdims=True)
    y = (x - mu) * lax.rsqrt(var + eps)
    y = y * w_ref[...] + b_ref[...]
    o_ref[...] = (res_ref[...].astype(jnp.float32) + y).astype(o_ref.dtype)


def groupnorm_residual(x, res, w, b, eps=1e-8):
    B, C, HW = x.shape
    spec = pl.BlockSpec((1, C, HW), lambda i: (i, 0, 0))
    wspec = pl.BlockSpec((1, C, 1), lambda i: (0, 0, 0))
    return pl.pallas_call(
        functools.partial(_gn_res_kernel, eps=float(eps)),
        out_shape=jax.ShapeDtypeStruct((B, C, HW), jnp.float32),
        grid=(B,),
        in_specs=[spec, spec, wspec, wspec],
        out_specs=spec,
        compiler_params=pltpu.CompilerParams(dimension_semantics=("parallel",)),
    )(x, res, w, b)


# ----------------------------- 1x1 conv + PReLU -------------------------------

def _conv1x1_prelu_kernel(x_ref, w_ref, b_ref, slope_ref, o_ref, *,
                          prelu_in, prelu_out):
    x = x_ref[...].astype(jnp.float32)
    slope = slope_ref[...]                               # (1, 1) learned scalar
    if prelu_in:
        x = jnp.where(x >= 0.0, x, x * slope)
    y = jnp.dot(_mx(x), _mx(w_ref[...]),
                preferred_element_type=jnp.float32) + b_ref[...]
    if prelu_out:
        y = jnp.where(y >= 0.0, y, y * slope)
    o_ref[...] = y.astype(o_ref.dtype)


def conv1x1(x2d, w, b, slope, prelu_in=False, prelu_out=False, m_blk=512):
    M, K = x2d.shape
    N = w.shape[1]
    Mb = min(m_blk, M)
    grid = (pl.cdiv(M, Mb),)
    return pl.pallas_call(
        functools.partial(_conv1x1_prelu_kernel, prelu_in=prelu_in,
                          prelu_out=prelu_out),
        out_shape=jax.ShapeDtypeStruct((M, N), jnp.float32),
        grid=grid,
        in_specs=[pl.BlockSpec((Mb, K), lambda i: (i, 0)),
                  _rep(w.shape), _rep(b.shape), _rep(slope.shape)],
        out_specs=pl.BlockSpec((Mb, N), lambda i: (i, 0)),
        compiler_params=pltpu.CompilerParams(dimension_semantics=("parallel",)),
    )(x2d, w, b, slope)


# --------------------------- model forward glue -------------------------------

def dual_transformer_forward(x, params, nhead=4):
    """x: (b, c, dim2, dim1) NCHW, matching the PyTorch module."""
    b, c, dim2, dim1 = x.shape
    c2 = params["in_conv_w"].shape[1]
    out_size = params["out_conv_w"].shape[1]

    # input: Conv2d(c, c//2, 1) + PReLU (1x1 conv == channel matmul)
    xf = jnp.transpose(x, (0, 2, 3, 1)).reshape(b * dim2 * dim1, c)
    y = conv1x1(xf, params["in_conv_w"], params["in_conv_b"],
                params["in_prelu"], prelu_out=True)
    output = jnp.transpose(y.reshape(b, dim2, dim1, c2), (0, 3, 1, 2))

    for lp in params["layers"]:
        # row pass: sequence along dim1, batch = b * dim2
        row_in = jnp.transpose(output, (3, 0, 2, 1)).reshape(dim1, b * dim2, c2)
        row_out = transformer_encoder_layer(row_in, lp["row"], nhead)
        row_out = jnp.transpose(row_out.reshape(dim1, b, dim2, c2), (1, 3, 2, 0))
        output = groupnorm_residual(
            row_out.reshape(b, c2, dim2 * dim1),
            output.reshape(b, c2, dim2 * dim1),
            lp["row_gn_w"], lp["row_gn_b"]).reshape(b, c2, dim2, dim1)

        # col pass: sequence along dim2, batch = b * dim1
        col_in = jnp.transpose(output, (2, 0, 3, 1)).reshape(dim2, b * dim1, c2)
        col_out = transformer_encoder_layer(col_in, lp["col"], nhead)
        col_out = jnp.transpose(col_out.reshape(dim2, b, dim1, c2), (1, 3, 0, 2))
        output = groupnorm_residual(
            col_out.reshape(b, c2, dim2 * dim1),
            output.reshape(b, c2, dim2 * dim1),
            lp["col_gn_w"], lp["col_gn_b"]).reshape(b, c2, dim2, dim1)

    # output: PReLU + Conv2d(c//2, output_size, 1)
    of = jnp.transpose(output, (0, 2, 3, 1)).reshape(b * dim2 * dim1, c2)
    out = conv1x1(of, params["out_conv_w"], params["out_conv_b"],
                  params["out_prelu"], prelu_in=True)
    return jnp.transpose(out.reshape(b, dim2, dim1, out_size), (0, 3, 1, 2))


# ----------------------------- parameter handling -----------------------------

def init_params(key, input_size, output_size, nhead=4, num_layers=1):
    """Random weights in PyTorch layouts (Conv/MHA/GRU weight shapes)."""
    c2 = input_size // 2
    d = c2

    def w(k, shape, scale=0.1):
        return (scale * jax.random.normal(k, shape)).astype(jnp.float32)

    keys = jax.random.split(key, 4 + num_layers)
    params = {
        "in_conv_w": w(keys[0], (c2, input_size)),
        "in_conv_b": w(keys[1], (c2,)),
        "in_prelu": 0.25,                      # PReLU scalar, torch default init
        "out_conv_w": w(keys[2], (output_size, c2)),
        "out_conv_b": w(keys[3], (output_size,)),
        "out_prelu": 0.25,
        "layers": [],
    }

    def enc_params(k):
        ks = jax.random.split(k, 16)
        return {
            "in_proj_w": w(ks[0], (3 * d, d)), "in_proj_b": w(ks[1], (3 * d,)),
            "out_proj_w": w(ks[2], (d, d)), "out_proj_b": w(ks[3], (d,)),
            "norm1_w": jnp.ones((d,), jnp.float32),
            "norm1_b": jnp.zeros((d,), jnp.float32),
            "norm2_w": jnp.ones((d,), jnp.float32),
            "norm2_b": jnp.zeros((d,), jnp.float32),
            # bidirectional GRU(d -> d)
            "gru_wih_f": w(ks[4], (3 * d, d)), "gru_whh_f": w(ks[5], (3 * d, d)),
            "gru_bih_f": w(ks[6], (3 * d,)), "gru_bhh_f": w(ks[7], (3 * d,)),
            "gru_wih_b": w(ks[8], (3 * d, d)), "gru_whh_b": w(ks[9], (3 * d, d)),
            "gru_bih_b": w(ks[10], (3 * d,)), "gru_bhh_b": w(ks[11], (3 * d,)),
            # linear2 = GRU(2d -> d)
            "lin2_wih": w(ks[12], (3 * d, 2 * d)), "lin2_whh": w(ks[13], (3 * d, d)),
            "lin2_bih": w(ks[14], (3 * d,)), "lin2_bhh": w(ks[15], (3 * d,)),
        }

    for i in range(num_layers):
        lk = jax.random.split(keys[4 + i], 2)
        params["layers"].append({
            "row": enc_params(lk[0]),
            "col": enc_params(lk[1]),
            "row_gn_w": jnp.ones((c2,), jnp.float32),
            "row_gn_b": jnp.zeros((c2,), jnp.float32),
            "col_gn_w": jnp.ones((c2,), jnp.float32),
            "col_gn_b": jnp.zeros((c2,), jnp.float32),
        })
    return params


def _prep_gru(wih, whh, bih, bhh):
    """PyTorch GRU weights -> gate-CONCATENATED, pre-transposed kernel layout.

    weight (3H, Din) with gates (r, z, n) stacked on dim 0 becomes
    (Din, 3H) with gates concatenated along the lane axis, so each GRU step
    does ONE matmul and recovers gates via static lane slices.
    """
    three_h, din = wih.shape
    h = three_h // 3
    wih_c = jnp.transpose(wih.reshape(3, h, din), (2, 0, 1)).reshape(din, 3 * h)
    whh_c = jnp.transpose(whh.reshape(3, h, h), (2, 0, 1)).reshape(h, 3 * h)
    return wih_c, whh_c, bih.reshape(1, 3 * h), bhh.reshape(1, 3 * h)


def _prep_encoder(p, nhead):
    d = p["norm1_w"].shape[0]
    scale = float((d // nhead) ** -0.5)
    wqkv = p["in_proj_w"].T                    # (d, 3d)
    bqkv = p["in_proj_b"]
    # Fold the 1/sqrt(head_dim) query scaling into the Q columns (once).
    wqkv = jnp.concatenate([wqkv[:, :d] * scale, wqkv[:, d:]], axis=1)
    bqkv = jnp.concatenate([bqkv[:d] * scale, bqkv[d:]]).reshape(1, 3 * d)
    q = {
        "wqkv": wqkv,
        "bqkv": bqkv,
        "wo": p["out_proj_w"].T,                  # (d, d)
        "bo": p["out_proj_b"].reshape(1, d),
        "ln1_w": p["norm1_w"].reshape(1, d),
        "ln1_b": p["norm1_b"].reshape(1, d),
        "ln2_w": p["norm2_w"].reshape(1, d),
        "ln2_b": p["norm2_b"].reshape(1, d),
    }
    (q["wih_f"], q["whh_f"], q["bih_f"], q["bhh_f"]) = _prep_gru(
        p["gru_wih_f"], p["gru_whh_f"], p["gru_bih_f"], p["gru_bhh_f"])
    (q["wih_b"], q["whh_b"], q["bih_b"], q["bhh_b"]) = _prep_gru(
        p["gru_wih_b"], p["gru_whh_b"], p["gru_bih_b"], p["gru_bhh_b"])
    wih2, whh2, bih2, bhh2 = _prep_gru(
        p["lin2_wih"], p["lin2_whh"], p["lin2_bih"], p["lin2_bhh"])
    # Split linear2's (2d, 3d) input projection into the halves that multiply
    # the forward / backward GRU outputs (replaces an in-kernel concatenate).
    q["wih2_f"] = wih2[:d, :]
    q["wih2_b"] = wih2[d:, :]
    q["whh_2"] = whh2
    q["bih_2"] = bih2
    q["bhh_2"] = bhh2
    return q


def prepare_params(p, nhead=4):
    """One-time conversion: pre-transpose / gate-concat / scale every weight."""
    c2 = p["in_conv_w"].shape[0]
    out_size = p["out_conv_w"].shape[0]
    q = {
        "in_conv_w": p["in_conv_w"].T,                       # (Cin, c2)
        "in_conv_b": p["in_conv_b"].reshape(1, c2),
        "in_prelu": jnp.full((1, 1), p["in_prelu"], jnp.float32),
        "out_conv_w": p["out_conv_w"].T,                     # (c2, out)
        "out_conv_b": p["out_conv_b"].reshape(1, out_size),
        "out_prelu": jnp.full((1, 1), p["out_prelu"], jnp.float32),
        "layers": [],
    }
    for lp in p["layers"]:
        q["layers"].append({
            "row": _prep_encoder(lp["row"], nhead),
            "col": _prep_encoder(lp["col"], nhead),
            "row_gn_w": lp["row_gn_w"].reshape(1, c2, 1),
            "row_gn_b": lp["row_gn_b"].reshape(1, c2, 1),
            "col_gn_w": lp["col_gn_w"].reshape(1, c2, 1),
            "col_gn_b": lp["col_gn_b"].reshape(1, c2, 1),
        })
    return q


# ---------------------------------- main --------------------------------------

if __name__ == "__main__":
    key = jax.random.PRNGKey(0)
    kp, kx = jax.random.split(key)

    input_size, output_size, nhead, num_layers = 16, 16, 4, 1
    b, dim2, dim1 = 2, 8, 8

    torch_layout_params = init_params(kp, input_size, output_size, nhead=nhead,
                                      num_layers=num_layers)
    params = prepare_params(torch_layout_params, nhead=nhead)
    x = jax.random.normal(kx, (b, input_size, dim2, dim1), dtype=jnp.float32)

    fwd = jax.jit(functools.partial(dual_transformer_forward, nhead=nhead))
    y = fwd(x, params)
    jax.block_until_ready(y)
    assert y.shape == (b, output_size, dim2, dim1), y.shape
    assert bool(jnp.all(jnp.isfinite(y)))
    print("KERNEL_OK")
</pallas_src>

<mosaic_0001>
module attributes {stable_mosaic.version = 11 : i64} {
  func.func @_attn_block_kernel(%arg0: i32, %arg1: memref<8x16x8xf32, #tpu.memory_space<vmem>>, %arg2: memref<8x24xf32, #tpu.memory_space<vmem>>, %arg3: memref<1x24xf32, #tpu.memory_space<vmem>>, %arg4: memref<8x8xf32, #tpu.memory_space<vmem>>, %arg5: memref<1x8xf32, #tpu.memory_space<vmem>>, %arg6: memref<1x8xf32, #tpu.memory_space<vmem>>, %arg7: memref<1x8xf32, #tpu.memory_space<vmem>>, %arg8: memref<8x16x8xf32, #tpu.memory_space<vmem>>) attributes {dimension_semantics = [#tpu.dimension_semantics<parallel>], iteration_bounds = array<i64: 1>, scalar_prefetch = 0 : i64, scratch_operands = 0 : i64, tpu.core_type = #tpu.core_type<tc>, window_params = [{transform_indices = @transform_0, window_bounds = array<i64: 8, 16, 8>}, {pipeline_mode = #tpu.pipeline_mode<synchronous>, transform_indices = @transform_1, window_bounds = array<i64: 8, 24>}, {pipeline_mode = #tpu.pipeline_mode<synchronous>, transform_indices = @transform_2, window_bounds = array<i64: 1, 24>}, {pipeline_mode = #tpu.pipeline_mode<synchronous>, transform_indices = @transform_3, window_bounds = array<i64: 8, 8>}, {pipeline_mode = #tpu.pipeline_mode<synchronous>, transform_indices = @transform_4, window_bounds = array<i64: 1, 8>}, {pipeline_mode = #tpu.pipeline_mode<synchronous>, transform_indices = @transform_5, window_bounds = array<i64: 1, 8>}, {pipeline_mode = #tpu.pipeline_mode<synchronous>, transform_indices = @transform_6, window_bounds = array<i64: 1, 8>}, {transform_indices = @transform_7, window_bounds = array<i64: 8, 16, 8>}]} {
    %c0 = arith.constant 0 : index
    %c0_0 = arith.constant 0 : index
    %c0_1 = arith.constant 0 : index
    %0 = vector.load %arg1[%c0, %c0_0, %c0_1] : memref<8x16x8xf32, #tpu.memory_space<vmem>>, vector<8x16x8xf32>
    %1 = vector.shape_cast %0 : vector<8x16x8xf32> to vector<128x8xf32>
    %c0_2 = arith.constant 0 : index
    %c0_3 = arith.constant 0 : index
    %2 = vector.load %arg2[%c0_2, %c0_3] : memref<8x24xf32, #tpu.memory_space<vmem>>, vector<8x24xf32>
    %cst = arith.constant dense<0.000000e+00> : vector<128x24xf32>
    %3 = tpu.matmul %1, %2, %cst {dimension_numbers = #tpu.dot_dimension_numbers<[1], [0], [0], [1], [0, 0, 1, 1], [], []>} : vector<128x8xf32>, vector<8x24xf32>, vector<128x24xf32> -> vector<128x24xf32>
    %c0_4 = arith.constant 0 : index
    %c0_5 = arith.constant 0 : index
    %4 = vector.load %arg3[%c0_4, %c0_5] : memref<1x24xf32, #tpu.memory_space<vmem>>, vector<1x24xf32>
    %5 = vector.broadcast %4 : vector<1x24xf32> to vector<128x24xf32>
    %6 = arith.addf %3, %5 : vector<128x24xf32>
    %7 = tpu.iota {dimensions = array<i32: 0>} : vector<128x128xi32>
    %c16_i32 = arith.constant 16 : i32
    %c0_i32 = arith.constant 0 : i32
    %8 = arith.cmpi eq, %c16_i32, %c0_i32 : i32
    %c1_i32 = arith.constant 1 : i32
    %9 = arith.select %8, %c1_i32, %c16_i32 : i32
    %10 = vector.broadcast %9 : i32 to vector<128x128xi32>
    %11 = arith.remsi %7, %10 : vector<128x128xi32>
    %c0_i32_6 = arith.constant 0 : i32
    %12 = vector.broadcast %c0_i32_6 : i32 to vector<128x128xi32>
    %13 = arith.cmpi ne, %11, %12 : vector<128x128xi32>
    %c0_i32_7 = arith.constant 0 : i32
    %14 = vector.broadcast %c0_i32_7 : i32 to vector<128x128xi32>
    %15 = arith.cmpi slt, %11, %14 : vector<128x128xi32>
    %c0_i32_8 = arith.constant 0 : i32
    %16 = arith.cmpi slt, %9, %c0_i32_8 : i32
    %17 = vector.broadcast %16 : i1 to vector<128x128xi1>
    %18 = vector.broadcast %17 : vector<128x128xi1> to vector<128x128xi1>
    %19 = arith.xori %15, %18 : vector<128x128xi1>
    %20 = arith.andi %19, %13 : vector<128x128xi1>
    %21 = vector.broadcast %9 : i32 to vector<128x128xi32>
    %22 = arith.addi %11, %21 : vector<128x128xi32>
    %23 = arith.select %20, %22, %11 : vector<128x128xi1>, vector<128x128xi32>
    %24 = tpu.iota {dimensions = array<i32: 1>} : vector<128x128xi32>
    %c16_i32_9 = arith.constant 16 : i32
    %c0_i32_10 = arith.constant 0 : i32
    %25 = arith.cmpi eq, %c16_i32_9, %c0_i32_10 : i32
    %c1_i32_11 = arith.constant 1 : i32
    %26 = arith.select %25, %c1_i32_11, %c16_i32_9 : i32
    %27 = vector.broadcast %26 : i32 to vector<128x128xi32>
    %28 = arith.remsi %24, %27 : vector<128x128xi32>
    %c0_i32_12 = arith.constant 0 : i32
    %29 = vector.broadcast %c0_i32_12 : i32 to vector<128x128xi32>
    %30 = arith.cmpi ne, %28, %29 : vector<128x128xi32>
    %c0_i32_13 = arith.constant 0 : i32
    %31 = vector.broadcast %c0_i32_13 : i32 to vector<128x128xi32>
    %32 = arith.cmpi slt, %28, %31 : vector<128x128xi32>
    %c0_i32_14 = arith.constant 0 : i32
    %33 = arith.cmpi slt, %26, %c0_i32_14 : i32
    %34 = vector.broadcast %33 : i1 to vector<128x128xi1>
    %35 = vector.broadcast %34 : vector<128x128xi1> to vector<128x128xi1>
    %36 = arith.xori %32, %35 : vector<128x128xi1>
    %37 = arith.andi %36, %30 : vector<128x128xi1>
    %38 = vector.broadcast %26 : i32 to vector<128x128xi32>
    %39 = arith.addi %28, %38 : vector<128x128xi32>
    %40 = arith.select %37, %39, %28 : vector<128x128xi1>, vector<128x128xi32>
    %41 = arith.cmpi eq, %23, %40 : vector<128x128xi32>
    %cst_15 = arith.constant 0.000000e+00 : f32
    %cst_16 = arith.constant -1.000000e+30 : f32
    %42 = vector.broadcast %cst_15 : f32 to vector<128x128xf32>
    %43 = vector.broadcast %cst_16 : f32 to vector<128x128xf32>
    %44 = arith.select %41, %42, %43 : vector<128x128xi1>, vector<128x128xf32>
    %45 = vector.extract_strided_slice %6 {offsets = [0, 0], sizes = [128, 2], strides = [1, 1]} : vector<128x24xf32> to vector<128x2xf32>
    %46 = vector.extract_strided_slice %6 {offsets = [0, 8], sizes = [128, 2], strides = [1, 1]} : vector<128x24xf32> to vector<128x2xf32>
    %47 = vector.extract_strided_slice %6 {offsets = [0, 16], sizes = [128, 2], strides = [1, 1]} : vector<128x24xf32> to vector<128x2xf32>
    %48 = tpu.transpose %46, [1, 0] : vector<128x2xf32> -> vector<2x128xf32>
    %cst_17 = arith.constant dense<0.000000e+00> : vector<128x128xf32>
    %49 = tpu.matmul %45, %48, %cst_17 {dimension_numbers = #tpu.dot_dimension_numbers<[1], [0], [0], [1], [0, 0, 1, 1], [], []>} : vector<128x2xf32>, vector<2x128xf32>, vector<128x128xf32> -> vector<128x128xf32>
    %50 = arith.addf %49, %44 : vector<128x128xf32>
    %cst_18 = arith.constant dense<0xFF800000> : vector<128xf32>
    %51 = vector.multi_reduction <maximumf>, %50, %cst_18 [1] : vector<128x128xf32> to vector<128xf32>
    %52 = vector.shape_cast %51 : vector<128xf32> to vector<128x1xf32>
    %53 = vector.broadcast %52 : vector<128x1xf32> to vector<128x128xf32>
    %54 = arith.subf %50, %53 : vector<128x128xf32>
    %55 = math.exp %54 : vector<128x128xf32>
    %cst_19 = arith.constant dense<0.000000e+00> : vector<128xf32>
    %56 = vector.multi_reduction <add>, %55, %cst_19 [1] : vector<128x128xf32> to vector<128xf32>
    %57 = vector.shape_cast %56 : vector<128xf32> to vector<128x1xf32>
    %58 = tpu.reciprocal %57 {approx = true} : vector<128x1xf32> -> vector<128x1xf32>
    %59 = vector.broadcast %58 : vector<128x1xf32> to vector<128x128xf32>
    %60 = arith.mulf %55, %59 : vector<128x128xf32>
    %cst_20 = arith.constant dense<0.000000e+00> : vector<128x2xf32>
    %61 = tpu.matmul %60, %47, %cst_20 {dimension_numbers = #tpu.dot_dimension_numbers<[1], [0], [0], [1], [0, 0, 1, 1], [], []>} : vector<128x128xf32>, vector<128x2xf32>, vector<128x2xf32> -> vector<128x2xf32>
    %62 = vector.extract_strided_slice %6 {offsets = [0, 2], sizes = [128, 2], strides = [1, 1]} : vector<128x24xf32> to vector<128x2xf32>
    %63 = vector.extract_strided_slice %6 {offsets = [0, 10], sizes = [128, 2], strides = [1, 1]} : vector<128x24xf32> to vector<128x2xf32>
    %64 = vector.extract_strided_slice %6 {offsets = [0, 18], sizes = [128, 2], strides = [1, 1]} : vector<128x24xf32> to vector<128x2xf32>
    %65 = tpu.transpose %63, [1, 0] : vector<128x2xf32> -> vector<2x128xf32>
    %cst_21 = arith.constant dense<0.000000e+00> : vector<128x128xf32>
    %66 = tpu.matmul %62, %65, %cst_21 {dimension_numbers = #tpu.dot_dimension_numbers<[1], [0], [0], [1], [0, 0, 1, 1], [], []>} : vector<128x2xf32>, vector<2x128xf32>, vector<128x128xf32> -> vector<128x128xf32>
    %67 = arith.addf %66, %44 : vector<128x128xf32>
    %cst_22 = arith.constant dense<0xFF800000> : vector<128xf32>
    %68 = vector.multi_reduction <maximumf>, %67, %cst_22 [1] : vector<128x128xf32> to vector<128xf32>
    %69 = vector.shape_cast %68 : vector<128xf32> to vector<128x1xf32>
    %70 = vector.broadcast %69 : vector<128x1xf32> to vector<128x128xf32>
    %71 = arith.subf %67, %70 : vector<128x128xf32>
    %72 = math.exp %71 : vector<128x128xf32>
    %cst_23 = arith.constant dense<0.000000e+00> : vector<128xf32>
    %73 = vector.multi_reduction <add>, %72, %cst_23 [1] : vector<128x128xf32> to vector<128xf32>
    %74 = vector.shape_cast %73 : vector<128xf32> to vector<128x1xf32>
    %75 = tpu.reciprocal %74 {approx = true} : vector<128x1xf32> -> vector<128x1xf32>
    %76 = vector.broadcast %75 : vector<128x1xf32> to vector<128x128xf32>
    %77 = arith.mulf %72, %76 : vector<128x128xf32>
    %cst_24 = arith.constant dense<0.000000e+00> : vector<128x2xf32>
    %78 = tpu.matmul %77, %64, %cst_24 {dimension_numbers = #tpu.dot_dimension_numbers<[1], [0], [0], [1], [0, 0, 1, 1], [], []>} : vector<128x128xf32>, vector<128x2xf32>, vector<128x2xf32> -> vector<128x2xf32>
    %79 = vector.extract_strided_slice %6 {offsets = [0, 4], sizes = [128, 2], strides = [1, 1]} : vector<128x24xf32> to vector<128x2xf32>
    %80 = vector.extract_strided_slice %6 {offsets = [0, 12], sizes = [128, 2], strides = [1, 1]} : vector<128x24xf32> to vector<128x2xf32>
    %81 = vector.extract_strided_slice %6 {offsets = [0, 20], sizes = [128, 2], strides = [1, 1]} : vector<128x24xf32> to vector<128x2xf32>
    %82 = tpu.transpose %80, [1, 0] : vector<128x2xf32> -> vector<2x128xf32>
    %cst_25 = arith.constant dense<0.000000e+00> : vector<128x128xf32>
    %83 = tpu.matmul %79, %82, %cst_25 {dimension_numbers = #tpu.dot_dimension_numbers<[1], [0], [0], [1], [0, 0, 1, 1], [], []>} : vector<128x2xf32>, vector<2x128xf32>, vector<128x128xf32> -> vector<128x128xf32>
    %84 = arith.addf %83, %44 : vector<128x128xf32>
    %cst_26 = arith.constant dense<0xFF800000> : vector<128xf32>
    %85 = vector.multi_reduction <maximumf>, %84, %cst_26 [1] : vector<128x128xf32> to vector<128xf32>
    %86 = vector.shape_cast %85 : vector<128xf32> to vector<128x1xf32>
    %87 = vector.broadcast %86 : vector<128x1xf32> to vector<128x128xf32>
    %88 = arith.subf %84, %87 : vector<128x128xf32>
    %89 = math.exp %88 : vector<128x128xf32>
    %cst_27 = arith.constant dense<0.000000e+00> : vector<128xf32>
    %90 = vector.multi_reduction <add>, %89, %cst_27 [1] : vector<128x128xf32> to vector<128xf32>
    %91 = vector.shape_cast %90 : vector<128xf32> to vector<128x1xf32>
    %92 = tpu.reciprocal %91 {approx = true} : vector<128x1xf32> -> vector<128x1xf32>
    %93 = vector.broadcast %92 : vector<128x1xf32> to vector<128x128xf32>
    %94 = arith.mulf %89, %93 : vector<128x128xf32>
    %cst_28 = arith.constant dense<0.000000e+00> : vector<128x2xf32>
    %95 = tpu.matmul %94, %81, %cst_28 {dimension_numbers = #tpu.dot_dimension_numbers<[1], [0], [0], [1], [0, 0, 1, 1], [], []>} : vector<128x128xf32>, vector<128x2xf32>, vector<128x2xf32> -> vector<128x2xf32>
    %96 = vector.extract_strided_slice %6 {offsets = [0, 6], sizes = [128, 2], strides = [1, 1]} : vector<128x24xf32> to vector<128x2xf32>
    %97 = vector.extract_strided_slice %6 {offsets = [0, 14], sizes = [128, 2], strides = [1, 1]} : vector<128x24xf32> to vector<128x2xf32>
    %98 = vector.extract_strided_slice %6 {offsets = [0, 22], sizes = [128, 2], strides = [1, 1]} : vector<128x24xf32> to vector<128x2xf32>
    %99 = tpu.transpose %97, [1, 0] : vector<128x2xf32> -> vector<2x128xf32>
    %cst_29 = arith.constant dense<0.000000e+00> : vector<128x128xf32>
    %100 = tpu.matmul %96, %99, %cst_29 {dimension_numbers = #tpu.dot_dimension_numbers<[1], [0], [0], [1], [0, 0, 1, 1], [], []>} : vector<128x2xf32>, vector<2x128xf32>, vector<128x128xf32> -> vector<128x128xf32>
    %101 = arith.addf %100, %44 : vector<128x128xf32>
    %cst_30 = arith.constant dense<0xFF800000> : vector<128xf32>
    %102 = vector.multi_reduction <maximumf>, %101, %cst_30 [1] : vector<128x128xf32> to vector<128xf32>
    %103 = vector.shape_cast %102 : vector<128xf32> to vector<128x1xf32>
    %104 = vector.broadcast %103 : vector<128x1xf32> to vector<128x128xf32>
    %105 = arith.subf %101, %104 : vector<128x128xf32>
    %106 = math.exp %105 : vector<128x128xf32>
    %cst_31 = arith.constant dense<0.000000e+00> : vector<128xf32>
    %107 = vector.multi_reduction <add>, %106, %cst_31 [1] : vector<128x128xf32> to vector<128xf32>
    %108 = vector.shape_cast %107 : vector<128xf32> to vector<128x1xf32>
    %109 = tpu.reciprocal %108 {approx = true} : vector<128x1xf32> -> vector<128x1xf32>
    %110 = vector.broadcast %109 : vector<128x1xf32> to vector<128x128xf32>
    %111 = arith.mulf %106, %110 : vector<128x128xf32>
    %cst_32 = arith.constant dense<0.000000e+00> : vector<128x2xf32>
    %112 = tpu.matmul %111, %98, %cst_32 {dimension_numbers = #tpu.dot_dimension_numbers<[1], [0], [0], [1], [0, 0, 1, 1], [], []>} : vector<128x128xf32>, vector<128x2xf32>, vector<128x2xf32> -> vector<128x2xf32>
    %113 = tpu.concatenate %61, %78, %95, %112 in 1 : vector<128x2xf32>, vector<128x2xf32>, vector<128x2xf32>, vector<128x2xf32> -> vector<128x8xf32>
    %c0_33 = arith.constant 0 : index
    %c0_34 = arith.constant 0 : index
    %114 = vector.load %arg4[%c0_33, %c0_34] : memref<8x8xf32, #tpu.memory_space<vmem>>, vector<8x8xf32>
    %cst_35 = arith.constant dense<0.000000e+00> : vector<128x8xf32>
    %115 = tpu.matmul %113, %114, %cst_35 {dimension_numbers = #tpu.dot_dimension_numbers<[1], [0], [0], [1], [0, 0, 1, 1], [], []>} : vector<128x8xf32>, vector<8x8xf32>, vector<128x8xf32> -> vector<128x8xf32>
    %c0_36 = arith.constant 0 : index
    %c0_37 = arith.constant 0 : index
    %116 = vector.load %arg5[%c0_36, %c0_37] : memref<1x8xf32, #tpu.memory_space<vmem>>, vector<1x8xf32>
    %117 = vector.broadcast %116 : vector<1x8xf32> to vector<128x8xf32>
    %118 = arith.addf %115, %117 : vector<128x8xf32>
    %119 = arith.addf %1, %118 : vector<128x8xf32>
    %cst_38 = arith.constant dense<0.000000e+00> : vector<128xf32>
    %120 = vector.multi_reduction <add>, %119, %cst_38 [1] : vector<128x8xf32> to vector<128xf32>
    %121 = vector.shape_cast %120 : vector<128xf32> to vector<128x1xf32>
    %cst_39 = arith.constant 8.000000e+00 : f32
    %122 = vector.broadcast %cst_39 : f32 to vector<128x1xf32>
    %123 = arith.divf %121, %122 : vector<128x1xf32>
    %124 = vector.broadcast %123 : vector<128x1xf32> to vector<128x8xf32>
    %125 = arith.subf %119, %124 : vector<128x8xf32>
    %126 = arith.mulf %125, %125 : vector<128x8xf32>
    %cst_40 = arith.constant dense<0.000000e+00> : vector<128xf32>
    %127 = vector.multi_reduction <add>, %126, %cst_40 [1] : vector<128x8xf32> to vector<128xf32>
    %128 = vector.shape_cast %127 : vector<128xf32> to vector<128x1xf32>
    %cst_41 = arith.constant 8.000000e+00 : f32
    %129 = vector.broadcast %cst_41 : f32 to vector<128x1xf32>
    %130 = arith.divf %128, %129 : vector<128x1xf32>
    %131 = vector.broadcast %123 : vector<128x1xf32> to vector<128x8xf32>
    %132 = arith.subf %119, %131 : vector<128x8xf32>
    %cst_42 = arith.constant 9.99999974E-6 : f32
    %133 = vector.broadcast %cst_42 : f32 to vector<128x1xf32>
    %134 = arith.addf %130, %133 : vector<128x1xf32>
    %135 = math.rsqrt %134 : vector<128x1xf32>
    %136 = vector.broadcast %135 : vector<128x1xf32> to vector<128x8xf32>
    %137 = arith.mulf %132, %136 : vector<128x8xf32>
    %c0_43 = arith.constant 0 : index
    %c0_44 = arith.constant 0 : index
    %138 = vector.load %arg6[%c0_43, %c0_44] : memref<1x8xf32, #tpu.memory_space<vmem>>, vector<1x8xf32>
    %139 = vector.broadcast %138 : vector<1x8xf32> to vector<128x8xf32>
    %140 = arith.mulf %137, %139 : vector<128x8xf32>
    %c0_45 = arith.constant 0 : index
    %c0_46 = arith.constant 0 : index
    %141 = vector.load %arg7[%c0_45, %c0_46] : memref<1x8xf32, #tpu.memory_space<vmem>>, vector<1x8xf32>
    %142 = vector.broadcast %141 : vector<1x8xf32> to vector<128x8xf32>
    %143 = arith.addf %140, %142 : vector<128x8xf32>
    %144 = vector.shape_cast %143 : vector<128x8xf32> to vector<8x16x8xf32>
    %c0_47 = arith.constant 0 : index
    %c0_48 = arith.constant 0 : index
    %c0_49 = arith.constant 0 : index
    %145 = vector.load %arg8[%c0_47, %c0_48, %c0_49] : memref<8x16x8xf32, #tpu.memory_space<vmem>>, vector<8x16x8xf32>
    tpu.vector_store %arg8[%c0_47, %c0_48, %c0_49], %144 {strides = array<i32>} : memref<8x16x8xf32, #tpu.memory_space<vmem>>, vector<8x16x8xf32>,
    return
  }
  func.func @transform_0(%arg0: i32) -> (i32, i32, i32) {
    %c0_i32 = arith.constant 0 : i32
    %c0_i32_0 = arith.constant 0 : i32
    %c0_i32_1 = arith.constant 0 : i32
    return %c0_i32, %arg0, %c0_i32_0 : i32, i32, i32
  }
  func.func @transform_1(%arg0: i32) -> (i32, i32) {
    %c0_i32 = arith.constant 0 : i32
    %c0_i32_0 = arith.constant 0 : i32
    %c0_i32_1 = arith.constant 0 : i32
    return %c0_i32, %c0_i32_0 : i32, i32
  }
  func.func @transform_2(%arg0: i32) -> (i32, i32) {
    %c0_i32 = arith.constant 0 : i32
    %c0_i32_0 = arith.constant 0 : i32
    %c0_i32_1 = arith.constant 0 : i32
    return %c0_i32, %c0_i32_0 : i32, i32
  }
  func.func @transform_3(%arg0: i32) -> (i32, i32) {
    %c0_i32 = arith.constant 0 : i32
    %c0_i32_0 = arith.constant 0 : i32
    %c0_i32_1 = arith.constant 0 : i32
    return %c0_i32, %c0_i32_0 : i32, i32
  }
  func.func @transform_4(%arg0: i32) -> (i32, i32) {
    %c0_i32 = arith.constant 0 : i32
    %c0_i32_0 = arith.constant 0 : i32
    %c0_i32_1 = arith.constant 0 : i32
    return %c0_i32, %c0_i32_0 : i32, i32
  }
  func.func @transform_5(%arg0: i32) -> (i32, i32) {
    %c0_i32 = arith.constant 0 : i32
    %c0_i32_0 = arith.constant 0 : i32
    %c0_i32_1 = arith.constant 0 : i32
    return %c0_i32, %c0_i32_0 : i32, i32
  }
  func.func @transform_6(%arg0: i32) -> (i32, i32) {
    %c0_i32 = arith.constant 0 : i32
    %c0_i32_0 = arith.constant 0 : i32
    %c0_i32_1 = arith.constant 0 : i32
    return %c0_i32, %c0_i32_0 : i32, i32
  }
  func.func @transform_7(%arg0: i32) -> (i32, i32, i32) {
    %c0_i32 = arith.constant 0 : i32
    %c0_i32_0 = arith.constant 0 : i32
    %c0_i32_1 = arith.constant 0 : i32
    return %c0_i32, %arg0, %c0_i32_0 : i32, i32, i32
  }
}

module attributes {stable_mosaic.version = 11 : i64} {
  func.func @_conv1x1_prelu_kernel(%arg0: i32, %arg1: memref<128x16xf32, #tpu.memory_space<vmem>>, %arg2: memref<16x8xf32, #tpu.memory_space<vmem>>, %arg3: memref<1x8xf32, #tpu.memory_space<vmem>>, %arg4: memref<1x1xf32, #tpu.memory_space<vmem>>, %arg5: memref<128x8xf32, #tpu.memory_space<vmem>>) attributes {dimension_semantics = [#tpu.dimension_semantics<parallel>], iteration_bounds = array<i64: 1>, scalar_prefetch = 0 : i64, scratch_operands = 0 : i64, tpu.core_type = #tpu.core_type<tc>, window_params = [{transform_indices = @transform_0, window_bounds = array<i64: 128, 16>}, {pipeline_mode = #tpu.pipeline_mode<synchronous>, transform_indices = @transform_1, window_bounds = array<i64: 16, 8>}, {pipeline_mode = #tpu.pipeline_mode<synchronous>, transform_indices = @transform_2, window_bounds = array<i64: 1, 8>}, {pipeline_mode = #tpu.pipeline_mode<synchronous>, transform_indices = @transform_3, window_bounds = array<i64: 1, 1>}, {transform_indices = @transform_4, window_bounds = array<i64: 128, 8>}]} {
    %c0 = arith.constant 0 : index
    %c0_0 = arith.constant 0 : index
    %0 = vector.load %arg1[%c0, %c0_0] : memref<128x16xf32, #tpu.memory_space<vmem>>, vector<128x16xf32>
    %c0_1 = arith.constant 0 : index
    %c0_2 = arith.constant 0 : index
    %1 = vector.load %arg4[%c0_1, %c0_2] : memref<1x1xf32, #tpu.memory_space<vmem>>, vector<1x1xf32>
    %c0_3 = arith.constant 0 : index
    %c0_4 = arith.constant 0 : index
    %2 = vector.load %arg2[%c0_3, %c0_4] : memref<16x8xf32, #tpu.memory_space<vmem>>, vector<16x8xf32>
    %cst = arith.constant dense<0.000000e+00> : vector<128x8xf32>
    %3 = tpu.matmul %0, %2, %cst {dimension_numbers = #tpu.dot_dimension_numbers<[1], [0], [0], [1], [0, 0, 1, 1], [], []>} : vector<128x16xf32>, vector<16x8xf32>, vector<128x8xf32> -> vector<128x8xf32>
    %c0_5 = arith.constant 0 : index
    %c0_6 = arith.constant 0 : index
    %4 = vector.load %arg3[%c0_5, %c0_6] : memref<1x8xf32, #tpu.memory_space<vmem>>, vector<1x8xf32>
    %5 = vector.broadcast %4 : vector<1x8xf32> to vector<128x8xf32>
    %6 = arith.addf %3, %5 : vector<128x8xf32>
    %cst_7 = arith.constant 0.000000e+00 : f32
    %7 = vector.broadcast %cst_7 : f32 to vector<128x8xf32>
    %8 = arith.cmpf oge, %6, %7 : vector<128x8xf32>
    %9 = vector.broadcast %1 : vector<1x1xf32> to vector<128x8xf32>
    %10 = arith.mulf %6, %9 : vector<128x8xf32>
    %11 = arith.select %8, %6, %10 : vector<128x8xi1>, vector<128x8xf32>
    %c0_8 = arith.constant 0 : index
    %c0_9 = arith.constant 0 : index
    %12 = vector.load %arg5[%c0_8, %c0_9] : memref<128x8xf32, #tpu.memory_space<vmem>>, vector<128x8xf32>
    tpu.vector_store %arg5[%c0_8, %c0_9], %11 {strides = array<i32>} : memref<128x8xf32, #tpu.memory_space<vmem>>, vector<128x8xf32>,
    return
  }
  func.func @transform_0(%arg0: i32) -> (i32, i32) {
    %c0_i32 = arith.constant 0 : i32
    %c0_i32_0 = arith.constant 0 : i32
    return %arg0, %c0_i32 : i32, i32
  }
  func.func @transform_1(%arg0: i32) -> (i32, i32) {
    %c0_i32 = arith.constant 0 : i32
    %c0_i32_0 = arith.constant 0 : i32
    %c0_i32_1 = arith.constant 0 : i32
    return %c0_i32, %c0_i32_0 : i32, i32
  }
  func.func @transform_2(%arg0: i32) -> (i32, i32) {
    %c0_i32 = arith.constant 0 : i32
    %c0_i32_0 = arith.constant 0 : i32
    %c0_i32_1 = arith.constant 0 : i32
    return %c0_i32, %c0_i32_0 : i32, i32
  }
  func.func @transform_3(%arg0: i32) -> (i32, i32) {
    %c0_i32 = arith.constant 0 : i32
    %c0_i32_0 = arith.constant 0 : i32
    %c0_i32_1 = arith.constant 0 : i32
    return %c0_i32, %c0_i32_0 : i32, i32
  }
  func.func @transform_4(%arg0: i32) -> (i32, i32) {
    %c0_i32 = arith.constant 0 : i32
    %c0_i32_0 = arith.constant 0 : i32
    return %arg0, %c0_i32 : i32, i32
  }
}

module attributes {stable_mosaic.version = 11 : i64} {
  func.func @_gru_ffn_kernel(%arg0: i32, %arg1: memref<8x16x8xf32, #tpu.memory_space<vmem>>, %arg2: memref<8x24xf32, #tpu.memory_space<vmem>>, %arg3: memref<8x24xf32, #tpu.memory_space<vmem>>, %arg4: memref<1x24xf32, #tpu.memory_space<vmem>>, %arg5: memref<1x24xf32, #tpu.memory_space<vmem>>, %arg6: memref<8x24xf32, #tpu.memory_space<vmem>>, %arg7: memref<8x24xf32, #tpu.memory_space<vmem>>, %arg8: memref<1x24xf32, #tpu.memory_space<vmem>>, %arg9: memref<1x24xf32, #tpu.memory_space<vmem>>, %arg10: memref<8x24xf32, #tpu.memory_space<vmem>>, %arg11: memref<8x24xf32, #tpu.memory_space<vmem>>, %arg12: memref<8x24xf32, #tpu.memory_space<vmem>>, %arg13: memref<1x24xf32, #tpu.memory_space<vmem>>, %arg14: memref<1x24xf32, #tpu.memory_space<vmem>>, %arg15: memref<1x8xf32, #tpu.memory_space<vmem>>, %arg16: memref<1x8xf32, #tpu.memory_space<vmem>>, %arg17: memref<8x16x8xf32, #tpu.memory_space<vmem>>, %arg18: memref<8x16x24xf32, #tpu.memory_space<vmem>>, %arg19: memref<8x16x24xf32, #tpu.memory_space<vmem>>, %arg20: memref<8x16x24xf32, #tpu.memory_space<vmem>>, %arg21: memref<8x16x8xf32, #tpu.memory_space<vmem>>, %arg22: memref<8x16x8xf32, #tpu.memory_space<vmem>>, %arg23: memref<8x16x8xf32, #tpu.memory_space<vmem>>) attributes {dimension_semantics = [#tpu.dimension_semantics<parallel>], iteration_bounds = array<i64: 1>, scalar_prefetch = 0 : i64, scratch_operands = 6 : i64, tpu.core_type = #tpu.core_type<tc>, window_params = [{transform_indices = @transform_0, window_bounds = array<i64: 8, 16, 8>}, {pipeline_mode = #tpu.pipeline_mode<synchronous>, transform_indices = @transform_1, window_bounds = array<i64: 8, 24>}, {pipeline_mode = #tpu.pipeline_mode<synchronous>, transform_indices = @transform_2, window_bounds = array<i64: 8, 24>}, {pipeline_mode = #tpu.pipeline_mode<synchronous>, transform_indices = @transform_3, window_bounds = array<i64: 1, 24>}, {pipeline_mode = #tpu.pipeline_mode<synchronous>, transform_indices = @transform_4, window_bounds = array<i64: 1, 24>}, {pipeline_mode = #tpu.pipeline_mode<synchronous>, transform_indices = @transform_5, window_bounds = array<i64: 8, 24>}, {pipeline_mode = #tpu.pipeline_mode<synchronous>, transform_indices = @transform_6, window_bounds = array<i64: 8, 24>}, {pipeline_mode = #tpu.pipeline_mode<synchronous>, transform_indices = @transform_7, window_bounds = array<i64: 1, 24>}, {pipeline_mode = #tpu.pipeline_mode<synchronous>, transform_indices = @transform_8, window_bounds = array<i64: 1, 24>}, {pipeline_mode = #tpu.pipeline_mode<synchronous>, transform_indices = @transform_9, window_bounds = array<i64: 8, 24>}, {pipeline_mode = #tpu.pipeline_mode<synchronous>, transform_indices = @transform_10, window_bounds = array<i64: 8, 24>}, {pipeline_mode = #tpu.pipeline_mode<synchronous>, transform_indices = @transform_11, window_bounds = array<i64: 8, 24>}, {pipeline_mode = #tpu.pipeline_mode<synchronous>, transform_indices = @transform_12, window_bounds = array<i64: 1, 24>}, {pipeline_mode = #tpu.pipeline_mode<synchronous>, transform_indices = @transform_13, window_bounds = array<i64: 1, 24>}, {pipeline_mode = #tpu.pipeline_mode<synchronous>, transform_indices = @transform_14, window_bounds = array<i64: 1, 8>}, {pipeline_mode = #tpu.pipeline_mode<synchronous>, transform_indices = @transform_15, window_bounds = array<i64: 1, 8>}, {transform_indices = @transform_16, window_bounds = array<i64: 8, 16, 8>}]} {
    %c0 = arith.constant 0 : index
    %c0_0 = arith.constant 0 : index
    %c0_1 = arith.constant 0 : index
    %0 = vector.load %arg1[%c0, %c0_0, %c0_1] : memref<8x16x8xf32, #tpu.memory_space<vmem>>, vector<8x16x8xf32>
    %1 = vector.shape_cast %0 : vector<8x16x8xf32> to vector<128x8xf32>
    %c0_2 = arith.constant 0 : index
    %c0_3 = arith.constant 0 : index
    %2 = vector.load %arg2[%c0_2, %c0_3] : memref<8x24xf32, #tpu.memory_space<vmem>>, vector<8x24xf32>
    %cst = arith.constant dense<0.000000e+00> : vector<128x24xf32>
    %3 = tpu.matmul %1, %2, %cst {dimension_numbers = #tpu.dot_dimension_numbers<[1], [0], [0], [1], [0, 0, 1, 1], [], []>} : vector<128x8xf32>, vector<8x24xf32>, vector<128x24xf32> -> vector<128x24xf32>
    %c0_4 = arith.constant 0 : index
    %c0_5 = arith.constant 0 : index
    %4 = vector.load %arg4[%c0_4, %c0_5] : memref<1x24xf32, #tpu.memory_space<vmem>>, vector<1x24xf32>
    %5 = vector.broadcast %4 : vector<1x24xf32> to vector<128x24xf32>
    %6 = arith.addf %3, %5 : vector<128x24xf32>
    %7 = vector.shape_cast %6 : vector<128x24xf32> to vector<8x16x24xf32>
    %c0_6 = arith.constant 0 : index
    %c0_7 = arith.constant 0 : index
    %c0_8 = arith.constant 0 : index
    %8 = vector.load %arg18[%c0_6, %c0_7, %c0_8] : memref<8x16x24xf32, #tpu.memory_space<vmem>>, vector<8x16x24xf32>
    tpu.vector_store %arg18[%c0_6, %c0_7, %c0_8], %7 {strides = array<i32>} : memref<8x16x24xf32, #tpu.memory_space<vmem>>, vector<8x16x24xf32>,
    %c0_9 = arith.constant 0 : index
    %c0_10 = arith.constant 0 : index
    %9 = vector.load %arg6[%c0_9, %c0_10] : memref<8x24xf32, #tpu.memory_space<vmem>>, vector<8x24xf32>
    %cst_11 = arith.constant dense<0.000000e+00> : vector<128x24xf32>
    %10 = tpu.matmul %1, %9, %cst_11 {dimension_numbers = #tpu.dot_dimension_numbers<[1], [0], [0], [1], [0, 0, 1, 1], [], []>} : vector<128x8xf32>, vector<8x24xf32>, vector<128x24xf32> -> vector<128x24xf32>
    %c0_12 = arith.constant 0 : index
    %c0_13 = arith.constant 0 : index
    %11 = vector.load %arg8[%c0_12, %c0_13] : memref<1x24xf32, #tpu.memory_space<vmem>>, vector<1x24xf32>
    %12 = vector.broadcast %11 : vector<1x24xf32> to vector<128x24xf32>
    %13 = arith.addf %10, %12 : vector<128x24xf32>
    %14 = vector.shape_cast %13 : vector<128x24xf32> to vector<8x16x24xf32>
    %c0_14 = arith.constant 0 : index
    %c0_15 = arith.constant 0 : index
    %c0_16 = arith.constant 0 : index
    %15 = vector.load %arg19[%c0_14, %c0_15, %c0_16] : memref<8x16x24xf32, #tpu.memory_space<vmem>>, vector<8x16x24xf32>
    tpu.vector_store %arg19[%c0_14, %c0_15, %c0_16], %14 {strides = array<i32>} : memref<8x16x24xf32, #tpu.memory_space<vmem>>, vector<8x16x24xf32>,
    %c0_17 = arith.constant 0 : index
    %c0_18 = arith.constant 0 : index
    %16 = vector.load %arg3[%c0_17, %c0_18] : memref<8x24xf32, #tpu.memory_space<vmem>>, vector<8x24xf32>
    %c0_19 = arith.constant 0 : index
    %c0_20 = arith.constant 0 : index
    %17 = vector.load %arg5[%c0_19, %c0_20] : memref<1x24xf32, #tpu.memory_space<vmem>>, vector<1x24xf32>
    %c0_21 = arith.constant 0 : index
    %c0_22 = arith.constant 0 : index
    %18 = vector.load %arg7[%c0_21, %c0_22] : memref<8x24xf32, #tpu.memory_space<vmem>>, vector<8x24xf32>
    %c0_23 = arith.constant 0 : index
    %c0_24 = arith.constant 0 : index
    %19 = vector.load %arg9[%c0_23, %c0_24] : memref<1x24xf32, #tpu.memory_space<vmem>>, vector<1x24xf32>
    %c0_25 = arith.constant 0 : index
    %c0_26 = arith.constant 0 : index
    %20 = vector.load %arg12[%c0_25, %c0_26] : memref<8x24xf32, #tpu.memory_space<vmem>>, vector<8x24xf32>
    %c0_27 = arith.constant 0 : index
    %c0_28 = arith.constant 0 : index
    %21 = vector.load %arg14[%c0_27, %c0_28] : memref<1x24xf32, #tpu.memory_space<vmem>>, vector<1x24xf32>
    %cst_29 = arith.constant 0.000000e+00 : f32
    %22 = vector.broadcast %cst_29 : f32 to vector<16x8xf32>
    %c0_i32 = arith.constant 0 : i32
    %23 = arith.index_cast %c0_i32 : i32 to index
    %c0_30 = arith.constant 0 : index
    %c0_31 = arith.constant 0 : index
    %24 = vector.load %arg18[%23, %c0_30, %c0_31] : memref<8x16x24xf32, #tpu.memory_space<vmem>>, vector<1x16x24xf32>
    %25 = vector.shape_cast %24 : vector<1x16x24xf32> to vector<16x24xf32>
    %cst_32 = arith.constant dense<0.000000e+00> : vector<16x24xf32>
    %26 = tpu.matmul %22, %16, %cst_32 {dimension_numbers = #tpu.dot_dimension_numbers<[1], [0], [0], [1], [0, 0, 1, 1], [], []>} : vector<16x8xf32>, vector<8x24xf32>, vector<16x24xf32> -> vector<16x24xf32>
    %27 = vector.broadcast %17 : vector<1x24xf32> to vector<16x24xf32>
    %28 = arith.addf %26, %27 : vector<16x24xf32>
    %29 = vector.extract_strided_slice %25 {offsets = [0, 0], sizes = [16, 8], strides = [1, 1]} : vector<16x24xf32> to vector<16x8xf32>
    %30 = vector.extract_strided_slice %28 {offsets = [0, 0], sizes = [16, 8], strides = [1, 1]} : vector<16x24xf32> to vector<16x8xf32>
    %31 = arith.addf %29, %30 : vector<16x8xf32>
    %32 = arith.negf %31 : vector<16x8xf32>
    %33 = math.exp %32 : vector<16x8xf32>
    %cst_33 = arith.constant 1.000000e+00 : f32
    %34 = vector.broadcast %cst_33 : f32 to vector<16x8xf32>
    %35 = arith.addf %34, %33 : vector<16x8xf32>
    %36 = arith.divf %34, %35 : vector<16x8xf32>
    %37 = vector.extract_strided_slice %25 {offsets = [0, 8], sizes = [16, 8], strides = [1, 1]} : vector<16x24xf32> to vector<16x8xf32>
    %38 = vector.extract_strided_slice %28 {offsets = [0, 8], sizes = [16, 8], strides = [1, 1]} : vector<16x24xf32> to vector<16x8xf32>
    %39 = arith.addf %37, %38 : vector<16x8xf32>
    %40 = arith.negf %39 : vector<16x8xf32>
    %41 = math.exp %40 : vector<16x8xf32>
    %cst_34 = arith.constant 1.000000e+00 : f32
    %42 = vector.broadcast %cst_34 : f32 to vector<16x8xf32>
    %43 = arith.addf %42, %41 : vector<16x8xf32>
    %44 = arith.divf %42, %43 : vector<16x8xf32>
    %45 = vector.extract_strided_slice %25 {offsets = [0, 16], sizes = [16, 8], strides = [1, 1]} : vector<16x24xf32> to vector<16x8xf32>
    %46 = vector.extract_strided_slice %28 {offsets = [0, 16], sizes = [16, 8], strides = [1, 1]} : vector<16x24xf32> to vector<16x8xf32>
    %47 = arith.mulf %36, %46 : vector<16x8xf32>
    %48 = arith.addf %45, %47 : vector<16x8xf32>
    %49 = math.tanh %48 : vector<16x8xf32>
    %cst_35 = arith.constant 1.000000e+00 : f32
    %50 = vector.broadcast %cst_35 : f32 to vector<16x8xf32>
    %51 = arith.subf %50, %44 : vector<16x8xf32>
    %52 = arith.mulf %51, %49 : vector<16x8xf32>
    %53 = arith.mulf %44, %22 : vector<16x8xf32>
    %54 = arith.addf %52, %53 : vector<16x8xf32>
    %55 = arith.index_cast %c0_i32 : i32 to index
    %c0_36 = arith.constant 0 : index
    %c0_37 = arith.constant 0 : index
    %56 = vector.load %arg21[%55, %c0_36, %c0_37] : memref<8x16x8xf32, #tpu.memory_space<vmem>>, vector<1x16x8xf32>
    %57 = vector.shape_cast %56 : vector<1x16x8xf32> to vector<16x8xf32>
    %58 = vector.shape_cast %54 : vector<16x8xf32> to vector<1x16x8xf32>
    tpu.vector_store %arg21[%55, %c0_36, %c0_37], %58 {strides = array<i32>} : memref<8x16x8xf32, #tpu.memory_space<vmem>>, vector<1x16x8xf32>,
    %c7_i32 = arith.constant 7 : i32
    %59 = arith.subi %c7_i32, %c0_i32 : i32
    %60 = arith.index_cast %59 : i32 to index
    %c0_38 = arith.constant 0 : index
    %c0_39 = arith.constant 0 : index
    %61 = vector.load %arg19[%60, %c0_38, %c0_39] : memref<8x16x24xf32, #tpu.memory_space<vmem>>, vector<1x16x24xf32>
    %62 = vector.shape_cast %61 : vector<1x16x24xf32> to vector<16x24xf32>
    %cst_40 = arith.constant dense<0.000000e+00> : vector<16x24xf32>
    %63 = tpu.matmul %22, %18, %cst_40 {dimension_numbers = #tpu.dot_dimension_numbers<[1], [0], [0], [1], [0, 0, 1, 1], [], []>} : vector<16x8xf32>, vector<8x24xf32>, vector<16x24xf32> -> vector<16x24xf32>
    %64 = vector.broadcast %19 : vector<1x24xf32> to vector<16x24xf32>
    %65 = arith.addf %63, %64 : vector<16x24xf32>
    %66 = vector.extract_strided_slice %62 {offsets = [0, 0], sizes = [16, 8], strides = [1, 1]} : vector<16x24xf32> to vector<16x8xf32>
    %67 = vector.extract_strided_slice %65 {offsets = [0, 0], sizes = [16, 8], strides = [1, 1]} : vector<16x24xf32> to vector<16x8xf32>
    %68 = arith.addf %66, %67 : vector<16x8xf32>
    %69 = arith.negf %68 : vector<16x8xf32>
    %70 = math.exp %69 : vector<16x8xf32>
    %cst_41 = arith.constant 1.000000e+00 : f32
    %71 = vector.broadcast %cst_41 : f32 to vector<16x8xf32>
    %72 = arith.addf %71, %70 : vector<16x8xf32>
    %73 = arith.divf %71, %72 : vector<16x8xf32>
    %74 = vector.extract_strided_slice %62 {offsets = [0, 8], sizes = [16, 8], strides = [1, 1]} : vector<16x24xf32> to vector<16x8xf32>
    %75 = vector.extract_strided_slice %65 {offsets = [0, 8], sizes = [16, 8], strides = [1, 1]} : vector<16x24xf32> to vector<16x8xf32>
    %76 = arith.addf %74, %75 : vector<16x8xf32>
    %77 = arith.negf %76 : vector<16x8xf32>
    %78 = math.exp %77 : vector<16x8xf32>
    %cst_42 = arith.constant 1.000000e+00 : f32
    %79 = vector.broadcast %cst_42 : f32 to vector<16x8xf32>
    %80 = arith.addf %79, %78 : vector<16x8xf32>
    %81 = arith.divf %79, %80 : vector<16x8xf32>
    %82 = vector.extract_strided_slice %62 {offsets = [0, 16], sizes = [16, 8], strides = [1, 1]} : vector<16x24xf32> to vector<16x8xf32>
    %83 = vector.extract_strided_slice %65 {offsets = [0, 16], sizes = [16, 8], strides = [1, 1]} : vector<16x24xf32> to vector<16x8xf32>
    %84 = arith.mulf %73, %83 : vector<16x8xf32>
    %85 = arith.addf %82, %84 : vector<16x8xf32>
    %86 = math.tanh %85 : vector<16x8xf32>
    %cst_43 = arith.constant 1.000000e+00 : f32
    %87 = vector.broadcast %cst_43 : f32 to vector<16x8xf32>
    %88 = arith.subf %87, %81 : vector<16x8xf32>
    %89 = arith.mulf %88, %86 : vector<16x8xf32>
    %90 = arith.mulf %81, %22 : vector<16x8xf32>
    %91 = arith.addf %89, %90 : vector<16x8xf32>
    %92 = arith.index_cast %59 : i32 to index
    %c0_44 = arith.constant 0 : index
    %c0_45 = arith.constant 0 : index
    %93 = vector.load %arg22[%92, %c0_44, %c0_45] : memref<8x16x8xf32, #tpu.memory_space<vmem>>, vector<1x16x8xf32>
    %94 = vector.shape_cast %93 : vector<1x16x8xf32> to vector<16x8xf32>
    %95 = vector.shape_cast %91 : vector<16x8xf32> to vector<1x16x8xf32>
    tpu.vector_store %arg22[%92, %c0_44, %c0_45], %95 {strides = array<i32>} : memref<8x16x8xf32, #tpu.memory_space<vmem>>, vector<1x16x8xf32>,
    %c1_i32 = arith.constant 1 : i32
    %96 = arith.index_cast %c1_i32 : i32 to index
    %c0_46 = arith.constant 0 : index
    %c0_47 = arith.constant 0 : index
    %97 = vector.load %arg18[%96, %c0_46, %c0_47] : memref<8x16x24xf32, #tpu.memory_space<vmem>>, vector<1x16x24xf32>
    %98 = vector.shape_cast %97 : vector<1x16x24xf32> to vector<16x24xf32>
    %cst_48 = arith.constant dense<0.000000e+00> : vector<16x24xf32>
    %99 = tpu.matmul %54, %16, %cst_48 {dimension_numbers = #tpu.dot_dimension_numbers<[1], [0], [0], [1], [0, 0, 1, 1], [], []>} : vector<16x8xf32>, vector<8x24xf32>, vector<16x24xf32> -> vector<16x24xf32>
    %100 = vector.broadcast %17 : vector<1x24xf32> to vector<16x24xf32>
    %101 = arith.addf %99, %100 : vector<16x24xf32>
    %102 = vector.extract_strided_slice %98 {offsets = [0, 0], sizes = [16, 8], strides = [1, 1]} : vector<16x24xf32> to vector<16x8xf32>
    %103 = vector.extract_strided_slice %101 {offsets = [0, 0], sizes = [16, 8], strides = [1, 1]} : vector<16x24xf32> to vector<16x8xf32>
    %104 = arith.addf %102, %103 : vector<16x8xf32>
    %105 = arith.negf %104 : vector<16x8xf32>
    %106 = math.exp %105 : vector<16x8xf32>
    %cst_49 = arith.constant 1.000000e+00 : f32
    %107 = vector.broadcast %cst_49 : f32 to vector<16x8xf32>
    %108 = arith.addf %107, %106 : vector<16x8xf32>
    %109 = arith.divf %107, %108 : vector<16x8xf32>
    %110 = vector.extract_strided_slice %98 {offsets = [0, 8], sizes = [16, 8], strides = [1, 1]} : vector<16x24xf32> to vector<16x8xf32>
    %111 = vector.extract_strided_slice %101 {offsets = [0, 8], sizes = [16, 8], strides = [1, 1]} : vector<16x24xf32> to vector<16x8xf32>
    %112 = arith.addf %110, %111 : vector<16x8xf32>
    %113 = arith.negf %112 : vector<16x8xf32>
    %114 = math.exp %113 : vector<16x8xf32>
    %cst_50 = arith.constant 1.000000e+00 : f32
    %115 = vector.broadcast %cst_50 : f32 to vector<16x8xf32>
    %116 = arith.addf %115, %114 : vector<16x8xf32>
    %117 = arith.divf %115, %116 : vector<16x8xf32>
    %118 = vector.extract_strided_slice %98 {offsets = [0, 16], sizes = [16, 8], strides = [1, 1]} : vector<16x24xf32> to vector<16x8xf32>
    %119 = vector.extract_strided_slice %101 {offsets = [0, 16], sizes = [16, 8], strides = [1, 1]} : vector<16x24xf32> to vector<16x8xf32>
    %120 = arith.mulf %109, %119 : vector<16x8xf32>
    %121 = arith.addf %118, %120 : vector<16x8xf32>
    %122 = math.tanh %121 : vector<16x8xf32>
    %cst_51 = arith.constant 1.000000e+00 : f32
    %123 = vector.broadcast %cst_51 : f32 to vector<16x8xf32>
    %124 = arith.subf %123, %117 : vector<16x8xf32>
    %125 = arith.mulf %124, %122 : vector<16x8xf32>
    %126 = arith.mulf %117, %54 : vector<16x8xf32>
    %127 = arith.addf %125, %126 : vector<16x8xf32>
    %128 = arith.index_cast %c1_i32 : i32 to index
    %c0_52 = arith.constant 0 : index
    %c0_53 = arith.constant 0 : index
    %129 = vector.load %arg21[%128, %c0_52, %c0_53] : memref<8x16x8xf32, #tpu.memory_space<vmem>>, vector<1x16x8xf32>
    %130 = vector.shape_cast %129 : vector<1x16x8xf32> to vector<16x8xf32>
    %131 = vector.shape_cast %127 : vector<16x8xf32> to vector<1x16x8xf32>
    tpu.vector_store %arg21[%128, %c0_52, %c0_53], %131 {strides = array<i32>} : memref<8x16x8xf32, #tpu.memory_space<vmem>>, vector<1x16x8xf32>,
    %c7_i32_54 = arith.constant 7 : i32
    %132 = arith.subi %c7_i32_54, %c1_i32 : i32
    %133 = arith.index_cast %132 : i32 to index
    %c0_55 = arith.constant 0 : index
    %c0_56 = arith.constant 0 : index
    %134 = vector.load %arg19[%133, %c0_55, %c0_56] : memref<8x16x24xf32, #tpu.memory_space<vmem>>, vector<1x16x24xf32>
    %135 = vector.shape_cast %134 : vector<1x16x24xf32> to vector<16x24xf32>
    %cst_57 = arith.constant dense<0.000000e+00> : vector<16x24xf32>
    %136 = tpu.matmul %91, %18, %cst_57 {dimension_numbers = #tpu.dot_dimension_numbers<[1], [0], [0], [1], [0, 0, 1, 1], [], []>} : vector<16x8xf32>, vector<8x24xf32>, vector<16x24xf32> -> vector<16x24xf32>
    %137 = vector.broadcast %19 : vector<1x24xf32> to vector<16x24xf32>
    %138 = arith.addf %136, %137 : vector<16x24xf32>
    %139 = vector.extract_strided_slice %135 {offsets = [0, 0], sizes = [16, 8], strides = [1, 1]} : vector<16x24xf32> to vector<16x8xf32>
    %140 = vector.extract_strided_slice %138 {offsets = [0, 0], sizes = [16, 8], strides = [1, 1]} : vector<16x24xf32> to vector<16x8xf32>
    %141 = arith.addf %139, %140 : vector<16x8xf32>
    %142 = arith.negf %141 : vector<16x8xf32>
    %143 = math.exp %142 : vector<16x8xf32>
    %cst_58 = arith.constant 1.000000e+00 : f32
    %144 = vector.broadcast %cst_58 : f32 to vector<16x8xf32>
    %145 = arith.addf %144, %143 : vector<16x8xf32>
    %146 = arith.divf %144, %145 : vector<16x8xf32>
    %147 = vector.extract_strided_slice %135 {offsets = [0, 8], sizes = [16, 8], strides = [1, 1]} : vector<16x24xf32> to vector<16x8xf32>
    %148 = vector.extract_strided_slice %138 {offsets = [0, 8], sizes = [16, 8], strides = [1, 1]} : vector<16x24xf32> to vector<16x8xf32>
    %149 = arith.addf %147, %148 : vector<16x8xf32>
    %150 = arith.negf %149 : vector<16x8xf32>
    %151 = math.exp %150 : vector<16x8xf32>
    %cst_59 = arith.constant 1.000000e+00 : f32
    %152 = vector.broadcast %cst_59 : f32 to vector<16x8xf32>
    %153 = arith.addf %152, %151 : vector<16x8xf32>
    %154 = arith.divf %152, %153 : vector<16x8xf32>
    %155 = vector.extract_strided_slice %135 {offsets = [0, 16], sizes = [16, 8], strides = [1, 1]} : vector<16x24xf32> to vector<16x8xf32>
    %156 = vector.extract_strided_slice %138 {offsets = [0, 16], sizes = [16, 8], strides = [1, 1]} : vector<16x24xf32> to vector<16x8xf32>
    %157 = arith.mulf %146, %156 : vector<16x8xf32>
    %158 = arith.addf %155, %157 : vector<16x8xf32>
    %159 = math.tanh %158 : vector<16x8xf32>
    %cst_60 = arith.constant 1.000000e+00 : f32
    %160 = vector.broadcast %cst_60 : f32 to vector<16x8xf32>
    %161 = arith.subf %160, %154 : vector<16x8xf32>
    %162 = arith.mulf %161, %159 : vector<16x8xf32>
    %163 = arith.mulf %154, %91 : vector<16x8xf32>
    %164 = arith.addf %162, %163 : vector<16x8xf32>
    %165 = arith.index_cast %132 : i32 to index
    %c0_61 = arith.constant 0 : index
    %c0_62 = arith.constant 0 : index
    %166 = vector.load %arg22[%165, %c0_61, %c0_62] : memref<8x16x8xf32, #tpu.memory_space<vmem>>, vector<1x16x8xf32>
    %167 = vector.shape_cast %166 : vector<1x16x8xf32> to vector<16x8xf32>
    %168 = vector.shape_cast %164 : vector<16x8xf32> to vector<1x16x8xf32>
    tpu.vector_store %arg22[%165, %c0_61, %c0_62], %168 {strides = array<i32>} : memref<8x16x8xf32, #tpu.memory_space<vmem>>, vector<1x16x8xf32>,
    %c2_i32 = arith.constant 2 : i32
    %169 = arith.index_cast %c2_i32 : i32 to index
    %c0_63 = arith.constant 0 : index
    %c0_64 = arith.constant 0 : index
    %170 = vector.load %arg18[%169, %c0_63, %c0_64] : memref<8x16x24xf32, #tpu.memory_space<vmem>>, vector<1x16x24xf32>
    %171 = vector.shape_cast %170 : vector<1x16x24xf32> to vector<16x24xf32>
    %cst_65 = arith.constant dense<0.000000e+00> : vector<16x24xf32>
    %172 = tpu.matmul %127, %16, %cst_65 {dimension_numbers = #tpu.dot_dimension_numbers<[1], [0], [0], [1], [0, 0, 1, 1], [], []>} : vector<16x8xf32>, vector<8x24xf32>, vector<16x24xf32> -> vector<16x24xf32>
    %173 = vector.broadcast %17 : vector<1x24xf32> to vector<16x24xf32>
    %174 = arith.addf %172, %173 : vector<16x24xf32>
    %175 = vector.extract_strided_slice %171 {offsets = [0, 0], sizes = [16, 8], strides = [1, 1]} : vector<16x24xf32> to vector<16x8xf32>
    %176 = vector.extract_strided_slice %174 {offsets = [0, 0], sizes = [16, 8], strides = [1, 1]} : vector<16x24xf32> to vector<16x8xf32>
    %177 = arith.addf %175, %176 : vector<16x8xf32>
    %178 = arith.negf %177 : vector<16x8xf32>
    %179 = math.exp %178 : vector<16x8xf32>
    %cst_66 = arith.constant 1.000000e+00 : f32
    %180 = vector.broadcast %cst_66 : f32 to vector<16x8xf32>
    %181 = arith.addf %180, %179 : vector<16x8xf32>
    %182 = arith.divf %180, %181 : vector<16x8xf32>
    %183 = vector.extract_strided_slice %171 {offsets = [0, 8], sizes = [16, 8], strides = [1, 1]} : vector<16x24xf32> to vector<16x8xf32>
    %184 = vector.extract_strided_slice %174 {offsets = [0, 8], sizes = [16, 8], strides = [1, 1]} : vector<16x24xf32> to vector<16x8xf32>
    %185 = arith.addf %183, %184 : vector<16x8xf32>
    %186 = arith.negf %185 : vector<16x8xf32>
    %187 = math.exp %186 : vector<16x8xf32>
    %cst_67 = arith.constant 1.000000e+00 : f32
    %188 = vector.broadcast %cst_67 : f32 to vector<16x8xf32>
    %189 = arith.addf %188, %187 : vector<16x8xf32>
    %190 = arith.divf %188, %189 : vector<16x8xf32>
    %191 = vector.extract_strided_slice %171 {offsets = [0, 16], sizes = [16, 8], strides = [1, 1]} : vector<16x24xf32> to vector<16x8xf32>
    %192 = vector.extract_strided_slice %174 {offsets = [0, 16], sizes = [16, 8], strides = [1, 1]} : vector<16x24xf32> to vector<16x8xf32>
    %193 = arith.mulf %182, %192 : vector<16x8xf32>
    %194 = arith.addf %191, %193 : vector<16x8xf32>
    %195 = math.tanh %194 : vector<16x8xf32>
    %cst_68 = arith.constant 1.000000e+00 : f32
    %196 = vector.broadcast %cst_68 : f32 to vector<16x8xf32>
    %197 = arith.subf %196, %190 : vector<16x8xf32>
    %198 = arith.mulf %197, %195 : vector<16x8xf32>
    %199 = arith.mulf %190, %127 : vector<16x8xf32>
    %200 = arith.addf %198, %199 : vector<16x8xf32>
    %201 = arith.index_cast %c2_i32 : i32 to index
    %c0_69 = arith.constant 0 : index
    %c0_70 = arith.constant 0 : index
    %202 = vector.load %arg21[%201, %c0_69, %c0_70] : memref<8x16x8xf32, #tpu.memory_space<vmem>>, vector<1x16x8xf32>
    %203 = vector.shape_cast %202 : vector<1x16x8xf32> to vector<16x8xf32>
    %204 = vector.shape_cast %200 : vector<16x8xf32> to vector<1x16x8xf32>
    tpu.vector_store %arg21[%201, %c0_69, %c0_70], %204 {strides = array<i32>} : memref<8x16x8xf32, #tpu.memory_space<vmem>>, vector<1x16x8xf32>,
    %c7_i32_71 = arith.constant 7 : i32
    %205 = arith.subi %c7_i32_71, %c2_i32 : i32
    %206 = arith.index_cast %205 : i32 to index
    %c0_72 = arith.constant 0 : index
    %c0_73 = arith.constant 0 : index
    %207 = vector.load %arg19[%206, %c0_72, %c0_73] : memref<8x16x24xf32, #tpu.memory_space<vmem>>, vector<1x16x24xf32>
    %208 = vector.shape_cast %207 : vector<1x16x24xf32> to vector<16x24xf32>
    %cst_74 = arith.constant dense<0.000000e+00> : vector<16x24xf32>
    %209 = tpu.matmul %164, %18, %cst_74 {dimension_numbers = #tpu.dot_dimension_numbers<[1], [0], [0], [1], [0, 0, 1, 1], [], []>} : vector<16x8xf32>, vector<8x24xf32>, vector<16x24xf32> -> vector<16x24xf32>
    %210 = vector.broadcast %19 : vector<1x24xf32> to vector<16x24xf32>
    %211 = arith.addf %209, %210 : vector<16x24xf32>
    %212 = vector.extract_strided_slice %208 {offsets = [0, 0], sizes = [16, 8], strides = [1, 1]} : vector<16x24xf32> to vector<16x8xf32>
    %213 = vector.extract_strided_slice %211 {offsets = [0, 0], sizes = [16, 8], strides = [1, 1]} : vector<16x24xf32> to vector<16x8xf32>
    %214 = arith.addf %212, %213 : vector<16x8xf32>
    %215 = arith.negf %214 : vector<16x8xf32>
    %216 = math.exp %215 : vector<16x8xf32>
    %cst_75 = arith.constant 1.000000e+00 : f32
    %217 = vector.broadcast %cst_75 : f32 to vector<16x8xf32>
    %218 = arith.addf %217, %216 : vector<16x8xf32>
    %219 = arith.divf %217, %218 : vector<16x8xf32>
    %220 = vector.extract_strided_slice %208 {offsets = [0, 8], sizes = [16, 8], strides = [1, 1]} : vector<16x24xf32> to vector<16x8xf32>
    %221 = vector.extract_strided_slice %211 {offsets = [0, 8], sizes = [16, 8], strides = [1, 1]} : vector<16x24xf32> to vector<16x8xf32>
    %222 = arith.addf %220, %221 : vector<16x8xf32>
    %223 = arith.negf %222 : vector<16x8xf32>
    %224 = math.exp %223 : vector<16x8xf32>
    %cst_76 = arith.constant 1.000000e+00 : f32
    %225 = vector.broadcast %cst_76 : f32 to vector<16x8xf32>
    %226 = arith.addf %225, %224 : vector<16x8xf32>
    %227 = arith.divf %225, %226 : vector<16x8xf32>
    %228 = vector.extract_strided_slice %208 {offsets = [0, 16], sizes = [16, 8], strides = [1, 1]} : vector<16x24xf32> to vector<16x8xf32>
    %229 = vector.extract_strided_slice %211 {offsets = [0, 16], sizes = [16, 8], strides = [1, 1]} : vector<16x24xf32> to vector<16x8xf32>
    %230 = arith.mulf %219, %229 : vector<16x8xf32>
    %231 = arith.addf %228, %230 : vector<16x8xf32>
    %232 = math.tanh %231 : vector<16x8xf32>
    %cst_77 = arith.constant 1.000000e+00 : f32
    %233 = vector.broadcast %cst_77 : f32 to vector<16x8xf32>
    %234 = arith.subf %233, %227 : vector<16x8xf32>
    %235 = arith.mulf %234, %232 : vector<16x8xf32>
    %236 = arith.mulf %227, %164 : vector<16x8xf32>
    %237 = arith.addf %235, %236 : vector<16x8xf32>
    %238 = arith.index_cast %205 : i32 to index
    %c0_78 = arith.constant 0 : index
    %c0_79 = arith.constant 0 : index
    %239 = vector.load %arg22[%238, %c0_78, %c0_79] : memref<8x16x8xf32, #tpu.memory_space<vmem>>, vector<1x16x8xf32>
    %240 = vector.shape_cast %239 : vector<1x16x8xf32> to vector<16x8xf32>
    %241 = vector.shape_cast %237 : vector<16x8xf32> to vector<1x16x8xf32>
    tpu.vector_store %arg22[%238, %c0_78, %c0_79], %241 {strides = array<i32>} : memref<8x16x8xf32, #tpu.memory_space<vmem>>, vector<1x16x8xf32>,
    %c3_i32 = arith.constant 3 : i32
    %242 = arith.index_cast %c3_i32 : i32 to index
    %c0_80 = arith.constant 0 : index
    %c0_81 = arith.constant 0 : index
    %243 = vector.load %arg18[%242, %c0_80, %c0_81] : memref<8x16x24xf32, #tpu.memory_space<vmem>>, vector<1x16x24xf32>
    %244 = vector.shape_cast %243 : vector<1x16x24xf32> to vector<16x24xf32>
    %cst_82 = arith.constant dense<0.000000e+00> : vector<16x24xf32>
    %245 = tpu.matmul %200, %16, %cst_82 {dimension_numbers = #tpu.dot_dimension_numbers<[1], [0], [0], [1], [0, 0, 1, 1], [], []>} : vector<16x8xf32>, vector<8x24xf32>, vector<16x24xf32> -> vector<16x24xf32>
    %246 = vector.broadcast %17 : vector<1x24xf32> to vector<16x24xf32>
    %247 = arith.addf %245, %246 : vector<16x24xf32>
    %248 = vector.extract_strided_slice %244 {offsets = [0, 0], sizes = [16, 8], strides = [1, 1]} : vector<16x24xf32> to vector<16x8xf32>
    %249 = vector.extract_strided_slice %247 {offsets = [0, 0], sizes = [16, 8], strides = [1, 1]} : vector<16x24xf32> to vector<16x8xf32>
    %250 = arith.addf %248, %249 : vector<16x8xf32>
    %251 = arith.negf %250 : vector<16x8xf32>
    %252 = math.exp %251 : vector<16x8xf32>
    %cst_83 = arith.constant 1.000000e+00 : f32
    %253 = vector.broadcast %cst_83 : f32 to vector<16x8xf32>
    %254 = arith.addf %253, %252 : vector<16x8xf32>
    %255 = arith.divf %253, %254 : vector<16x8xf32>
    %256 = vector.extract_strided_slice %244 {offsets = [0, 8], sizes = [16, 8], strides = [1, 1]} : vector<16x24xf32> to vector<16x8xf32>
    %257 = vector.extract_strided_slice %247 {offsets = [0, 8], sizes = [16, 8], strides = [1, 1]} : vector<16x24xf32> to vector<16x8xf32>
    %258 = arith.addf %256, %257 : vector<16x8xf32>
    %259 = arith.negf %258 : vector<16x8xf32>
    %260 = math.exp %259 : vector<16x8xf32>
    %cst_84 = arith.constant 1.000000e+00 : f32
    %261 = vector.broadcast %cst_84 : f32 to vector<16x8xf32>
    %262 = arith.addf %261, %260 : vector<16x8xf32>
    %263 = arith.divf %261, %262 : vector<16x8xf32>
    %264 = vector.extract_strided_slice %244 {offsets = [0, 16], sizes = [16, 8], strides = [1, 1]} : vector<16x24xf32> to vector<16x8xf32>
    %265 = vector.extract_strided_slice %247 {offsets = [0, 16], sizes = [16, 8], strides = [1, 1]} : vector<16x24xf32> to vector<16x8xf32>
    %266 = arith.mulf %255, %265 : vector<16x8xf32>
    %267 = arith.addf %264, %266 : vector<16x8xf32>
    %268 = math.tanh %267 : vector<16x8xf32>
    %cst_85 = arith.constant 1.000000e+00 : f32
    %269 = vector.broadcast %cst_85 : f32 to vector<16x8xf32>
    %270 = arith.subf %269, %263 : vector<16x8xf32>
    %271 = arith.mulf %270, %268 : vector<16x8xf32>
    %272 = arith.mulf %263, %200 : vector<16x8xf32>
    %273 = arith.addf %271, %272 : vector<16x8xf32>
    %274 = arith.index_cast %c3_i32 : i32 to index
    %c0_86 = arith.constant 0 : index
    %c0_87 = arith.constant 0 : index
    %275 = vector.load %arg21[%274, %c0_86, %c0_87] : memref<8x16x8xf32, #tpu.memory_space<vmem>>, vector<1x16x8xf32>
    %276 = vector.shape_cast %275 : vector<1x16x8xf32> to vector<16x8xf32>
    %277 = vector.shape_cast %273 : vector<16x8xf32> to vector<1x16x8xf32>
    tpu.vector_store %arg21[%274, %c0_86, %c0_87], %277 {strides = array<i32>} : memref<8x16x8xf32, #tpu.memory_space<vmem>>, vector<1x16x8xf32>,
    %c7_i32_88 = arith.constant 7 : i32
    %278 = arith.subi %c7_i32_88, %c3_i32 : i32
    %279 = arith.index_cast %278 : i32 to index
    %c0_89 = arith.constant 0 : index
    %c0_90 = arith.constant 0 : index
    %280 = vector.load %arg19[%279, %c0_89, %c0_90] : memref<8x16x24xf32, #tpu.memory_space<vmem>>, vector<1x16x24xf32>
    %281 = vector.shape_cast %280 : vector<1x16x24xf32> to vector<16x24xf32>
    %cst_91 = arith.constant dense<0.000000e+00> : vector<16x24xf32>
    %282 = tpu.matmul %237, %18, %cst_91 {dimension_numbers = #tpu.dot_dimension_numbers<[1], [0], [0], [1], [0, 0, 1, 1], [], []>} : vector<16x8xf32>, vector<8x24xf32>, vector<16x24xf32> -> vector<16x24xf32>
    %283 = vector.broadcast %19 : vector<1x24xf32> to vector<16x24xf32>
    %284 = arith.addf %282, %283 : vector<16x24xf32>
    %285 = vector.extract_strided_slice %281 {offsets = [0, 0], sizes = [16, 8], strides = [1, 1]} : vector<16x24xf32> to vector<16x8xf32>
    %286 = vector.extract_strided_slice %284 {offsets = [0, 0], sizes = [16, 8], strides = [1, 1]} : vector<16x24xf32> to vector<16x8xf32>
    %287 = arith.addf %285, %286 : vector<16x8xf32>
    %288 = arith.negf %287 : vector<16x8xf32>
    %289 = math.exp %288 : vector<16x8xf32>
    %cst_92 = arith.constant 1.000000e+00 : f32
    %290 = vector.broadcast %cst_92 : f32 to vector<16x8xf32>
    %291 = arith.addf %290, %289 : vector<16x8xf32>
    %292 = arith.divf %290, %291 : vector<16x8xf32>
    %293 = vector.extract_strided_slice %281 {offsets = [0, 8], sizes = [16, 8], strides = [1, 1]} : vector<16x24xf32> to vector<16x8xf32>
    %294 = vector.extract_strided_slice %284 {offsets = [0, 8], sizes = [16, 8], strides = [1, 1]} : vector<16x24xf32> to vector<16x8xf32>
    %295 = arith.addf %293, %294 : vector<16x8xf32>
    %296 = arith.negf %295 : vector<16x8xf32>
    %297 = math.exp %296 : vector<16x8xf32>
    %cst_93 = arith.constant 1.000000e+00 : f32
    %298 = vector.broadcast %cst_93 : f32 to vector<16x8xf32>
    %299 = arith.addf %298, %297 : vector<16x8xf32>
    %300 = arith.divf %298, %299 : vector<16x8xf32>
    %301 = vector.extract_strided_slice %281 {offsets = [0, 16], sizes = [16, 8], strides = [1, 1]} : vector<16x24xf32> to vector<16x8xf32>
    %302 = vector.extract_strided_slice %284 {offsets = [0, 16], sizes = [16, 8], strides = [1, 1]} : vector<16x24xf32> to vector<16x8xf32>
    %303 = arith.mulf %292, %302 : vector<16x8xf32>
    %304 = arith.addf %301, %303 : vector<16x8xf32>
    %305 = math.tanh %304 : vector<16x8xf32>
    %cst_94 = arith.constant 1.000000e+00 : f32
    %306 = vector.broadcast %cst_94 : f32 to vector<16x8xf32>
    %307 = arith.subf %306, %300 : vector<16x8xf32>
    %308 = arith.mulf %307, %305 : vector<16x8xf32>
    %309 = arith.mulf %300, %237 : vector<16x8xf32>
    %310 = arith.addf %308, %309 : vector<16x8xf32>
    %311 = arith.index_cast %278 : i32 to index
    %c0_95 = arith.constant 0 : index
    %c0_96 = arith.constant 0 : index
    %312 = vector.load %arg22[%311, %c0_95, %c0_96] : memref<8x16x8xf32, #tpu.memory_space<vmem>>, vector<1x16x8xf32>
    %313 = vector.shape_cast %312 : vector<1x16x8xf32> to vector<16x8xf32>
    %314 = vector.shape_cast %310 : vector<16x8xf32> to vector<1x16x8xf32>
    tpu.vector_store %arg22[%311, %c0_95, %c0_96], %314 {strides = array<i32>} : memref<8x16x8xf32, #tpu.memory_space<vmem>>, vector<1x16x8xf32>,
    %c4_i32 = arith.constant 4 : i32
    %315 = arith.index_cast %c4_i32 : i32 to index
    %c0_97 = arith.constant 0 : index
    %c0_98 = arith.constant 0 : index
    %316 = vector.load %arg18[%315, %c0_97, %c0_98] : memref<8x16x24xf32, #tpu.memory_space<vmem>>, vector<1x16x24xf32>
    %317 = vector.shape_cast %316 : vector<1x16x24xf32> to vector<16x24xf32>
    %cst_99 = arith.constant dense<0.000000e+00> : vector<16x24xf32>
    %318 = tpu.matmul %273, %16, %cst_99 {dimension_numbers = #tpu.dot_dimension_numbers<[1], [0], [0], [1], [0, 0, 1, 1], [], []>} : vector<16x8xf32>, vector<8x24xf32>, vector<16x24xf32> -> vector<16x24xf32>
    %319 = vector.broadcast %17 : vector<1x24xf32> to vector<16x24xf32>
    %320 = arith.addf %318, %319 : vector<16x24xf32>
    %321 = vector.extract_strided_slice %317 {offsets = [0, 0], sizes = [16, 8], strides = [1, 1]} : vector<16x24xf32> to vector<16x8xf32>
    %322 = vector.extract_strided_slice %320 {offsets = [0, 0], sizes = [16, 8], strides = [1, 1]} : vector<16x24xf32> to vector<16x8xf32>
    %323 = arith.addf %321, %322 : vector<16x8xf32>
    %324 = arith.negf %323 : vector<16x8xf32>
    %325 = math.exp %324 : vector<16x8xf32>
    %cst_100 = arith.constant 1.000000e+00 : f32
    %326 = vector.broadcast %cst_100 : f32 to vector<16x8xf32>
    %327 = arith.addf %326, %325 : vector<16x8xf32>
    %328 = arith.divf %326, %327 : vector<16x8xf32>
    %329 = vector.extract_strided_slice %317 {offsets = [0, 8], sizes = [16, 8], strides = [1, 1]} : vector<16x24xf32> to vector<16x8xf32>
    %330 = vector.extract_strided_slice %320 {offsets = [0, 8], sizes = [16, 8], strides = [1, 1]} : vector<16x24xf32> to vector<16x8xf32>
    %331 = arith.addf %329, %330 : vector<16x8xf32>
    %332 = arith.negf %331 : vector<16x8xf32>
    %333 = math.exp %332 : vector<16x8xf32>
    %cst_101 = arith.constant 1.000000e+00 : f32
    %334 = vector.broadcast %cst_101 : f32 to vector<16x8xf32>
    %335 = arith.addf %334, %333 : vector<16x8xf32>
    %336 = arith.divf %334, %335 : vector<16x8xf32>
    %337 = vector.extract_strided_slice %317 {offsets = [0, 16], sizes = [16, 8], strides = [1, 1]} : vector<16x24xf32> to vector<16x8xf32>
    %338 = vector.extract_strided_slice %320 {offsets = [0, 16], sizes = [16, 8], strides = [1, 1]} : vector<16x24xf32> to vector<16x8xf32>
    %339 = arith.mulf %328, %338 : vector<16x8xf32>
    %340 = arith.addf %337, %339 : vector<16x8xf32>
    %341 = math.tanh %340 : vector<16x8xf32>
    %cst_102 = arith.constant 1.000000e+00 : f32
    %342 = vector.broadcast %cst_102 : f32 to vector<16x8xf32>
    %343 = arith.subf %342, %336 : vector<16x8xf32>
    %344 = arith.mulf %343, %341 : vector<16x8xf32>
    %345 = arith.mulf %336, %273 : vector<16x8xf32>
    %346 = arith.addf %344, %345 : vector<16x8xf32>
    %347 = arith.index_cast %c4_i32 : i32 to index
    %c0_103 = arith.constant 0 : index
    %c0_104 = arith.constant 0 : index
    %348 = vector.load %arg21[%347, %c0_103, %c0_104] : memref<8x16x8xf32, #tpu.memory_space<vmem>>, vector<1x16x8xf32>
    %349 = vector.shape_cast %348 : vector<1x16x8xf32> to vector<16x8xf32>
    %350 = vector.shape_cast %346 : vector<16x8xf32> to vector<1x16x8xf32>
    tpu.vector_store %arg21[%347, %c0_103, %c0_104], %350 {strides = array<i32>} : memref<8x16x8xf32, #tpu.memory_space<vmem>>, vector<1x16x8xf32>,
    %c7_i32_105 = arith.constant 7 : i32
    %351 = arith.subi %c7_i32_105, %c4_i32 : i32
    %352 = arith.index_cast %351 : i32 to index
    %c0_106 = arith.constant 0 : index
    %c0_107 = arith.constant 0 : index
    %353 = vector.load %arg19[%352, %c0_106, %c0_107] : memref<8x16x24xf32, #tpu.memory_space<vmem>>, vector<1x16x24xf32>
    %354 = vector.shape_cast %353 : vector<1x16x24xf32> to vector<16x24xf32>
    %cst_108 = arith.constant dense<0.000000e+00> : vector<16x24xf32>
    %355 = tpu.matmul %310, %18, %cst_108 {dimension_numbers = #tpu.dot_dimension_numbers<[1], [0], [0], [1], [0, 0, 1, 1], [], []>} : vector<16x8xf32>, vector<8x24xf32>, vector<16x24xf32> -> vector<16x24xf32>
    %356 = vector.broadcast %19 : vector<1x24xf32> to vector<16x24xf32>
    %357 = arith.addf %355, %356 : vector<16x24xf32>
    %358 = vector.extract_strided_slice %354 {offsets = [0, 0], sizes = [16, 8], strides = [1, 1]} : vector<16x24xf32> to vector<16x8xf32>
    %359 = vector.extract_strided_slice %357 {offsets = [0, 0], sizes = [16, 8], strides = [1, 1]} : vector<16x24xf32> to vector<16x8xf32>
    %360 = arith.addf %358, %359 : vector<16x8xf32>
    %361 = arith.negf %360 : vector<16x8xf32>
    %362 = math.exp %361 : vector<16x8xf32>
    %cst_109 = arith.constant 1.000000e+00 : f32
    %363 = vector.broadcast %cst_109 : f32 to vector<16x8xf32>
    %364 = arith.addf %363, %362 : vector<16x8xf32>
    %365 = arith.divf %363, %364 : vector<16x8xf32>
    %366 = vector.extract_strided_slice %354 {offsets = [0, 8], sizes = [16, 8], strides = [1, 1]} : vector<16x24xf32> to vector<16x8xf32>
    %367 = vector.extract_strided_slice %357 {offsets = [0, 8], sizes = [16, 8], strides = [1, 1]} : vector<16x24xf32> to vector<16x8xf32>
    %368 = arith.addf %366, %367 : vector<16x8xf32>
    %369 = arith.negf %368 : vector<16x8xf32>
    %370 = math.exp %369 : vector<16x8xf32>
    %cst_110 = arith.constant 1.000000e+00 : f32
    %371 = vector.broadcast %cst_110 : f32 to vector<16x8xf32>
    %372 = arith.addf %371, %370 : vector<16x8xf32>
    %373 = arith.divf %371, %372 : vector<16x8xf32>
    %374 = vector.extract_strided_slice %354 {offsets = [0, 16], sizes = [16, 8], strides = [1, 1]} : vector<16x24xf32> to vector<16x8xf32>
    %375 = vector.extract_strided_slice %357 {offsets = [0, 16], sizes = [16, 8], strides = [1, 1]} : vector<16x24xf32> to vector<16x8xf32>
    %376 = arith.mulf %365, %375 : vector<16x8xf32>
    %377 = arith.addf %374, %376 : vector<16x8xf32>
    %378 = math.tanh %377 : vector<16x8xf32>
    %cst_111 = arith.constant 1.000000e+00 : f32
    %379 = vector.broadcast %cst_111 : f32 to vector<16x8xf32>
    %380 = arith.subf %379, %373 : vector<16x8xf32>
    %381 = arith.mulf %380, %378 : vector<16x8xf32>
    %382 = arith.mulf %373, %310 : vector<16x8xf32>
    %383 = arith.addf %381, %382 : vector<16x8xf32>
    %384 = arith.index_cast %351 : i32 to index
    %c0_112 = arith.constant 0 : index
    %c0_113 = arith.constant 0 : index
    %385 = vector.load %arg22[%384, %c0_112, %c0_113] : memref<8x16x8xf32, #tpu.memory_space<vmem>>, vector<1x16x8xf32>
    %386 = vector.shape_cast %385 : vector<1x16x8xf32> to vector<16x8xf32>
    %387 = vector.shape_cast %383 : vector<16x8xf32> to vector<1x16x8xf32>
    tpu.vector_store %arg22[%384, %c0_112, %c0_113], %387 {strides = array<i32>} : memref<8x16x8xf32, #tpu.memory_space<vmem>>, vector<1x16x8xf32>,
    %c5_i32 = arith.constant 5 : i32
    %388 = arith.index_cast %c5_i32 : i32 to index
    %c0_114 = arith.constant 0 : index
    %c0_115 = arith.constant 0 : index
    %389 = vector.load %arg18[%388, %c0_114, %c0_115] : memref<8x16x24xf32, #tpu.memory_space<vmem>>, vector<1x16x24xf32>
    %390 = vector.shape_cast %389 : vector<1x16x24xf32> to vector<16x24xf32>
    %cst_116 = arith.constant dense<0.000000e+00> : vector<16x24xf32>
    %391 = tpu.matmul %346, %16, %cst_116 {dimension_numbers = #tpu.dot_dimension_numbers<[1], [0], [0], [1], [0, 0, 1, 1], [], []>} : vector<16x8xf32>, vector<8x24xf32>, vector<16x24xf32> -> vector<16x24xf32>
    %392 = vector.broadcast %17 : vector<1x24xf32> to vector<16x24xf32>
    %393 = arith.addf %391, %392 : vector<16x24xf32>
    %394 = vector.extract_strided_slice %390 {offsets = [0, 0], sizes = [16, 8], strides = [1, 1]} : vector<16x24xf32> to vector<16x8xf32>
    %395 = vector.extract_strided_slice %393 {offsets = [0, 0], sizes = [16, 8], strides = [1, 1]} : vector<16x24xf32> to vector<16x8xf32>
    %396 = arith.addf %394, %395 : vector<16x8xf32>
    %397 = arith.negf %396 : vector<16x8xf32>
    %398 = math.exp %397 : vector<16x8xf32>
    %cst_117 = arith.constant 1.000000e+00 : f32
    %399 = vector.broadcast %cst_117 : f32 to vector<16x8xf32>
    %400 = arith.addf %399, %398 : vector<16x8xf32>
    %401 = arith.divf %399, %400 : vector<16x8xf32>
    %402 = vector.extract_strided_slice %390 {offsets = [0, 8], sizes = [16, 8], strides = [1, 1]} : vector<16x24xf32> to vector<16x8xf32>
    %403 = vector.extract_strided_slice %393 {offsets = [0, 8], sizes = [16, 8], strides = [1, 1]} : vector<16x24xf32> to vector<16x8xf32>
    %404 = arith.addf %402, %403 : vector<16x8xf32>
    %405 = arith.negf %404 : vector<16x8xf32>
    %406 = math.exp %405 : vector<16x8xf32>
    %cst_118 = arith.constant 1.000000e+00 : f32
    %407 = vector.broadcast %cst_118 : f32 to vector<16x8xf32>
    %408 = arith.addf %407, %406 : vector<16x8xf32>
    %409 = arith.divf %407, %408 : vector<16x8xf32>
    %410 = vector.extract_strided_slice %390 {offsets = [0, 16], sizes = [16, 8], strides = [1, 1]} : vector<16x24xf32> to vector<16x8xf32>
    %411 = vector.extract_strided_slice %393 {offsets = [0, 16], sizes = [16, 8], strides = [1, 1]} : vector<16x24xf32> to vector<16x8xf32>
    %412 = arith.mulf %401, %411 : vector<16x8xf32>
    %413 = arith.addf %410, %412 : vector<16x8xf32>
    %414 = math.tanh %413 : vector<16x8xf32>
    %cst_119 = arith.constant 1.000000e+00 : f32
    %415 = vector.broadcast %cst_119 : f32 to vector<16x8xf32>
    %416 = arith.subf %415, %409 : vector<16x8xf32>
    %417 = arith.mulf %416, %414 : vector<16x8xf32>
    %418 = arith.mulf %409, %346 : vector<16x8xf32>
    %419 = arith.addf %417, %418 : vector<16x8xf32>
    %420 = arith.index_cast %c5_i32 : i32 to index
    %c0_120 = arith.constant 0 : index
    %c0_121 = arith.constant 0 : index
    %421 = vector.load %arg21[%420, %c0_120, %c0_121] : memref<8x16x8xf32, #tpu.memory_space<vmem>>, vector<1x16x8xf32>
    %422 = vector.shape_cast %421 : vector<1x16x8xf32> to vector<16x8xf32>
    %423 = vector.shape_cast %419 : vector<16x8xf32> to vector<1x16x8xf32>
    tpu.vector_store %arg21[%420, %c0_120, %c0_121], %423 {strides = array<i32>} : memref<8x16x8xf32, #tpu.memory_space<vmem>>, vector<1x16x8xf32>,
    %c7_i32_122 = arith.constant 7 : i32
    %424 = arith.subi %c7_i32_122, %c5_i32 : i32
    %425 = arith.index_cast %424 : i32 to index
    %c0_123 = arith.constant 0 : index
    %c0_124 = arith.constant 0 : index
    %426 = vector.load %arg19[%425, %c0_123, %c0_124] : memref<8x16x24xf32, #tpu.memory_space<vmem>>, vector<1x16x24xf32>
    %427 = vector.shape_cast %426 : vector<1x16x24xf32> to vector<16x24xf32>
    %cst_125 = arith.constant dense<0.000000e+00> : vector<16x24xf32>
    %428 = tpu.matmul %383, %18, %cst_125 {dimension_numbers = #tpu.dot_dimension_numbers<[1], [0], [0], [1], [0, 0, 1, 1], [], []>} : vector<16x8xf32>, vector<8x24xf32>, vector<16x24xf32> -> vector<16x24xf32>
    %429 = vector.broadcast %19 : vector<1x24xf32> to vector<16x24xf32>
    %430 = arith.addf %428, %429 : vector<16x24xf32>
    %431 = vector.extract_strided_slice %427 {offsets = [0, 0], sizes = [16, 8], strides = [1, 1]} : vector<16x24xf32> to vector<16x8xf32>
    %432 = vector.extract_strided_slice %430 {offsets = [0, 0], sizes = [16, 8], strides = [1, 1]} : vector<16x24xf32> to vector<16x8xf32>
    %433 = arith.addf %431, %432 : vector<16x8xf32>
    %434 = arith.negf %433 : vector<16x8xf32>
    %435 = math.exp %434 : vector<16x8xf32>
    %cst_126 = arith.constant 1.000000e+00 : f32
    %436 = vector.broadcast %cst_126 : f32 to vector<16x8xf32>
    %437 = arith.addf %436, %435 : vector<16x8xf32>
    %438 = arith.divf %436, %437 : vector<16x8xf32>
    %439 = vector.extract_strided_slice %427 {offsets = [0, 8], sizes = [16, 8], strides = [1, 1]} : vector<16x24xf32> to vector<16x8xf32>
    %440 = vector.extract_strided_slice %430 {offsets = [0, 8], sizes = [16, 8], strides = [1, 1]} : vector<16x24xf32> to vector<16x8xf32>
    %441 = arith.addf %439, %440 : vector<16x8xf32>
    %442 = arith.negf %441 : vector<16x8xf32>
    %443 = math.exp %442 : vector<16x8xf32>
    %cst_127 = arith.constant 1.000000e+00 : f32
    %444 = vector.broadcast %cst_127 : f32 to vector<16x8xf32>
    %445 = arith.addf %444, %443 : vector<16x8xf32>
    %446 = arith.divf %444, %445 : vector<16x8xf32>
    %447 = vector.extract_strided_slice %427 {offsets = [0, 16], sizes = [16, 8], strides = [1, 1]} : vector<16x24xf32> to vector<16x8xf32>
    %448 = vector.extract_strided_slice %430 {offsets = [0, 16], sizes = [16, 8], strides = [1, 1]} : vector<16x24xf32> to vector<16x8xf32>
    %449 = arith.mulf %438, %448 : vector<16x8xf32>
    %450 = arith.addf %447, %449 : vector<16x8xf32>
    %451 = math.tanh %450 : vector<16x8xf32>
    %cst_128 = arith.constant 1.000000e+00 : f32
    %452 = vector.broadcast %cst_128 : f32 to vector<16x8xf32>
    %453 = arith.subf %452, %446 : vector<16x8xf32>
    %454 = arith.mulf %453, %451 : vector<16x8xf32>
    %455 = arith.mulf %446, %383 : vector<16x8xf32>
    %456 = arith.addf %454, %455 : vector<16x8xf32>
    %457 = arith.index_cast %424 : i32 to index
    %c0_129 = arith.constant 0 : index
    %c0_130 = arith.constant 0 : index
    %458 = vector.load %arg22[%457, %c0_129, %c0_130] : memref<8x16x8xf32, #tpu.memory_space<vmem>>, vector<1x16x8xf32>
    %459 = vector.shape_cast %458 : vector<1x16x8xf32> to vector<16x8xf32>
    %460 = vector.shape_cast %456 : vector<16x8xf32> to vector<1x16x8xf32>
    tpu.vector_store %arg22[%457, %c0_129, %c0_130], %460 {strides = array<i32>} : memref<8x16x8xf32, #tpu.memory_space<vmem>>, vector<1x16x8xf32>,
    %c6_i32 = arith.constant 6 : i32
    %461 = arith.index_cast %c6_i32 : i32 to index
    %c0_131 = arith.constant 0 : index
    %c0_132 = arith.constant 0 : index
    %462 = vector.load %arg18[%461, %c0_131, %c0_132] : memref<8x16x24xf32, #tpu.memory_space<vmem>>, vector<1x16x24xf32>
    %463 = vector.shape_cast %462 : vector<1x16x24xf32> to vector<16x24xf32>
    %cst_133 = arith.constant dense<0.000000e+00> : vector<16x24xf32>
    %464 = tpu.matmul %419, %16, %cst_133 {dimension_numbers = #tpu.dot_dimension_numbers<[1], [0], [0], [1], [0, 0, 1, 1], [], []>} : vector<16x8xf32>, vector<8x24xf32>, vector<16x24xf32> -> vector<16x24xf32>
    %465 = vector.broadcast %17 : vector<1x24xf32> to vector<16x24xf32>
    %466 = arith.addf %464, %465 : vector<16x24xf32>
    %467 = vector.extract_strided_slice %463 {offsets = [0, 0], sizes = [16, 8], strides = [1, 1]} : vector<16x24xf32> to vector<16x8xf32>
    %468 = vector.extract_strided_slice %466 {offsets = [0, 0], sizes = [16, 8], strides = [1, 1]} : vector<16x24xf32> to vector<16x8xf32>
    %469 = arith.addf %467, %468 : vector<16x8xf32>
    %470 = arith.negf %469 : vector<16x8xf32>
    %471 = math.exp %470 : vector<16x8xf32>
    %cst_134 = arith.constant 1.000000e+00 : f32
    %472 = vector.broadcast %cst_134 : f32 to vector<16x8xf32>
    %473 = arith.addf %472, %471 : vector<16x8xf32>
    %474 = arith.divf %472, %473 : vector<16x8xf32>
    %475 = vector.extract_strided_slice %463 {offsets = [0, 8], sizes = [16, 8], strides = [1, 1]} : vector<16x24xf32> to vector<16x8xf32>
    %476 = vector.extract_strided_slice %466 {offsets = [0, 8], sizes = [16, 8], strides = [1, 1]} : vector<16x24xf32> to vector<16x8xf32>
    %477 = arith.addf %475, %476 : vector<16x8xf32>
    %478 = arith.negf %477 : vector<16x8xf32>
    %479 = math.exp %478 : vector<16x8xf32>
    %cst_135 = arith.constant 1.000000e+00 : f32
    %480 = vector.broadcast %cst_135 : f32 to vector<16x8xf32>
    %481 = arith.addf %480, %479 : vector<16x8xf32>
    %482 = arith.divf %480, %481 : vector<16x8xf32>
    %483 = vector.extract_strided_slice %463 {offsets = [0, 16], sizes = [16, 8], strides = [1, 1]} : vector<16x24xf32> to vector<16x8xf32>
    %484 = vector.extract_strided_slice %466 {offsets = [0, 16], sizes = [16, 8], strides = [1, 1]} : vector<16x24xf32> to vector<16x8xf32>
    %485 = arith.mulf %474, %484 : vector<16x8xf32>
    %486 = arith.addf %483, %485 : vector<16x8xf32>
    %487 = math.tanh %486 : vector<16x8xf32>
    %cst_136 = arith.constant 1.000000e+00 : f32
    %488 = vector.broadcast %cst_136 : f32 to vector<16x8xf32>
    %489 = arith.subf %488, %482 : vector<16x8xf32>
    %490 = arith.mulf %489, %487 : vector<16x8xf32>
    %491 = arith.mulf %482, %419 : vector<16x8xf32>
    %492 = arith.addf %490, %491 : vector<16x8xf32>
    %493 = arith.index_cast %c6_i32 : i32 to index
    %c0_137 = arith.constant 0 : index
    %c0_138 = arith.constant 0 : index
    %494 = vector.load %arg21[%493, %c0_137, %c0_138] : memref<8x16x8xf32, #tpu.memory_space<vmem>>, vector<1x16x8xf32>
    %495 = vector.shape_cast %494 : vector<1x16x8xf32> to vector<16x8xf32>
    %496 = vector.shape_cast %492 : vector<16x8xf32> to vector<1x16x8xf32>
    tpu.vector_store %arg21[%493, %c0_137, %c0_138], %496 {strides = array<i32>} : memref<8x16x8xf32, #tpu.memory_space<vmem>>, vector<1x16x8xf32>,
    %c7_i32_139 = arith.constant 7 : i32
    %497 = arith.subi %c7_i32_139, %c6_i32 : i32
    %498 = arith.index_cast %497 : i32 to index
    %c0_140 = arith.constant 0 : index
    %c0_141 = arith.constant 0 : index
    %499 = vector.load %arg19[%498, %c0_140, %c0_141] : memref<8x16x24xf32, #tpu.memory_space<vmem>>, vector<1x16x24xf32>
    %500 = vector.shape_cast %499 : vector<1x16x24xf32> to vector<16x24xf32>
    %cst_142 = arith.constant dense<0.000000e+00> : vector<16x24xf32>
    %501 = tpu.matmul %456, %18, %cst_142 {dimension_numbers = #tpu.dot_dimension_numbers<[1], [0], [0], [1], [0, 0, 1, 1], [], []>} : vector<16x8xf32>, vector<8x24xf32>, vector<16x24xf32> -> vector<16x24xf32>
    %502 = vector.broadcast %19 : vector<1x24xf32> to vector<16x24xf32>
    %503 = arith.addf %501, %502 : vector<16x24xf32>
    %504 = vector.extract_strided_slice %500 {offsets = [0, 0], sizes = [16, 8], strides = [1, 1]} : vector<16x24xf32> to vector<16x8xf32>
    %505 = vector.extract_strided_slice %503 {offsets = [0, 0], sizes = [16, 8], strides = [1, 1]} : vector<16x24xf32> to vector<16x8xf32>
    %506 = arith.addf %504, %505 : vector<16x8xf32>
    %507 = arith.negf %506 : vector<16x8xf32>
    %508 = math.exp %507 : vector<16x8xf32>
    %cst_143 = arith.constant 1.000000e+00 : f32
    %509 = vector.broadcast %cst_143 : f32 to vector<16x8xf32>
    %510 = arith.addf %509, %508 : vector<16x8xf32>
    %511 = arith.divf %509, %510 : vector<16x8xf32>
    %512 = vector.extract_strided_slice %500 {offsets = [0, 8], sizes = [16, 8], strides = [1, 1]} : vector<16x24xf32> to vector<16x8xf32>
    %513 = vector.extract_strided_slice %503 {offsets = [0, 8], sizes = [16, 8], strides = [1, 1]} : vector<16x24xf32> to vector<16x8xf32>
    %514 = arith.addf %512, %513 : vector<16x8xf32>
    %515 = arith.negf %514 : vector<16x8xf32>
    %516 = math.exp %515 : vector<16x8xf32>
    %cst_144 = arith.constant 1.000000e+00 : f32
    %517 = vector.broadcast %cst_144 : f32 to vector<16x8xf32>
    %518 = arith.addf %517, %516 : vector<16x8xf32>
    %519 = arith.divf %517, %518 : vector<16x8xf32>
    %520 = vector.extract_strided_slice %500 {offsets = [0, 16], sizes = [16, 8], strides = [1, 1]} : vector<16x24xf32> to vector<16x8xf32>
    %521 = vector.extract_strided_slice %503 {offsets = [0, 16], sizes = [16, 8], strides = [1, 1]} : vector<16x24xf32> to vector<16x8xf32>
    %522 = arith.mulf %511, %521 : vector<16x8xf32>
    %523 = arith.addf %520, %522 : vector<16x8xf32>
    %524 = math.tanh %523 : vector<16x8xf32>
    %cst_145 = arith.constant 1.000000e+00 : f32
    %525 = vector.broadcast %cst_145 : f32 to vector<16x8xf32>
    %526 = arith.subf %525, %519 : vector<16x8xf32>
    %527 = arith.mulf %526, %524 : vector<16x8xf32>
    %528 = arith.mulf %519, %456 : vector<16x8xf32>
    %529 = arith.addf %527, %528 : vector<16x8xf32>
    %530 = arith.index_cast %497 : i32 to index
    %c0_146 = arith.constant 0 : index
    %c0_147 = arith.constant 0 : index
    %531 = vector.load %arg22[%530, %c0_146, %c0_147] : memref<8x16x8xf32, #tpu.memory_space<vmem>>, vector<1x16x8xf32>
    %532 = vector.shape_cast %531 : vector<1x16x8xf32> to vector<16x8xf32>
    %533 = vector.shape_cast %529 : vector<16x8xf32> to vector<1x16x8xf32>
    tpu.vector_store %arg22[%530, %c0_146, %c0_147], %533 {strides = array<i32>} : memref<8x16x8xf32, #tpu.memory_space<vmem>>, vector<1x16x8xf32>,
    %c7_i32_148 = arith.constant 7 : i32
    %534 = arith.index_cast %c7_i32_148 : i32 to index
    %c0_149 = arith.constant 0 : index
    %c0_150 = arith.constant 0 : index
    %535 = vector.load %arg18[%534, %c0_149, %c0_150] : memref<8x16x24xf32, #tpu.memory_space<vmem>>, vector<1x16x24xf32>
    %536 = vector.shape_cast %535 : vector<1x16x24xf32> to vector<16x24xf32>
    %cst_151 = arith.constant dense<0.000000e+00> : vector<16x24xf32>
    %537 = tpu.matmul %492, %16, %cst_151 {dimension_numbers = #tpu.dot_dimension_numbers<[1], [0], [0], [1], [0, 0, 1, 1], [], []>} : vector<16x8xf32>, vector<8x24xf32>, vector<16x24xf32> -> vector<16x24xf32>
    %538 = vector.broadcast %17 : vector<1x24xf32> to vector<16x24xf32>
    %539 = arith.addf %537, %538 : vector<16x24xf32>
    %540 = vector.extract_strided_slice %536 {offsets = [0, 0], sizes = [16, 8], strides = [1, 1]} : vector<16x24xf32> to vector<16x8xf32>
    %541 = vector.extract_strided_slice %539 {offsets = [0, 0], sizes = [16, 8], strides = [1, 1]} : vector<16x24xf32> to vector<16x8xf32>
    %542 = arith.addf %540, %541 : vector<16x8xf32>
    %543 = arith.negf %542 : vector<16x8xf32>
    %544 = math.exp %543 : vector<16x8xf32>
    %cst_152 = arith.constant 1.000000e+00 : f32
    %545 = vector.broadcast %cst_152 : f32 to vector<16x8xf32>
    %546 = arith.addf %545, %544 : vector<16x8xf32>
    %547 = arith.divf %545, %546 : vector<16x8xf32>
    %548 = vector.extract_strided_slice %536 {offsets = [0, 8], sizes = [16, 8], strides = [1, 1]} : vector<16x24xf32> to vector<16x8xf32>
    %549 = vector.extract_strided_slice %539 {offsets = [0, 8], sizes = [16, 8], strides = [1, 1]} : vector<16x24xf32> to vector<16x8xf32>
    %550 = arith.addf %548, %549 : vector<16x8xf32>
    %551 = arith.negf %550 : vector<16x8xf32>
    %552 = math.exp %551 : vector<16x8xf32>
    %cst_153 = arith.constant 1.000000e+00 : f32
    %553 = vector.broadcast %cst_153 : f32 to vector<16x8xf32>
    %554 = arith.addf %553, %552 : vector<16x8xf32>
    %555 = arith.divf %553, %554 : vector<16x8xf32>
    %556 = vector.extract_strided_slice %536 {offsets = [0, 16], sizes = [16, 8], strides = [1, 1]} : vector<16x24xf32> to vector<16x8xf32>
    %557 = vector.extract_strided_slice %539 {offsets = [0, 16], sizes = [16, 8], strides = [1, 1]} : vector<16x24xf32> to vector<16x8xf32>
    %558 = arith.mulf %547, %557 : vector<16x8xf32>
    %559 = arith.addf %556, %558 : vector<16x8xf32>
    %560 = math.tanh %559 : vector<16x8xf32>
    %cst_154 = arith.constant 1.000000e+00 : f32
    %561 = vector.broadcast %cst_154 : f32 to vector<16x8xf32>
    %562 = arith.subf %561, %555 : vector<16x8xf32>
    %563 = arith.mulf %562, %560 : vector<16x8xf32>
    %564 = arith.mulf %555, %492 : vector<16x8xf32>
    %565 = arith.addf %563, %564 : vector<16x8xf32>
    %566 = arith.index_cast %c7_i32_148 : i32 to index
    %c0_155 = arith.constant 0 : index
    %c0_156 = arith.constant 0 : index
    %567 = vector.load %arg21[%566, %c0_155, %c0_156] : memref<8x16x8xf32, #tpu.memory_space<vmem>>, vector<1x16x8xf32>
    %568 = vector.shape_cast %567 : vector<1x16x8xf32> to vector<16x8xf32>
    %569 = vector.shape_cast %565 : vector<16x8xf32> to vector<1x16x8xf32>
    tpu.vector_store %arg21[%566, %c0_155, %c0_156], %569 {strides = array<i32>} : memref<8x16x8xf32, #tpu.memory_space<vmem>>, vector<1x16x8xf32>,
    %c7_i32_157 = arith.constant 7 : i32
    %570 = arith.subi %c7_i32_157, %c7_i32_148 : i32
    %571 = arith.index_cast %570 : i32 to index
    %c0_158 = arith.constant 0 : index
    %c0_159 = arith.constant 0 : index
    %572 = vector.load %arg19[%571, %c0_158, %c0_159] : memref<8x16x24xf32, #tpu.memory_space<vmem>>, vector<1x16x24xf32>
    %573 = vector.shape_cast %572 : vector<1x16x24xf32> to vector<16x24xf32>
    %cst_160 = arith.constant dense<0.000000e+00> : vector<16x24xf32>
    %574 = tpu.matmul %529, %18, %cst_160 {dimension_numbers = #tpu.dot_dimension_numbers<[1], [0], [0], [1], [0, 0, 1, 1], [], []>} : vector<16x8xf32>, vector<8x24xf32>, vector<16x24xf32> -> vector<16x24xf32>
    %575 = vector.broadcast %19 : vector<1x24xf32> to vector<16x24xf32>
    %576 = arith.addf %574, %575 : vector<16x24xf32>
    %577 = vector.extract_strided_slice %573 {offsets = [0, 0], sizes = [16, 8], strides = [1, 1]} : vector<16x24xf32> to vector<16x8xf32>
    %578 = vector.extract_strided_slice %576 {offsets = [0, 0], sizes = [16, 8], strides = [1, 1]} : vector<16x24xf32> to vector<16x8xf32>
    %579 = arith.addf %577, %578 : vector<16x8xf32>
    %580 = arith.negf %579 : vector<16x8xf32>
    %581 = math.exp %580 : vector<16x8xf32>
    %cst_161 = arith.constant 1.000000e+00 : f32
    %582 = vector.broadcast %cst_161 : f32 to vector<16x8xf32>
    %583 = arith.addf %582, %581 : vector<16x8xf32>
    %584 = arith.divf %582, %583 : vector<16x8xf32>
    %585 = vector.extract_strided_slice %573 {offsets = [0, 8], sizes = [16, 8], strides = [1, 1]} : vector<16x24xf32> to vector<16x8xf32>
    %586 = vector.extract_strided_slice %576 {offsets = [0, 8], sizes = [16, 8], strides = [1, 1]} : vector<16x24xf32> to vector<16x8xf32>
    %587 = arith.addf %585, %586 : vector<16x8xf32>
    %588 = arith.negf %587 : vector<16x8xf32>
    %589 = math.exp %588 : vector<16x8xf32>
    %cst_162 = arith.constant 1.000000e+00 : f32
    %590 = vector.broadcast %cst_162 : f32 to vector<16x8xf32>
    %591 = arith.addf %590, %589 : vector<16x8xf32>
    %592 = arith.divf %590, %591 : vector<16x8xf32>
    %593 = vector.extract_strided_slice %573 {offsets = [0, 16], sizes = [16, 8], strides = [1, 1]} : vector<16x24xf32> to vector<16x8xf32>
    %594 = vector.extract_strided_slice %576 {offsets = [0, 16], sizes = [16, 8], strides = [1, 1]} : vector<16x24xf32> to vector<16x8xf32>
    %595 = arith.mulf %584, %594 : vector<16x8xf32>
    %596 = arith.addf %593, %595 : vector<16x8xf32>
    %597 = math.tanh %596 : vector<16x8xf32>
    %cst_163 = arith.constant 1.000000e+00 : f32
    %598 = vector.broadcast %cst_163 : f32 to vector<16x8xf32>
    %599 = arith.subf %598, %592 : vector<16x8xf32>
    %600 = arith.mulf %599, %597 : vector<16x8xf32>
    %601 = arith.mulf %592, %529 : vector<16x8xf32>
    %602 = arith.addf %600, %601 : vector<16x8xf32>
    %603 = arith.index_cast %570 : i32 to index
    %c0_164 = arith.constant 0 : index
    %c0_165 = arith.constant 0 : index
    %604 = vector.load %arg22[%603, %c0_164, %c0_165] : memref<8x16x8xf32, #tpu.memory_space<vmem>>, vector<1x16x8xf32>
    %605 = vector.shape_cast %604 : vector<1x16x8xf32> to vector<16x8xf32>
    %606 = vector.shape_cast %602 : vector<16x8xf32> to vector<1x16x8xf32>
    tpu.vector_store %arg22[%603, %c0_164, %c0_165], %606 {strides = array<i32>} : memref<8x16x8xf32, #tpu.memory_space<vmem>>, vector<1x16x8xf32>,
    %c8_i32 = arith.constant 8 : i32
    %c0_166 = arith.constant 0 : index
    %c0_167 = arith.constant 0 : index
    %c0_168 = arith.constant 0 : index
    %607 = vector.load %arg21[%c0_166, %c0_167, %c0_168] : memref<8x16x8xf32, #tpu.memory_space<vmem>>, vector<8x16x8xf32>
    %cst_169 = arith.constant 5.000000e-01 : f32
    %608 = vector.broadcast %cst_169 : f32 to vector<8x16x8xf32>
    %609 = arith.mulf %608, %607 : vector<8x16x8xf32>
    %cst_170 = arith.constant 0.707106769 : f32
    %610 = vector.broadcast %cst_170 : f32 to vector<8x16x8xf32>
    %611 = arith.mulf %607, %610 : vector<8x16x8xf32>
    %612 = math.erf %611 : vector<8x16x8xf32>
    %cst_171 = arith.constant 1.000000e+00 : f32
    %613 = vector.broadcast %cst_171 : f32 to vector<8x16x8xf32>
    %614 = arith.addf %613, %612 : vector<8x16x8xf32>
    %615 = arith.mulf %609, %614 : vector<8x16x8xf32>
    %616 = vector.shape_cast %615 : vector<8x16x8xf32> to vector<128x8xf32>
    %c0_172 = arith.constant 0 : index
    %c0_173 = arith.constant 0 : index
    %c0_174 = arith.constant 0 : index
    %617 = vector.load %arg22[%c0_172, %c0_173, %c0_174] : memref<8x16x8xf32, #tpu.memory_space<vmem>>, vector<8x16x8xf32>
    %cst_175 = arith.constant 5.000000e-01 : f32
    %618 = vector.broadcast %cst_175 : f32 to vector<8x16x8xf32>
    %619 = arith.mulf %618, %617 : vector<8x16x8xf32>
    %cst_176 = arith.constant 0.707106769 : f32
    %620 = vector.broadcast %cst_176 : f32 to vector<8x16x8xf32>
    %621 = arith.mulf %617, %620 : vector<8x16x8xf32>
    %622 = math.erf %621 : vector<8x16x8xf32>
    %cst_177 = arith.constant 1.000000e+00 : f32
    %623 = vector.broadcast %cst_177 : f32 to vector<8x16x8xf32>
    %624 = arith.addf %623, %622 : vector<8x16x8xf32>
    %625 = arith.mulf %619, %624 : vector<8x16x8xf32>
    %626 = vector.shape_cast %625 : vector<8x16x8xf32> to vector<128x8xf32>
    %c0_178 = arith.constant 0 : index
    %c0_179 = arith.constant 0 : index
    %627 = vector.load %arg10[%c0_178, %c0_179] : memref<8x24xf32, #tpu.memory_space<vmem>>, vector<8x24xf32>
    %cst_180 = arith.constant dense<0.000000e+00> : vector<128x24xf32>
    %628 = tpu.matmul %616, %627, %cst_180 {dimension_numbers = #tpu.dot_dimension_numbers<[1], [0], [0], [1], [0, 0, 1, 1], [], []>} : vector<128x8xf32>, vector<8x24xf32>, vector<128x24xf32> -> vector<128x24xf32>
    %c0_181 = arith.constant 0 : index
    %c0_182 = arith.constant 0 : index
    %629 = vector.load %arg11[%c0_181, %c0_182] : memref<8x24xf32, #tpu.memory_space<vmem>>, vector<8x24xf32>
    %cst_183 = arith.constant dense<0.000000e+00> : vector<128x24xf32>
    %630 = tpu.matmul %626, %629, %cst_183 {dimension_numbers = #tpu.dot_dimension_numbers<[1], [0], [0], [1], [0, 0, 1, 1], [], []>} : vector<128x8xf32>, vector<8x24xf32>, vector<128x24xf32> -> vector<128x24xf32>
    %631 = arith.addf %628, %630 : vector<128x24xf32>
    %c0_184 = arith.constant 0 : index
    %c0_185 = arith.constant 0 : index
    %632 = vector.load %arg13[%c0_184, %c0_185] : memref<1x24xf32, #tpu.memory_space<vmem>>, vector<1x24xf32>
    %633 = vector.broadcast %632 : vector<1x24xf32> to vector<128x24xf32>
    %634 = arith.addf %631, %633 : vector<128x24xf32>
    %635 = vector.shape_cast %634 : vector<128x24xf32> to vector<8x16x24xf32>
    %c0_186 = arith.constant 0 : index
    %c0_187 = arith.constant 0 : index
    %c0_188 = arith.constant 0 : index
    %636 = vector.load %arg20[%c0_186, %c0_187, %c0_188] : memref<8x16x24xf32, #tpu.memory_space<vmem>>, vector<8x16x24xf32>
    tpu.vector_store %arg20[%c0_186, %c0_187, %c0_188], %635 {strides = array<i32>} : memref<8x16x24xf32, #tpu.memory_space<vmem>>, vector<8x16x24xf32>,
    %c0_i32_189 = arith.constant 0 : i32
    %637 = arith.index_cast %c0_i32_189 : i32 to index
    %c0_190 = arith.constant 0 : index
    %c0_191 = arith.constant 0 : index
    %638 = vector.load %arg20[%637, %c0_190, %c0_191] : memref<8x16x24xf32, #tpu.memory_space<vmem>>, vector<1x16x24xf32>
    %639 = vector.shape_cast %638 : vector<1x16x24xf32> to vector<16x24xf32>
    %cst_192 = arith.constant dense<0.000000e+00> : vector<16x24xf32>
    %640 = tpu.matmul %22, %20, %cst_192 {dimension_numbers = #tpu.dot_dimension_numbers<[1], [0], [0], [1], [0, 0, 1, 1], [], []>} : vector<16x8xf32>, vector<8x24xf32>, vector<16x24xf32> -> vector<16x24xf32>
    %641 = vector.broadcast %21 : vector<1x24xf32> to vector<16x24xf32>
    %642 = arith.addf %640, %641 : vector<16x24xf32>
    %643 = vector.extract_strided_slice %639 {offsets = [0, 0], sizes = [16, 8], strides = [1, 1]} : vector<16x24xf32> to vector<16x8xf32>
    %644 = vector.extract_strided_slice %642 {offsets = [0, 0], sizes = [16, 8], strides = [1, 1]} : vector<16x24xf32> to vector<16x8xf32>
    %645 = arith.addf %643, %644 : vector<16x8xf32>
    %646 = arith.negf %645 : vector<16x8xf32>
    %647 = math.exp %646 : vector<16x8xf32>
    %cst_193 = arith.constant 1.000000e+00 : f32
    %648 = vector.broadcast %cst_193 : f32 to vector<16x8xf32>
    %649 = arith.addf %648, %647 : vector<16x8xf32>
    %650 = arith.divf %648, %649 : vector<16x8xf32>
    %651 = vector.extract_strided_slice %639 {offsets = [0, 8], sizes = [16, 8], strides = [1, 1]} : vector<16x24xf32> to vector<16x8xf32>
    %652 = vector.extract_strided_slice %642 {offsets = [0, 8], sizes = [16, 8], strides = [1, 1]} : vector<16x24xf32> to vector<16x8xf32>
    %653 = arith.addf %651, %652 : vector<16x8xf32>
    %654 = arith.negf %653 : vector<16x8xf32>
    %655 = math.exp %654 : vector<16x8xf32>
    %cst_194 = arith.constant 1.000000e+00 : f32
    %656 = vector.broadcast %cst_194 : f32 to vector<16x8xf32>
    %657 = arith.addf %656, %655 : vector<16x8xf32>
    %658 = arith.divf %656, %657 : vector<16x8xf32>
    %659 = vector.extract_strided_slice %639 {offsets = [0, 16], sizes = [16, 8], strides = [1, 1]} : vector<16x24xf32> to vector<16x8xf32>
    %660 = vector.extract_strided_slice %642 {offsets = [0, 16], sizes = [16, 8], strides = [1, 1]} : vector<16x24xf32> to vector<16x8xf32>
    %661 = arith.mulf %650, %660 : vector<16x8xf32>
    %662 = arith.addf %659, %661 : vector<16x8xf32>
    %663 = math.tanh %662 : vector<16x8xf32>
    %cst_195 = arith.constant 1.000000e+00 : f32
    %664 = vector.broadcast %cst_195 : f32 to vector<16x8xf32>
    %665 = arith.subf %664, %658 : vector<16x8xf32>
    %666 = arith.mulf %665, %663 : vector<16x8xf32>
    %667 = arith.mulf %658, %22 : vector<16x8xf32>
    %668 = arith.addf %666, %667 : vector<16x8xf32>
    %669 = arith.index_cast %c0_i32_189 : i32 to index
    %c0_196 = arith.constant 0 : index
    %c0_197 = arith.constant 0 : index
    %670 = vector.load %arg23[%669, %c0_196, %c0_197] : memref<8x16x8xf32, #tpu.memory_space<vmem>>, vector<1x16x8xf32>
    %671 = vector.shape_cast %670 : vector<1x16x8xf32> to vector<16x8xf32>
    %672 = vector.shape_cast %668 : vector<16x8xf32> to vector<1x16x8xf32>
    tpu.vector_store %arg23[%669, %c0_196, %c0_197], %672 {strides = array<i32>} : memref<8x16x8xf32, #tpu.memory_space<vmem>>, vector<1x16x8xf32>,
    %c1_i32_198 = arith.constant 1 : i32
    %673 = arith.index_cast %c1_i32_198 : i32 to index
    %c0_199 = arith.constant 0 : index
    %c0_200 = arith.constant 0 : index
    %674 = vector.load %arg20[%673, %c0_199, %c0_200] : memref<8x16x24xf32, #tpu.memory_space<vmem>>, vector<1x16x24xf32>
    %675 = vector.shape_cast %674 : vector<1x16x24xf32> to vector<16x24xf32>
    %cst_201 = arith.constant dense<0.000000e+00> : vector<16x24xf32>
    %676 = tpu.matmul %668, %20, %cst_201 {dimension_numbers = #tpu.dot_dimension_numbers<[1], [0], [0], [1], [0, 0, 1, 1], [], []>} : vector<16x8xf32>, vector<8x24xf32>, vector<16x24xf32> -> vector<16x24xf32>
    %677 = vector.broadcast %21 : vector<1x24xf32> to vector<16x24xf32>
    %678 = arith.addf %676, %677 : vector<16x24xf32>
    %679 = vector.extract_strided_slice %675 {offsets = [0, 0], sizes = [16, 8], strides = [1, 1]} : vector<16x24xf32> to vector<16x8xf32>
    %680 = vector.extract_strided_slice %678 {offsets = [0, 0], sizes = [16, 8], strides = [1, 1]} : vector<16x24xf32> to vector<16x8xf32>
    %681 = arith.addf %679, %680 : vector<16x8xf32>
    %682 = arith.negf %681 : vector<16x8xf32>
    %683 = math.exp %682 : vector<16x8xf32>
    %cst_202 = arith.constant 1.000000e+00 : f32
    %684 = vector.broadcast %cst_202 : f32 to vector<16x8xf32>
    %685 = arith.addf %684, %683 : vector<16x8xf32>
    %686 = arith.divf %684, %685 : vector<16x8xf32>
    %687 = vector.extract_strided_slice %675 {offsets = [0, 8], sizes = [16, 8], strides = [1, 1]} : vector<16x24xf32> to vector<16x8xf32>
    %688 = vector.extract_strided_slice %678 {offsets = [0, 8], sizes = [16, 8], strides = [1, 1]} : vector<16x24xf32> to vector<16x8xf32>
    %689 = arith.addf %687, %688 : vector<16x8xf32>
    %690 = arith.negf %689 : vector<16x8xf32>
    %691 = math.exp %690 : vector<16x8xf32>
    %cst_203 = arith.constant 1.000000e+00 : f32
    %692 = vector.broadcast %cst_203 : f32 to vector<16x8xf32>
    %693 = arith.addf %692, %691 : vector<16x8xf32>
    %694 = arith.divf %692, %693 : vector<16x8xf32>
    %695 = vector.extract_strided_slice %675 {offsets = [0, 16], sizes = [16, 8], strides = [1, 1]} : vector<16x24xf32> to vector<16x8xf32>
    %696 = vector.extract_strided_slice %678 {offsets = [0, 16], sizes = [16, 8], strides = [1, 1]} : vector<16x24xf32> to vector<16x8xf32>
    %697 = arith.mulf %686, %696 : vector<16x8xf32>
    %698 = arith.addf %695, %697 : vector<16x8xf32>
    %699 = math.tanh %698 : vector<16x8xf32>
    %cst_204 = arith.constant 1.000000e+00 : f32
    %700 = vector.broadcast %cst_204 : f32 to vector<16x8xf32>
    %701 = arith.subf %700, %694 : vector<16x8xf32>
    %702 = arith.mulf %701, %699 : vector<16x8xf32>
    %703 = arith.mulf %694, %668 : vector<16x8xf32>
    %704 = arith.addf %702, %703 : vector<16x8xf32>
    %705 = arith.index_cast %c1_i32_198 : i32 to index
    %c0_205 = arith.constant 0 : index
    %c0_206 = arith.constant 0 : index
    %706 = vector.load %arg23[%705, %c0_205, %c0_206] : memref<8x16x8xf32, #tpu.memory_space<vmem>>, vector<1x16x8xf32>
    %707 = vector.shape_cast %706 : vector<1x16x8xf32> to vector<16x8xf32>
    %708 = vector.shape_cast %704 : vector<16x8xf32> to vector<1x16x8xf32>
    tpu.vector_store %arg23[%705, %c0_205, %c0_206], %708 {strides = array<i32>} : memref<8x16x8xf32, #tpu.memory_space<vmem>>, vector<1x16x8xf32>,
    %c2_i32_207 = arith.constant 2 : i32
    %709 = arith.index_cast %c2_i32_207 : i32 to index
    %c0_208 = arith.constant 0 : index
    %c0_209 = arith.constant 0 : index
    %710 = vector.load %arg20[%709, %c0_208, %c0_209] : memref<8x16x24xf32, #tpu.memory_space<vmem>>, vector<1x16x24xf32>
    %711 = vector.shape_cast %710 : vector<1x16x24xf32> to vector<16x24xf32>
    %cst_210 = arith.constant dense<0.000000e+00> : vector<16x24xf32>
    %712 = tpu.matmul %704, %20, %cst_210 {dimension_numbers = #tpu.dot_dimension_numbers<[1], [0], [0], [1], [0, 0, 1, 1], [], []>} : vector<16x8xf32>, vector<8x24xf32>, vector<16x24xf32> -> vector<16x24xf32>
    %713 = vector.broadcast %21 : vector<1x24xf32> to vector<16x24xf32>
    %714 = arith.addf %712, %713 : vector<16x24xf32>
    %715 = vector.extract_strided_slice %711 {offsets = [0, 0], sizes = [16, 8], strides = [1, 1]} : vector<16x24xf32> to vector<16x8xf32>
    %716 = vector.extract_strided_slice %714 {offsets = [0, 0], sizes = [16, 8], strides = [1, 1]} : vector<16x24xf32> to vector<16x8xf32>
    %717 = arith.addf %715, %716 : vector<16x8xf32>
    %718 = arith.negf %717 : vector<16x8xf32>
    %719 = math.exp %718 : vector<16x8xf32>
    %cst_211 = arith.constant 1.000000e+00 : f32
    %720 = vector.broadcast %cst_211 : f32 to vector<16x8xf32>
    %721 = arith.addf %720, %719 : vector<16x8xf32>
    %722 = arith.divf %720, %721 : vector<16x8xf32>
    %723 = vector.extract_strided_slice %711 {offsets = [0, 8], sizes = [16, 8], strides = [1, 1]} : vector<16x24xf32> to vector<16x8xf32>
    %724 = vector.extract_strided_slice %714 {offsets = [0, 8], sizes = [16, 8], strides = [1, 1]} : vector<16x24xf32> to vector<16x8xf32>
    %725 = arith.addf %723, %724 : vector<16x8xf32>
    %726 = arith.negf %725 : vector<16x8xf32>
    %727 = math.exp %726 : vector<16x8xf32>
    %cst_212 = arith.constant 1.000000e+00 : f32
    %728 = vector.broadcast %cst_212 : f32 to vector<16x8xf32>
    %729 = arith.addf %728, %727 : vector<16x8xf32>
    %730 = arith.divf %728, %729 : vector<16x8xf32>
    %731 = vector.extract_strided_slice %711 {offsets = [0, 16], sizes = [16, 8], strides = [1, 1]} : vector<16x24xf32> to vector<16x8xf32>
    %732 = vector.extract_strided_slice %714 {offsets = [0, 16], sizes = [16, 8], strides = [1, 1]} : vector<16x24xf32> to vector<16x8xf32>
    %733 = arith.mulf %722, %732 : vector<16x8xf32>
    %734 = arith.addf %731, %733 : vector<16x8xf32>
    %735 = math.tanh %734 : vector<16x8xf32>
    %cst_213 = arith.constant 1.000000e+00 : f32
    %736 = vector.broadcast %cst_213 : f32 to vector<16x8xf32>
    %737 = arith.subf %736, %730 : vector<16x8xf32>
    %738 = arith.mulf %737, %735 : vector<16x8xf32>
    %739 = arith.mulf %730, %704 : vector<16x8xf32>
    %740 = arith.addf %738, %739 : vector<16x8xf32>
    %741 = arith.index_cast %c2_i32_207 : i32 to index
    %c0_214 = arith.constant 0 : index
    %c0_215 = arith.constant 0 : index
    %742 = vector.load %arg23[%741, %c0_214, %c0_215] : memref<8x16x8xf32, #tpu.memory_space<vmem>>, vector<1x16x8xf32>
    %743 = vector.shape_cast %742 : vector<1x16x8xf32> to vector<16x8xf32>
    %744 = vector.shape_cast %740 : vector<16x8xf32> to vector<1x16x8xf32>
    tpu.vector_store %arg23[%741, %c0_214, %c0_215], %744 {strides = array<i32>} : memref<8x16x8xf32, #tpu.memory_space<vmem>>, vector<1x16x8xf32>,
    %c3_i32_216 = arith.constant 3 : i32
    %745 = arith.index_cast %c3_i32_216 : i32 to index
    %c0_217 = arith.constant 0 : index
    %c0_218 = arith.constant 0 : index
    %746 = vector.load %arg20[%745, %c0_217, %c0_218] : memref<8x16x24xf32, #tpu.memory_space<vmem>>, vector<1x16x24xf32>
    %747 = vector.shape_cast %746 : vector<1x16x24xf32> to vector<16x24xf32>
    %cst_219 = arith.constant dense<0.000000e+00> : vector<16x24xf32>
    %748 = tpu.matmul %740, %20, %cst_219 {dimension_numbers = #tpu.dot_dimension_numbers<[1], [0], [0], [1], [0, 0, 1, 1], [], []>} : vector<16x8xf32>, vector<8x24xf32>, vector<16x24xf32> -> vector<16x24xf32>
    %749 = vector.broadcast %21 : vector<1x24xf32> to vector<16x24xf32>
    %750 = arith.addf %748, %749 : vector<16x24xf32>
    %751 = vector.extract_strided_slice %747 {offsets = [0, 0], sizes = [16, 8], strides = [1, 1]} : vector<16x24xf32> to vector<16x8xf32>
    %752 = vector.extract_strided_slice %750 {offsets = [0, 0], sizes = [16, 8], strides = [1, 1]} : vector<16x24xf32> to vector<16x8xf32>
    %753 = arith.addf %751, %752 : vector<16x8xf32>
    %754 = arith.negf %753 : vector<16x8xf32>
    %755 = math.exp %754 : vector<16x8xf32>
    %cst_220 = arith.constant 1.000000e+00 : f32
    %756 = vector.broadcast %cst_220 : f32 to vector<16x8xf32>
    %757 = arith.addf %756, %755 : vector<16x8xf32>
    %758 = arith.divf %756, %757 : vector<16x8xf32>
    %759 = vector.extract_strided_slice %747 {offsets = [0, 8], sizes = [16, 8], strides = [1, 1]} : vector<16x24xf32> to vector<16x8xf32>
    %760 = vector.extract_strided_slice %750 {offsets = [0, 8], sizes = [16, 8], strides = [1, 1]} : vector<16x24xf32> to vector<16x8xf32>
    %761 = arith.addf %759, %760 : vector<16x8xf32>
    %762 = arith.negf %761 : vector<16x8xf32>
    %763 = math.exp %762 : vector<16x8xf32>
    %cst_221 = arith.constant 1.000000e+00 : f32
    %764 = vector.broadcast %cst_221 : f32 to vector<16x8xf32>
    %765 = arith.addf %764, %763 : vector<16x8xf32>
    %766 = arith.divf %764, %765 : vector<16x8xf32>
    %767 = vector.extract_strided_slice %747 {offsets = [0, 16], sizes = [16, 8], strides = [1, 1]} : vector<16x24xf32> to vector<16x8xf32>
    %768 = vector.extract_strided_slice %750 {offsets = [0, 16], sizes = [16, 8], strides = [1, 1]} : vector<16x24xf32> to vector<16x8xf32>
    %769 = arith.mulf %758, %768 : vector<16x8xf32>
    %770 = arith.addf %767, %769 : vector<16x8xf32>
    %771 = math.tanh %770 : vector<16x8xf32>
    %cst_222 = arith.constant 1.000000e+00 : f32
    %772 = vector.broadcast %cst_222 : f32 to vector<16x8xf32>
    %773 = arith.subf %772, %766 : vector<16x8xf32>
    %774 = arith.mulf %773, %771 : vector<16x8xf32>
    %775 = arith.mulf %766, %740 : vector<16x8xf32>
    %776 = arith.addf %774, %775 : vector<16x8xf32>
    %777 = arith.index_cast %c3_i32_216 : i32 to index
    %c0_223 = arith.constant 0 : index
    %c0_224 = arith.constant 0 : index
    %778 = vector.load %arg23[%777, %c0_223, %c0_224] : memref<8x16x8xf32, #tpu.memory_space<vmem>>, vector<1x16x8xf32>
    %779 = vector.shape_cast %778 : vector<1x16x8xf32> to vector<16x8xf32>
    %780 = vector.shape_cast %776 : vector<16x8xf32> to vector<1x16x8xf32>
    tpu.vector_store %arg23[%777, %c0_223, %c0_224], %780 {strides = array<i32>} : memref<8x16x8xf32, #tpu.memory_space<vmem>>, vector<1x16x8xf32>,
    %c4_i32_225 = arith.constant 4 : i32
    %781 = arith.index_cast %c4_i32_225 : i32 to index
    %c0_226 = arith.constant 0 : index
    %c0_227 = arith.constant 0 : index
    %782 = vector.load %arg20[%781, %c0_226, %c0_227] : memref<8x16x24xf32, #tpu.memory_space<vmem>>, vector<1x16x24xf32>
    %783 = vector.shape_cast %782 : vector<1x16x24xf32> to vector<16x24xf32>
    %cst_228 = arith.constant dense<0.000000e+00> : vector<16x24xf32>
    %784 = tpu.matmul %776, %20, %cst_228 {dimension_numbers = #tpu.dot_dimension_numbers<[1], [0], [0], [1], [0, 0, 1, 1], [], []>} : vector<16x8xf32>, vector<8x24xf32>, vector<16x24xf32> -> vector<16x24xf32>
    %785 = vector.broadcast %21 : vector<1x24xf32> to vector<16x24xf32>
    %786 = arith.addf %784, %785 : vector<16x24xf32>
    %787 = vector.extract_strided_slice %783 {offsets = [0, 0], sizes = [16, 8], strides = [1, 1]} : vector<16x24xf32> to vector<16x8xf32>
    %788 = vector.extract_strided_slice %786 {offsets = [0, 0], sizes = [16, 8], strides = [1, 1]} : vector<16x24xf32> to vector<16x8xf32>
    %789 = arith.addf %787, %788 : vector<16x8xf32>
    %790 = arith.negf %789 : vector<16x8xf32>
    %791 = math.exp %790 : vector<16x8xf32>
    %cst_229 = arith.constant 1.000000e+00 : f32
    %792 = vector.broadcast %cst_229 : f32 to vector<16x8xf32>
    %793 = arith.addf %792, %791 : vector<16x8xf32>
    %794 = arith.divf %792, %793 : vector<16x8xf32>
    %795 = vector.extract_strided_slice %783 {offsets = [0, 8], sizes = [16, 8], strides = [1, 1]} : vector<16x24xf32> to vector<16x8xf32>
    %796 = vector.extract_strided_slice %786 {offsets = [0, 8], sizes = [16, 8], strides = [1, 1]} : vector<16x24xf32> to vector<16x8xf32>
    %797 = arith.addf %795, %796 : vector<16x8xf32>
    %798 = arith.negf %797 : vector<16x8xf32>
    %799 = math.exp %798 : vector<16x8xf32>
    %cst_230 = arith.constant 1.000000e+00 : f32
    %800 = vector.broadcast %cst_230 : f32 to vector<16x8xf32>
    %801 = arith.addf %800, %799 : vector<16x8xf32>
    %802 = arith.divf %800, %801 : vector<16x8xf32>
    %803 = vector.extract_strided_slice %783 {offsets = [0, 16], sizes = [16, 8], strides = [1, 1]} : vector<16x24xf32> to vector<16x8xf32>
    %804 = vector.extract_strided_slice %786 {offsets = [0, 16], sizes = [16, 8], strides = [1, 1]} : vector<16x24xf32> to vector<16x8xf32>
    %805 = arith.mulf %794, %804 : vector<16x8xf32>
    %806 = arith.addf %803, %805 : vector<16x8xf32>
    %807 = math.tanh %806 : vector<16x8xf32>
    %cst_231 = arith.constant 1.000000e+00 : f32
    %808 = vector.broadcast %cst_231 : f32 to vector<16x8xf32>
    %809 = arith.subf %808, %802 : vector<16x8xf32>
    %810 = arith.mulf %809, %807 : vector<16x8xf32>
    %811 = arith.mulf %802, %776 : vector<16x8xf32>
    %812 = arith.addf %810, %811 : vector<16x8xf32>
    %813 = arith.index_cast %c4_i32_225 : i32 to index
    %c0_232 = arith.constant 0 : index
    %c0_233 = arith.constant 0 : index
    %814 = vector.load %arg23[%813, %c0_232, %c0_233] : memref<8x16x8xf32, #tpu.memory_space<vmem>>, vector<1x16x8xf32>
    %815 = vector.shape_cast %814 : vector<1x16x8xf32> to vector<16x8xf32>
    %816 = vector.shape_cast %812 : vector<16x8xf32> to vector<1x16x8xf32>
    tpu.vector_store %arg23[%813, %c0_232, %c0_233], %816 {strides = array<i32>} : memref<8x16x8xf32, #tpu.memory_space<vmem>>, vector<1x16x8xf32>,
    %c5_i32_234 = arith.constant 5 : i32
    %817 = arith.index_cast %c5_i32_234 : i32 to index
    %c0_235 = arith.constant 0 : index
    %c0_236 = arith.constant 0 : index
    %818 = vector.load %arg20[%817, %c0_235, %c0_236] : memref<8x16x24xf32, #tpu.memory_space<vmem>>, vector<1x16x24xf32>
    %819 = vector.shape_cast %818 : vector<1x16x24xf32> to vector<16x24xf32>
    %cst_237 = arith.constant dense<0.000000e+00> : vector<16x24xf32>
    %820 = tpu.matmul %812, %20, %cst_237 {dimension_numbers = #tpu.dot_dimension_numbers<[1], [0], [0], [1], [0, 0, 1, 1], [], []>} : vector<16x8xf32>, vector<8x24xf32>, vector<16x24xf32> -> vector<16x24xf32>
    %821 = vector.broadcast %21 : vector<1x24xf32> to vector<16x24xf32>
    %822 = arith.addf %820, %821 : vector<16x24xf32>
    %823 = vector.extract_strided_slice %819 {offsets = [0, 0], sizes = [16, 8], strides = [1, 1]} : vector<16x24xf32> to vector<16x8xf32>
    %824 = vector.extract_strided_slice %822 {offsets = [0, 0], sizes = [16, 8], strides = [1, 1]} : vector<16x24xf32> to vector<16x8xf32>
    %825 = arith.addf %823, %824 : vector<16x8xf32>
    %826 = arith.negf %825 : vector<16x8xf32>
    %827 = math.exp %826 : vector<16x8xf32>
    %cst_238 = arith.constant 1.000000e+00 : f32
    %828 = vector.broadcast %cst_238 : f32 to vector<16x8xf32>
    %829 = arith.addf %828, %827 : vector<16x8xf32>
    %830 = arith.divf %828, %829 : vector<16x8xf32>
    %831 = vector.extract_strided_slice %819 {offsets = [0, 8], sizes = [16, 8], strides = [1, 1]} : vector<16x24xf32> to vector<16x8xf32>
    %832 = vector.extract_strided_slice %822 {offsets = [0, 8], sizes = [16, 8], strides = [1, 1]} : vector<16x24xf32> to vector<16x8xf32>
    %833 = arith.addf %831, %832 : vector<16x8xf32>
    %834 = arith.negf %833 : vector<16x8xf32>
    %835 = math.exp %834 : vector<16x8xf32>
    %cst_239 = arith.constant 1.000000e+00 : f32
    %836 = vector.broadcast %cst_239 : f32 to vector<16x8xf32>
    %837 = arith.addf %836, %835 : vector<16x8xf32>
    %838 = arith.divf %836, %837 : vector<16x8xf32>
    %839 = vector.extract_strided_slice %819 {offsets = [0, 16], sizes = [16, 8], strides = [1, 1]} : vector<16x24xf32> to vector<16x8xf32>
    %840 = vector.extract_strided_slice %822 {offsets = [0, 16], sizes = [16, 8], strides = [1, 1]} : vector<16x24xf32> to vector<16x8xf32>
    %841 = arith.mulf %830, %840 : vector<16x8xf32>
    %842 = arith.addf %839, %841 : vector<16x8xf32>
    %843 = math.tanh %842 : vector<16x8xf32>
    %cst_240 = arith.constant 1.000000e+00 : f32
    %844 = vector.broadcast %cst_240 : f32 to vector<16x8xf32>
    %845 = arith.subf %844, %838 : vector<16x8xf32>
    %846 = arith.mulf %845, %843 : vector<16x8xf32>
    %847 = arith.mulf %838, %812 : vector<16x8xf32>
    %848 = arith.addf %846, %847 : vector<16x8xf32>
    %849 = arith.index_cast %c5_i32_234 : i32 to index
    %c0_241 = arith.constant 0 : index
    %c0_242 = arith.constant 0 : index
    %850 = vector.load %arg23[%849, %c0_241, %c0_242] : memref<8x16x8xf32, #tpu.memory_space<vmem>>, vector<1x16x8xf32>
    %851 = vector.shape_cast %850 : vector<1x16x8xf32> to vector<16x8xf32>
    %852 = vector.shape_cast %848 : vector<16x8xf32> to vector<1x16x8xf32>
    tpu.vector_store %arg23[%849, %c0_241, %c0_242], %852 {strides = array<i32>} : memref<8x16x8xf32, #tpu.memory_space<vmem>>, vector<1x16x8xf32>,
    %c6_i32_243 = arith.constant 6 : i32
    %853 = arith.index_cast %c6_i32_243 : i32 to index
    %c0_244 = arith.constant 0 : index
    %c0_245 = arith.constant 0 : index
    %854 = vector.load %arg20[%853, %c0_244, %c0_245] : memref<8x16x24xf32, #tpu.memory_space<vmem>>, vector<1x16x24xf32>
    %855 = vector.shape_cast %854 : vector<1x16x24xf32> to vector<16x24xf32>
    %cst_246 = arith.constant dense<0.000000e+00> : vector<16x24xf32>
    %856 = tpu.matmul %848, %20, %cst_246 {dimension_numbers = #tpu.dot_dimension_numbers<[1], [0], [0], [1], [0, 0, 1, 1], [], []>} : vector<16x8xf32>, vector<8x24xf32>, vector<16x24xf32> -> vector<16x24xf32>
    %857 = vector.broadcast %21 : vector<1x24xf32> to vector<16x24xf32>
    %858 = arith.addf %856, %857 : vector<16x24xf32>
    %859 = vector.extract_strided_slice %855 {offsets = [0, 0], sizes = [16, 8], strides = [1, 1]} : vector<16x24xf32> to vector<16x8xf32>
    %860 = vector.extract_strided_slice %858 {offsets = [0, 0], sizes = [16, 8], strides = [1, 1]} : vector<16x24xf32> to vector<16x8xf32>
    %861 = arith.addf %859, %860 : vector<16x8xf32>
    %862 = arith.negf %861 : vector<16x8xf32>
    %863 = math.exp %862 : vector<16x8xf32>
    %cst_247 = arith.constant 1.000000e+00 : f32
    %864 = vector.broadcast %cst_247 : f32 to vector<16x8xf32>
    %865 = arith.addf %864, %863 : vector<16x8xf32>
    %866 = arith.divf %864, %865 : vector<16x8xf32>
    %867 = vector.extract_strided_slice %855 {offsets = [0, 8], sizes = [16, 8], strides = [1, 1]} : vector<16x24xf32> to vector<16x8xf32>
    %868 = vector.extract_strided_slice %858 {offsets = [0, 8], sizes = [16, 8], strides = [1, 1]} : vector<16x24xf32> to vector<16x8xf32>
    %869 = arith.addf %867, %868 : vector<16x8xf32>
    %870 = arith.negf %869 : vector<16x8xf32>
    %871 = math.exp %870 : vector<16x8xf32>
    %cst_248 = arith.constant 1.000000e+00 : f32
    %872 = vector.broadcast %cst_248 : f32 to vector<16x8xf32>
    %873 = arith.addf %872, %871 : vector<16x8xf32>
    %874 = arith.divf %872, %873 : vector<16x8xf32>
    %875 = vector.extract_strided_slice %855 {offsets = [0, 16], sizes = [16, 8], strides = [1, 1]} : vector<16x24xf32> to vector<16x8xf32>
    %876 = vector.extract_strided_slice %858 {offsets = [0, 16], sizes = [16, 8], strides = [1, 1]} : vector<16x24xf32> to vector<16x8xf32>
    %877 = arith.mulf %866, %876 : vector<16x8xf32>
    %878 = arith.addf %875, %877 : vector<16x8xf32>
    %879 = math.tanh %878 : vector<16x8xf32>
    %cst_249 = arith.constant 1.000000e+00 : f32
    %880 = vector.broadcast %cst_249 : f32 to vector<16x8xf32>
    %881 = arith.subf %880, %874 : vector<16x8xf32>
    %882 = arith.mulf %881, %879 : vector<16x8xf32>
    %883 = arith.mulf %874, %848 : vector<16x8xf32>
    %884 = arith.addf %882, %883 : vector<16x8xf32>
    %885 = arith.index_cast %c6_i32_243 : i32 to index
    %c0_250 = arith.constant 0 : index
    %c0_251 = arith.constant 0 : index
    %886 = vector.load %arg23[%885, %c0_250, %c0_251] : memref<8x16x8xf32, #tpu.memory_space<vmem>>, vector<1x16x8xf32>
    %887 = vector.shape_cast %886 : vector<1x16x8xf32> to vector<16x8xf32>
    %888 = vector.shape_cast %884 : vector<16x8xf32> to vector<1x16x8xf32>
    tpu.vector_store %arg23[%885, %c0_250, %c0_251], %888 {strides = array<i32>} : memref<8x16x8xf32, #tpu.memory_space<vmem>>, vector<1x16x8xf32>,
    %c7_i32_252 = arith.constant 7 : i32
    %889 = arith.index_cast %c7_i32_252 : i32 to index
    %c0_253 = arith.constant 0 : index
    %c0_254 = arith.constant 0 : index
    %890 = vector.load %arg20[%889, %c0_253, %c0_254] : memref<8x16x24xf32, #tpu.memory_space<vmem>>, vector<1x16x24xf32>
    %891 = vector.shape_cast %890 : vector<1x16x24xf32> to vector<16x24xf32>
    %cst_255 = arith.constant dense<0.000000e+00> : vector<16x24xf32>
    %892 = tpu.matmul %884, %20, %cst_255 {dimension_numbers = #tpu.dot_dimension_numbers<[1], [0], [0], [1], [0, 0, 1, 1], [], []>} : vector<16x8xf32>, vector<8x24xf32>, vector<16x24xf32> -> vector<16x24xf32>
    %893 = vector.broadcast %21 : vector<1x24xf32> to vector<16x24xf32>
    %894 = arith.addf %892, %893 : vector<16x24xf32>
    %895 = vector.extract_strided_slice %891 {offsets = [0, 0], sizes = [16, 8], strides = [1, 1]} : vector<16x24xf32> to vector<16x8xf32>
    %896 = vector.extract_strided_slice %894 {offsets = [0, 0], sizes = [16, 8], strides = [1, 1]} : vector<16x24xf32> to vector<16x8xf32>
    %897 = arith.addf %895, %896 : vector<16x8xf32>
    %898 = arith.negf %897 : vector<16x8xf32>
    %899 = math.exp %898 : vector<16x8xf32>
    %cst_256 = arith.constant 1.000000e+00 : f32
    %900 = vector.broadcast %cst_256 : f32 to vector<16x8xf32>
    %901 = arith.addf %900, %899 : vector<16x8xf32>
    %902 = arith.divf %900, %901 : vector<16x8xf32>
    %903 = vector.extract_strided_slice %891 {offsets = [0, 8], sizes = [16, 8], strides = [1, 1]} : vector<16x24xf32> to vector<16x8xf32>
    %904 = vector.extract_strided_slice %894 {offsets = [0, 8], sizes = [16, 8], strides = [1, 1]} : vector<16x24xf32> to vector<16x8xf32>
    %905 = arith.addf %903, %904 : vector<16x8xf32>
    %906 = arith.negf %905 : vector<16x8xf32>
    %907 = math.exp %906 : vector<16x8xf32>
    %cst_257 = arith.constant 1.000000e+00 : f32
    %908 = vector.broadcast %cst_257 : f32 to vector<16x8xf32>
    %909 = arith.addf %908, %907 : vector<16x8xf32>
    %910 = arith.divf %908, %909 : vector<16x8xf32>
    %911 = vector.extract_strided_slice %891 {offsets = [0, 16], sizes = [16, 8], strides = [1, 1]} : vector<16x24xf32> to vector<16x8xf32>
    %912 = vector.extract_strided_slice %894 {offsets = [0, 16], sizes = [16, 8], strides = [1, 1]} : vector<16x24xf32> to vector<16x8xf32>
    %913 = arith.mulf %902, %912 : vector<16x8xf32>
    %914 = arith.addf %911, %913 : vector<16x8xf32>
    %915 = math.tanh %914 : vector<16x8xf32>
    %cst_258 = arith.constant 1.000000e+00 : f32
    %916 = vector.broadcast %cst_258 : f32 to vector<16x8xf32>
    %917 = arith.subf %916, %910 : vector<16x8xf32>
    %918 = arith.mulf %917, %915 : vector<16x8xf32>
    %919 = arith.mulf %910, %884 : vector<16x8xf32>
    %920 = arith.addf %918, %919 : vector<16x8xf32>
    %921 = arith.index_cast %c7_i32_252 : i32 to index
    %c0_259 = arith.constant 0 : index
    %c0_260 = arith.constant 0 : index
    %922 = vector.load %arg23[%921, %c0_259, %c0_260] : memref<8x16x8xf32, #tpu.memory_space<vmem>>, vector<1x16x8xf32>
    %923 = vector.shape_cast %922 : vector<1x16x8xf32> to vector<16x8xf32>
    %924 = vector.shape_cast %920 : vector<16x8xf32> to vector<1x16x8xf32>
    tpu.vector_store %arg23[%921, %c0_259, %c0_260], %924 {strides = array<i32>} : memref<8x16x8xf32, #tpu.memory_space<vmem>>, vector<1x16x8xf32>,
    %c8_i32_261 = arith.constant 8 : i32
    %c0_262 = arith.constant 0 : index
    %c0_263 = arith.constant 0 : index
    %c0_264 = arith.constant 0 : index
    %925 = vector.load %arg23[%c0_262, %c0_263, %c0_264] : memref<8x16x8xf32, #tpu.memory_space<vmem>>, vector<8x16x8xf32>
    %926 = arith.addf %0, %925 : vector<8x16x8xf32>
    %927 = vector.shape_cast %926 : vector<8x16x8xf32> to vector<128x8xf32>
    %cst_265 = arith.constant dense<0.000000e+00> : vector<128xf32>
    %928 = vector.multi_reduction <add>, %927, %cst_265 [1] : vector<128x8xf32> to vector<128xf32>
    %929 = vector.shape_cast %928 : vector<128xf32> to vector<128x1xf32>
    %cst_266 = arith.constant 8.000000e+00 : f32
    %930 = vector.broadcast %cst_266 : f32 to vector<128x1xf32>
    %931 = arith.divf %929, %930 : vector<128x1xf32>
    %932 = vector.broadcast %931 : vector<128x1xf32> to vector<128x8xf32>
    %933 = arith.subf %927, %932 : vector<128x8xf32>
    %934 = arith.mulf %933, %933 : vector<128x8xf32>
    %cst_267 = arith.constant dense<0.000000e+00> : vector<128xf32>
    %935 = vector.multi_reduction <add>, %934, %cst_267 [1] : vector<128x8xf32> to vector<128xf32>
    %936 = vector.shape_cast %935 : vector<128xf32> to vector<128x1xf32>
    %cst_268 = arith.constant 8.000000e+00 : f32
    %937 = vector.broadcast %cst_268 : f32 to vector<128x1xf32>
    %938 = arith.divf %936, %937 : vector<128x1xf32>
    %939 = vector.broadcast %931 : vector<128x1xf32> to vector<128x8xf32>
    %940 = arith.subf %927, %939 : vector<128x8xf32>
    %cst_269 = arith.constant 9.99999974E-6 : f32
    %941 = vector.broadcast %cst_269 : f32 to vector<128x1xf32>
    %942 = arith.addf %938, %941 : vector<128x1xf32>
    %943 = math.rsqrt %942 : vector<128x1xf32>
    %944 = vector.broadcast %943 : vector<128x1xf32> to vector<128x8xf32>
    %945 = arith.mulf %940, %944 : vector<128x8xf32>
    %c0_270 = arith.constant 0 : index
    %c0_271 = arith.constant 0 : index
    %946 = vector.load %arg15[%c0_270, %c0_271] : memref<1x8xf32, #tpu.memory_space<vmem>>, vector<1x8xf32>
    %947 = vector.broadcast %946 : vector<1x8xf32> to vector<128x8xf32>
    %948 = arith.mulf %945, %947 : vector<128x8xf32>
    %c0_272 = arith.constant 0 : index
    %c0_273 = arith.constant 0 : index
    %949 = vector.load %arg16[%c0_272, %c0_273] : memref<1x8xf32, #tpu.memory_space<vmem>>, vector<1x8xf32>
    %950 = vector.broadcast %949 : vector<1x8xf32> to vector<128x8xf32>
    %951 = arith.addf %948, %950 : vector<128x8xf32>
    %952 = vector.shape_cast %951 : vector<128x8xf32> to vector<8x16x8xf32>
    %c0_274 = arith.constant 0 : index
    %c0_275 = arith.constant 0 : index
    %c0_276 = arith.constant 0 : index
    %953 = vector.load %arg17[%c0_274, %c0_275, %c0_276] : memref<8x16x8xf32, #tpu.memory_space<vmem>>, vector<8x16x8xf32>
    tpu.vector_store %arg17[%c0_274, %c0_275, %c0_276], %952 {strides = array<i32>} : memref<8x16x8xf32, #tpu.memory_space<vmem>>, vector<8x16x8xf32>,
    return
  }
  func.func @transform_0(%arg0: i32) -> (i32, i32, i32) {
    %c0_i32 = arith.constant 0 : i32
    %c0_i32_0 = arith.constant 0 : i32
    %c0_i32_1 = arith.constant 0 : i32
    return %c0_i32, %arg0, %c0_i32_0 : i32, i32, i32
  }
  func.func @transform_1(%arg0: i32) -> (i32, i32) {
    %c0_i32 = arith.constant 0 : i32
    %c0_i32_0 = arith.constant 0 : i32
    %c0_i32_1 = arith.constant 0 : i32
    return %c0_i32, %c0_i32_0 : i32, i32
  }
  func.func @transform_2(%arg0: i32) -> (i32, i32) {
    %c0_i32 = arith.constant 0 : i32
    %c0_i32_0 = arith.constant 0 : i32
    %c0_i32_1 = arith.constant 0 : i32
    return %c0_i32, %c0_i32_0 : i32, i32
  }
  func.func @transform_3(%arg0: i32) -> (i32, i32) {
    %c0_i32 = arith.constant 0 : i32
    %c0_i32_0 = arith.constant 0 : i32
    %c0_i32_1 = arith.constant 0 : i32
    return %c0_i32, %c0_i32_0 : i32, i32
  }
  func.func @transform_4(%arg0: i32) -> (i32, i32) {
    %c0_i32 = arith.constant 0 : i32
    %c0_i32_0 = arith.constant 0 : i32
    %c0_i32_1 = arith.constant 0 : i32
    return %c0_i32, %c0_i32_0 : i32, i32
  }
  func.func @transform_5(%arg0: i32) -> (i32, i32) {
    %c0_i32 = arith.constant 0 : i32
    %c0_i32_0 = arith.constant 0 : i32
    %c0_i32_1 = arith.constant 0 : i32
    return %c0_i32, %c0_i32_0 : i32, i32
  }
  func.func @transform_6(%arg0: i32) -> (i32, i32) {
    %c0_i32 = arith.constant 0 : i32
    %c0_i32_0 = arith.constant 0 : i32
    %c0_i32_1 = arith.constant 0 : i32
    return %c0_i32, %c0_i32_0 : i32, i32
  }
  func.func @transform_7(%arg0: i32) -> (i32, i32) {
    %c0_i32 = arith.constant 0 : i32
    %c0_i32_0 = arith.constant 0 : i32
    %c0_i32_1 = arith.constant 0 : i32
    return %c0_i32, %c0_i32_0 : i32, i32
  }
  func.func @transform_8(%arg0: i32) -> (i32, i32) {
    %c0_i32 = arith.constant 0 : i32
    %c0_i32_0 = arith.constant 0 : i32
    %c0_i32_1 = arith.constant 0 : i32
    return %c0_i32, %c0_i32_0 : i32, i32
  }
  func.func @transform_9(%arg0: i32) -> (i32, i32) {
    %c0_i32 = arith.constant 0 : i32
    %c0_i32_0 = arith.constant 0 : i32
    %c0_i32_1 = arith.constant 0 : i32
    return %c0_i32, %c0_i32_0 : i32, i32
  }
  func.func @transform_10(%arg0: i32) -> (i32, i32) {
    %c0_i32 = arith.constant 0 : i32
    %c0_i32_0 = arith.constant 0 : i32
    %c0_i32_1 = arith.constant 0 : i32
    return %c0_i32, %c0_i32_0 : i32, i32
  }
  func.func @transform_11(%arg0: i32) -> (i32, i32) {
    %c0_i32 = arith.constant 0 : i32
    %c0_i32_0 = arith.constant 0 : i32
    %c0_i32_1 = arith.constant 0 : i32
    return %c0_i32, %c0_i32_0 : i32, i32
  }
  func.func @transform_12(%arg0: i32) -> (i32, i32) {
    %c0_i32 = arith.constant 0 : i32
    %c0_i32_0 = arith.constant 0 : i32
    %c0_i32_1 = arith.constant 0 : i32
    return %c0_i32, %c0_i32_0 : i32, i32
  }
  func.func @transform_13(%arg0: i32) -> (i32, i32) {
    %c0_i32 = arith.constant 0 : i32
    %c0_i32_0 = arith.constant 0 : i32
    %c0_i32_1 = arith.constant 0 : i32
    return %c0_i32, %c0_i32_0 : i32, i32
  }
  func.func @transform_14(%arg0: i32) -> (i32, i32) {
    %c0_i32 = arith.constant 0 : i32
    %c0_i32_0 = arith.constant 0 : i32
    %c0_i32_1 = arith.constant 0 : i32
    return %c0_i32, %c0_i32_0 : i32, i32
  }
  func.func @transform_15(%arg0: i32) -> (i32, i32) {
    %c0_i32 = arith.constant 0 : i32
    %c0_i32_0 = arith.constant 0 : i32
    %c0_i32_1 = arith.constant 0 : i32
    return %c0_i32, %c0_i32_0 : i32, i32
  }
  func.func @transform_16(%arg0: i32) -> (i32, i32, i32) {
    %c0_i32 = arith.constant 0 : i32
    %c0_i32_0 = arith.constant 0 : i32
    %c0_i32_1 = arith.constant 0 : i32
    return %c0_i32, %arg0, %c0_i32_0 : i32, i32, i32
  }
}

module attributes {stable_mosaic.version = 11 : i64} {
  func.func @_gn_res_kernel(%arg0: i32, %arg1: memref<1x8x64xf32, #tpu.memory_space<vmem>>, %arg2: memref<1x8x64xf32, #tpu.memory_space<vmem>>, %arg3: memref<1x8x1xf32, #tpu.memory_space<vmem>>, %arg4: memref<1x8x1xf32, #tpu.memory_space<vmem>>, %arg5: memref<1x8x64xf32, #tpu.memory_space<vmem>>) attributes {dimension_semantics = [#tpu.dimension_semantics<parallel>], iteration_bounds = array<i64: 2>, scalar_prefetch = 0 : i64, scratch_operands = 0 : i64, tpu.core_type = #tpu.core_type<tc>, window_params = [{transform_indices = @transform_0, window_bounds = array<i64: 1, 8, 64>}, {transform_indices = @transform_1, window_bounds = array<i64: 1, 8, 64>}, {pipeline_mode = #tpu.pipeline_mode<synchronous>, transform_indices = @transform_2, window_bounds = array<i64: 1, 8, 1>}, {pipeline_mode = #tpu.pipeline_mode<synchronous>, transform_indices = @transform_3, window_bounds = array<i64: 1, 8, 1>}, {transform_indices = @transform_4, window_bounds = array<i64: 1, 8, 64>}]} {
    %c0 = arith.constant 0 : index
    %c0_0 = arith.constant 0 : index
    %c0_1 = arith.constant 0 : index
    %0 = vector.load %arg1[%c0, %c0_0, %c0_1] : memref<1x8x64xf32, #tpu.memory_space<vmem>>, vector<1x8x64xf32>
    %cst = arith.constant dense<0.000000e+00> : vector<1xf32>
    %1 = vector.multi_reduction <add>, %0, %cst [1, 2] : vector<1x8x64xf32> to vector<1xf32>
    %2 = vector.shape_cast %1 : vector<1xf32> to vector<1x1x1xf32>
    %cst_2 = arith.constant 5.120000e+02 : f32
    %3 = vector.broadcast %cst_2 : f32 to vector<1x1x1xf32>
    %4 = arith.divf %2, %3 : vector<1x1x1xf32>
    %5 = vector.broadcast %4 : vector<1x1x1xf32> to vector<1x8x64xf32>
    %6 = arith.subf %0, %5 : vector<1x8x64xf32>
    %7 = arith.mulf %6, %6 : vector<1x8x64xf32>
    %cst_3 = arith.constant dense<0.000000e+00> : vector<1xf32>
    %8 = vector.multi_reduction <add>, %7, %cst_3 [1, 2] : vector<1x8x64xf32> to vector<1xf32>
    %9 = vector.shape_cast %8 : vector<1xf32> to vector<1x1x1xf32>
    %cst_4 = arith.constant 5.120000e+02 : f32
    %10 = vector.broadcast %cst_4 : f32 to vector<1x1x1xf32>
    %11 = arith.divf %9, %10 : vector<1x1x1xf32>
    %12 = vector.broadcast %4 : vector<1x1x1xf32> to vector<1x8x64xf32>
    %13 = arith.subf %0, %12 : vector<1x8x64xf32>
    %cst_5 = arith.constant 9.99999993E-9 : f32
    %14 = vector.broadcast %cst_5 : f32 to vector<1x1x1xf32>
    %15 = arith.addf %11, %14 : vector<1x1x1xf32>
    %16 = math.rsqrt %15 : vector<1x1x1xf32>
    %17 = vector.broadcast %16 : vector<1x1x1xf32> to vector<1x8x64xf32>
    %18 = arith.mulf %13, %17 : vector<1x8x64xf32>
    %c0_6 = arith.constant 0 : index
    %c0_7 = arith.constant 0 : index
    %c0_8 = arith.constant 0 : index
    %19 = vector.load %arg3[%c0_6, %c0_7, %c0_8] : memref<1x8x1xf32, #tpu.memory_space<vmem>>, vector<1x8x1xf32>
    %20 = vector.broadcast %19 : vector<1x8x1xf32> to vector<1x8x64xf32>
    %21 = arith.mulf %18, %20 : vector<1x8x64xf32>
    %c0_9 = arith.constant 0 : index
    %c0_10 = arith.constant 0 : index
    %c0_11 = arith.constant 0 : index
    %22 = vector.load %arg4[%c0_9, %c0_10, %c0_11] : memref<1x8x1xf32, #tpu.memory_space<vmem>>, vector<1x8x1xf32>
    %23 = vector.broadcast %22 : vector<1x8x1xf32> to vector<1x8x64xf32>
    %24 = arith.addf %21, %23 : vector<1x8x64xf32>
    %c0_12 = arith.constant 0 : index
    %c0_13 = arith.constant 0 : index
    %c0_14 = arith.constant 0 : index
    %25 = vector.load %arg2[%c0_12, %c0_13, %c0_14] : memref<1x8x64xf32, #tpu.memory_space<vmem>>, vector<1x8x64xf32>
    %26 = arith.addf %25, %24 : vector<1x8x64xf32>
    %c0_15 = arith.constant 0 : index
    %c0_16 = arith.constant 0 : index
    %c0_17 = arith.constant 0 : index
    %27 = vector.load %arg5[%c0_15, %c0_16, %c0_17] : memref<1x8x64xf32, #tpu.memory_space<vmem>>, vector<1x8x64xf32>
    tpu.vector_store %arg5[%c0_15, %c0_16, %c0_17], %26 {strides = array<i32>} : memref<1x8x64xf32, #tpu.memory_space<vmem>>, vector<1x8x64xf32>,
    return
  }
  func.func @transform_0(%arg0: i32) -> (i32, i32, i32) {
    %c0_i32 = arith.constant 0 : i32
    %c0_i32_0 = arith.constant 0 : i32
    %c0_i32_1 = arith.constant 0 : i32
    return %arg0, %c0_i32, %c0_i32_0 : i32, i32, i32
  }
  func.func @transform_1(%arg0: i32) -> (i32, i32, i32) {
    %c0_i32 = arith.constant 0 : i32
    %c0_i32_0 = arith.constant 0 : i32
    %c0_i32_1 = arith.constant 0 : i32
    return %arg0, %c0_i32, %c0_i32_0 : i32, i32, i32
  }
  func.func @transform_2(%arg0: i32) -> (i32, i32, i32) {
    %c0_i32 = arith.constant 0 : i32
    %c0_i32_0 = arith.constant 0 : i32
    %c0_i32_1 = arith.constant 0 : i32
    %c0_i32_2 = arith.constant 0 : i32
    return %c0_i32, %c0_i32_0, %c0_i32_1 : i32, i32, i32
  }
  func.func @transform_3(%arg0: i32) -> (i32, i32, i32) {
    %c0_i32 = arith.constant 0 : i32
    %c0_i32_0 = arith.constant 0 : i32
    %c0_i32_1 = arith.constant 0 : i32
    %c0_i32_2 = arith.constant 0 : i32
    return %c0_i32, %c0_i32_0, %c0_i32_1 : i32, i32, i32
  }
  func.func @transform_4(%arg0: i32) -> (i32, i32, i32) {
    %c0_i32 = arith.constant 0 : i32
    %c0_i32_0 = arith.constant 0 : i32
    %c0_i32_1 = arith.constant 0 : i32
    return %arg0, %c0_i32, %c0_i32_0 : i32, i32, i32
  }
}

module attributes {stable_mosaic.version = 11 : i64} {
  func.func @_conv1x1_prelu_kernel(%arg0: i32, %arg1: memref<128x8xf32, #tpu.memory_space<vmem>>, %arg2: memref<8x16xf32, #tpu.memory_space<vmem>>, %arg3: memref<1x16xf32, #tpu.memory_space<vmem>>, %arg4: memref<1x1xf32, #tpu.memory_space<vmem>>, %arg5: memref<128x16xf32, #tpu.memory_space<vmem>>) attributes {dimension_semantics = [#tpu.dimension_semantics<parallel>], iteration_bounds = array<i64: 1>, scalar_prefetch = 0 : i64, scratch_operands = 0 : i64, tpu.core_type = #tpu.core_type<tc>, window_params = [{transform_indices = @transform_0, window_bounds = array<i64: 128, 8>}, {pipeline_mode = #tpu.pipeline_mode<synchronous>, transform_indices = @transform_1, window_bounds = array<i64: 8, 16>}, {pipeline_mode = #tpu.pipeline_mode<synchronous>, transform_indices = @transform_2, window_bounds = array<i64: 1, 16>}, {pipeline_mode = #tpu.pipeline_mode<synchronous>, transform_indices = @transform_3, window_bounds = array<i64: 1, 1>}, {transform_indices = @transform_4, window_bounds = array<i64: 128, 16>}]} {
    %c0 = arith.constant 0 : index
    %c0_0 = arith.constant 0 : index
    %0 = vector.load %arg1[%c0, %c0_0] : memref<128x8xf32, #tpu.memory_space<vmem>>, vector<128x8xf32>
    %c0_1 = arith.constant 0 : index
    %c0_2 = arith.constant 0 : index
    %1 = vector.load %arg4[%c0_1, %c0_2] : memref<1x1xf32, #tpu.memory_space<vmem>>, vector<1x1xf32>
    %cst = arith.constant 0.000000e+00 : f32
    %2 = vector.broadcast %cst : f32 to vector<128x8xf32>
    %3 = arith.cmpf oge, %0, %2 : vector<128x8xf32>
    %4 = vector.broadcast %1 : vector<1x1xf32> to vector<128x8xf32>
    %5 = arith.mulf %0, %4 : vector<128x8xf32>
    %6 = arith.select %3, %0, %5 : vector<128x8xi1>, vector<128x8xf32>
    %c0_3 = arith.constant 0 : index
    %c0_4 = arith.constant 0 : index
    %7 = vector.load %arg2[%c0_3, %c0_4] : memref<8x16xf32, #tpu.memory_space<vmem>>, vector<8x16xf32>
    %cst_5 = arith.constant dense<0.000000e+00> : vector<128x16xf32>
    %8 = tpu.matmul %6, %7, %cst_5 {dimension_numbers = #tpu.dot_dimension_numbers<[1], [0], [0], [1], [0, 0, 1, 1], [], []>} : vector<128x8xf32>, vector<8x16xf32>, vector<128x16xf32> -> vector<128x16xf32>
    %c0_6 = arith.constant 0 : index
    %c0_7 = arith.constant 0 : index
    %9 = vector.load %arg3[%c0_6, %c0_7] : memref<1x16xf32, #tpu.memory_space<vmem>>, vector<1x16xf32>
    %10 = vector.broadcast %9 : vector<1x16xf32> to vector<128x16xf32>
    %11 = arith.addf %8, %10 : vector<128x16xf32>
    %c0_8 = arith.constant 0 : index
    %c0_9 = arith.constant 0 : index
    %12 = vector.load %arg5[%c0_8, %c0_9] : memref<128x16xf32, #tpu.memory_space<vmem>>, vector<128x16xf32>
    tpu.vector_store %arg5[%c0_8, %c0_9], %11 {strides = array<i32>} : memref<128x16xf32, #tpu.memory_space<vmem>>, vector<128x16xf32>,
    return
  }
  func.func @transform_0(%arg0: i32) -> (i32, i32) {
    %c0_i32 = arith.constant 0 : i32
    %c0_i32_0 = arith.constant 0 : i32
    return %arg0, %c0_i32 : i32, i32
  }
  func.func @transform_1(%arg0: i32) -> (i32, i32) {
    %c0_i32 = arith.constant 0 : i32
    %c0_i32_0 = arith.constant 0 : i32
    %c0_i32_1 = arith.constant 0 : i32
    return %c0_i32, %c0_i32_0 : i32, i32
  }
  func.func @transform_2(%arg0: i32) -> (i32, i32) {
    %c0_i32 = arith.constant 0 : i32
    %c0_i32_0 = arith.constant 0 : i32
    %c0_i32_1 = arith.constant 0 : i32
    return %c0_i32, %c0_i32_0 : i32, i32
  }
  func.func @transform_3(%arg0: i32) -> (i32, i32) {
    %c0_i32 = arith.constant 0 : i32
    %c0_i32_0 = arith.constant 0 : i32
    %c0_i32_1 = arith.constant 0 : i32
    return %c0_i32, %c0_i32_0 : i32, i32
  }
  func.func @transform_4(%arg0: i32) -> (i32, i32) {
    %c0_i32 = arith.constant 0 : i32
    %c0_i32_0 = arith.constant 0 : i32
    return %arg0, %c0_i32 : i32, i32
  }
}

</mosaic_0001>

<bundles_post_ra>
// kernel: dual_transformer_forward.8
= control target key start
LH: loop header
LB: loop body
LE: loop exit
PB: predicated region body
PF: predicated region fallthrough
CT: control target
= control target key end

     0   :  { %s587_s0 = inlined_call_operand.hbm [shape: f32[128,16], index: 0, kind: input, shape index: {}]   ;;  %s588_s1 = inlined_call_operand.vmem [shape: f32[16,8], index: 1, kind: input, shape index: {}]   ;;  %s589_s2 = inlined_call_operand.vmem [shape: f32[1,8], index: 2, kind: input, shape index: {}]   ;;  %s590_s3 = inlined_call_operand.<no memory space> [shape: f32[1,1], index: 3, kind: input, shape index: {}]   ;;  %s591_s4 = inlined_call_operand.vmem [shape: f32[128,8], index: 4, kind: output, shape index: {}]  }
   0x1   :  { %v9_v0 = vstv %s590_s3 }
   0x2   :  { %10 = vst [vmem:[#allocation2] sm:$0x1] %v9_v0 }
   0x3   :  { %11 = vsyncpa [#allocation4], 0  ;;  %s427_s17 = smov [#allocation3]  }
   0x4   :  { %s17_s18 = sshll.u32 %s427_s17, 4  ;;  %s18_s18 = int_to_ptr.vmem [resolvable:$true] %s17_s18 }
   0x5   :  { %s413_s19 = scalar_lea.vmem %s18_s18, 2048  ;;  %p418_p1 = scmp.lt.s32.totalorder %s18_s18, %s18_s18 }
   0x6   :  { %p414_p0 = scmp.ne.s32.totalorder %s18_s18, %s413_s19  ;;  %p419_p2 = scmp.lt.s32.totalorder %s413_s19, %s413_s19 }
   0x8   :  { %p420_p3 = por %p419_p2, %p418_p1 }
   0xa   :  { %p421_p4 = pnand %p420_p3, %p414_p0 }
   0xc   :  { %424 = shalt.err (!%p421_p4)
}
   0xd   :  { %s428_s20 = smov 128   ;;  %s429_s21 = smov 8  }
   0xe   :  { %23 = dma.hbm_to_vmem [thread:$0]  %s587_s0, 2048, %s18_s18, [#allocation4], %s428_s20, %s428_s20, %s429_s21  }
   0xf   :  { %425 = dma.done.wait [#allocation4], 2048  }
  0x10   :  { %426 = vsyncadd [#allocation4], 4294965248  ;;  %v430_v1 = vmov 0   ;;  %v51_v2 = vld [vmem:[%s588_s1 + $0x8] sm:$0xff]  ;;  %v50_v3 = vld [vmem:[%s588_s1] sm:$0xff]  ;;  %vm59_vm0 = vcmask 130048  }
  0x11   :  { %404 = vset.pattern.permute.xlu0 %v430_v1  ;;  %368 = vmatprep.subr.mxu0 %v51_v2  ;;  %v33_v4 = vld [vmem:[#allocation3] sm:$0xff]  ;;  %v34_v6 = vld [vmem:[#allocation3 + $0x8] sm:$0xff]  ;;  %v35_v8 = vld [vmem:[#allocation3 + $0x10] sm:$0xff]  ;;  %vm310_vm1 = vcmask 64512  }
  0x12   :  { %396 = vmatprep.subr.mxu1 %v51_v2  ;;  %369 = vmatpush3.msra.mxu0 %v51_v2  ;;  %v41_v5 = vld [vmem:[#allocation3 + $0x40] sm:$0xff]  ;;  %v42_v7 = vld [vmem:[#allocation3 + $0x48] sm:$0xff]  ;;  %v43_v9 = vld [vmem:[#allocation3 + $0x50] sm:$0xff] }
  0x13   :  { %398 = vmatpush3.msra.mxu1 %v51_v2  ;;  %370 = vmatprep.subr.mxu0 %v50_v3  ;;  %v349_v10 = vld [vmem:[#allocation2] ss:$0 sm:$0xff]  ;;  %v37_v13 = vld [vmem:[#allocation3 + $0x20] sm:$0xff]  ;;  %v38_v15 = vld [vmem:[#allocation3 + $0x28] sm:$0xff] }
  0x14   :  { %397 = vmatprep.subr.mxu1 %v50_v3  ;;  %371 = vmatpush3.msra.mxu0 %v50_v3  ;;  %v36_v11 = vld [vmem:[#allocation3 + $0x18] sm:$0xff]  ;;  %v45_v14 = vld [vmem:[#allocation3 + $0x60] sm:$0xff]  ;;  %v46_v16 = vld [vmem:[#allocation3 + $0x68] sm:$0xff] }
  0x15   :  { %399 = vmatpush3.msra.mxu1 %v50_v3  ;;  %372 = vmatprep.mubr.msk.f32.mxu0 %vm59_vm0, %v33_v4  ;;  %v44_v12 = vld [vmem:[#allocation3 + $0x58] sm:$0xff]  ;;  %v39_v17 = vld [vmem:[#allocation3 + $0x30] sm:$0xff] }
  0x16   :  { %384 = vmatprep.mubr.msk.f32.mxu1 %vm59_vm0, %v41_v5  ;;  %373 = vmatmul.mubr.msk.f32.vlgmr.msra.gmra.mxu0 %vm59_vm0, %v34_v6  ;;  %v47_v18 = vld [vmem:[#allocation3 + $0x70] sm:$0xff]  ;;  %v40_v19 = vld [vmem:[#allocation3 + $0x38] sm:$0xff] }
  0x17   :  { %385 = vmatmul.mubr.msk.f32.vlgmr.msra.gmra.mxu1 %vm59_vm0, %v42_v7  ;;  %375 = vmatprep.mubr.msk.f32.mxu0 %vm59_vm0, %v35_v8  ;;  %v48_v20 = vld [vmem:[#allocation3 + $0x78] sm:$0xff] }
  0x18   :  { %387 = vmatprep.mubr.msk.f32.mxu1 %vm59_vm0, %v43_v9  ;;  %275 = vperm.xlu0 %404, %v349_v10   ;;  %v487_v21 = vld [vmem:[%s589_s2] ss:$0 sm:$0xff] }
  0x1a   :  { %376 = vmatmul.mubr.msk.f32.gmra.mxu0 %vm59_vm0, %v36_v11 }
  0x1b   :  { %388 = vmatmul.mubr.msk.f32.gmra.mxu1 %vm59_vm0, %v44_v12  ;;  %378 = vmatprep.mubr.msk.f32.mxu0 %vm59_vm0, %v37_v13 }
  0x1c   :  { %390 = vmatprep.mubr.msk.f32.mxu1 %vm59_vm0, %v45_v14 }
  0x1e   :  { %379 = vmatmul.mubr.msk.f32.gmra.mxu0 %vm59_vm0, %v38_v15 }
  0x1f   :  { %391 = vmatmul.mubr.msk.f32.gmra.mxu1 %vm59_vm0, %v46_v16  ;;  %381 = vmatprep.mubr.msk.f32.mxu0 %vm59_vm0, %v39_v17 }
  0x20   :  { %393 = vmatprep.mubr.msk.f32.mxu1 %vm59_vm0, %v47_v18 }
  0x22   :  { %382 = vmatmul.mubr.msk.f32.gmra.mxu0 %vm59_vm0, %v40_v19 }
  0x23   :  { %394 = vmatmul.mubr.msk.f32.gmra.mxu1 %vm59_vm0, %v48_v20 }
  0x93   :  { %v489_v22 = vpop.permute.xlu0 %275 }
  0xd6   :  { %v374_v23 = vpop.f32.mrf.mxu0 }
  0xd7   :  { %v386_v24 = vpop.f32.mrf.mxu1  ;;  %v180_v25 = vadd.f32 %v374_v23, %v487_v21 }
  0xd8   :  { %v220_v26 = vadd.f32 %v386_v24, %v487_v21  ;;  %v174_v27 = vpop.f32.mrf.mxu0 }
  0xd9   :  { %v214_v28 = vpop.f32.mrf.mxu1  ;;  %vm254_vm2 = vcmp.ge.f32.partialorder %v180_v25, 0.0  ;;  %v279_v29 = vmul.f32 %v489_v22, %v180_v25  ;;  %v175_v31 = vadd.f32 %v487_v21, %v174_v27 }
  0xda   :  { %vm262_vm3 = vcmp.ge.f32.partialorder %v220_v26, 0.0  ;;  %v287_v30 = vmul.f32 %v489_v22, %v220_v26  ;;  %v215_v32 = vadd.f32 %v487_v21, %v214_v28  ;;  %v377_v33 = vpop.f32.mrf.mxu0 }
  0xdb   :  { %v389_v34 = vpop.f32.mrf.mxu1  ;;  %v295_v35 = vsel %vm254_vm2, %v180_v25, %v279_v29  ;;  %v190_v37 = vadd.f32 %v377_v33, %v487_v21  ;;  %vm253_vm4 = vcmp.ge.f32.partialorder %v175_v31, 0.0  ;;  %v278_v39 = vmul.f32 %v489_v22, %v175_v31 }
  0xdc   :  { %v303_v36 = vsel %vm262_vm3, %v220_v26, %v287_v30  ;;  %v230_v38 = vadd.f32 %v389_v34, %v487_v21  ;;  %312 = vst.msk [vmem:[%s591_s4 + $0x8] sm:$0xff] %vm310_vm1, %v295_v35  ;;  %vm261_vm5 = vcmp.ge.f32.partialorder %v215_v32, 0.0  ;;  %v286_v40 = vmul.f32 %v489_v22, %v215_v32  ;;  %v184_v41 = vpop.f32.mrf.mxu0 }
  0xdd   :  { %320 = vst.msk [vmem:[%s591_s4 + $0x48] sm:$0xff] %vm310_vm1, %v303_v36  ;;  %v224_v42 = vpop.f32.mrf.mxu1  ;;  %vm256_vm6 = vcmp.ge.f32.partialorder %v190_v37, 0.0  ;;  %v281_v43 = vmul.f32 %v489_v22, %v190_v37  ;;  %v294_v45 = vsel %vm253_vm4, %v175_v31, %v278_v39  ;;  %v185_v47 = vadd.f32 %v487_v21, %v184_v41 }
  0xde   :  { %vm264_vm7 = vcmp.ge.f32.partialorder %v230_v38, 0.0  ;;  %v289_v44 = vmul.f32 %v489_v22, %v230_v38  ;;  %v302_v46 = vsel %vm261_vm5, %v215_v32, %v286_v40  ;;  %v225_v48 = vadd.f32 %v487_v21, %v224_v42  ;;  %v380_v49 = vpop.f32.mrf.mxu0  ;;  %311 = vst.msk [vmem:[%s591_s4] sm:$0xff] %vm310_vm1, %v294_v45 }
  0xdf   :  { %v392_v50 = vpop.f32.mrf.mxu1  ;;  %319 = vst.msk [vmem:[%s591_s4 + $0x40] sm:$0xff] %vm310_vm1, %v302_v46  ;;  %v297_v51 = vsel %vm256_vm6, %v190_v37, %v281_v43  ;;  %v200_v53 = vadd.f32 %v380_v49, %v487_v21  ;;  %vm255_vm8 = vcmp.ge.f32.partialorder %v185_v47, 0.0  ;;  %v280_v55 = vmul.f32 %v489_v22, %v185_v47 }
  0xe0   :  { %v305_v52 = vsel %vm264_vm7, %v230_v38, %v289_v44  ;;  %v240_v54 = vadd.f32 %v392_v50, %v487_v21  ;;  %314 = vst.msk [vmem:[%s591_s4 + $0x18] sm:$0xff] %vm310_vm1, %v297_v51  ;;  %vm263_vm9 = vcmp.ge.f32.partialorder %v225_v48, 0.0  ;;  %v288_v56 = vmul.f32 %v489_v22, %v225_v48  ;;  %v194_v57 = vpop.f32.mrf.mxu0 }
  0xe1   :  { %322 = vst.msk [vmem:[%s591_s4 + $0x58] sm:$0xff] %vm310_vm1, %v305_v52  ;;  %v234_v58 = vpop.f32.mrf.mxu1  ;;  %vm258_vm10 = vcmp.ge.f32.partialorder %v200_v53, 0.0  ;;  %v283_v59 = vmul.f32 %v489_v22, %v200_v53  ;;  %v296_v61 = vsel %vm255_vm8, %v185_v47, %v280_v55  ;;  %v195_v63 = vadd.f32 %v487_v21, %v194_v57 }
  0xe2   :  { %vm266_vm11 = vcmp.ge.f32.partialorder %v240_v54, 0.0  ;;  %v291_v60 = vmul.f32 %v489_v22, %v240_v54  ;;  %v304_v62 = vsel %vm263_vm9, %v225_v48, %v288_v56  ;;  %v235_v0 = vadd.f32 %v487_v21, %v234_v58  ;;  %v383_v1 = vpop.f32.mrf.mxu0  ;;  %313 = vst.msk [vmem:[%s591_s4 + $0x10] sm:$0xff] %vm310_vm1, %v296_v61 }
  0xe3   :  { %v395_v2 = vpop.f32.mrf.mxu1  ;;  %321 = vst.msk [vmem:[%s591_s4 + $0x50] sm:$0xff] %vm310_vm1, %v304_v62  ;;  %v299_v3 = vsel %vm258_vm10, %v200_v53, %v283_v59  ;;  %v210_v5 = vadd.f32 %v383_v1, %v487_v21  ;;  %vm257_vm12 = vcmp.ge.f32.partialorder %v195_v63, 0.0  ;;  %v282_v7 = vmul.f32 %v489_v22, %v195_v63 }
  0xe4   :  { %v307_v4 = vsel %vm266_vm11, %v240_v54, %v291_v60  ;;  %v250_v6 = vadd.f32 %v395_v2, %v487_v21  ;;  %316 = vst.msk [vmem:[%s591_s4 + $0x28] sm:$0xff] %vm310_vm1, %v299_v3  ;;  %vm265_vm13 = vcmp.ge.f32.partialorder %v235_v0, 0.0  ;;  %v290_v8 = vmul.f32 %v489_v22, %v235_v0  ;;  %v204_v9 = vpop.f32.mrf.mxu0 }
  0xe5   :  { %324 = vst.msk [vmem:[%s591_s4 + $0x68] sm:$0xff] %vm310_vm1, %v307_v4  ;;  %v244_v10 = vpop.f32.mrf.mxu1  ;;  %vm260_vm14 = vcmp.ge.f32.partialorder %v210_v5, 0.0  ;;  %v285_v11 = vmul.f32 %v489_v22, %v210_v5  ;;  %v298_v13 = vsel %vm257_vm12, %v195_v63, %v282_v7  ;;  %v205_v15 = vadd.f32 %v487_v21, %v204_v9 }
  0xe6   :  { %vm268_vm15 = vcmp.ge.f32.partialorder %v250_v6, 0.0  ;;  %v293_v12 = vmul.f32 %v489_v22, %v250_v6  ;;  %v306_v14 = vsel %vm265_vm13, %v235_v0, %v290_v8  ;;  %v245_v16 = vadd.f32 %v487_v21, %v244_v10  ;;  %315 = vst.msk [vmem:[%s591_s4 + $0x20] sm:$0xff] %vm310_vm1, %v298_v13 }
  0xe7   :  { %323 = vst.msk [vmem:[%s591_s4 + $0x60] sm:$0xff] %vm310_vm1, %v306_v14  ;;  %v301_v17 = vsel %vm260_vm14, %v210_v5, %v285_v11  ;;  %vm259_vm0 = vcmp.ge.f32.partialorder %v205_v15, 0.0  ;;  %v284_v19 = vmul.f32 %v489_v22, %v205_v15 }
  0xe8   :  { %v309_v18 = vsel %vm268_vm15, %v250_v6, %v293_v12  ;;  %318 = vst.msk [vmem:[%s591_s4 + $0x38] sm:$0xff] %vm310_vm1, %v301_v17  ;;  %vm267_vm2 = vcmp.ge.f32.partialorder %v245_v16, 0.0  ;;  %v292_v20 = vmul.f32 %v489_v22, %v245_v16 }
  0xe9   :  { %326 = vst.msk [vmem:[%s591_s4 + $0x78] sm:$0xff] %vm310_vm1, %v309_v18  ;;  %v300_v21 = vsel %vm259_vm0, %v205_v15, %v284_v19 }
  0xea   :  { %v308_v23 = vsel %vm267_vm2, %v245_v16, %v292_v20  ;;  %317 = vst.msk [vmem:[%s591_s4 + $0x30] sm:$0xff] %vm310_vm1, %v300_v21 }
  0xeb   :  { %325 = vst.msk [vmem:[%s591_s4 + $0x70] sm:$0xff] %vm310_vm1, %v308_v23 }
  0xec   :  { %331 = vsyncpa [#allocation4], 1 }

// kernel: dual_transformer_forward.11
= control target key start
LH: loop header
LB: loop body
LE: loop exit
PB: predicated region body
PF: predicated region fallthrough
CT: control target
= control target key end

     0   :  { %s377_s15 = smov 0   ;;  %s411_s0 = inlined_call_operand.vmem [shape: f32[2,8,64], index: 0, kind: input, shape index: {}]   ;;  %s412_s1 = inlined_call_operand.vmem [shape: f32[2,8,64], index: 1, kind: input, shape index: {}]   ;;  %s413_s2 = inlined_call_operand.vmem [shape: f32[1,8,1], index: 2, kind: input, shape index: {}]   ;;  %s414_s3 = inlined_call_operand.vmem [shape: f32[1,8,1], index: 3, kind: input, shape index: {}]   ;;  %s415_s4 = inlined_call_operand.vmem [shape: f32[2,8,64], index: 4, kind: output, shape index: {}]  }
   0x1 LB: > { %s320_s16 = sadd.s32 4294967295, %s349_s15   ;;  %p324_p0 = scmp.ge.s32.totalorder %s349_s15, 1  ;;  %s349_s15 = sphi %s377_s15, %s14_s15  }
   0x2   : > { %p170_p1 = scmp.lt.s32.totalorder %s349_s15, 3 }
   0x4   : > { %p171_p2 = pnand %p324_p0, %p170_p1 }
   0x5   : > { %p198_p3 = scmp.lt.s32.totalorder (!%p171_p2), %s320_s16, 1 }
   0x6   : > { %174 = sbr.rel (%p171_p2) target bundleno = 350 (0x15e), region = 36 }
   0xb   : > { %s417_s16 = smov (!%p198_p3, %s320_s16), 1  ;;  %vm211_vm0 = vcmask 523264   ;;  %v238_v2 = vld [vmem:[%s413_s2] sm:$0xff]  ;;  %v351_v3 = vmov 0  }
   0xc   : > { %s385_s17 = sshll.u32 %s417_s16, 3  ;;  %339 = vset.pattern.permute.xlu1 %v351_v3  ;;  %340 = vset.pattern.permute.xlu0 %v351_v3  ;;  %v245_v4 = vld [vmem:[%s414_s3] sm:$0xff] }
   0xd   : > { %s201_s20 = scalar_lea.vmem %s411_s0, %s385_s17  ;;  %241 = vperm.xlu1 %339, %v238_v2   ;;  %s205_s27 = scalar_lea.vmem %s412_s1, %s385_s17 }
   0xe   : > { %v210_v0 = vld [vmem:[%s201_s20] sm:$0xff]  ;;  %s209_s30 = scalar_lea.vmem %s415_s4, %s385_s17 }
   0xf   : > { %v212_v1 = vsel %vm211_vm0, %v210_v0, 0.0  ;;  %v252_v30 = vld [vmem:[%s205_s27] sm:$0xff] }
  0x10   : > { %213 = vadd.xlane.f32.xlu0 %v212_v1 }
  0x11   : > { %248 = vperm.xlu1 %339, %v245_v4  }
  0x88   : > { %v242_v25 = vpop.permute.xlu1 %241 }
  0x8c   : > { %v249_v29 = vpop.permute.xlu1 %248 }
  0x99   : > { %v214_v5 = vpop.xlane.xlu0 %213 }
  0x9a   : > { %v215_v6 = vrot.slane %v214_v5, 4 }
  0x9c   : > { %v216_v7 = vadd.f32 %v215_v6, %v214_v5 }
  0x9e   : > { %v217_v8 = vrot.slane %v216_v7, 2 }
  0xa0   : > { %v218_v9 = vadd.f32 %v217_v8, %v216_v7 }
  0xa2   : > { %v219_v10 = vrot.slane %v218_v9, 1 }
  0xa4   : > { %v220_v11 = vadd.f32 %v219_v10, %v218_v9 }
  0xa6   : > { %v222_v12 = vmul.f32 0.001953125, %v220_v11 }
  0xa8   : > { %v223_v13 = vsub.f32 %v210_v0, %v222_v12 }
  0xaa   : > { %v224_v14 = vmul.f32 %v223_v13, %v223_v13 }
  0xac   : > { %v225_v15 = vsel %vm211_vm0, %v224_v14, 0.0 }
  0xad   : > { %226 = vadd.xlane.f32.xlu0 %v225_v15 }
 0x136   : > { %v227_v16 = vpop.xlane.xlu0 %226 }
 0x137   : > { %v228_v17 = vrot.slane %v227_v16, 4 }
 0x139   : > { %v229_v18 = vadd.f32 %v228_v17, %v227_v16 }
 0x13b   : > { %v230_v19 = vrot.slane %v229_v18, 2 }
 0x13d   : > { %v231_v20 = vadd.f32 %v230_v19, %v229_v18 }
 0x13f   : > { %v232_v21 = vrot.slane %v231_v20, 1 }
 0x141   : > { %v233_v22 = vadd.f32 %v232_v21, %v231_v20 }
 0x143   : > { %v234_v23 = vmul.f32 0.001953125, %v233_v22 }
 0x145   : > { %v235_v24 = vadd.f32 1e-08, %v234_v23 }
 0x147   : > { %341 = vrsqrt.f32 %v235_v24 }
 0x154   : > { %v342_v26 = vpop.eup %341 }
 0x155   : > { %v237_v27 = vmul.f32 %v342_v26, %v223_v13 }
 0x157   : > { %v244_v28 = vmul.f32 %v242_v25, %v237_v27 }
 0x159   : > { %v251_v31 = vadd.f32 %v249_v29, %v244_v28 }
 0x15b   : > { %v253_v32 = vadd.f32 %v252_v30, %v251_v31 }
 0x15d   : > { %254 = vst.msk [vmem:[%s209_s30] sm:$0xff] %vm211_vm0, %v253_v32 }
 0x15e PF: > { %s14_s15 = sadd.s32 1, %s349_s15  }
 0x15f   : > { %p11_p4 = scmp.ge.s32.totalorder %s14_s15, 4  }
 0x161   :  { %13 = sbr.rel (!%p11_p4) target bundleno = 1 (0x1), region = 69 }

// kernel: dual_transformer_forward.9
= control target key start
LH: loop header
LB: loop body
LE: loop exit
PB: predicated region body
PF: predicated region fallthrough
CT: control target
= control target key end

     0   :  { %vm50_vm0 = vcmask 64512   ;;  %vm547_vm1 = vcmask 15360   ;;  %s4964_s12 = smov 112   ;;  %s4965_s13 = smov 118   ;;  %s7140_s1 = inlined_call_operand.vmem [shape: f32[8,24], index: 1, kind: input, shape index: {}]   ;;  %s7141_s0 = inlined_call_operand.vmem [shape: f32[8,16,8], index: 0, kind: input, shape index: {}]   ;;  %s7142_s2 = inlined_call_operand.vmem [shape: f32[1,24], index: 2, kind: input, shape index: {}]   ;;  %s7143_s3 = inlined_call_operand.vmem [shape: f32[8,8], index: 3, kind: input, shape index: {}]   ;;  %s7144_s4 = inlined_call_operand.vmem [shape: f32[1,8], index: 4, kind: input, shape index: {}]   ;;  %s7145_s5 = inlined_call_operand.vmem [shape: f32[1,8], index: 5, kind: input, shape index: {}]   ;;  %s7146_s6 = inlined_call_operand.vmem [shape: f32[1,8], index: 6, kind: input, shape index: {}]   ;;  %s7147_s7 = inlined_call_operand.vmem [shape: f32[8,16,8], index: 7, kind: output, shape index: {}]  }
   0x1   :  { %v42_v0 = vld [vmem:[%s7140_s1] sm:$0xff]  ;;  %v27_v2 = vld [vmem:[%s7141_s0 + $0x8] sm:$0xff]  ;;  %v28_v3 = vld [vmem:[%s7141_s0 + $0x10] sm:$0xff]  ;;  %s4967_s14 = smov 126   ;;  %s4968_s15 = smov 110  }
   0x2   :  { %v26_v1 = vld [vmem:[%s7141_s0] sm:$0xff]  ;;  %4112 = vmatprep.subr.mxu0 %v42_v0  ;;  %v29_v4 = vld [vmem:[%s7141_s0 + $0x18] sm:$0xff]  ;;  %v31_v6 = vld [vmem:[%s7141_s0 + $0x28] sm:$0xff]  ;;  %s4969_s16 = smov 116   ;;  %s4970_s17 = smov 124  }
   0x3   :  { %4114 = vmatprep.mubr.msk.f32.mxu0 %vm50_vm0, %v26_v1  ;;  %4113 = vmatpush3.msra.mxu0 %v42_v0  ;;  %v30_v5 = vld [vmem:[%s7141_s0 + $0x20] sm:$0xff]  ;;  %v32_v7 = vld [vmem:[%s7141_s0 + $0x30] sm:$0xff]  ;;  %v33_v8 = vld [vmem:[%s7141_s0 + $0x38] sm:$0xff]  ;;  %s4971_s18 = smov 108   ;;  %s4972_s19 = smov 114  }
   0x4   :  { %4115 = vmatmul.mubr.msk.f32.vlgmr.msra.gmra.mxu0 %vm50_vm0, %v27_v2  ;;  %v34_v9 = vld [vmem:[%s7141_s0 + $0x40] sm:$0xff]  ;;  %v35_v10 = vld [vmem:[%s7141_s0 + $0x48] sm:$0xff]  ;;  %v36_v11 = vld [vmem:[%s7141_s0 + $0x50] sm:$0xff]  ;;  %s4973_s20 = smov 122   ;;  %s4974_s21 = smov 106  }
   0x5   :  { %4117 = vmatprep.mubr.msk.f32.mxu0 %vm50_vm0, %v28_v3  ;;  %v37_v12 = vld [vmem:[%s7141_s0 + $0x58] sm:$0xff]  ;;  %v38_v13 = vld [vmem:[%s7141_s0 + $0x60] sm:$0xff]  ;;  %v39_v14 = vld [vmem:[%s7141_s0 + $0x68] sm:$0xff]  ;;  %s4975_s22 = smov 2   ;;  %s4976_s23 = smov 4  }
   0x6   :  { %v40_v15 = vld [vmem:[%s7141_s0 + $0x70] sm:$0xff]  ;;  %v41_v16 = vld [vmem:[%s7141_s0 + $0x78] sm:$0xff]  ;;  %v3658_v18 = vld [vmem:[%s7142_s2] ss:$0 sm:$0xff]  ;;  %s4963_s2 = smov 120   ;;  %s4977_s26 = smov 6  }
   0x8   :  { %4118 = vmatmul.mubr.msk.f32.gmra.mxu0 %vm50_vm0, %v29_v4 }
   0x9   :  { %4120 = vmatprep.mubr.msk.f32.mxu0 %vm50_vm0, %v30_v5 }
   0xc   :  { %4121 = vmatmul.mubr.msk.f32.gmra.mxu0 %vm50_vm0, %v31_v6 }
   0xd   :  { %4123 = vmatprep.mubr.msk.f32.mxu0 %vm50_vm0, %v32_v7 }
  0x10   :  { %4124 = vmatmul.mubr.msk.f32.gmra.mxu0 %vm50_vm0, %v33_v8 }
  0x11   :  { %4126 = vmatprep.mubr.msk.f32.mxu0 %vm50_vm0, %v34_v9 }
  0x14   :  { %4127 = vmatmul.mubr.msk.f32.gmra.mxu0 %vm50_vm0, %v35_v10 }
  0x15   :  { %4129 = vmatprep.mubr.msk.f32.mxu0 %vm50_vm0, %v36_v11 }
  0x18   :  { %4130 = vmatmul.mubr.msk.f32.gmra.mxu0 %vm50_vm0, %v37_v12 }
  0x19   :  { %4132 = vmatprep.mubr.msk.f32.mxu0 %vm50_vm0, %v38_v13 }
  0x1c   :  { %4133 = vmatmul.mubr.msk.f32.gmra.mxu0 %vm50_vm0, %v39_v14 }
  0x1d   :  { %4135 = vmatprep.mubr.msk.f32.mxu0 %vm50_vm0, %v40_v15 }
  0x20   :  { %4136 = vmatmul.mubr.msk.f32.gmra.mxu0 %vm50_vm0, %v41_v16 }
  0xc4   :  { %v4116_v17 = vpop.f32.mrf.mxu0 }
  0xc5   :  { %v5150_v49 = vadd.f32 %v4116_v17, %v3658_v18 }
  0xc6   :  { %v165_v19 = vpop.f32.mrf.mxu0 }
  0xc7   :  { %v5088_v20 = vadd.f32 %v3658_v18, %v165_v19 }
  0xc8   :  { %v4119_v21 = vpop.f32.mrf.mxu0 }
  0xc9   :  { %4170 = vmatprep.mubr.msk.f32.mxu1 %vm547_vm1, %v5088_v20  ;;  %v5144_v48 = vadd.f32 %v4119_v21, %v3658_v18 }
  0xca   :  { %v175_v22 = vpop.f32.mrf.mxu0 }
  0xcb   :  { %v5136_v46 = vadd.f32 %v3658_v18, %v175_v22 }
  0xcc   :  { %v4122_v23 = vpop.f32.mrf.mxu0 }
  0xcd   :  { %v5138_v47 = vadd.f32 %v4122_v23, %v3658_v18 }
  0xce   :  { %v185_v24 = vpop.f32.mrf.mxu0 }
  0xcf   :  { %v5128_v44 = vadd.f32 %v3658_v18, %v185_v24  ;;  %v244_v24 = vlaneseq }
  0xd0   :  { %v4125_v25 = vpop.f32.mrf.mxu0 }
  0xd1   :  { %v5130_v45 = vadd.f32 %v4125_v25, %v3658_v18  ;;  %v5268_v25 = vshrl.u32 %v244_v24, 7 }
  0xd2   :  { %v195_v26 = vpop.f32.mrf.mxu0 }
  0xd3   :  { %v5120_v42 = vadd.f32 %v3658_v18, %v195_v26  ;;  %v246_v26 = vadd.s32 8, %v5268_v25 }
  0xd4   :  { %v4128_v27 = vpop.f32.mrf.mxu0 }
  0xd5   :  { %v5122_v43 = vadd.f32 %v4128_v27, %v3658_v18  ;;  %v454_v27 = vand.u32 127, %v244_v24 }
  0xd6   :  { %v205_v28 = vpop.f32.mrf.mxu0 }
  0xd7   :  { %v5112_v40 = vadd.f32 %v3658_v18, %v205_v28  ;;  %v272_v28 = vand.u32 15, %v246_v26 }
  0xd8   :  { %v4131_v29 = vpop.f32.mrf.mxu0 }
  0xd9   :  { %v5114_v41 = vadd.f32 %v4131_v29, %v3658_v18  ;;  %v5271_v29 = vand.u32 15, %v454_v27 }
  0xda   :  { %v215_v30 = vpop.f32.mrf.mxu0 }
  0xdb   :  { %v5104_v38 = vadd.f32 %v3658_v18, %v215_v30  ;;  %v265_v30 = vand.u32 15, %v5268_v25  ;;  %vm468_vm2 = vcmp.eq.s32.totalorder %v272_v28, %v5271_v29  ;;  %v260_v28 = vadd.s32 120, %v5268_v25 }
  0xdc   :  { %v4134_v31 = vpop.f32.mrf.mxu0 }
  0xdd   :  { %v5092_v32 = vadd.f32 %v4134_v31, %v3658_v18  ;;  %v248_v31 = vadd.s32 24, %v5268_v25  ;;  %vm467_vm3 = vcmp.eq.s32.totalorder %v265_v30, %v5271_v29 }
  0xde   :  { %v225_v33 = vpop.f32.mrf.mxu0 }
  0xdf   :  { %541 = vrot.lane.b32.xlu1 %v5092_v32, %s4963_s2  ;;  %v5096_v35 = vadd.f32 %v3658_v18, %v225_v33  ;;  %v286_v33 = vand.u32 15, %v248_v31 }
  0xe0   :  { %v4137_v34 = vpop.f32.mrf.mxu0 }
  0xe1   :  { %v5098_v36 = vadd.f32 %v4137_v34, %v3658_v18  ;;  %v247_v34 = vadd.s32 16, %v5268_v25  ;;  %vm470_vm4 = vcmp.eq.s32.totalorder %v286_v33, %v5271_v29 }
  0xe2   :  { %v235_v37 = vpop.f32.mrf.mxu0 }
  0xe3   :  { %545 = vrot.lane.b32.xlu0 %v5098_v36, %s4963_s2  ;;  %539 = vrot.lane.b32.xlu1 %v5096_v35, %s4963_s2  ;;  %v5106_v39 = vadd.f32 %v3658_v18, %v235_v37  ;;  %v4966_v37 = vmov -1e+30  }
  0xe7   :  { %543 = vrot.lane.b32.xlu0 %v5106_v39, %s4963_s2  ;;  %535 = vrot.lane.b32.xlu1 %v5104_v38, %s4963_s2 }
  0xeb   :  { %537 = vrot.lane.b32.xlu0 %v5114_v41, %s4963_s2  ;;  %531 = vrot.lane.b32.xlu1 %v5112_v40, %s4963_s2 }
  0xef   :  { %533 = vrot.lane.b32.xlu0 %v5122_v43, %s4963_s2  ;;  %527 = vrot.lane.b32.xlu1 %v5120_v42, %s4963_s2 }
  0xf3   :  { %529 = vrot.lane.b32.xlu0 %v5130_v45, %s4963_s2  ;;  %523 = vrot.lane.b32.xlu1 %v5128_v44, %s4963_s2 }
  0xf7   :  { %525 = vrot.lane.b32.xlu0 %v5138_v47, %s4963_s2  ;;  %519 = vrot.lane.b32.xlu1 %v5136_v46, %s4963_s2 }
  0xfb   :  { %521 = vrot.lane.b32.xlu0 %v5144_v48, %s4963_s2  ;;  %515 = vrot.lane.b32.xlu1 %v5088_v20, %s4963_s2 }
  0xff   :  { %517 = vrot.lane.b32.xlu0 %v5150_v49, %s4963_s2  ;;  %931 = vrot.lane.b32.xlu1 %v5098_v36, %s4964_s12 }
 0x103   :  { %927 = vrot.lane.b32.xlu0 %v5092_v32, %s4964_s12  ;;  %925 = vrot.lane.b32.xlu1 %v5096_v35, %s4964_s12 }
 0x107   :  { %923 = vrot.lane.b32.xlu0 %v5114_v41, %s4964_s12  ;;  %921 = vrot.lane.b32.xlu1 %v5104_v38, %s4964_s12 }
 0x10b   :  { %915 = vrot.lane.b32.xlu0 %v5130_v45, %s4964_s12  ;;  %919 = vrot.lane.b32.xlu1 %v5122_v43, %s4964_s12 }
 0x10f   :  { %911 = vrot.lane.b32.xlu0 %v5138_v47, %s4964_s12  ;;  %917 = vrot.lane.b32.xlu1 %v5112_v40, %s4964_s12 }
 0x113   :  { %907 = vrot.lane.b32.xlu0 %v5144_v48, %s4964_s12  ;;  %913 = vrot.lane.b32.xlu1 %v5120_v42, %s4964_s12 }
 0x117   :  { %903 = vrot.lane.b32.xlu0 %v5150_v49, %s4964_s12  ;;  %909 = vrot.lane.b32.xlu1 %v5128_v44, %s4964_s12 }
 0x11b   :  { %1156 = vrot.lane.b32.xlu0 %v5098_v36, %s4965_s13  ;;  %905 = vrot.lane.b32.xlu1 %v5136_v46, %s4964_s12 }
 0x11f   :  { %1152 = vrot.lane.b32.xlu0 %v5092_v32, %s4965_s13  ;;  %901 = vrot.lane.b32.xlu1 %v5088_v20, %s4964_s12 }
 0x123   :  { %1148 = vrot.lane.b32.xlu0 %v5114_v41, %s4965_s13  ;;  %1150 = vrot.lane.b32.xlu1 %v5096_v35, %s4965_s13 }
 0x127   :  { %1144 = vrot.lane.b32.xlu0 %v5122_v43, %s4965_s13  ;;  %1146 = vrot.lane.b32.xlu1 %v5104_v38, %s4965_s13 }
 0x12b   :  { %1140 = vrot.lane.b32.xlu0 %v5130_v45, %s4965_s13  ;;  %1142 = vrot.lane.b32.xlu1 %v5112_v40, %s4965_s13 }
 0x12f   :  { %929 = vrot.lane.b32.xlu0 %v5106_v39, %s4964_s12  ;;  %1154 = vrot.lane.b32.xlu1 %v5106_v39, %s4965_s13 }
 0x133   :  { %1136 = vrot.lane.b32.xlu0 %v5138_v47, %s4965_s13 }
 0x137   :  { %1134 = vrot.lane.b32.xlu0 %v5128_v44, %s4965_s13 }
 0x13b   :  { %1132 = vrot.lane.b32.xlu0 %v5144_v48, %s4965_s13 }
 0x151   :  { %v542_v50 = vpop.permute.xlu1 %541 }
 0x155   :  { %v546_v51 = vpop.permute.xlu0 %545  ;;  %v540_v52 = vpop.permute.xlu1 %539 }
 0x156   :  { %4138 = vmatprep.subr.msk.mxu1 %vm547_vm1, %v546_v51 }
 0x157   :  { %4139 = vmatpush3.xpose.msk.msra.mxu1 %vm547_vm1, %v546_v51 }
 0x159   :  { %v544_v53 = vpop.permute.xlu0 %543  ;;  %v536_v54 = vpop.permute.xlu1 %535 }
 0x15a   :  { %4140 = vmatprep.subr.msk.mxu1 %vm547_vm1, %v544_v53 }
 0x15b   :  { %4141 = vmatpush3.xpose.msk.msra.mxu1 %vm547_vm1, %v544_v53 }
 0x15c   :  { %4142 = vmatprep.subr.msk.mxu1 %vm547_vm1, %v542_v50 }
 0x15d   :  { %v538_v55 = vpop.permute.xlu0 %537  ;;  %v532_v56 = vpop.permute.xlu1 %531 }
 0x15f   :  { %4143 = vmatpush3.xpose.msk.msra.mxu1 %vm547_vm1, %v542_v50  ;;  %v5279_v50 = vsel %vm468_vm2, 0.0, %v4966_v37 }
 0x160   :  { %4144 = vmatprep.subr.msk.mxu1 %vm547_vm1, %v540_v52 }
 0x161   :  { %v534_v57 = vpop.permute.xlu0 %533  ;;  %v528_v58 = vpop.permute.xlu1 %527 }
 0x163   :  { %4145 = vmatpush3.xpose.msk.msra.mxu1 %vm547_vm1, %v540_v52  ;;  %v5282_v52 = vsel %vm467_vm3, 0.0, %v4966_v37 }
 0x164   :  { %4146 = vmatprep.subr.msk.mxu1 %vm547_vm1, %v538_v55 }
 0x165   :  { %v530_v59 = vpop.permute.xlu0 %529  ;;  %v524_v60 = vpop.permute.xlu1 %523 }
 0x167   :  { %4147 = vmatpush3.xpose.msk.msra.mxu1 %vm547_vm1, %v538_v55  ;;  %v250_v55 = vadd.s32 40, %v5268_v25 }
 0x168   :  { %4148 = vmatprep.subr.msk.mxu1 %vm547_vm1, %v536_v54 }
 0x169   :  { %v526_v61 = vpop.permute.xlu0 %525  ;;  %v520_v62 = vpop.permute.xlu1 %519 }
 0x16b   :  { %4149 = vmatpush3.xpose.msk.msra.mxu1 %vm547_vm1, %v536_v54  ;;  %v279_v54 = vand.u32 15, %v247_v34 }
 0x16c   :  { %4150 = vmatprep.subr.msk.mxu1 %vm547_vm1, %v534_v57 }
 0x16d   :  { %v522_v63 = vpop.permute.xlu0 %521  ;;  %v516_v0 = vpop.permute.xlu1 %515  ;;  %vm469_vm5 = vcmp.eq.s32.totalorder %v279_v54, %v5271_v29 }
 0x16f   :  { %4151 = vmatpush3.xpose.msk.msra.mxu1 %vm547_vm1, %v534_v57 }
 0x170   :  { %4152 = vmatprep.subr.msk.mxu1 %vm547_vm1, %v532_v56 }
 0x171   :  { %v518_v1 = vpop.permute.xlu0 %517  ;;  %v932_v2 = vpop.permute.xlu1 %931 }
 0x172   :  { %4194 = vmatprep.subr.mxu0 %v932_v2 }
 0x173   :  { %4153 = vmatpush3.xpose.msk.msra.mxu1 %vm547_vm1, %v532_v56  ;;  %4195 = vmatpush3.msra.mxu0 %v932_v2 }
 0x174   :  { %4154 = vmatprep.subr.msk.mxu1 %vm547_vm1, %v530_v59 }
 0x175   :  { %v928_v3 = vpop.permute.xlu0 %927  ;;  %v926_v11 = vpop.permute.xlu1 %925 }
 0x177   :  { %4155 = vmatpush3.xpose.msk.msra.mxu1 %vm547_vm1, %v530_v59 }
 0x178   :  { %4156 = vmatprep.subr.msk.mxu1 %vm547_vm1, %v528_v58 }
 0x179   :  { %v924_v4 = vpop.permute.xlu0 %923  ;;  %v922_v13 = vpop.permute.xlu1 %921 }
 0x17b   :  { %4157 = vmatpush3.xpose.msk.msra.mxu1 %vm547_vm1, %v528_v58  ;;  %v5294_v58 = vsel %vm470_vm4, 0.0, %v4966_v37  ;;  %vm3132_vm4 = vcmask 31744  }
 0x17c   :  { %4158 = vmatprep.subr.msk.mxu1 %vm547_vm1, %v526_v61 }
 0x17d   :  { %v916_v5 = vpop.permute.xlu0 %915  ;;  %v920_v16 = vpop.permute.xlu1 %919 }
 0x17f   :  { %4159 = vmatpush3.xpose.msk.msra.mxu1 %vm547_vm1, %v526_v61  ;;  %v252_v61 = vadd.s32 56, %v5268_v25 }
 0x180   :  { %4160 = vmatprep.subr.msk.mxu1 %vm547_vm1, %v524_v60 }
 0x181   :  { %v912_v6 = vpop.permute.xlu0 %911  ;;  %v918_v18 = vpop.permute.xlu1 %917  ;;  %v314_v2 = vand.u32 15, %v252_v61 }
 0x183   :  { %4161 = vmatpush3.xpose.msk.msra.mxu1 %vm547_vm1, %v524_v60  ;;  %v300_v60 = vand.u32 15, %v250_v55  ;;  %vm474_vm7 = vcmp.eq.s32.totalorder %v314_v2, %v5271_v29 }
 0x184   :  { %4162 = vmatprep.subr.msk.mxu1 %vm547_vm1, %v522_v63 }
 0x185   :  { %v908_v7 = vpop.permute.xlu0 %907  ;;  %v914_v19 = vpop.permute.xlu1 %913  ;;  %vm472_vm6 = vcmp.eq.s32.totalorder %v300_v60, %v5271_v29 }
 0x187   :  { %4163 = vmatpush3.xpose.msk.msra.mxu1 %vm547_vm1, %v522_v63 }
 0x188   :  { %4164 = vmatprep.subr.msk.mxu1 %vm547_vm1, %v520_v62 }
 0x189   :  { %v904_v8 = vpop.permute.xlu0 %903  ;;  %v910_v21 = vpop.permute.xlu1 %909 }
 0x18b   :  { %4165 = vmatpush3.xpose.msk.msra.mxu1 %vm547_vm1, %v520_v62 }
 0x18c   :  { %4166 = vmatprep.subr.msk.mxu1 %vm547_vm1, %v518_v1 }
 0x18d   :  { %v5223_v9 = vpop.permute.xlu0 %1156  ;;  %v906_v22 = vpop.permute.xlu1 %905 }
 0x18f   :  { %4167 = vmatpush3.xpose.msk.msra.mxu1 %vm547_vm1, %v518_v1 }
 0x190   :  { %4168 = vmatprep.subr.msk.mxu1 %vm547_vm1, %v516_v0 }
 0x191   :  { %v5227_v10 = vpop.permute.xlu0 %1152  ;;  %v902_v23 = vpop.permute.xlu1 %901 }
 0x193   :  { %4169 = vmatpush3.xpose.msk.msra.mxu1 %vm547_vm1, %v516_v0  ;;  %v5303_v0 = vsel %vm469_vm5, 0.0, %v4966_v37  ;;  %vm3149_vm5 = vcmask 48128  }
 0x195   :  { %v5230_v12 = vpop.permute.xlu0 %1148 }
 0x196   :  { %4171 = vmatmul.mubr.msk.f32.vlgmr.msra.gmra.mxu1 %vm547_vm1, %v5150_v49 }
 0x197   :  { %4173 = vmatprep.mubr.msk.f32.mxu1 %vm547_vm1, %v5136_v46 }
 0x199   :  { %v5236_v14 = vpop.permute.xlu0 %1144 }
 0x19a   :  { %4174 = vmatmul.mubr.msk.f32.gmra.mxu1 %vm547_vm1, %v5144_v48 }
 0x19b   :  { %4176 = vmatprep.mubr.msk.f32.mxu1 %vm547_vm1, %v5128_v44 }
 0x19d   :  { %v5242_v15 = vpop.permute.xlu0 %1140 }
 0x19e   :  { %4177 = vmatmul.mubr.msk.f32.gmra.mxu1 %vm547_vm1, %v5138_v47 }
 0x19f   :  { %4179 = vmatprep.mubr.msk.f32.mxu1 %vm547_vm1, %v5120_v42 }
 0x1a1   :  { %v930_v17 = vpop.permute.xlu0 %929 }
 0x1a2   :  { %4180 = vmatmul.mubr.msk.f32.gmra.mxu1 %vm547_vm1, %v5130_v45  ;;  %4196 = vmatprep.subr.mxu0 %v930_v17 }
 0x1a3   :  { %4182 = vmatprep.mubr.msk.f32.mxu1 %vm547_vm1, %v5112_v40  ;;  %4197 = vmatpush3.msra.mxu0 %v930_v17  ;;  %v5321_v17 = vsel %vm474_vm7, 0.0, %v4966_v37 }
 0x1a4   :  { %4198 = vmatprep.subr.mxu0 %v928_v3  ;;  %7173 = vst [vmem:[#allocation3_spill] sm:$0xff] %v5321_v17 }
 0x1a5   :  { %4199 = vmatpush3.msra.mxu0 %v928_v3  ;;  %v254_v3 = vadd.s32 72, %v5268_v25 }
 0x1a6   :  { %4183 = vmatmul.mubr.msk.f32.gmra.mxu1 %vm547_vm1, %v5122_v43  ;;  %4200 = vmatprep.subr.mxu0 %v926_v11 }
 0x1a7   :  { %4185 = vmatprep.mubr.msk.f32.mxu1 %vm547_vm1, %v5104_v38  ;;  %4201 = vmatpush3.msra.mxu0 %v926_v11  ;;  %v256_v11 = vadd.s32 88, %v5268_v25 }
 0x1a8   :  { %4202 = vmatprep.subr.mxu0 %v924_v4 }
 0x1a9   :  { %4203 = vmatpush3.msra.mxu0 %v924_v4 }
 0x1aa   :  { %4186 = vmatmul.mubr.msk.f32.gmra.mxu1 %vm547_vm1, %v5114_v41  ;;  %4204 = vmatprep.subr.mxu0 %v922_v13 }
 0x1ab   :  { %4188 = vmatprep.mubr.msk.f32.mxu1 %vm547_vm1, %v5096_v35  ;;  %4205 = vmatpush3.msra.mxu0 %v922_v13 }
 0x1ac   :  { %4206 = vmatprep.subr.mxu0 %v920_v16 }
 0x1ad   :  { %4207 = vmatpush3.msra.mxu0 %v920_v16 }
 0x1ae   :  { %4189 = vmatmul.mubr.msk.f32.gmra.mxu1 %vm547_vm1, %v5092_v32  ;;  %4208 = vmatprep.subr.mxu0 %v918_v18 }
 0x1af   :  { %4191 = vmatprep.mubr.msk.f32.mxu1 %vm547_vm1, %v5106_v39  ;;  %4209 = vmatpush3.msra.mxu0 %v918_v18 }
 0x1b0   :  { %4210 = vmatprep.subr.mxu0 %v916_v5 }
 0x1b1   :  { %4211 = vmatpush3.msra.mxu0 %v916_v5 }
 0x1b2   :  { %4192 = vmatmul.mubr.msk.f32.gmra.mxu1 %vm547_vm1, %v5098_v36  ;;  %4212 = vmatprep.subr.mxu0 %v914_v19 }
 0x1b3   :  { %4213 = vmatpush3.msra.mxu0 %v914_v19  ;;  %v342_v19 = vand.u32 15, %v256_v11 }
 0x1b4   :  { %4214 = vmatprep.subr.mxu0 %v912_v6 }
 0x1b5   :  { %4215 = vmatpush3.msra.mxu0 %v912_v6  ;;  %v5312_v6 = vsel %vm472_vm6, 0.0, %v4966_v37  ;;  %vm478_vm9 = vcmp.eq.s32.totalorder %v342_v19, %v5271_v29  ;;  %v255_v19 = vadd.s32 80, %v5268_v25 }
 0x1b6   :  { %4216 = vmatprep.subr.mxu0 %v910_v21  ;;  %7172 = vst [vmem:[#allocation2_spill] sm:$0xff] %v5312_v6  ;;  %v5341_v33 = vsel %vm478_vm9, 0.0, %v4966_v37 }
 0x1b7   :  { %4217 = vmatpush3.msra.mxu0 %v910_v21  ;;  %v258_v21 = vadd.s32 104, %v5268_v25  ;;  %7175 = vst [vmem:[#allocation5_spill] sm:$0xff] %v5341_v33 }
 0x1b8   :  { %4218 = vmatprep.subr.mxu0 %v908_v7 }
 0x1b9   :  { %4219 = vmatpush3.msra.mxu0 %v908_v7  ;;  %v356_v27 = vand.u32 15, %v258_v21 }
 0x1ba   :  { %4220 = vmatprep.subr.mxu0 %v906_v22 }
 0x1bb   :  { %4221 = vmatpush3.msra.mxu0 %v906_v22  ;;  %vm480_vm10 = vcmp.eq.s32.totalorder %v356_v27, %v5271_v29  ;;  %v335_v27 = vand.u32 15, %v255_v19 }
 0x1bc   :  { %4222 = vmatprep.subr.mxu0 %v904_v8  ;;  %v5349_v55 = vsel %vm480_vm10, 0.0, %v4966_v37 }
 0x1bd   :  { %4223 = vmatpush3.msra.mxu0 %v904_v8  ;;  %v328_v8 = vand.u32 15, %v254_v3  ;;  %7176 = vst [vmem:[#allocation6_spill] sm:$0xff] %v5349_v55  ;;  %v251_v3 = vadd.s32 48, %v5268_v25  ;;  %vm477_vm15 = vcmp.eq.s32.totalorder %v335_v27, %v5271_v29 }
 0x1be   :  { %4224 = vmatprep.subr.mxu0 %v902_v23 }
 0x1bf   :  { %4225 = vmatpush3.msra.mxu0 %v902_v23  ;;  %vm476_vm8 = vcmp.eq.s32.totalorder %v328_v8, %v5271_v29  ;;  %v253_v8 = vadd.s32 64, %v5268_v25 }
 0x1c0   :  { %4250 = vmatprep.subr.msk.mxu0 %vm547_vm1, %v5223_v9  ;;  %v5330_v24 = vsel %vm476_vm8, 0.0, %v4966_v37 }
 0x1c1   :  { %7174 = vst [vmem:[#allocation4_spill] sm:$0xff] %v5330_v24 }
 0x256   :  { %v4172_v51 = vpop.f32.mrf.mxu1 }
 0x257   :  { %v5285_v53 = vadd.f32 %v4172_v51, %v5279_v50  ;;  %v370_v51 = vand.u32 15, %v260_v28  ;;  %v257_v28 = vadd.s32 96, %v5268_v25 }
 0x258   :  { %v678_v56 = vpop.f32.mrf.mxu1 }
 0x259   :  { %v5290_v57 = vadd.f32 %v678_v56, %v5282_v52  ;;  %759 = vmax.xlane.f32.xlu1 %v5285_v53  ;;  %vm482_vm11 = vcmp.eq.s32.totalorder %v370_v51, %v5271_v29 }
 0x25a   :  { %v4175_v59 = vpop.f32.mrf.mxu1  ;;  %v5357_v60 = vsel %vm482_vm11, 0.0, %v4966_v37 }
 0x25b   :  { %757 = vmax.xlane.f32.xlu0 %v5290_v57  ;;  %v5300_v63 = vadd.f32 %v4175_v59, %v5294_v58  ;;  %7177 = vst [vmem:[#allocation7_spill] sm:$0xff] %v5357_v60 }
 0x25c   :  { %v688_v62 = vpop.f32.mrf.mxu1 }
 0x25d   :  { %v5309_v5 = vadd.f32 %v688_v62, %v5303_v0 }
 0x25e   :  { %v4178_v1 = vpop.f32.mrf.mxu1 }
 0x25f   :  { %763 = vmax.xlane.f32.xlu0 %v5300_v63  ;;  %v5318_v16 = vadd.f32 %v4178_v1, %v5312_v6  ;;  %v249_v1 = vadd.s32 32, %v5268_v25 }
 0x260   :  { %v698_v4 = vpop.f32.mrf.mxu1 }
 0x261   :  { %v293_v2 = vand.u32 15, %v249_v1 }
 0x262   :  { %v4181_v7 = vpop.f32.mrf.mxu1 }
 0x263   :  { %761 = vmax.xlane.f32.xlu0 %v5309_v5  ;;  %v5327_v23 = vadd.f32 %v4181_v7, %v5321_v17  ;;  %vm471_vm12 = vcmp.eq.s32.totalorder %v293_v2, %v5271_v29  ;;  %v307_v7 = vand.u32 15, %v251_v3  ;;  %v5397_v2 = vsel %vm477_vm15, 0.0, %v4966_v37 }
 0x264   :  { %v708_v13 = vpop.f32.mrf.mxu1  ;;  %v5369_v11 = vsel %vm471_vm12, 0.0, %v4966_v37  ;;  %7181 = vst [vmem:[#allocation11_spill] sm:$0xff] %v5397_v2 }
 0x265   :  { %7178 = vst [vmem:[#allocation8_spill] sm:$0xff] %v5369_v11  ;;  %vm473_vm13 = vcmp.eq.s32.totalorder %v307_v7, %v5271_v29  ;;  %v5374_v21 = vadd.f32 %v698_v4, %v5369_v11  ;;  %v349_v4 = vand.u32 15, %v257_v28 }
 0x266   :  { %v4184_v18 = vpop.f32.mrf.mxu1 }
 0x267   :  { %767 = vmax.xlane.f32.xlu0 %v5318_v16  ;;  %v5338_v31 = vadd.f32 %v4184_v18, %v5330_v24  ;;  %v321_v18 = vand.u32 15, %v253_v8  ;;  %vm479_vm2 = vcmp.eq.s32.totalorder %v349_v4, %v5271_v29 }
 0x268   :  { %v718_v22 = vpop.f32.mrf.mxu1  ;;  %v5405_v7 = vsel %vm479_vm2, 0.0, %v4966_v37 }
 0x269   :  { %vm475_vm14 = vcmp.eq.s32.totalorder %v321_v18, %v5271_v29  ;;  %7182 = vst [vmem:[#allocation12_spill] sm:$0xff] %v5405_v7 }
 0x26a   :  { %1138 = vrot.lane.b32.xlu1 %v5120_v42, %s4965_s13  ;;  %v4187_v26 = vpop.f32.mrf.mxu1  ;;  %v5386_v51 = vsel %vm475_vm14, 0.0, %v4966_v37 }
 0x26b   :  { %771 = vmax.xlane.f32.xlu0 %v5327_v23  ;;  %v5346_v54 = vadd.f32 %v4187_v26, %v5341_v33  ;;  %v5377_v26 = vsel %vm473_vm13, 0.0, %v4966_v37  ;;  %7180 = vst [vmem:[#allocation10_spill] sm:$0xff] %v5386_v51  ;;  %v5394_v1 = vadd.f32 %v718_v22, %v5386_v51 }
 0x26c   :  { %v728_v30 = vpop.f32.mrf.mxu1  ;;  %7179 = vst [vmem:[#allocation9_spill] sm:$0xff] %v5377_v26 }
 0x26d   :  { %v5402_v3 = vadd.f32 %v728_v30, %v5397_v2  ;;  %v5420_v30 = vpop.permute.xlu1 %1150 }
 0x26e   :  { %v4190_v34 = vpop.f32.mrf.mxu1 }
 0x26f   :  { %775 = vmax.xlane.f32.xlu0 %v5338_v31  ;;  %v5354_v59 = vadd.f32 %v4190_v34, %v5349_v55  ;;  %v5383_v34 = vadd.f32 %v708_v13, %v5377_v26 }
 0x270   :  { %v738_v56 = vpop.f32.mrf.mxu1 }
 0x271   :  { %v5422_v19 = vpop.permute.xlu1 %1146 }
 0x272   :  { %v4193_v61 = vpop.f32.mrf.mxu1 }
 0x273   :  { %779 = vmax.xlane.f32.xlu0 %v5346_v54  ;;  %v5361_v62 = vadd.f32 %v4193_v61, %v5357_v60  ;;  %v259_v61 = vadd.s32 112, %v5268_v25  ;;  %v5410_v25 = vadd.f32 %v738_v56, %v5405_v7 }
 0x274   :  { %v748_v8 = vpop.f32.mrf.mxu1 }
 0x275   :  { %v363_v13 = vand.u32 15, %v259_v61  ;;  %v5426_v27 = vpop.permute.xlu1 %1142 }
 0x277   :  { %783 = vmax.xlane.f32.xlu0 %v5354_v59  ;;  %vm481_vm3 = vcmp.eq.s32.totalorder %v363_v13, %v5271_v29  ;;  %v5424_v29 = vpop.permute.xlu0 %1136 }
 0x278   :  { %v5413_v22 = vsel %vm481_vm3, 0.0, %v4966_v37 }
 0x279   :  { %7183 = vst [vmem:[#allocation13_spill] sm:$0xff] %v5413_v22  ;;  %v5417_v18 = vadd.f32 %v748_v8, %v5413_v22  ;;  %v5430_v37 = vpop.permute.xlu1 %1154 }
 0x27b   :  { %787 = vmax.xlane.f32.xlu0 %v5361_v62  ;;  %v5428_v56 = vpop.permute.xlu0 %1134 }
 0x27f   :  { %v5432_v28 = vpop.permute.xlu0 %1132 }
 0x28e   :  { %765 = vmax.xlane.f32.xlu1 %v5374_v21 }
 0x291   :  { %1130 = vrot.lane.b32.xlu0 %v5136_v46, %s4965_s13 }
 0x292   :  { %769 = vmax.xlane.f32.xlu1 %v5383_v34 }
 0x296   :  { %773 = vmax.xlane.f32.xlu1 %v5394_v1 }
 0x29a   :  { %777 = vmax.xlane.f32.xlu1 %v5402_v3 }
 0x29e   :  { %781 = vmax.xlane.f32.xlu1 %v5410_v25 }
 0x2a2   :  { %785 = vmax.xlane.f32.xlu1 %v5417_v18 }
 0x2e2   :  { %v760_v4 = vpop.xlane.xlu1 %759 }
 0x2e3   :  { %v790_v61 = vsub.f32 %v5285_v53, %v760_v4 }
 0x2e4   :  { %v758_v13 = vpop.xlane.xlu0 %757 }
 0x2e5   :  { %v807_v8 = vmul.f32 1.442695, %v790_v61  ;;  %v789_v22 = vsub.f32 %v5290_v57, %v758_v13 }
 0x2e7   :  { %4659 = vpow2.f32 %v807_v8  ;;  %v805_v7 = vmul.f32 1.442695, %v789_v22 }
 0x2e8   :  { %v764_v2 = vpop.xlane.xlu0 %763 }
 0x2e9   :  { %4661 = vpow2.f32 %v805_v7  ;;  %v792_v51 = vsub.f32 %v5300_v63, %v764_v2 }
 0x2eb   :  { %v811_v26 = vmul.f32 1.442695, %v792_v51 }
 0x2ec   :  { %v762_v11 = vpop.xlane.xlu0 %761 }
 0x2ed   :  { %4663 = vpow2.f32 %v811_v26  ;;  %v791_v60 = vsub.f32 %v5309_v5, %v762_v11 }
 0x2ef   :  { %v809_v55 = vmul.f32 1.442695, %v791_v60 }
 0x2f0   :  { %v768_v33 = vpop.xlane.xlu0 %767 }
 0x2f1   :  { %4665 = vpow2.f32 %v809_v55  ;;  %v794_v53 = vsub.f32 %v5318_v16, %v768_v33  ;;  %v5454_v16 = vpop.permute.xlu1 %1138 }
 0x2f3   :  { %v815_v4 = vmul.f32 1.442695, %v794_v53 }
 0x2f4   :  { %v5439_v61 = vpop.eup %4659  ;;  %v772_v33 = vpop.xlane.xlu0 %771 }
 0x2f5   :  { %4667 = vpow2.f32 %v815_v4  ;;  %839 = vadd.xlane.f32.xlu0 %v5439_v61  ;;  %v796_v60 = vsub.f32 %v5327_v23, %v772_v33 }
 0x2f6   :  { %v5442_v57 = vpop.eup %4661 }
 0x2f7   :  { %837 = vadd.xlane.f32.xlu1 %v5442_v57  ;;  %v819_v7 = vmul.f32 1.442695, %v796_v60 }
 0x2f8   :  { %v776_v51 = vpop.xlane.xlu0 %775 }
 0x2f9   :  { %v798_v13 = vsub.f32 %v5338_v31, %v776_v51 }
 0x2fa   :  { %v5445_v63 = vpop.eup %4663 }
 0x2fb   :  { %843 = vadd.xlane.f32.xlu1 %v5445_v63  ;;  %v823_v24 = vmul.f32 1.442695, %v798_v13 }
 0x2fc   :  { %v780_v23 = vpop.xlane.xlu0 %779 }
 0x2fe   :  { %v5448_v5 = vpop.eup %4665 }
 0x2ff   :  { %841 = vadd.xlane.f32.xlu0 %v5448_v5 }
 0x302   :  { %v5451_v55 = vpop.eup %4667 }
 0x303   :  { %847 = vadd.xlane.f32.xlu1 %v5451_v55 }
 0x317   :  { %v766_v11 = vpop.xlane.xlu1 %765 }
 0x318   :  { %v793_v26 = vsub.f32 %v5374_v21, %v766_v11  ;;  %v800_v21 = vsub.f32 %v5346_v54, %v780_v23 }
 0x31a   :  { %v813_v2 = vmul.f32 1.442695, %v793_v26  ;;  %v827_v31 = vmul.f32 1.442695, %v800_v21 }
 0x31b   :  { %v770_v22 = vpop.xlane.xlu1 %769 }
 0x31c   :  { %4669 = vpow2.f32 %v813_v2  ;;  %v795_v8 = vsub.f32 %v5383_v34, %v770_v22 }
 0x31d   :  { %4671 = vpow2.f32 %v819_v7 }
 0x31e   :  { %v817_v53 = vmul.f32 1.442695, %v795_v8 }
 0x31f   :  { %v774_v4 = vpop.xlane.xlu1 %773 }
 0x320   :  { %4673 = vpow2.f32 %v817_v53  ;;  %v797_v17 = vsub.f32 %v5394_v1, %v774_v4 }
 0x321   :  { %4675 = vpow2.f32 %v823_v24 }
 0x322   :  { %v821_v33 = vmul.f32 1.442695, %v797_v17 }
 0x323   :  { %v778_v6 = vpop.xlane.xlu1 %777 }
 0x324   :  { %v799_v60 = vsub.f32 %v5402_v3, %v778_v6  ;;  %4677 = vpow2.f32 %v821_v33  ;;  %v784_v3 = vpop.xlane.xlu0 %783 }
 0x325   :  { %v802_v2 = vsub.f32 %v5354_v59, %v784_v3 }
 0x326   :  { %v825_v11 = vmul.f32 1.442695, %v799_v60 }
 0x327   :  { %v782_v51 = vpop.xlane.xlu1 %781  ;;  %v831_v13 = vmul.f32 1.442695, %v802_v2 }
 0x328   :  { %4679 = vpow2.f32 %v825_v11  ;;  %v788_v7 = vpop.xlane.xlu0 %787  ;;  %v801_v8 = vsub.f32 %v5410_v25, %v782_v51 }
 0x329   :  { %v5463_v34 = vpop.eup %4669  ;;  %4681 = vpow2.f32 %v827_v31  ;;  %v804_v22 = vsub.f32 %v5361_v62, %v788_v7 }
 0x32a   :  { %845 = vadd.xlane.f32.xlu1 %v5463_v34  ;;  %v5466_v26 = vpop.eup %4671  ;;  %4683 = vpow2.f32 %v831_v13  ;;  %v829_v23 = vmul.f32 1.442695, %v801_v8 }
 0x32b   :  { %v786_v53 = vpop.xlane.xlu1 %785  ;;  %v835_v4 = vmul.f32 1.442695, %v804_v22 }
 0x32c   :  { %v803_v33 = vsub.f32 %v5417_v18, %v786_v53  ;;  %v5504_v18 = vpop.permute.xlu0 %1130 }
 0x32d   :  { %v5468_v1 = vpop.eup %4673  ;;  %4685 = vpow2.f32 %v835_v4 }
 0x32e   :  { %849 = vadd.xlane.f32.xlu0 %v5468_v1  ;;  %851 = vadd.xlane.f32.xlu1 %v5466_v26  ;;  %v5472_v17 = vpop.eup %4675  ;;  %4687 = vpow2.f32 %v829_v23  ;;  %v833_v21 = vmul.f32 1.442695, %v803_v33 }
 0x330   :  { %4689 = vpow2.f32 %v833_v21 }
 0x331   :  { %v5475_v6 = vpop.eup %4677 }
 0x332   :  { %855 = vadd.xlane.f32.xlu1 %v5472_v17 }
 0x335   :  { %v5477_v24 = vpop.eup %4679 }
 0x336   :  { %857 = vadd.xlane.f32.xlu0 %v5477_v24  ;;  %853 = vadd.xlane.f32.xlu1 %v5475_v6  ;;  %v5481_v54 = vpop.eup %4681 }
 0x337   :  { %v5492_v60 = vpop.eup %4683 }
 0x33a   :  { %859 = vadd.xlane.f32.xlu1 %v5481_v54  ;;  %v5495_v59 = vpop.eup %4685 }
 0x33b   :  { %v5497_v62 = vpop.eup %4687 }
 0x33d   :  { %v5501_v25 = vpop.eup %4689 }
 0x34b   :  { %1126 = vrot.lane.b32.xlu1 %v5088_v20, %s4965_s13 }
 0x34c   :  { %1128 = vrot.lane.b32.xlu0 %v5150_v49, %s4965_s13 }
 0x36b   :  { %863 = vadd.xlane.f32.xlu0 %v5492_v60 }
 0x36f   :  { %861 = vadd.xlane.f32.xlu1 %v5497_v62  ;;  %867 = vadd.xlane.f32.xlu0 %v5495_v59 }
 0x373   :  { %865 = vadd.xlane.f32.xlu1 %v5501_v25 }
 0x37e   :  { %v840_v11 = vpop.xlane.xlu0 %839 }
 0x37f   :  { %4691 = vrcp.f32 %v840_v11 }
 0x380   :  { %v838_v31 = vpop.xlane.xlu1 %837 }
 0x381   :  { %4693 = vrcp.f32 %v838_v31 }
 0x384   :  { %1096 = vrot.lane.b32.xlu1 %v5150_v49, %s4967_s14  ;;  %v844_v3 = vpop.xlane.xlu1 %843 }
 0x385   :  { %1094 = vrot.lane.b32.xlu0 %v5088_v20, %s4967_s14  ;;  %4695 = vrcp.f32 %v844_v3 }
 0x388   :  { %1100 = vrot.lane.b32.xlu1 %v5144_v48, %s4967_s14  ;;  %v842_v51 = vpop.xlane.xlu0 %841 }
 0x389   :  { %4697 = vrcp.f32 %v842_v51  ;;  %1098 = vrot.lane.b32.xlu0 %v5136_v46, %s4967_s14 }
 0x38c   :  { %1104 = vrot.lane.b32.xlu1 %v5138_v47, %s4967_s14  ;;  %v4692_v2 = vpop.eup %4691 }
 0x38d   :  { %1102 = vrot.lane.b32.xlu0 %v5128_v44, %s4967_s14  ;;  %v886_v13 = vmul.f32 %v4692_v2, %v5439_v61 }
 0x38e   :  { %v4694_v7 = vpop.eup %4693 }
 0x38f   :  { %v885_v22 = vmul.f32 %v4694_v7, %v5442_v57 }
 0x390   :  { %1108 = vrot.lane.b32.xlu1 %v5130_v45, %s4967_s14 }
 0x391   :  { %4226 = vmatprep.mubr.f32.mxu0 %v885_v22  ;;  %1106 = vrot.lane.b32.xlu0 %v5120_v42, %s4967_s14 }
 0x392   :  { %4227 = vmatmul.mubr.f32.vlgmr.msra.gmra.mxu0 %v886_v13  ;;  %v4696_v57 = vpop.eup %4695 }
 0x393   :  { %4251 = vmatpush3.xpose.msk.msra.mxu0 %vm547_vm1, %v5223_v9  ;;  %v888_v9 = vmul.f32 %v4696_v57, %v5445_v63 }
 0x394   :  { %4252 = vmatprep.subr.msk.mxu0 %vm547_vm1, %v5430_v37  ;;  %1112 = vrot.lane.b32.xlu1 %v5122_v43, %s4967_s14 }
 0x395   :  { %1110 = vrot.lane.b32.xlu0 %v5112_v40, %s4967_s14 }
 0x396   :  { %v4698_v8 = vpop.eup %4697 }
 0x397   :  { %4253 = vmatpush3.xpose.msk.msra.mxu0 %vm547_vm1, %v5430_v37  ;;  %v887_v61 = vmul.f32 %v4698_v8, %v5448_v5 }
 0x398   :  { %4254 = vmatprep.subr.msk.mxu0 %vm547_vm1, %v5227_v10  ;;  %1116 = vrot.lane.b32.xlu1 %v5114_v41, %s4967_s14 }
 0x399   :  { %1114 = vrot.lane.b32.xlu0 %v5104_v38, %s4967_s14  ;;  %4229 = vmatprep.mubr.f32.mxu0 %v887_v61 }
 0x39a   :  { %4230 = vmatmul.mubr.f32.gmra.mxu0 %v888_v9 }
 0x39b   :  { %4255 = vmatpush3.xpose.msk.msra.mxu0 %vm547_vm1, %v5227_v10  ;;  %v848_v10 = vpop.xlane.xlu1 %847 }
 0x39c   :  { %4256 = vmatprep.subr.msk.mxu0 %vm547_vm1, %v5420_v30  ;;  %1120 = vrot.lane.b32.xlu1 %v5092_v32, %s4967_s14  ;;  %4699 = vrcp.f32 %v848_v10 }
 0x39d   :  { %1118 = vrot.lane.b32.xlu0 %v5096_v35, %s4967_s14 }
 0x39f   :  { %4257 = vmatpush3.xpose.msk.msra.mxu0 %vm547_vm1, %v5420_v30 }
 0x3a0   :  { %4258 = vmatprep.subr.msk.mxu0 %vm547_vm1, %v5230_v12  ;;  %1124 = vrot.lane.b32.xlu1 %v5098_v36, %s4967_s14 }
 0x3a1   :  { %1122 = vrot.lane.b32.xlu0 %v5106_v39, %s4967_s14 }
 0x3a3   :  { %4259 = vmatpush3.xpose.msk.msra.mxu0 %vm547_vm1, %v5230_v12 }
 0x3a4   :  { %4260 = vmatprep.subr.msk.mxu0 %vm547_vm1, %v5422_v19  ;;  %1541 = vrot.lane.b32.xlu1 %v5098_v36, %s4968_s15 }
 0x3a5   :  { %1539 = vrot.lane.b32.xlu0 %v5106_v39, %s4968_s15 }
 0x3a7   :  { %4261 = vmatpush3.xpose.msk.msra.mxu0 %vm547_vm1, %v5422_v19 }
 0x3a8   :  { %4262 = vmatprep.subr.msk.mxu0 %vm547_vm1, %v5236_v14  ;;  %1535 = vrot.lane.b32.xlu1 %v5096_v35, %s4968_s15 }
 0x3a9   :  { %1537 = vrot.lane.b32.xlu0 %v5092_v32, %s4968_s15  ;;  %v4700_v37 = vpop.eup %4699 }
 0x3aa   :  { %v890_v5 = vmul.f32 %v4700_v37, %v5451_v55 }
 0x3ab   :  { %4263 = vmatpush3.xpose.msk.msra.mxu0 %vm547_vm1, %v5236_v14 }
 0x3ac   :  { %4264 = vmatprep.subr.msk.mxu0 %vm547_vm1, %v5426_v27  ;;  %1531 = vrot.lane.b32.xlu1 %v5104_v38, %s4968_s15 }
 0x3ad   :  { %1533 = vrot.lane.b32.xlu0 %v5114_v41, %s4968_s15 }
 0x3af   :  { %4265 = vmatpush3.xpose.msk.msra.mxu0 %vm547_vm1, %v5426_v27 }
 0x3b0   :  { %4266 = vmatprep.subr.msk.mxu0 %vm547_vm1, %v5242_v15  ;;  %1529 = vrot.lane.b32.xlu1 %v5122_v43, %s4968_s15 }
 0x3b1   :  { %1525 = vrot.lane.b32.xlu0 %v5130_v45, %s4968_s15 }
 0x3b3   :  { %4267 = vmatpush3.xpose.msk.msra.mxu0 %vm547_vm1, %v5242_v15  ;;  %v846_v12 = vpop.xlane.xlu1 %845 }
 0x3b4   :  { %4701 = vrcp.f32 %v846_v12  ;;  %4268 = vmatprep.subr.msk.mxu0 %vm547_vm1, %v5454_v16  ;;  %1527 = vrot.lane.b32.xlu1 %v5112_v40, %s4968_s15 }
 0x3b5   :  { %1521 = vrot.lane.b32.xlu0 %v5138_v47, %s4968_s15 }
 0x3b7   :  { %4269 = vmatpush3.xpose.msk.msra.mxu0 %vm547_vm1, %v5454_v16  ;;  %v852_v14 = vpop.xlane.xlu1 %851  ;;  %v850_v30 = vpop.xlane.xlu0 %849 }
 0x3b8   :  { %4703 = vrcp.f32 %v852_v14  ;;  %4270 = vmatprep.subr.msk.mxu0 %vm547_vm1, %v5424_v29  ;;  %1523 = vrot.lane.b32.xlu1 %v5120_v42, %s4968_s15 }
 0x3b9   :  { %4705 = vrcp.f32 %v850_v30  ;;  %1517 = vrot.lane.b32.xlu0 %v5144_v48, %s4968_s15 }
 0x3bb   :  { %4271 = vmatpush3.xpose.msk.msra.mxu0 %vm547_vm1, %v5424_v29  ;;  %v856_v15 = vpop.xlane.xlu1 %855 }
 0x3bc   :  { %4272 = vmatprep.subr.msk.mxu0 %vm547_vm1, %v5428_v56  ;;  %1519 = vrot.lane.b32.xlu1 %v5128_v44, %s4968_s15  ;;  %4707 = vrcp.f32 %v856_v15 }
 0x3bd   :  { %1513 = vrot.lane.b32.xlu0 %v5150_v49, %s4968_s15 }
 0x3bf   :  { %4273 = vmatpush3.xpose.msk.msra.mxu0 %vm547_vm1, %v5428_v56  ;;  %v854_v19 = vpop.xlane.xlu1 %853  ;;  %v858_v27 = vpop.xlane.xlu0 %857 }
 0x3c0   :  { %4709 = vrcp.f32 %v854_v19  ;;  %4274 = vmatprep.subr.msk.mxu0 %vm547_vm1, %v5432_v28  ;;  %1515 = vrot.lane.b32.xlu1 %v5136_v46, %s4968_s15 }
 0x3c1   :  { %v4702_v29 = vpop.eup %4701  ;;  %4711 = vrcp.f32 %v858_v27  ;;  %1766 = vrot.lane.b32.xlu0 %v5098_v36, %s4969_s16 }
 0x3c2   :  { %v889_v63 = vmul.f32 %v4702_v29, %v5463_v34 }
 0x3c3   :  { %4275 = vmatpush3.xpose.msk.msra.mxu0 %vm547_vm1, %v5432_v28  ;;  %v860_v56 = vpop.xlane.xlu1 %859  ;;  %v1129_v28 = vpop.permute.xlu0 %1128 }
 0x3c4   :  { %4713 = vrcp.f32 %v860_v56  ;;  %4276 = vmatprep.subr.msk.mxu0 %vm547_vm1, %v5504_v18  ;;  %1511 = vrot.lane.b32.xlu1 %v5088_v20, %s4968_s15 }
 0x3c5   :  { %v4704_v16 = vpop.eup %4703  ;;  %4232 = vmatprep.mubr.f32.mxu0 %v889_v63  ;;  %1762 = vrot.lane.b32.xlu0 %v5092_v32, %s4969_s16 }
 0x3c6   :  { %v4706_v53 = vpop.eup %4705  ;;  %4233 = vmatmul.mubr.f32.gmra.mxu0 %v890_v5  ;;  %v892_v34 = vmul.f32 %v4704_v16, %v5466_v26 }
 0x3c7   :  { %4277 = vmatpush3.xpose.msk.msra.mxu0 %vm547_vm1, %v5504_v18  ;;  %v891_v4 = vmul.f32 %v4706_v53, %v5468_v1  ;;  %v1127_v55 = vpop.permute.xlu1 %1126 }
 0x3c8   :  { %4278 = vmatprep.subr.msk.mxu0 %vm547_vm1, %v1129_v28  ;;  %1764 = vrot.lane.b32.xlu1 %v5106_v39, %s4969_s16 }
 0x3c9   :  { %4235 = vmatprep.mubr.f32.mxu0 %v891_v4  ;;  %1758 = vrot.lane.b32.xlu0 %v5114_v41, %s4969_s16  ;;  %v4708_v26 = vpop.eup %4707 }
 0x3ca   :  { %4236 = vmatmul.mubr.f32.gmra.mxu0 %v892_v34  ;;  %v894_v21 = vmul.f32 %v4708_v26, %v5472_v17 }
 0x3cb   :  { %4279 = vmatpush3.xpose.msk.msra.mxu0 %vm547_vm1, %v1129_v28 }
 0x3cc   :  { %4280 = vmatprep.subr.msk.mxu0 %vm547_vm1, %v1127_v55  ;;  %1760 = vrot.lane.b32.xlu1 %v5096_v35, %s4969_s16 }
 0x3cd   :  { %v4710_v1 = vpop.eup %4709  ;;  %1754 = vrot.lane.b32.xlu0 %v5122_v43, %s4969_s16 }
 0x3ce   :  { %v4712_v23 = vpop.eup %4711  ;;  %v893_v33 = vmul.f32 %v4710_v1, %v5475_v6 }
 0x3cf   :  { %4281 = vmatpush3.xpose.msk.msra.mxu0 %vm547_vm1, %v1127_v55  ;;  %v895_v18 = vmul.f32 %v4712_v23, %v5477_v24 }
 0x3d0   :  { %1756 = vrot.lane.b32.xlu1 %v5104_v38, %s4969_s16  ;;  %4238 = vmatprep.mubr.f32.mxu0 %v893_v33 }
 0x3d1   :  { %v4714_v11 = vpop.eup %4713  ;;  %1750 = vrot.lane.b32.xlu0 %v5130_v45, %s4969_s16  ;;  %4239 = vmatmul.mubr.f32.gmra.mxu0 %v894_v21 }
 0x3d2   :  { %4241 = vmatprep.mubr.f32.mxu0 %v895_v18  ;;  %v896_v31 = vmul.f32 %v4714_v11, %v5481_v54 }
 0x3d4   :  { %1752 = vrot.lane.b32.xlu1 %v5112_v40, %s4969_s16 }
 0x3d5   :  { %1746 = vrot.lane.b32.xlu0 %v5138_v47, %s4969_s16  ;;  %4242 = vmatmul.mubr.f32.gmra.mxu0 %v896_v31 }
 0x3d9   :  { %1744 = vrot.lane.b32.xlu0 %v5128_v44, %s4969_s16 }
 0x3dd   :  { %1742 = vrot.lane.b32.xlu0 %v5144_v48, %s4969_s16 }
 0x3f4   :  { %v864_v17 = vpop.xlane.xlu0 %863 }
 0x3f5   :  { %4715 = vrcp.f32 %v864_v17 }
 0x3f8   :  { %v862_v6 = vpop.xlane.xlu1 %861  ;;  %v868_v24 = vpop.xlane.xlu0 %867 }
 0x3f9   :  { %4717 = vrcp.f32 %v862_v6 }
 0x3fa   :  { %4719 = vrcp.f32 %v868_v24 }
 0x3fc   :  { %v866_v54 = vpop.xlane.xlu1 %865  ;;  %v1095_v3 = vpop.permute.xlu0 %1094 }
 0x3fd   :  { %4721 = vrcp.f32 %v866_v54 }
 0x400   :  { %v1097_v51 = vpop.permute.xlu1 %1096  ;;  %v1099_v2 = vpop.permute.xlu0 %1098 }
 0x402   :  { %v4716_v13 = vpop.eup %4715 }
 0x403   :  { %v898_v10 = vmul.f32 %v4716_v13, %v5492_v60 }
 0x404   :  { %v1101_v7 = vpop.permute.xlu1 %1100  ;;  %v1103_v22 = vpop.permute.xlu0 %1102 }
 0x406   :  { %v4718_v57 = vpop.eup %4717 }
 0x407   :  { %v897_v8 = vmul.f32 %v4718_v57, %v5497_v62  ;;  %v4720_v12 = vpop.eup %4719 }
 0x408   :  { %v1105_v61 = vpop.permute.xlu1 %1104  ;;  %v1107_v9 = vpop.permute.xlu0 %1106  ;;  %v900_v27 = vmul.f32 %v4720_v12, %v5495_v59 }
 0x409   :  { %4244 = vmatprep.mubr.f32.mxu0 %v897_v8 }
 0x40a   :  { %v4722_v14 = vpop.eup %4721  ;;  %4245 = vmatmul.mubr.f32.gmra.mxu0 %v898_v10 }
 0x40b   :  { %v899_v30 = vmul.f32 %v4722_v14, %v5501_v25 }
 0x40c   :  { %v1109_v15 = vpop.permute.xlu1 %1108  ;;  %v1111_v19 = vpop.permute.xlu0 %1110 }
 0x40d   :  { %4247 = vmatprep.mubr.f32.mxu0 %v899_v30 }
 0x40e   :  { %4248 = vmatmul.mubr.f32.gmra.mxu0 %v900_v27 }
 0x40f   :  { %4282 = vmatprep.mubr.msk.f32.mxu0 %vm547_vm1, %v1095_v3 }
 0x410   :  { %v1113_v37 = vpop.permute.xlu1 %1112  ;;  %v1115_v62 = vpop.permute.xlu0 %1114 }
 0x412   :  { %4283 = vmatmul.mubr.msk.f32.vlgmr.msra.gmra.mxu0 %vm547_vm1, %v1097_v51 }
 0x413   :  { %4285 = vmatprep.mubr.msk.f32.mxu0 %vm547_vm1, %v1099_v2 }
 0x414   :  { %v1117_v60 = vpop.permute.xlu1 %1116  ;;  %v1119_v29 = vpop.permute.xlu0 %1118 }
 0x416   :  { %4286 = vmatmul.mubr.msk.f32.gmra.mxu0 %vm547_vm1, %v1101_v7 }
 0x417   :  { %4288 = vmatprep.mubr.msk.f32.mxu0 %vm547_vm1, %v1103_v22 }
 0x418   :  { %v1121_v25 = vpop.permute.xlu1 %1120  ;;  %v1123_v63 = vpop.permute.xlu0 %1122 }
 0x41a   :  { %4289 = vmatmul.mubr.msk.f32.gmra.mxu0 %vm547_vm1, %v1105_v61 }
 0x41b   :  { %4291 = vmatprep.mubr.msk.f32.mxu0 %vm547_vm1, %v1107_v9 }
 0x41c   :  { %v1125_v59 = vpop.permute.xlu1 %1124  ;;  %v1540_v56 = vpop.permute.xlu0 %1539 }
 0x41e   :  { %4292 = vmatmul.mubr.msk.f32.gmra.mxu0 %vm547_vm1, %v1109_v15 }
 0x41f   :  { %4294 = vmatprep.mubr.msk.f32.mxu0 %vm547_vm1, %v1111_v19 }
 0x420   :  { %v1542_v5 = vpop.permute.xlu1 %1541  ;;  %v1538_v16 = vpop.permute.xlu0 %1537 }
 0x421   :  { %4306 = vmatprep.subr.mxu1 %v1542_v5 }
 0x422   :  { %4295 = vmatmul.mubr.msk.f32.gmra.mxu0 %vm547_vm1, %v1113_v37  ;;  %4307 = vmatpush3.msra.mxu1 %v1542_v5  ;;  %v7200_v5 = vld [vmem:[#allocation2_spill] sm:$0xff] }
 0x423   :  { %4297 = vmatprep.mubr.msk.f32.mxu0 %vm547_vm1, %v1115_v62  ;;  %4308 = vmatprep.subr.mxu1 %v1540_v56 }
 0x424   :  { %v1536_v53 = vpop.permute.xlu1 %1535  ;;  %4309 = vmatpush3.msra.mxu1 %v1540_v56  ;;  %v1534_v34 = vpop.permute.xlu0 %1533 }
 0x425   :  { %4310 = vmatprep.subr.mxu1 %v1538_v16 }
 0x426   :  { %4298 = vmatmul.mubr.msk.f32.gmra.mxu0 %vm547_vm1, %v1117_v60  ;;  %4311 = vmatpush3.msra.mxu1 %v1538_v16 }
 0x427   :  { %4300 = vmatprep.mubr.msk.f32.mxu0 %vm547_vm1, %v1119_v29  ;;  %4312 = vmatprep.subr.mxu1 %v1536_v53 }
 0x428   :  { %v1532_v28 = vpop.permute.xlu1 %1531  ;;  %4313 = vmatpush3.msra.mxu1 %v1536_v53  ;;  %v1526_v4 = vpop.permute.xlu0 %1525 }
 0x429   :  { %4314 = vmatprep.subr.mxu1 %v1534_v34 }
 0x42a   :  { %4301 = vmatmul.mubr.msk.f32.gmra.mxu0 %vm547_vm1, %v1121_v25  ;;  %4315 = vmatpush3.msra.mxu1 %v1534_v34 }
 0x42b   :  { %4303 = vmatprep.mubr.msk.f32.mxu0 %vm547_vm1, %v1123_v63  ;;  %4316 = vmatprep.subr.mxu1 %v1532_v28 }
 0x42c   :  { %v1530_v55 = vpop.permute.xlu1 %1529  ;;  %4317 = vmatpush3.msra.mxu1 %v1532_v28  ;;  %v1522_v26 = vpop.permute.xlu0 %1521  ;;  %v7201_v28 = vld [vmem:[#allocation3_spill] sm:$0xff] }
 0x42d   :  { %4318 = vmatprep.subr.mxu1 %v1530_v55 }
 0x42e   :  { %4304 = vmatmul.mubr.msk.f32.gmra.mxu0 %vm547_vm1, %v1125_v59  ;;  %4319 = vmatpush3.msra.mxu1 %v1530_v55 }
 0x430   :  { %v1528_v1 = vpop.permute.xlu1 %1527  ;;  %v1518_v33 = vpop.permute.xlu0 %1517 }
 0x431   :  { %4320 = vmatprep.subr.mxu1 %v1528_v1 }
 0x432   :  { %4321 = vmatpush3.msra.mxu1 %v1528_v1  ;;  %v7202_v1 = vld [vmem:[#allocation4_spill] sm:$0xff] }
 0x433   :  { %4322 = vmatprep.subr.mxu1 %v1526_v4 }
 0x434   :  { %v1524_v23 = vpop.permute.xlu1 %1523  ;;  %4323 = vmatpush3.msra.mxu1 %v1526_v4  ;;  %v1514_v18 = vpop.permute.xlu0 %1513 }
 0x435   :  { %4324 = vmatprep.subr.mxu1 %v1524_v23 }
 0x436   :  { %4325 = vmatpush3.msra.mxu1 %v1524_v23 }
 0x437   :  { %4326 = vmatprep.subr.mxu1 %v1522_v26 }
 0x438   :  { %v1520_v21 = vpop.permute.xlu1 %1519  ;;  %4327 = vmatpush3.msra.mxu1 %v1522_v26  ;;  %v5684_v17 = vpop.permute.xlu0 %1766 }
 0x439   :  { %4328 = vmatprep.subr.mxu1 %v1520_v21 }
 0x43a   :  { %4329 = vmatpush3.msra.mxu1 %v1520_v21  ;;  %v7203_v21 = vld [vmem:[#allocation5_spill] sm:$0xff] }
 0x43b   :  { %4330 = vmatprep.subr.mxu1 %v1518_v33 }
 0x43c   :  { %v1516_v11 = vpop.permute.xlu1 %1515  ;;  %4331 = vmatpush3.msra.mxu1 %v1518_v33 }
 0x43d   :  { %4332 = vmatprep.subr.mxu1 %v1516_v11 }
 0x43e   :  { %4333 = vmatpush3.msra.mxu1 %v1516_v11 }
 0x43f   :  { %4334 = vmatprep.subr.mxu1 %v1514_v18 }
 0x440   :  { %v1512_v31 = vpop.permute.xlu1 %1511  ;;  %4335 = vmatpush3.msra.mxu1 %v1514_v18 }
 0x441   :  { %4336 = vmatprep.subr.mxu1 %v1512_v31 }
 0x442   :  { %4337 = vmatpush3.msra.mxu1 %v1512_v31  ;;  %v7204_v31 = vld [vmem:[#allocation6_spill] sm:$0xff] }
 0x443   :  { %4362 = vmatprep.subr.msk.mxu1 %vm547_vm1, %v5684_v17 }
 0x452   :  { %v5688_v6 = vpop.f32.mrf.mxu0 }
 0x453   :  { %7184 = vst [vmem:[#allocation14_spill] sm:$0xff] %v5688_v6 }
 0x454   :  { %v5690_v24 = vpop.f32.mrf.mxu0 }
 0x455   :  { %7185 = vst [vmem:[#allocation15_spill] sm:$0xff] %v5690_v24 }
 0x45a   :  { %v5692_v54 = vpop.f32.mrf.mxu0 }
 0x45b   :  { %7186 = vst [vmem:[#allocation16_spill] sm:$0xff] %v5692_v54 }
 0x45c   :  { %v5694_v3 = vpop.f32.mrf.mxu0 }
 0x45d   :  { %7187 = vst [vmem:[#allocation17_spill] sm:$0xff] %v5694_v3  ;;  %v7211_v3 = vld [vmem:[#allocation13_spill] sm:$0xff] }
 0x486   :  { %v5696_v51 = vpop.f32.mrf.mxu0 }
 0x487   :  { %7188 = vst [vmem:[#allocation18_spill] sm:$0xff] %v5696_v51 }
 0x488   :  { %v5698_v2 = vpop.f32.mrf.mxu0 }
 0x489   :  { %7189 = vst [vmem:[#allocation19_spill] sm:$0xff] %v5698_v2 }
 0x48a   :  { %v5700_v7 = vpop.f32.mrf.mxu0 }
 0x48b   :  { %7190 = vst [vmem:[#allocation20_spill] sm:$0xff] %v5700_v7 }
 0x48c   :  { %v5702_v22 = vpop.f32.mrf.mxu0 }
 0x48d   :  { %7191 = vst [vmem:[#allocation21_spill] sm:$0xff] %v5702_v22 }
 0x491   :  { %v5704_v13 = vpop.f32.mrf.mxu0 }
 0x492   :  { %7192 = vst [vmem:[#allocation22_spill] sm:$0xff] %v5704_v13 }
 0x493   :  { %v5706_v57 = vpop.f32.mrf.mxu0 }
 0x494   :  { %7193 = vst [vmem:[#allocation23_spill] sm:$0xff] %v5706_v57 }
 0x495   :  { %v5708_v8 = vpop.f32.mrf.mxu0 }
 0x496   :  { %7194 = vst [vmem:[#allocation24_spill] sm:$0xff] %v5708_v8 }
 0x497   :  { %v5710_v61 = vpop.f32.mrf.mxu0 }
 0x498   :  { %7195 = vst [vmem:[#allocation25_spill] sm:$0xff] %v5710_v61 }
 0x4ca   :  { %v5712_v9 = vpop.f32.mrf.mxu0 }
 0x4cb   :  { %7196 = vst [vmem:[#allocation26_spill] sm:$0xff] %v5712_v9 }
 0x4cc   :  { %v5714_v10 = vpop.f32.mrf.mxu0 }
 0x4cd   :  { %7197 = vst [vmem:[#allocation27_spill] sm:$0xff] %v5714_v10 }
 0x4ce   :  { %v5716_v12 = vpop.f32.mrf.mxu0 }
 0x4cf   :  { %7198 = vst [vmem:[#allocation28_spill] sm:$0xff] %v5716_v12 }
 0x4d0   :  { %v5718_v14 = vpop.f32.mrf.mxu0 }
 0x4d1   :  { %7199 = vst [vmem:[#allocation29_spill] sm:$0xff] %v5718_v14 }
 0x4d2   :  { %v4284_v30 = vpop.f32.mrf.mxu0 }
 0x4d3   :  { %v5721_v15 = vadd.f32 %v4284_v30, %v5279_v50 }
 0x4d4   :  { %v1288_v19 = vpop.f32.mrf.mxu0 }
 0x4d5   :  { %v5724_v27 = vadd.f32 %v1288_v19, %v5282_v52  ;;  %1369 = vmax.xlane.f32.xlu1 %v5721_v15 }
 0x4d6   :  { %v4287_v37 = vpop.f32.mrf.mxu0 }
 0x4d7   :  { %1367 = vmax.xlane.f32.xlu0 %v5724_v27  ;;  %v5729_v60 = vadd.f32 %v4287_v37, %v5294_v58  ;;  %v7205_v37 = vld [vmem:[#allocation7_spill] sm:$0xff] }
 0x4d8   :  { %v1298_v62 = vpop.f32.mrf.mxu0 }
 0x4d9   :  { %v5733_v63 = vadd.f32 %v1298_v62, %v5303_v0 }
 0x4da   :  { %v4290_v29 = vpop.f32.mrf.mxu0 }
 0x4db   :  { %1373 = vmax.xlane.f32.xlu0 %v5729_v60  ;;  %v5737_v16 = vadd.f32 %v4290_v29, %v7200_v5  ;;  %v7206_v29 = vld [vmem:[#allocation8_spill] sm:$0xff] }
 0x4dc   :  { %v1308_v25 = vpop.f32.mrf.mxu0 }
 0x4de   :  { %v4293_v59 = vpop.f32.mrf.mxu0 }
 0x4df   :  { %1371 = vmax.xlane.f32.xlu0 %v5733_v63  ;;  %v5741_v4 = vadd.f32 %v4293_v59, %v7201_v28  ;;  %v1309_v59 = vadd.f32 %v1308_v25, %v7206_v29  ;;  %v7210_v25 = vld [vmem:[#allocation12_spill] sm:$0xff] }
 0x4e0   :  { %v1318_v56 = vpop.f32.mrf.mxu0 }
 0x4e2   :  { %v4296_v53 = vpop.f32.mrf.mxu0 }
 0x4e3   :  { %1377 = vmax.xlane.f32.xlu0 %v5737_v16  ;;  %v5747_v23 = vadd.f32 %v4296_v53, %v7202_v1  ;;  %v7207_v53 = vld [vmem:[#allocation9_spill] sm:$0xff] }
 0x4e4   :  { %v1328_v34 = vpop.f32.mrf.mxu0 }
 0x4e6   :  { %1748 = vrot.lane.b32.xlu1 %v5120_v42, %s4969_s16  ;;  %v4299_v55 = vpop.f32.mrf.mxu0 }
 0x4e7   :  { %1381 = vmax.xlane.f32.xlu0 %v5741_v4  ;;  %v5751_v18 = vadd.f32 %v4299_v55, %v7203_v21  ;;  %v5764_v55 = vadd.f32 %v1318_v56, %v7207_v53 }
 0x4e8   :  { %v1338_v26 = vpop.f32.mrf.mxu0 }
 0x4ea   :  { %v4302_v33 = vpop.f32.mrf.mxu0 }
 0x4eb   :  { %1385 = vmax.xlane.f32.xlu0 %v5747_v23  ;;  %v5755_v30 = vadd.f32 %v4302_v33, %v7204_v31  ;;  %v7208_v33 = vld [vmem:[#allocation10_spill] sm:$0xff] }
 0x4ec   :  { %v1348_v11 = vpop.f32.mrf.mxu0  ;;  %v5770_v12 = vadd.f32 %v1328_v34, %v7208_v33  ;;  %v5785_v34 = vpop.permute.xlu0 %1762 }
 0x4ed   :  { %v5778_v54 = vadd.f32 %v1348_v11, %v7210_v25 }
 0x4ee   :  { %v4305_v19 = vpop.f32.mrf.mxu0 }
 0x4ef   :  { %1389 = vmax.xlane.f32.xlu0 %v5751_v18  ;;  %v5759_v62 = vadd.f32 %v4305_v19, %v7205_v37  ;;  %v7209_v19 = vld [vmem:[#allocation11_spill] sm:$0xff] }
 0x4f0   :  { %v5774_v14 = vadd.f32 %v1338_v26, %v7209_v19  ;;  %v1358_v56 = vpop.f32.mrf.mxu0  ;;  %v5787_v24 = vpop.permute.xlu0 %1758 }
 0x4f1   :  { %v5782_v6 = vadd.f32 %v1358_v56, %v7211_v3  ;;  %v5791_v26 = vpop.permute.xlu1 %1764 }
 0x4f3   :  { %1393 = vmax.xlane.f32.xlu0 %v5755_v30 }
 0x4f4   :  { %v5789_v9 = vpop.permute.xlu0 %1754 }
 0x4f5   :  { %v5795_v11 = vpop.permute.xlu1 %1760 }
 0x4f7   :  { %1397 = vmax.xlane.f32.xlu0 %v5759_v62 }
 0x4f8   :  { %v5793_v8 = vpop.permute.xlu0 %1750 }
 0x4f9   :  { %v5799_v7 = vpop.permute.xlu1 %1756 }
 0x4fc   :  { %v5797_v13 = vpop.permute.xlu0 %1746 }
 0x4fd   :  { %v5803_v51 = vpop.permute.xlu1 %1752 }
 0x500   :  { %v5801_v56 = vpop.permute.xlu0 %1744 }
 0x504   :  { %v5805_v10 = vpop.permute.xlu0 %1742 }
 0x50a   :  { %1375 = vmax.xlane.f32.xlu1 %v1309_v59 }
 0x50d   :  { %1740 = vrot.lane.b32.xlu0 %v5136_v46, %s4969_s16 }
 0x50e   :  { %1379 = vmax.xlane.f32.xlu1 %v5764_v55 }
 0x512   :  { %1383 = vmax.xlane.f32.xlu1 %v5770_v12 }
 0x516   :  { %1387 = vmax.xlane.f32.xlu1 %v5774_v14 }
 0x51a   :  { %1391 = vmax.xlane.f32.xlu1 %v5778_v54 }
 0x51e   :  { %1395 = vmax.xlane.f32.xlu1 %v5782_v6 }
 0x55e   :  { %v1370_v61 = vpop.xlane.xlu1 %1369 }
 0x55f   :  { %v1400_v57 = vsub.f32 %v5721_v15, %v1370_v61 }
 0x560   :  { %v1368_v22 = vpop.xlane.xlu0 %1367 }
 0x561   :  { %v1417_v2 = vmul.f32 1.442695, %v1400_v57  ;;  %v1399_v3 = vsub.f32 %v5724_v27, %v1368_v22 }
 0x563   :  { %4723 = vpow2.f32 %v1417_v2  ;;  %v1415_v25 = vmul.f32 1.442695, %v1399_v3 }
 0x564   :  { %v1374_v19 = vpop.xlane.xlu0 %1373 }
 0x565   :  { %4725 = vpow2.f32 %v1415_v25  ;;  %v1402_v33 = vsub.f32 %v5729_v60, %v1374_v19  ;;  %v5827_v60 = vpop.permute.xlu1 %1748 }
 0x567   :  { %v1421_v53 = vmul.f32 1.442695, %v1402_v33 }
 0x568   :  { %v1372_v29 = vpop.xlane.xlu0 %1371 }
 0x569   :  { %4727 = vpow2.f32 %v1421_v53  ;;  %v1401_v37 = vsub.f32 %v5733_v63, %v1372_v29 }
 0x56b   :  { %v1419_v31 = vmul.f32 1.442695, %v1401_v37 }
 0x56c   :  { %v1378_v21 = vpop.xlane.xlu0 %1377 }
 0x56d   :  { %4729 = vpow2.f32 %v1419_v31  ;;  %v1404_v61 = vsub.f32 %v5737_v16, %v1378_v21 }
 0x56f   :  { %v1425_v15 = vmul.f32 1.442695, %v1404_v61 }
 0x570   :  { %v5812_v57 = vpop.eup %4723  ;;  %v1382_v63 = vpop.xlane.xlu0 %1381 }
 0x571   :  { %4731 = vpow2.f32 %v1425_v15  ;;  %1449 = vadd.xlane.f32.xlu0 %v5812_v57  ;;  %v1406_v16 = vsub.f32 %v5741_v4, %v1382_v63 }
 0x572   :  { %v5815_v3 = vpop.eup %4725 }
 0x573   :  { %1447 = vadd.xlane.f32.xlu1 %v5815_v3  ;;  %v1429_v53 = vmul.f32 1.442695, %v1406_v16 }
 0x574   :  { %v1386_v37 = vpop.xlane.xlu0 %1385 }
 0x575   :  { %v1408_v19 = vsub.f32 %v5747_v23, %v1386_v37 }
 0x576   :  { %v5818_v2 = vpop.eup %4727 }
 0x577   :  { %1453 = vadd.xlane.f32.xlu1 %v5818_v2  ;;  %v1433_v1 = vmul.f32 1.442695, %v1408_v19 }
 0x578   :  { %v1390_v5 = vpop.xlane.xlu0 %1389 }
 0x57a   :  { %v5821_v22 = vpop.eup %4729 }
 0x57b   :  { %1451 = vadd.xlane.f32.xlu0 %v5821_v22 }
 0x57e   :  { %v5824_v27 = vpop.eup %4731 }
 0x57f   :  { %1457 = vadd.xlane.f32.xlu1 %v5824_v27 }
 0x593   :  { %v1376_v21 = vpop.xlane.xlu1 %1375 }
 0x594   :  { %v1403_v31 = vsub.f32 %v1309_v59, %v1376_v21  ;;  %v1410_v59 = vsub.f32 %v5751_v18, %v1390_v5  ;;  %v1394_v18 = vpop.xlane.xlu0 %1393 }
 0x596   :  { %v1423_v29 = vmul.f32 1.442695, %v1403_v31  ;;  %v1437_v23 = vmul.f32 1.442695, %v1410_v59 }
 0x597   :  { %v1380_v33 = vpop.xlane.xlu1 %1379 }
 0x598   :  { %4733 = vpow2.f32 %v1423_v29  ;;  %v1405_v25 = vsub.f32 %v5764_v55, %v1380_v33  ;;  %v1412_v29 = vsub.f32 %v5755_v30, %v1394_v18 }
 0x599   :  { %4735 = vpow2.f32 %v1429_v53  ;;  %v1398_v53 = vpop.xlane.xlu0 %1397 }
 0x59a   :  { %v1427_v61 = vmul.f32 1.442695, %v1405_v25  ;;  %v1414_v33 = vsub.f32 %v5759_v62, %v1398_v53  ;;  %v1441_v19 = vmul.f32 1.442695, %v1412_v29 }
 0x59b   :  { %v1384_v15 = vpop.xlane.xlu1 %1383 }
 0x59c   :  { %4737 = vpow2.f32 %v1427_v61  ;;  %v1407_v28 = vsub.f32 %v5770_v12, %v1384_v15  ;;  %v1445_v15 = vmul.f32 1.442695, %v1414_v33 }
 0x59d   :  { %4739 = vpow2.f32 %v1433_v1 }
 0x59e   :  { %v1431_v4 = vmul.f32 1.442695, %v1407_v28 }
 0x59f   :  { %v1388_v63 = vpop.xlane.xlu1 %1387 }
 0x5a0   :  { %v1409_v16 = vsub.f32 %v5774_v14, %v1388_v63  ;;  %4741 = vpow2.f32 %v1431_v4 }
 0x5a2   :  { %v1435_v21 = vmul.f32 1.442695, %v1409_v16 }
 0x5a3   :  { %v1392_v37 = vpop.xlane.xlu1 %1391 }
 0x5a4   :  { %4743 = vpow2.f32 %v1435_v21  ;;  %v1411_v25 = vsub.f32 %v5778_v54, %v1392_v37 }
 0x5a5   :  { %v5835_v55 = vpop.eup %4733  ;;  %4745 = vpow2.f32 %v1437_v23 }
 0x5a6   :  { %1455 = vadd.xlane.f32.xlu1 %v5835_v55  ;;  %v5838_v31 = vpop.eup %4735  ;;  %4747 = vpow2.f32 %v1441_v19  ;;  %v1439_v4 = vmul.f32 1.442695, %v1411_v25 }
 0x5a7   :  { %v1396_v61 = vpop.xlane.xlu1 %1395  ;;  %4749 = vpow2.f32 %v1445_v15 }
 0x5a8   :  { %v1413_v63 = vsub.f32 %v5782_v6, %v1396_v61  ;;  %4751 = vpow2.f32 %v1439_v4  ;;  %v5876_v6 = vpop.permute.xlu0 %1740 }
 0x5a9   :  { %v5840_v12 = vpop.eup %4737 }
 0x5aa   :  { %1459 = vadd.xlane.f32.xlu0 %v5840_v12  ;;  %1461 = vadd.xlane.f32.xlu1 %v5838_v31  ;;  %v5844_v5 = vpop.eup %4739  ;;  %v1443_v59 = vmul.f32 1.442695, %v1413_v63 }
 0x5ac   :  { %4753 = vpow2.f32 %v1443_v59 }
 0x5ad   :  { %v5847_v14 = vpop.eup %4741 }
 0x5ae   :  { %1465 = vadd.xlane.f32.xlu1 %v5844_v5 }
 0x5b1   :  { %v5849_v28 = vpop.eup %4743 }
 0x5b2   :  { %1467 = vadd.xlane.f32.xlu0 %v5849_v28  ;;  %1463 = vadd.xlane.f32.xlu1 %v5847_v14  ;;  %v5853_v1 = vpop.eup %4745 }
 0x5b3   :  { %v5864_v16 = vpop.eup %4747 }
 0x5b4   :  { %v5867_v30 = vpop.eup %4749 }
 0x5b5   :  { %v5869_v62 = vpop.eup %4751 }
 0x5b6   :  { %1469 = vadd.xlane.f32.xlu1 %v5853_v1 }
 0x5b9   :  { %v5873_v54 = vpop.eup %4753 }
 0x5c7   :  { %1736 = vrot.lane.b32.xlu1 %v5088_v20, %s4969_s16 }
 0x5c8   :  { %1738 = vrot.lane.b32.xlu0 %v5150_v49, %s4969_s16 }
 0x5e7   :  { %1473 = vadd.xlane.f32.xlu0 %v5864_v16 }
 0x5eb   :  { %1471 = vadd.xlane.f32.xlu1 %v5869_v62  ;;  %1477 = vadd.xlane.f32.xlu0 %v5867_v30 }
 0x5ef   :  { %1475 = vadd.xlane.f32.xlu1 %v5873_v54 }
 0x5fa   :  { %v1450_v21 = vpop.xlane.xlu0 %1449 }
 0x5fb   :  { %4755 = vrcp.f32 %v1450_v21 }
 0x5fc   :  { %v1448_v23 = vpop.xlane.xlu1 %1447 }
 0x5fd   :  { %4757 = vrcp.f32 %v1448_v23 }
 0x600   :  { %1706 = vrot.lane.b32.xlu1 %v5150_v49, %s4970_s17  ;;  %v1454_v18 = vpop.xlane.xlu1 %1453 }
 0x601   :  { %1704 = vrot.lane.b32.xlu0 %v5088_v20, %s4970_s17  ;;  %4759 = vrcp.f32 %v1454_v18 }
 0x604   :  { %1710 = vrot.lane.b32.xlu1 %v5144_v48, %s4970_s17  ;;  %v1452_v37 = vpop.xlane.xlu0 %1451 }
 0x605   :  { %4761 = vrcp.f32 %v1452_v37  ;;  %1708 = vrot.lane.b32.xlu0 %v5136_v46, %s4970_s17 }
 0x608   :  { %1714 = vrot.lane.b32.xlu1 %v5138_v47, %s4970_s17  ;;  %v4756_v29 = vpop.eup %4755 }
 0x609   :  { %1712 = vrot.lane.b32.xlu0 %v5128_v44, %s4970_s17  ;;  %v1496_v19 = vmul.f32 %v4756_v29, %v5812_v57 }
 0x60a   :  { %v4758_v53 = vpop.eup %4757 }
 0x60b   :  { %v1495_v33 = vmul.f32 %v4758_v53, %v5815_v3 }
 0x60c   :  { %1718 = vrot.lane.b32.xlu1 %v5130_v45, %s4970_s17 }
 0x60d   :  { %4338 = vmatprep.mubr.f32.mxu1 %v1495_v33  ;;  %1716 = vrot.lane.b32.xlu0 %v5120_v42, %s4970_s17 }
 0x60e   :  { %4339 = vmatmul.mubr.f32.vlgmr.msra.gmra.mxu1 %v1496_v19  ;;  %v4760_v3 = vpop.eup %4759 }
 0x60f   :  { %4363 = vmatpush3.xpose.msk.msra.mxu1 %vm547_vm1, %v5684_v17  ;;  %v1498_v17 = vmul.f32 %v4760_v3, %v5818_v2 }
 0x610   :  { %4364 = vmatprep.subr.msk.mxu1 %vm547_vm1, %v5791_v26  ;;  %1722 = vrot.lane.b32.xlu1 %v5122_v43, %s4970_s17 }
 0x611   :  { %1720 = vrot.lane.b32.xlu0 %v5112_v40, %s4970_s17 }
 0x612   :  { %v4762_v25 = vpop.eup %4761 }
 0x613   :  { %4365 = vmatpush3.xpose.msk.msra.mxu1 %vm547_vm1, %v5791_v26  ;;  %v1497_v57 = vmul.f32 %v4762_v25, %v5821_v22 }
 0x614   :  { %4366 = vmatprep.subr.msk.mxu1 %vm547_vm1, %v5785_v34  ;;  %1726 = vrot.lane.b32.xlu1 %v5114_v41, %s4970_s17 }
 0x615   :  { %1724 = vrot.lane.b32.xlu0 %v5104_v38, %s4970_s17  ;;  %4341 = vmatprep.mubr.f32.mxu1 %v1497_v57 }
 0x616   :  { %4342 = vmatmul.mubr.f32.gmra.mxu1 %v1498_v17 }
 0x617   :  { %4367 = vmatpush3.xpose.msk.msra.mxu1 %vm547_vm1, %v5785_v34 }
 0x618   :  { %4368 = vmatprep.subr.msk.mxu1 %vm547_vm1, %v5795_v11  ;;  %1730 = vrot.lane.b32.xlu1 %v5092_v32, %s4970_s17 }
 0x619   :  { %1728 = vrot.lane.b32.xlu0 %v5096_v35, %s4970_s17 }
 0x61b   :  { %4369 = vmatpush3.xpose.msk.msra.mxu1 %vm547_vm1, %v5795_v11 }
 0x61c   :  { %4370 = vmatprep.subr.msk.mxu1 %vm547_vm1, %v5787_v24  ;;  %1734 = vrot.lane.b32.xlu1 %v5098_v36, %s4970_s17 }
 0x61d   :  { %1732 = vrot.lane.b32.xlu0 %v5106_v39, %s4970_s17 }
 0x61f   :  { %4371 = vmatpush3.xpose.msk.msra.mxu1 %vm547_vm1, %v5787_v24  ;;  %v1458_v24 = vpop.xlane.xlu1 %1457 }
 0x620   :  { %4372 = vmatprep.subr.msk.mxu1 %vm547_vm1, %v5799_v7  ;;  %2151 = vrot.lane.b32.xlu1 %v5098_v36, %s4971_s18  ;;  %4763 = vrcp.f32 %v1458_v24 }
 0x621   :  { %2149 = vrot.lane.b32.xlu0 %v5106_v39, %s4971_s18 }
 0x623   :  { %4373 = vmatpush3.xpose.msk.msra.mxu1 %vm547_vm1, %v5799_v7 }
 0x624   :  { %4374 = vmatprep.subr.msk.mxu1 %vm547_vm1, %v5789_v9  ;;  %2145 = vrot.lane.b32.xlu1 %v5096_v35, %s4971_s18 }
 0x625   :  { %2147 = vrot.lane.b32.xlu0 %v5092_v32, %s4971_s18 }
 0x627   :  { %4375 = vmatpush3.xpose.msk.msra.mxu1 %vm547_vm1, %v5789_v9 }
 0x628   :  { %4376 = vmatprep.subr.msk.mxu1 %vm547_vm1, %v5803_v51  ;;  %2141 = vrot.lane.b32.xlu1 %v5104_v38, %s4971_s18 }
 0x629   :  { %2143 = vrot.lane.b32.xlu0 %v5114_v41, %s4971_s18 }
 0x62b   :  { %4377 = vmatpush3.xpose.msk.msra.mxu1 %vm547_vm1, %v5803_v51 }
 0x62c   :  { %4378 = vmatprep.subr.msk.mxu1 %vm547_vm1, %v5793_v8  ;;  %2139 = vrot.lane.b32.xlu1 %v5122_v43, %s4971_s18 }
 0x62d   :  { %2135 = vrot.lane.b32.xlu0 %v5130_v45, %s4971_s18  ;;  %v4764_v11 = vpop.eup %4763 }
 0x62e   :  { %v1500_v22 = vmul.f32 %v4764_v11, %v5824_v27 }
 0x62f   :  { %4379 = vmatpush3.xpose.msk.msra.mxu1 %vm547_vm1, %v5793_v8  ;;  %v1456_v7 = vpop.xlane.xlu1 %1455 }
 0x630   :  { %4765 = vrcp.f32 %v1456_v7  ;;  %4380 = vmatprep.subr.msk.mxu1 %vm547_vm1, %v5827_v60  ;;  %2137 = vrot.lane.b32.xlu1 %v5112_v40, %s4971_s18 }
 0x631   :  { %2131 = vrot.lane.b32.xlu0 %v5138_v47, %s4971_s18 }
 0x633   :  { %4381 = vmatpush3.xpose.msk.msra.mxu1 %vm547_vm1, %v5827_v60  ;;  %v1462_v51 = vpop.xlane.xlu1 %1461  ;;  %v1460_v9 = vpop.xlane.xlu0 %1459 }
 0x634   :  { %4767 = vrcp.f32 %v1462_v51  ;;  %4382 = vmatprep.subr.msk.mxu1 %vm547_vm1, %v5797_v13  ;;  %2133 = vrot.lane.b32.xlu1 %v5120_v42, %s4971_s18 }
 0x635   :  { %4769 = vrcp.f32 %v1460_v9  ;;  %2127 = vrot.lane.b32.xlu0 %v5144_v48, %s4971_s18 }
 0x637   :  { %4383 = vmatpush3.xpose.msk.msra.mxu1 %vm547_vm1, %v5797_v13  ;;  %v1466_v8 = vpop.xlane.xlu1 %1465 }
 0x638   :  { %4384 = vmatprep.subr.msk.mxu1 %vm547_vm1, %v5801_v56  ;;  %2129 = vrot.lane.b32.xlu1 %v5128_v44, %s4971_s18  ;;  %4771 = vrcp.f32 %v1466_v8 }
 0x639   :  { %2123 = vrot.lane.b32.xlu0 %v5150_v49, %s4971_s18 }
 0x63b   :  { %4385 = vmatpush3.xpose.msk.msra.mxu1 %vm547_vm1, %v5801_v56  ;;  %v1464_v34 = vpop.xlane.xlu1 %1463  ;;  %v1468_v26 = vpop.xlane.xlu0 %1467 }
 0x63c   :  { %4773 = vrcp.f32 %v1464_v34  ;;  %4386 = vmatprep.subr.msk.mxu1 %vm547_vm1, %v5805_v10  ;;  %2125 = vrot.lane.b32.xlu1 %v5136_v46, %s4971_s18 }
 0x63d   :  { %v4766_v13 = vpop.eup %4765  ;;  %4775 = vrcp.f32 %v1468_v26  ;;  %2376 = vrot.lane.b32.xlu0 %v5098_v36, %s4972_s19 }
 0x63e   :  { %v1499_v2 = vmul.f32 %v4766_v13, %v5835_v55 }
 0x63f   :  { %4387 = vmatpush3.xpose.msk.msra.mxu1 %vm547_vm1, %v5805_v10  ;;  %v1470_v56 = vpop.xlane.xlu1 %1469  ;;  %v1739_v10 = vpop.permute.xlu0 %1738 }
 0x640   :  { %4777 = vrcp.f32 %v1470_v56  ;;  %4388 = vmatprep.subr.msk.mxu1 %vm547_vm1, %v5876_v6  ;;  %2121 = vrot.lane.b32.xlu1 %v5088_v20, %s4971_s18 }
 0x641   :  { %v4768_v60 = vpop.eup %4767  ;;  %4344 = vmatprep.mubr.f32.mxu1 %v1499_v2  ;;  %2372 = vrot.lane.b32.xlu0 %v5092_v32, %s4972_s19 }
 0x642   :  { %v4770_v61 = vpop.eup %4769  ;;  %4345 = vmatmul.mubr.f32.gmra.mxu1 %v1500_v22  ;;  %v1502_v55 = vmul.f32 %v4768_v60, %v5838_v31 }
 0x643   :  { %4389 = vmatpush3.xpose.msk.msra.mxu1 %vm547_vm1, %v5876_v6  ;;  %v1501_v15 = vmul.f32 %v4770_v61, %v5840_v12  ;;  %v1737_v27 = vpop.permute.xlu1 %1736 }
 0x644   :  { %4390 = vmatprep.subr.msk.mxu1 %vm547_vm1, %v1739_v10  ;;  %2374 = vrot.lane.b32.xlu1 %v5106_v39, %s4972_s19 }
 0x645   :  { %4347 = vmatprep.mubr.f32.mxu1 %v1501_v15  ;;  %2368 = vrot.lane.b32.xlu0 %v5114_v41, %s4972_s19  ;;  %v4772_v31 = vpop.eup %4771 }
 0x646   :  { %4348 = vmatmul.mubr.f32.gmra.mxu1 %v1502_v55  ;;  %v1504_v59 = vmul.f32 %v4772_v31, %v5844_v5 }
 0x647   :  { %4391 = vmatpush3.xpose.msk.msra.mxu1 %vm547_vm1, %v1739_v10 }
 0x648   :  { %4392 = vmatprep.subr.msk.mxu1 %vm547_vm1, %v1737_v27  ;;  %2370 = vrot.lane.b32.xlu1 %v5096_v35, %s4972_s19 }
 0x649   :  { %v4774_v12 = vpop.eup %4773  ;;  %2364 = vrot.lane.b32.xlu0 %v5122_v43, %s4972_s19 }
 0x64a   :  { %v4776_v4 = vpop.eup %4775  ;;  %v1503_v63 = vmul.f32 %v4774_v12, %v5847_v14 }
 0x64b   :  { %4393 = vmatpush3.xpose.msk.msra.mxu1 %vm547_vm1, %v1737_v27  ;;  %v1505_v6 = vmul.f32 %v4776_v4, %v5849_v28 }
 0x64c   :  { %2366 = vrot.lane.b32.xlu1 %v5104_v38, %s4972_s19  ;;  %4350 = vmatprep.mubr.f32.mxu1 %v1503_v63 }
 0x64d   :  { %v4778_v21 = vpop.eup %4777  ;;  %2360 = vrot.lane.b32.xlu0 %v5130_v45, %s4972_s19  ;;  %4351 = vmatmul.mubr.f32.gmra.mxu1 %v1504_v59 }
 0x64e   :  { %4353 = vmatprep.mubr.f32.mxu1 %v1505_v6  ;;  %v1506_v23 = vmul.f32 %v4778_v21, %v5853_v1 }
 0x650   :  { %2362 = vrot.lane.b32.xlu1 %v5112_v40, %s4972_s19 }
 0x651   :  { %2356 = vrot.lane.b32.xlu0 %v5138_v47, %s4972_s19  ;;  %4354 = vmatmul.mubr.f32.gmra.mxu1 %v1506_v23 }
 0x655   :  { %2354 = vrot.lane.b32.xlu0 %v5128_v44, %s4972_s19 }
 0x659   :  { %2352 = vrot.lane.b32.xlu0 %v5144_v48, %s4972_s19 }
 0x670   :  { %v1474_v5 = vpop.xlane.xlu0 %1473 }
 0x671   :  { %4779 = vrcp.f32 %v1474_v5 }
 0x674   :  { %v1472_v14 = vpop.xlane.xlu1 %1471  ;;  %v1478_v28 = vpop.xlane.xlu0 %1477 }
 0x675   :  { %4781 = vrcp.f32 %v1472_v14 }
 0x676   :  { %4783 = vrcp.f32 %v1478_v28 }
 0x678   :  { %v1476_v1 = vpop.xlane.xlu1 %1475  ;;  %v1705_v18 = vpop.permute.xlu0 %1704 }
 0x679   :  { %4785 = vrcp.f32 %v1476_v1 }
 0x67c   :  { %v1707_v37 = vpop.permute.xlu1 %1706  ;;  %v1709_v29 = vpop.permute.xlu0 %1708 }
 0x67e   :  { %v4780_v19 = vpop.eup %4779 }
 0x67f   :  { %v1508_v24 = vmul.f32 %v4780_v19, %v5864_v16 }
 0x680   :  { %v1711_v53 = vpop.permute.xlu1 %1710  ;;  %v1713_v33 = vpop.permute.xlu0 %1712 }
 0x682   :  { %v4782_v3 = vpop.eup %4781 }
 0x683   :  { %v1507_v25 = vmul.f32 %v4782_v3, %v5869_v62  ;;  %v4784_v7 = vpop.eup %4783 }
 0x684   :  { %v1715_v57 = vpop.permute.xlu1 %1714  ;;  %v1717_v17 = vpop.permute.xlu0 %1716  ;;  %v1510_v26 = vmul.f32 %v4784_v7, %v5867_v30 }
 0x685   :  { %4356 = vmatprep.mubr.f32.mxu1 %v1507_v25 }
 0x686   :  { %v4786_v51 = vpop.eup %4785  ;;  %4357 = vmatmul.mubr.f32.gmra.mxu1 %v1508_v24 }
 0x687   :  { %v1509_v9 = vmul.f32 %v4786_v51, %v5873_v54 }
 0x688   :  { %v1719_v8 = vpop.permute.xlu1 %1718  ;;  %v1721_v34 = vpop.permute.xlu0 %1720 }
 0x689   :  { %4359 = vmatprep.mubr.f32.mxu1 %v1509_v9 }
 0x68a   :  { %4360 = vmatmul.mubr.f32.gmra.mxu1 %v1510_v26 }
 0x68b   :  { %4394 = vmatprep.mubr.msk.f32.mxu1 %vm547_vm1, %v1705_v18 }
 0x68c   :  { %v1723_v11 = vpop.permute.xlu1 %1722  ;;  %v1725_v62 = vpop.permute.xlu0 %1724 }
 0x68e   :  { %4395 = vmatmul.mubr.msk.f32.vlgmr.msra.gmra.mxu1 %vm547_vm1, %v1707_v37 }
 0x68f   :  { %4397 = vmatprep.mubr.msk.f32.mxu1 %vm547_vm1, %v1709_v29 }
 0x690   :  { %v1727_v16 = vpop.permute.xlu1 %1726  ;;  %v1729_v13 = vpop.permute.xlu0 %1728 }
 0x692   :  { %4398 = vmatmul.mubr.msk.f32.gmra.mxu1 %vm547_vm1, %v1711_v53 }
 0x693   :  { %4400 = vmatprep.mubr.msk.f32.mxu1 %vm547_vm1, %v1713_v33 }
 0x694   :  { %v1731_v54 = vpop.permute.xlu1 %1730  ;;  %v1733_v2 = vpop.permute.xlu0 %1732 }
 0x696   :  { %4401 = vmatmul.mubr.msk.f32.gmra.mxu1 %vm547_vm1, %v1715_v57 }
 0x697   :  { %4403 = vmatprep.mubr.msk.f32.mxu1 %vm547_vm1, %v1717_v17 }
 0x698   :  { %v1735_v30 = vpop.permute.xlu1 %1734  ;;  %v2150_v56 = vpop.permute.xlu0 %2149 }
 0x69a   :  { %4404 = vmatmul.mubr.msk.f32.gmra.mxu1 %vm547_vm1, %v1719_v8 }
 0x69b   :  { %4406 = vmatprep.mubr.msk.f32.mxu1 %vm547_vm1, %v1721_v34 }
 0x69c   :  { %v2152_v22 = vpop.permute.xlu1 %2151  ;;  %v2148_v60 = vpop.permute.xlu0 %2147 }
 0x69d   :  { %4418 = vmatprep.subr.mxu0 %v2152_v22 }
 0x69e   :  { %4407 = vmatmul.mubr.msk.f32.gmra.mxu1 %vm547_vm1, %v1723_v11  ;;  %4419 = vmatpush3.msra.mxu0 %v2152_v22  ;;  %v7228_v22 = vld [vmem:[#allocation2_spill] sm:$0xff] }
 0x69f   :  { %4409 = vmatprep.mubr.msk.f32.mxu1 %vm547_vm1, %v1725_v62  ;;  %4420 = vmatprep.subr.mxu0 %v2150_v56 }
 0x6a0   :  { %v2146_v61 = vpop.permute.xlu1 %2145  ;;  %4421 = vmatpush3.msra.mxu0 %v2150_v56  ;;  %v2144_v55 = vpop.permute.xlu0 %2143 }
 0x6a1   :  { %4422 = vmatprep.subr.mxu0 %v2148_v60 }
 0x6a2   :  { %4410 = vmatmul.mubr.msk.f32.gmra.mxu1 %vm547_vm1, %v1727_v16  ;;  %4423 = vmatpush3.msra.mxu0 %v2148_v60 }
 0x6a3   :  { %4412 = vmatprep.mubr.msk.f32.mxu1 %vm547_vm1, %v1729_v13  ;;  %4424 = vmatprep.subr.mxu0 %v2146_v61 }
 0x6a4   :  { %v2142_v10 = vpop.permute.xlu1 %2141  ;;  %4425 = vmatpush3.msra.mxu0 %v2146_v61  ;;  %v2136_v15 = vpop.permute.xlu0 %2135 }
 0x6a5   :  { %4426 = vmatprep.subr.mxu0 %v2144_v55 }
 0x6a6   :  { %4413 = vmatmul.mubr.msk.f32.gmra.mxu1 %vm547_vm1, %v1731_v54  ;;  %4427 = vmatpush3.msra.mxu0 %v2144_v55 }
 0x6a7   :  { %4415 = vmatprep.mubr.msk.f32.mxu1 %vm547_vm1, %v1733_v2  ;;  %4428 = vmatprep.subr.mxu0 %v2142_v10 }
 0x6a8   :  { %v2140_v27 = vpop.permute.xlu1 %2139  ;;  %4429 = vmatpush3.msra.mxu0 %v2142_v10  ;;  %v2132_v31 = vpop.permute.xlu0 %2131  ;;  %v7229_v10 = vld [vmem:[#allocation3_spill] sm:$0xff] }
 0x6a9   :  { %4430 = vmatprep.subr.mxu0 %v2140_v27 }
 0x6aa   :  { %4416 = vmatmul.mubr.msk.f32.gmra.mxu1 %vm547_vm1, %v1735_v30  ;;  %4431 = vmatpush3.msra.mxu0 %v2140_v27 }
 0x6ac   :  { %v2138_v12 = vpop.permute.xlu1 %2137  ;;  %v2128_v63 = vpop.permute.xlu0 %2127 }
 0x6ad   :  { %4432 = vmatprep.subr.mxu0 %v2138_v12 }
 0x6ae   :  { %4433 = vmatpush3.msra.mxu0 %v2138_v12  ;;  %v7230_v12 = vld [vmem:[#allocation4_spill] sm:$0xff] }
 0x6af   :  { %4434 = vmatprep.subr.mxu0 %v2136_v15 }
 0x6b0   :  { %v2134_v4 = vpop.permute.xlu1 %2133  ;;  %4435 = vmatpush3.msra.mxu0 %v2136_v15  ;;  %v2124_v6 = vpop.permute.xlu0 %2123 }
 0x6b1   :  { %4436 = vmatprep.subr.mxu0 %v2134_v4 }
 0x6b2   :  { %4437 = vmatpush3.msra.mxu0 %v2134_v4 }
 0x6b3   :  { %4438 = vmatprep.subr.mxu0 %v2132_v31 }
 0x6b4   :  { %v2130_v59 = vpop.permute.xlu1 %2129  ;;  %4439 = vmatpush3.msra.mxu0 %v2132_v31  ;;  %v6056_v5 = vpop.permute.xlu0 %2376 }
 0x6b5   :  { %4440 = vmatprep.subr.mxu0 %v2130_v59 }
 0x6b6   :  { %4441 = vmatpush3.msra.mxu0 %v2130_v59  ;;  %v7231_v59 = vld [vmem:[#allocation5_spill] sm:$0xff] }
 0x6b7   :  { %4442 = vmatprep.subr.mxu0 %v2128_v63 }
 0x6b8   :  { %v2126_v21 = vpop.permute.xlu1 %2125  ;;  %4443 = vmatpush3.msra.mxu0 %v2128_v63 }
 0x6b9   :  { %4444 = vmatprep.subr.mxu0 %v2126_v21 }
 0x6ba   :  { %4445 = vmatpush3.msra.mxu0 %v2126_v21 }
 0x6bb   :  { %4446 = vmatprep.subr.mxu0 %v2124_v6 }
 0x6bc   :  { %v2122_v23 = vpop.permute.xlu1 %2121  ;;  %4447 = vmatpush3.msra.mxu0 %v2124_v6 }
 0x6bd   :  { %4448 = vmatprep.subr.mxu0 %v2122_v23 }
 0x6be   :  { %4449 = vmatpush3.msra.mxu0 %v2122_v23  ;;  %v7232_v23 = vld [vmem:[#allocation6_spill] sm:$0xff] }
 0x6bf   :  { %4474 = vmatprep.subr.msk.mxu0 %vm547_vm1, %v6056_v5 }
 0x6ce   :  { %v6060_v14 = vpop.f32.mrf.mxu1 }
 0x6cf   :  { %7212 = vst [vmem:[#allocation30_spill] sm:$0xff] %v6060_v14 }
 0x6d0   :  { %v6062_v28 = vpop.f32.mrf.mxu1 }
 0x6d1   :  { %7213 = vst [vmem:[#allocation31_spill] sm:$0xff] %v6062_v28 }
 0x6d6   :  { %v6064_v1 = vpop.f32.mrf.mxu1 }
 0x6d7   :  { %7214 = vst [vmem:[#allocation32_spill] sm:$0xff] %v6064_v1 }
 0x6d8   :  { %v6066_v18 = vpop.f32.mrf.mxu1 }
 0x6d9   :  { %7215 = vst [vmem:[#allocation33_spill] sm:$0xff] %v6066_v18 }
 0x702   :  { %v6068_v37 = vpop.f32.mrf.mxu1 }
 0x703   :  { %7216 = vst [vmem:[#allocation34_spill] sm:$0xff] %v6068_v37 }
 0x704   :  { %v6070_v29 = vpop.f32.mrf.mxu1 }
 0x705   :  { %7217 = vst [vmem:[#allocation35_spill] sm:$0xff] %v6070_v29 }
 0x706   :  { %v6072_v53 = vpop.f32.mrf.mxu1 }
 0x707   :  { %7218 = vst [vmem:[#allocation36_spill] sm:$0xff] %v6072_v53 }
 0x708   :  { %v6074_v33 = vpop.f32.mrf.mxu1 }
 0x709   :  { %7219 = vst [vmem:[#allocation37_spill] sm:$0xff] %v6074_v33 }
 0x70d   :  { %v6076_v19 = vpop.f32.mrf.mxu1 }
 0x70e   :  { %7220 = vst [vmem:[#allocation38_spill] sm:$0xff] %v6076_v19  ;;  %v7239_v19 = vld [vmem:[#allocation13_spill] sm:$0xff] }
 0x70f   :  { %v6078_v3 = vpop.f32.mrf.mxu1 }
 0x710   :  { %7221 = vst [vmem:[#allocation39_spill] sm:$0xff] %v6078_v3 }
 0x711   :  { %v6080_v25 = vpop.f32.mrf.mxu1 }
 0x712   :  { %7222 = vst [vmem:[#allocation40_spill] sm:$0xff] %v6080_v25 }
 0x713   :  { %v6082_v57 = vpop.f32.mrf.mxu1 }
 0x714   :  { %7223 = vst [vmem:[#allocation41_spill] sm:$0xff] %v6082_v57 }
 0x746   :  { %v6084_v17 = vpop.f32.mrf.mxu1 }
 0x747   :  { %7224 = vst [vmem:[#allocation42_spill] sm:$0xff] %v6084_v17 }
 0x748   :  { %v6086_v24 = vpop.f32.mrf.mxu1 }
 0x749   :  { %7225 = vst [vmem:[#allocation43_spill] sm:$0xff] %v6086_v24 }
 0x74a   :  { %v6088_v7 = vpop.f32.mrf.mxu1 }
 0x74b   :  { %7226 = vst [vmem:[#allocation44_spill] sm:$0xff] %v6088_v7 }
 0x74c   :  { %v6090_v51 = vpop.f32.mrf.mxu1 }
 0x74d   :  { %7227 = vst [vmem:[#allocation45_spill] sm:$0xff] %v6090_v51 }
 0x74e   :  { %v4396_v9 = vpop.f32.mrf.mxu1 }
 0x74f   :  { %v6093_v8 = vadd.f32 %v4396_v9, %v5279_v50 }
 0x750   :  { %v1898_v34 = vpop.f32.mrf.mxu1 }
 0x751   :  { %v6096_v26 = vadd.f32 %v1898_v34, %v5282_v52  ;;  %1979 = vmax.xlane.f32.xlu1 %v6093_v8 }
 0x752   :  { %v4399_v11 = vpop.f32.mrf.mxu1 }
 0x753   :  { %1977 = vmax.xlane.f32.xlu0 %v6096_v26  ;;  %v6101_v16 = vadd.f32 %v4399_v11, %v5294_v58  ;;  %v7233_v11 = vld [vmem:[#allocation7_spill] sm:$0xff] }
 0x754   :  { %v1908_v62 = vpop.f32.mrf.mxu1 }
 0x755   :  { %v6105_v2 = vadd.f32 %v1908_v62, %v5303_v0 }
 0x756   :  { %v4402_v13 = vpop.f32.mrf.mxu1 }
 0x757   :  { %1983 = vmax.xlane.f32.xlu0 %v6101_v16  ;;  %v6109_v60 = vadd.f32 %v4402_v13, %v7228_v22  ;;  %v7234_v13 = vld [vmem:[#allocation8_spill] sm:$0xff] }
 0x758   :  { %v1918_v54 = vpop.f32.mrf.mxu1 }
 0x75a   :  { %v4405_v30 = vpop.f32.mrf.mxu1 }
 0x75b   :  { %1981 = vmax.xlane.f32.xlu0 %v6105_v2  ;;  %v6113_v15 = vadd.f32 %v4405_v30, %v7229_v10  ;;  %v1919_v30 = vadd.f32 %v1918_v54, %v7234_v13  ;;  %v7238_v54 = vld [vmem:[#allocation12_spill] sm:$0xff] }
 0x75c   :  { %v1928_v56 = vpop.f32.mrf.mxu1 }
 0x75e   :  { %v4408_v61 = vpop.f32.mrf.mxu1 }
 0x75f   :  { %1987 = vmax.xlane.f32.xlu0 %v6109_v60  ;;  %v6119_v4 = vadd.f32 %v4408_v61, %v7230_v12  ;;  %v7235_v61 = vld [vmem:[#allocation9_spill] sm:$0xff] }
 0x760   :  { %v1938_v55 = vpop.f32.mrf.mxu1 }
 0x762   :  { %2358 = vrot.lane.b32.xlu1 %v5120_v42, %s4972_s19  ;;  %v4411_v27 = vpop.f32.mrf.mxu1 }
 0x763   :  { %1991 = vmax.xlane.f32.xlu0 %v6113_v15  ;;  %v6123_v6 = vadd.f32 %v4411_v27, %v7231_v59  ;;  %v6136_v27 = vadd.f32 %v1928_v56, %v7235_v61 }
 0x764   :  { %v1948_v31 = vpop.f32.mrf.mxu1 }
 0x766   :  { %v4414_v63 = vpop.f32.mrf.mxu1 }
 0x767   :  { %1995 = vmax.xlane.f32.xlu0 %v6119_v4  ;;  %v6127_v9 = vadd.f32 %v4414_v63, %v7232_v23  ;;  %v7236_v63 = vld [vmem:[#allocation10_spill] sm:$0xff] }
 0x768   :  { %v1958_v21 = vpop.f32.mrf.mxu1  ;;  %v6142_v7 = vadd.f32 %v1938_v55, %v7236_v63  ;;  %v6157_v55 = vpop.permute.xlu0 %2372 }
 0x769   :  { %v6150_v25 = vadd.f32 %v1958_v21, %v7238_v54 }
 0x76a   :  { %v4417_v34 = vpop.f32.mrf.mxu1 }
 0x76b   :  { %1999 = vmax.xlane.f32.xlu0 %v6123_v6  ;;  %v6131_v62 = vadd.f32 %v4417_v34, %v7233_v11  ;;  %v7237_v34 = vld [vmem:[#allocation11_spill] sm:$0xff] }
 0x76c   :  { %v6146_v17 = vadd.f32 %v1948_v31, %v7237_v34  ;;  %v1968_v56 = vpop.f32.mrf.mxu1  ;;  %v6159_v37 = vpop.permute.xlu0 %2368 }
 0x76d   :  { %v6154_v53 = vadd.f32 %v1968_v56, %v7239_v19  ;;  %v6163_v31 = vpop.permute.xlu1 %2374 }
 0x76f   :  { %2003 = vmax.xlane.f32.xlu0 %v6127_v9 }
 0x770   :  { %v6161_v51 = vpop.permute.xlu0 %2364 }
 0x771   :  { %v6167_v21 = vpop.permute.xlu1 %2370 }
 0x773   :  { %2007 = vmax.xlane.f32.xlu0 %v6131_v62 }
 0x774   :  { %v6165_v1 = vpop.permute.xlu0 %2360 }
 0x775   :  { %v6171_v57 = vpop.permute.xlu1 %2366 }
 0x778   :  { %v6169_v24 = vpop.permute.xlu0 %2356 }
 0x779   :  { %v6175_v28 = vpop.permute.xlu1 %2362 }
 0x77c   :  { %v6173_v56 = vpop.permute.xlu0 %2354 }
 0x780   :  { %v6177_v3 = vpop.permute.xlu0 %2352 }
 0x786   :  { %1985 = vmax.xlane.f32.xlu1 %v1919_v30 }
 0x789   :  { %2350 = vrot.lane.b32.xlu0 %v5136_v46, %s4972_s19 }
 0x78a   :  { %1989 = vmax.xlane.f32.xlu1 %v6136_v27 }
 0x78e   :  { %1993 = vmax.xlane.f32.xlu1 %v6142_v7 }
 0x792   :  { %1997 = vmax.xlane.f32.xlu1 %v6146_v17 }
 0x796   :  { %2001 = vmax.xlane.f32.xlu1 %v6150_v25 }
 0x79a   :  { %2005 = vmax.xlane.f32.xlu1 %v6154_v53 }
 0x7da   :  { %v1980_v33 = vpop.xlane.xlu1 %1979 }
 0x7db   :  { %v2010_v29 = vsub.f32 %v6093_v8, %v1980_v33 }
 0x7dc   :  { %v1978_v18 = vpop.xlane.xlu0 %1977 }
 0x7dd   :  { %v2027_v14 = vmul.f32 1.442695, %v2010_v29  ;;  %v2009_v19 = vsub.f32 %v6096_v26, %v1978_v18 }
 0x7df   :  { %4787 = vpow2.f32 %v2027_v14  ;;  %v2025_v54 = vmul.f32 1.442695, %v2009_v19 }
 0x7e0   :  { %v1984_v34 = vpop.xlane.xlu0 %1983 }
 0x7e1   :  { %4789 = vpow2.f32 %v2025_v54  ;;  %v2012_v63 = vsub.f32 %v6101_v16, %v1984_v34  ;;  %v6199_v16 = vpop.permute.xlu1 %2358 }
 0x7e3   :  { %v2031_v61 = vmul.f32 1.442695, %v2012_v63 }
 0x7e4   :  { %v1982_v13 = vpop.xlane.xlu0 %1981 }
 0x7e5   :  { %4791 = vpow2.f32 %v2031_v61  ;;  %v2011_v11 = vsub.f32 %v6105_v2, %v1982_v13 }
 0x7e7   :  { %v2029_v23 = vmul.f32 1.442695, %v2011_v11 }
 0x7e8   :  { %v1988_v59 = vpop.xlane.xlu0 %1987 }
 0x7e9   :  { %4793 = vpow2.f32 %v2029_v23  ;;  %v2014_v33 = vsub.f32 %v6109_v60, %v1988_v59 }
 0x7eb   :  { %v2035_v8 = vmul.f32 1.442695, %v2014_v33 }
 0x7ec   :  { %v6184_v29 = vpop.eup %4787  ;;  %v1992_v2 = vpop.xlane.xlu0 %1991 }
 0x7ed   :  { %4795 = vpow2.f32 %v2035_v8  ;;  %2059 = vadd.xlane.f32.xlu0 %v6184_v29  ;;  %v2016_v60 = vsub.f32 %v6113_v15, %v1992_v2 }
 0x7ee   :  { %v6187_v14 = vpop.eup %4789 }
 0x7ef   :  { %2057 = vadd.xlane.f32.xlu1 %v6187_v14  ;;  %v2039_v61 = vmul.f32 1.442695, %v2016_v60 }
 0x7f0   :  { %v1996_v11 = vpop.xlane.xlu0 %1995 }
 0x7f1   :  { %v2018_v34 = vsub.f32 %v6119_v4, %v1996_v11 }
 0x7f2   :  { %v6190_v18 = vpop.eup %4791 }
 0x7f3   :  { %2063 = vadd.xlane.f32.xlu1 %v6190_v18  ;;  %v2043_v12 = vmul.f32 1.442695, %v2018_v34 }
 0x7f4   :  { %v2000_v22 = vpop.xlane.xlu0 %1999 }
 0x7f6   :  { %v6193_v19 = vpop.eup %4793 }
 0x7f7   :  { %2061 = vadd.xlane.f32.xlu0 %v6193_v19 }
 0x7fa   :  { %v6196_v26 = vpop.eup %4795 }
 0x7fb   :  { %2067 = vadd.xlane.f32.xlu1 %v6196_v26 }
 0x80f   :  { %v1986_v59 = vpop.xlane.xlu1 %1985 }
 0x810   :  { %v2013_v23 = vsub.f32 %v1919_v30, %v1986_v59  ;;  %v2020_v30 = vsub.f32 %v6123_v6, %v2000_v22  ;;  %v2004_v6 = vpop.xlane.xlu0 %2003 }
 0x812   :  { %v2033_v13 = vmul.f32 1.442695, %v2013_v23  ;;  %v2047_v4 = vmul.f32 1.442695, %v2020_v30 }
 0x813   :  { %v1990_v63 = vpop.xlane.xlu1 %1989 }
 0x814   :  { %4797 = vpow2.f32 %v2033_v13  ;;  %v2015_v54 = vsub.f32 %v6136_v27, %v1990_v63  ;;  %v2022_v13 = vsub.f32 %v6127_v9, %v2004_v6 }
 0x815   :  { %4799 = vpow2.f32 %v2039_v61  ;;  %v2008_v61 = vpop.xlane.xlu0 %2007 }
 0x816   :  { %v2037_v33 = vmul.f32 1.442695, %v2015_v54  ;;  %v2024_v63 = vsub.f32 %v6131_v62, %v2008_v61  ;;  %v2051_v34 = vmul.f32 1.442695, %v2022_v13 }
 0x817   :  { %v1994_v8 = vpop.xlane.xlu1 %1993 }
 0x818   :  { %4801 = vpow2.f32 %v2037_v33  ;;  %v2017_v10 = vsub.f32 %v6142_v7, %v1994_v8  ;;  %v2055_v8 = vmul.f32 1.442695, %v2024_v63 }
 0x819   :  { %4803 = vpow2.f32 %v2043_v12 }
 0x81a   :  { %v2041_v15 = vmul.f32 1.442695, %v2017_v10 }
 0x81b   :  { %v1998_v2 = vpop.xlane.xlu1 %1997 }
 0x81c   :  { %v2019_v60 = vsub.f32 %v6146_v17, %v1998_v2  ;;  %4805 = vpow2.f32 %v2041_v15 }
 0x81e   :  { %v2045_v59 = vmul.f32 1.442695, %v2019_v60 }
 0x81f   :  { %v2002_v11 = vpop.xlane.xlu1 %2001 }
 0x820   :  { %4807 = vpow2.f32 %v2045_v59  ;;  %v2021_v54 = vsub.f32 %v6150_v25, %v2002_v11 }
 0x821   :  { %v6207_v27 = vpop.eup %4797  ;;  %4809 = vpow2.f32 %v2047_v4 }
 0x822   :  { %2065 = vadd.xlane.f32.xlu1 %v6207_v27  ;;  %v6210_v23 = vpop.eup %4799  ;;  %4811 = vpow2.f32 %v2051_v34  ;;  %v2049_v15 = vmul.f32 1.442695, %v2021_v54 }
 0x823   :  { %v2006_v33 = vpop.xlane.xlu1 %2005  ;;  %4813 = vpow2.f32 %v2055_v8 }
 0x824   :  { %v2023_v2 = vsub.f32 %v6154_v53, %v2006_v33  ;;  %4815 = vpow2.f32 %v2049_v15  ;;  %v6248_v53 = vpop.permute.xlu0 %2350 }
 0x825   :  { %v6212_v7 = vpop.eup %4801 }
 0x826   :  { %2069 = vadd.xlane.f32.xlu0 %v6212_v7  ;;  %2071 = vadd.xlane.f32.xlu1 %v6210_v23  ;;  %v6216_v22 = vpop.eup %4803  ;;  %v2053_v30 = vmul.f32 1.442695, %v2023_v2 }
 0x828   :  { %4817 = vpow2.f32 %v2053_v30 }
 0x829   :  { %v6219_v17 = vpop.eup %4805 }
 0x82a   :  { %2075 = vadd.xlane.f32.xlu1 %v6216_v22 }
 0x82d   :  { %v6221_v10 = vpop.eup %4807 }
 0x82e   :  { %2077 = vadd.xlane.f32.xlu0 %v6221_v10  ;;  %2073 = vadd.xlane.f32.xlu1 %v6219_v17  ;;  %v6225_v12 = vpop.eup %4809 }
 0x82f   :  { %v6236_v60 = vpop.eup %4811 }
 0x830   :  { %v6239_v9 = vpop.eup %4813 }
 0x831   :  { %v6241_v62 = vpop.eup %4815 }
 0x832   :  { %2079 = vadd.xlane.f32.xlu1 %v6225_v12 }
 0x835   :  { %v6245_v25 = vpop.eup %4817 }
 0x843   :  { %2346 = vrot.lane.b32.xlu1 %v5088_v20, %s4972_s19 }
 0x844   :  { %2348 = vrot.lane.b32.xlu0 %v5150_v49, %s4972_s19 }
 0x863   :  { %2083 = vadd.xlane.f32.xlu0 %v6236_v60 }
 0x867   :  { %2081 = vadd.xlane.f32.xlu1 %v6241_v62  ;;  %2087 = vadd.xlane.f32.xlu0 %v6239_v9 }
 0x86b   :  { %2085 = vadd.xlane.f32.xlu1 %v6245_v25 }
 0x876   :  { %v2060_v59 = vpop.xlane.xlu0 %2059 }
 0x877   :  { %4819 = vrcp.f32 %v2060_v59 }
 0x878   :  { %v2058_v4 = vpop.xlane.xlu1 %2057 }
 0x879   :  { %4821 = vrcp.f32 %v2058_v4 }
 0x87c   :  { %2316 = vrot.lane.b32.xlu1 %v5150_v49, %s4973_s20  ;;  %v2064_v6 = vpop.xlane.xlu1 %2063 }
 0x87d   :  { %2314 = vrot.lane.b32.xlu0 %v5088_v20, %s4973_s20  ;;  %4823 = vrcp.f32 %v2064_v6 }
 0x880   :  { %2320 = vrot.lane.b32.xlu1 %v5144_v48, %s4973_s20  ;;  %v2062_v11 = vpop.xlane.xlu0 %2061 }
 0x881   :  { %4825 = vrcp.f32 %v2062_v11  ;;  %2318 = vrot.lane.b32.xlu0 %v5136_v46, %s4973_s20 }
 0x884   :  { %2324 = vrot.lane.b32.xlu1 %v5138_v47, %s4973_s20  ;;  %v4820_v13 = vpop.eup %4819 }
 0x885   :  { %2322 = vrot.lane.b32.xlu0 %v5128_v44, %s4973_s20  ;;  %v2106_v34 = vmul.f32 %v4820_v13, %v6184_v29 }
 0x886   :  { %v4822_v61 = vpop.eup %4821 }
 0x887   :  { %v2105_v63 = vmul.f32 %v4822_v61, %v6187_v14 }
 0x888   :  { %2328 = vrot.lane.b32.xlu1 %v5130_v45, %s4973_s20 }
 0x889   :  { %4450 = vmatprep.mubr.f32.mxu0 %v2105_v63  ;;  %2326 = vrot.lane.b32.xlu0 %v5120_v42, %s4973_s20 }
 0x88a   :  { %4451 = vmatmul.mubr.f32.vlgmr.msra.gmra.mxu0 %v2106_v34  ;;  %v4824_v14 = vpop.eup %4823 }
 0x88b   :  { %4475 = vmatpush3.xpose.msk.msra.mxu0 %vm547_vm1, %v6056_v5  ;;  %v2108_v5 = vmul.f32 %v4824_v14, %v6190_v18 }
 0x88c   :  { %4476 = vmatprep.subr.msk.mxu0 %vm547_vm1, %v6163_v31  ;;  %2332 = vrot.lane.b32.xlu1 %v5122_v43, %s4973_s20 }
 0x88d   :  { %2330 = vrot.lane.b32.xlu0 %v5112_v40, %s4973_s20 }
 0x88e   :  { %v4826_v54 = vpop.eup %4825 }
 0x88f   :  { %4477 = vmatpush3.xpose.msk.msra.mxu0 %vm547_vm1, %v6163_v31  ;;  %v2107_v29 = vmul.f32 %v4826_v54, %v6193_v19 }
 0x890   :  { %4478 = vmatprep.subr.msk.mxu0 %vm547_vm1, %v6157_v55  ;;  %2336 = vrot.lane.b32.xlu1 %v5114_v41, %s4973_s20 }
 0x891   :  { %2334 = vrot.lane.b32.xlu0 %v5104_v38, %s4973_s20  ;;  %4453 = vmatprep.mubr.f32.mxu0 %v2107_v29 }
 0x892   :  { %4454 = vmatmul.mubr.f32.gmra.mxu0 %v2108_v5 }
 0x893   :  { %4479 = vmatpush3.xpose.msk.msra.mxu0 %vm547_vm1, %v6157_v55 }
 0x894   :  { %4480 = vmatprep.subr.msk.mxu0 %vm547_vm1, %v6167_v21  ;;  %2340 = vrot.lane.b32.xlu1 %v5092_v32, %s4973_s20 }
 0x895   :  { %2338 = vrot.lane.b32.xlu0 %v5096_v35, %s4973_s20 }
 0x897   :  { %4481 = vmatpush3.xpose.msk.msra.mxu0 %vm547_vm1, %v6167_v21 }
 0x898   :  { %4482 = vmatprep.subr.msk.mxu0 %vm547_vm1, %v6159_v37  ;;  %2344 = vrot.lane.b32.xlu1 %v5098_v36, %s4973_s20 }
 0x899   :  { %2342 = vrot.lane.b32.xlu0 %v5106_v39, %s4973_s20 }
 0x89b   :  { %4483 = vmatpush3.xpose.msk.msra.mxu0 %vm547_vm1, %v6159_v37 }
 0x89c   :  { %4484 = vmatprep.subr.msk.mxu0 %vm547_vm1, %v6171_v57  ;;  %2761 = vrot.lane.b32.xlu1 %v5098_v36, %s4974_s21  ;;  %v2068_v36 = vpop.xlane.xlu1 %2067 }
 0x89d   :  { %2759 = vrot.lane.b32.xlu0 %v5106_v39, %s4974_s21  ;;  %4827 = vrcp.f32 %v2068_v36 }
 0x89f   :  { %4485 = vmatpush3.xpose.msk.msra.mxu0 %vm547_vm1, %v6171_v57 }
 0x8a0   :  { %4486 = vmatprep.subr.msk.mxu0 %vm547_vm1, %v6161_v51  ;;  %2757 = vrot.lane.b32.xlu1 %v5092_v32, %s4974_s21 }
 0x8a1   :  { %2755 = vrot.lane.b32.xlu0 %v5096_v35, %s4974_s21 }
 0x8a3   :  { %4487 = vmatpush3.xpose.msk.msra.mxu0 %vm547_vm1, %v6161_v51 }
 0x8a4   :  { %4488 = vmatprep.subr.msk.mxu0 %vm547_vm1, %v6175_v28  ;;  %2753 = vrot.lane.b32.xlu1 %v5114_v41, %s4974_s21 }
 0x8a5   :  { %2751 = vrot.lane.b32.xlu0 %v5104_v38, %s4974_s21 }
 0x8a7   :  { %4489 = vmatpush3.xpose.msk.msra.mxu0 %vm547_vm1, %v6175_v28 }
 0x8a8   :  { %4490 = vmatprep.subr.msk.mxu0 %vm547_vm1, %v6165_v1  ;;  %2749 = vrot.lane.b32.xlu1 %v5122_v43, %s4974_s21 }
 0x8a9   :  { %2747 = vrot.lane.b32.xlu0 %v5112_v40, %s4974_s21 }
 0x8ab   :  { %4491 = vmatpush3.xpose.msk.msra.mxu0 %vm547_vm1, %v6165_v1  ;;  %v2066_v32 = vpop.xlane.xlu1 %2065 }
 0x8ac   :  { %4829 = vrcp.f32 %v2066_v32  ;;  %4492 = vmatprep.subr.msk.mxu0 %vm547_vm1, %v6199_v16 }
 0x8ad   :  { %2743 = vrot.lane.b32.xlu0 %v5120_v42, %s4974_s21  ;;  %v4828_v42 = vpop.eup %4827 }
 0x8ae   :  { %v2110_v37 = vmul.f32 %v4828_v42, %v6196_v26 }
 0x8af   :  { %4493 = vmatpush3.xpose.msk.msra.mxu0 %vm547_vm1, %v6199_v16  ;;  %v2072_v35 = vpop.xlane.xlu1 %2071  ;;  %v2070_v38 = vpop.xlane.xlu0 %2069 }
 0x8b0   :  { %4831 = vrcp.f32 %v2072_v35  ;;  %4494 = vmatprep.subr.msk.mxu0 %vm547_vm1, %v6169_v24 }
 0x8b1   :  { %4833 = vrcp.f32 %v2070_v38 }
 0x8b3   :  { %4495 = vmatpush3.xpose.msk.msra.mxu0 %vm547_vm1, %v6169_v24  ;;  %v2076_v39 = vpop.xlane.xlu1 %2075 }
 0x8b4   :  { %4496 = vmatprep.subr.msk.mxu0 %vm547_vm1, %v6173_v56  ;;  %4835 = vrcp.f32 %v2076_v39 }
 0x8b7   :  { %4497 = vmatpush3.xpose.msk.msra.mxu0 %vm547_vm1, %v6173_v56  ;;  %v2074_v40 = vpop.xlane.xlu1 %2073  ;;  %v2078_v41 = vpop.xlane.xlu0 %2077 }
 0x8b8   :  { %4837 = vrcp.f32 %v2074_v40  ;;  %4498 = vmatprep.subr.msk.mxu0 %vm547_vm1, %v6177_v3 }
 0x8b9   :  { %v4830_v43 = vpop.eup %4829  ;;  %4839 = vrcp.f32 %v2078_v41 }
 0x8ba   :  { %v2109_v28 = vmul.f32 %v4830_v43, %v6207_v27 }
 0x8bb   :  { %4499 = vmatpush3.xpose.msk.msra.mxu0 %vm547_vm1, %v6177_v3  ;;  %v2080_v1 = vpop.xlane.xlu1 %2079  ;;  %v2349_v55 = vpop.permute.xlu0 %2348 }
 0x8bc   :  { %4841 = vrcp.f32 %v2080_v1  ;;  %4500 = vmatprep.subr.msk.mxu0 %vm547_vm1, %v6248_v53  ;;  %4456 = vmatprep.mubr.f32.mxu0 %v2109_v28 }
 0x8bd   :  { %v4832_v57 = vpop.eup %4831  ;;  %4457 = vmatmul.mubr.f32.gmra.mxu0 %v2110_v37 }
 0x8be   :  { %v4834_v24 = vpop.eup %4833  ;;  %v2112_v51 = vmul.f32 %v4832_v57, %v6210_v23 }
 0x8bf   :  { %4501 = vmatpush3.xpose.msk.msra.mxu0 %vm547_vm1, %v6248_v53  ;;  %v2111_v31 = vmul.f32 %v4834_v24, %v6212_v7  ;;  %v2347_v3 = vpop.permute.xlu1 %2346 }
 0x8c0   :  { %4502 = vmatprep.subr.msk.mxu0 %vm547_vm1, %v2349_v55 }
 0x8c1   :  { %4459 = vmatprep.mubr.f32.mxu0 %v2111_v31  ;;  %v4836_v21 = vpop.eup %4835 }
 0x8c2   :  { %4460 = vmatmul.mubr.f32.gmra.mxu0 %v2112_v51  ;;  %v2114_v26 = vmul.f32 %v4836_v21, %v6216_v22 }
 0x8c3   :  { %4503 = vmatpush3.xpose.msk.msra.mxu0 %vm547_vm1, %v2349_v55 }
 0x8c4   :  { %4504 = vmatprep.subr.msk.mxu0 %vm547_vm1, %v2347_v3 }
 0x8c5   :  { %v4838_v56 = vpop.eup %4837 }
 0x8c6   :  { %v4840_v18 = vpop.eup %4839  ;;  %v2113_v19 = vmul.f32 %v4838_v56, %v6219_v17 }
 0x8c7   :  { %4505 = vmatpush3.xpose.msk.msra.mxu0 %vm547_vm1, %v2347_v3  ;;  %v2115_v16 = vmul.f32 %v4840_v18, %v6221_v10 }
 0x8c8   :  { %4462 = vmatprep.mubr.f32.mxu0 %v2113_v19 }
 0x8c9   :  { %v4842_v27 = vpop.eup %4841  ;;  %4463 = vmatmul.mubr.f32.gmra.mxu0 %v2114_v26 }
 0x8ca   :  { %4465 = vmatprep.mubr.f32.mxu0 %v2115_v16  ;;  %v2116_v23 = vmul.f32 %v4842_v27, %v6225_v12 }
 0x8cd   :  { %4466 = vmatmul.mubr.f32.gmra.mxu0 %v2116_v23 }
 0x8ec   :  { %v2084_v7 = vpop.xlane.xlu0 %2083 }
 0x8ed   :  { %4843 = vrcp.f32 %v2084_v7 }
 0x8f0   :  { %v2082_v33 = vpop.xlane.xlu1 %2081  ;;  %v2088_v8 = vpop.xlane.xlu0 %2087 }
 0x8f1   :  { %4845 = vrcp.f32 %v2082_v33 }
 0x8f2   :  { %4847 = vrcp.f32 %v2088_v8 }
 0x8f4   :  { %v2086_v17 = vpop.xlane.xlu1 %2085  ;;  %v2315_v15 = vpop.permute.xlu0 %2314 }
 0x8f5   :  { %4849 = vrcp.f32 %v2086_v17 }
 0x8f8   :  { %v2317_v2 = vpop.permute.xlu1 %2316  ;;  %v2319_v22 = vpop.permute.xlu0 %2318 }
 0x8fa   :  { %v4844_v10 = vpop.eup %4843 }
 0x8fb   :  { %v2118_v11 = vmul.f32 %v4844_v10, %v6236_v60 }
 0x8fc   :  { %v2321_v30 = vpop.permute.xlu1 %2320  ;;  %v2323_v53 = vpop.permute.xlu0 %2322 }
 0x8fe   :  { %v4846_v59 = vpop.eup %4845 }
 0x8ff   :  { %v2117_v4 = vmul.f32 %v4846_v59, %v6241_v62  ;;  %v4848_v13 = vpop.eup %4847  ;;  %v7240_v59 = vld [vmem:[#allocation2_spill] sm:$0xff] }
 0x900   :  { %v2325_v6 = vpop.permute.xlu1 %2324  ;;  %v2327_v12 = vpop.permute.xlu0 %2326  ;;  %v2120_v54 = vmul.f32 %v4848_v13, %v6239_v9 }
 0x901   :  { %4468 = vmatprep.mubr.f32.mxu0 %v2117_v4 }
 0x902   :  { %v4850_v61 = vpop.eup %4849  ;;  %4469 = vmatmul.mubr.f32.gmra.mxu0 %v2118_v11 }
 0x903   :  { %v2119_v63 = vmul.f32 %v4850_v61, %v6245_v25 }
 0x904   :  { %v2329_v34 = vpop.permute.xlu1 %2328  ;;  %v2331_v14 = vpop.permute.xlu0 %2330 }
 0x905   :  { %4471 = vmatprep.mubr.f32.mxu0 %v2119_v63 }
 0x906   :  { %4472 = vmatmul.mubr.f32.gmra.mxu0 %v2120_v54 }
 0x907   :  { %4506 = vmatprep.mubr.msk.f32.mxu0 %vm547_vm1, %v2315_v15 }
 0x908   :  { %v2333_v29 = vpop.permute.xlu1 %2332  ;;  %v2335_v62 = vpop.permute.xlu0 %2334 }
 0x90a   :  { %4507 = vmatmul.mubr.msk.f32.vlgmr.msra.gmra.mxu0 %vm547_vm1, %v2317_v2 }
 0x90b   :  { %4509 = vmatprep.mubr.msk.f32.mxu0 %vm547_vm1, %v2319_v22 }
 0x90c   :  { %v2337_v60 = vpop.permute.xlu1 %2336  ;;  %v2339_v5 = vpop.permute.xlu0 %2338 }
 0x90e   :  { %4510 = vmatmul.mubr.msk.f32.gmra.mxu0 %vm547_vm1, %v2321_v30 }
 0x90f   :  { %4512 = vmatprep.mubr.msk.f32.mxu0 %vm547_vm1, %v2323_v53 }
 0x910   :  { %v2341_v25 = vpop.permute.xlu1 %2340  ;;  %v2343_v36 = vpop.permute.xlu0 %2342 }
 0x912   :  { %4513 = vmatmul.mubr.msk.f32.gmra.mxu0 %vm547_vm1, %v2325_v6 }
 0x913   :  { %4515 = vmatprep.mubr.msk.f32.mxu0 %vm547_vm1, %v2327_v12 }
 0x914   :  { %v2345_v9 = vpop.permute.xlu1 %2344  ;;  %v2760_v32 = vpop.permute.xlu0 %2759 }
 0x916   :  { %4516 = vmatmul.mubr.msk.f32.gmra.mxu0 %vm547_vm1, %v2329_v34  ;;  %v7243_v34 = vld [vmem:[#allocation5_spill] sm:$0xff] }
 0x917   :  { %4518 = vmatprep.mubr.msk.f32.mxu0 %vm547_vm1, %v2331_v14 }
 0x918   :  { %v2762_v35 = vpop.permute.xlu1 %2761  ;;  %v2756_v39 = vpop.permute.xlu0 %2755 }
 0x919   :  { %4530 = vmatprep.subr.mxu0 %v2762_v35  ;;  %4612 = vmatprep.subr.mxu1 %v2762_v35 }
 0x91a   :  { %4519 = vmatmul.mubr.msk.f32.gmra.mxu0 %vm547_vm1, %v2333_v29  ;;  %4628 = vmatpush3.msra.mxu1 %v2762_v35  ;;  %v7244_v29 = vld [vmem:[#allocation6_spill] sm:$0xff] }
 0x91b   :  { %4531 = vmatpush3.msra.mxu0 %v2762_v35  ;;  %4521 = vmatprep.mubr.msk.f32.mxu0 %vm547_vm1, %v2335_v62  ;;  %v7248_v35 = vld [vmem:[#allocation10_spill] sm:$0xff] }
 0x91c   :  { %4532 = vmatprep.subr.mxu0 %v2760_v32  ;;  %4613 = vmatprep.subr.mxu1 %v2760_v32  ;;  %v2758_v38 = vpop.permute.xlu1 %2757  ;;  %v2752_v41 = vpop.permute.xlu0 %2751 }
 0x91d   :  { %4533 = vmatpush3.msra.mxu0 %v2760_v32  ;;  %4629 = vmatpush3.msra.mxu1 %v2760_v32 }
 0x91e   :  { %4534 = vmatprep.subr.mxu0 %v2758_v38  ;;  %4614 = vmatprep.subr.mxu1 %v2758_v38 }
 0x91f   :  { %4522 = vmatmul.mubr.msk.f32.gmra.mxu0 %vm547_vm1, %v2337_v60  ;;  %4630 = vmatpush3.msra.mxu1 %v2758_v38  ;;  %v7245_v60 = vld [vmem:[#allocation7_spill] sm:$0xff] }
 0x920   :  { %4535 = vmatpush3.msra.mxu0 %v2758_v38  ;;  %4524 = vmatprep.mubr.msk.f32.mxu0 %vm547_vm1, %v2339_v5  ;;  %v2754_v40 = vpop.permute.xlu1 %2753  ;;  %v2748_v43 = vpop.permute.xlu0 %2747 }
 0x921   :  { %4536 = vmatprep.subr.mxu0 %v2756_v39  ;;  %4615 = vmatprep.subr.mxu1 %v2756_v39 }
 0x922   :  { %4537 = vmatpush3.msra.mxu0 %v2756_v39  ;;  %4631 = vmatpush3.msra.mxu1 %v2756_v39  ;;  %v7249_v39 = vld [vmem:[#allocation11_spill] sm:$0xff] }
 0x923   :  { %4538 = vmatprep.subr.mxu0 %v2754_v40  ;;  %4616 = vmatprep.subr.mxu1 %v2754_v40 }
 0x924   :  { %4525 = vmatmul.mubr.msk.f32.gmra.mxu0 %vm547_vm1, %v2341_v25  ;;  %4632 = vmatpush3.msra.mxu1 %v2754_v40  ;;  %v2750_v42 = vpop.permute.xlu1 %2749  ;;  %v7246_v25 = vld [vmem:[#allocation8_spill] sm:$0xff] }
 0x925   :  { %4539 = vmatpush3.msra.mxu0 %v2754_v40  ;;  %4527 = vmatprep.mubr.msk.f32.mxu0 %vm547_vm1, %v2343_v36 }
 0x926   :  { %4540 = vmatprep.subr.mxu0 %v2752_v41  ;;  %4617 = vmatprep.subr.mxu1 %v2752_v41 }
 0x927   :  { %4541 = vmatpush3.msra.mxu0 %v2752_v41  ;;  %4633 = vmatpush3.msra.mxu1 %v2752_v41  ;;  %v7250_v41 = vld [vmem:[#allocation12_spill] sm:$0xff] }
 0x928   :  { %4542 = vmatprep.subr.mxu0 %v2750_v42  ;;  %4618 = vmatprep.subr.mxu1 %v2750_v42 }
 0x929   :  { %4528 = vmatmul.mubr.msk.f32.gmra.mxu0 %vm547_vm1, %v2345_v9  ;;  %4634 = vmatpush3.msra.mxu1 %v2750_v42  ;;  %v7247_v9 = vld [vmem:[#allocation9_spill] sm:$0xff] }
 0x92a   :  { %4543 = vmatpush3.msra.mxu0 %v2750_v42  ;;  %4619 = vmatprep.subr.mxu1 %v2748_v43 }
 0x92b   :  { %4544 = vmatprep.subr.mxu0 %v2748_v43  ;;  %4635 = vmatpush3.msra.mxu1 %v2748_v43 }
 0x92c   :  { %4545 = vmatpush3.msra.mxu0 %v2748_v43  ;;  %v7251_v43 = vld [vmem:[#allocation13_spill] sm:$0xff] }
 0x94a   :  { %v6390_v28 = vpop.f32.mrf.mxu0 }
 0x94c   :  { %v6392_v1 = vpop.f32.mrf.mxu0 }
 0x952   :  { %v6394_v37 = vpop.f32.mrf.mxu0 }
 0x954   :  { %v6396_v57 = vpop.f32.mrf.mxu0 }
 0x97d   :  { %v6398_v24 = vpop.f32.mrf.mxu0 }
 0x97f   :  { %v6400_v51 = vpop.f32.mrf.mxu0 }
 0x982   :  { %v6402_v55 = vpop.f32.mrf.mxu0 }
 0x984   :  { %v6404_v31 = vpop.f32.mrf.mxu0 }
 0x989   :  { %v6406_v3 = vpop.f32.mrf.mxu0 }
 0x98b   :  { %v6408_v21 = vpop.f32.mrf.mxu0 }
 0x98d   :  { %v6410_v56 = vpop.f32.mrf.mxu0 }
 0x98f   :  { %v6412_v18 = vpop.f32.mrf.mxu0 }
 0x9c2   :  { %v6414_v19 = vpop.f32.mrf.mxu0 }
 0x9c4   :  { %v6416_v26 = vpop.f32.mrf.mxu0 }
 0x9c6   :  { %v6418_v16 = vpop.f32.mrf.mxu0 }
 0x9c8   :  { %v6420_v27 = vpop.f32.mrf.mxu0 }
 0x9ca   :  { %v4508_v23 = vpop.f32.mrf.mxu0 }
 0x9cb   :  { %v2514_v7 = vadd.f32 %v4508_v23, %v5279_v50 }
 0x9cc   :  { %v2508_v33 = vpop.f32.mrf.mxu0 }
 0x9cd   :  { %v2509_v8 = vadd.f32 %v2508_v33, %v5282_v52  ;;  %2589 = vmax.xlane.f32.xlu1 %v2514_v7 }
 0x9ce   :  { %v4511_v17 = vpop.f32.mrf.mxu0 }
 0x9cf   :  { %2587 = vmax.xlane.f32.xlu0 %v2509_v8  ;;  %v6425_v2 = vadd.f32 %v4511_v17, %v5294_v58  ;;  %v7241_v58 = vld [vmem:[#allocation3_spill] sm:$0xff] }
 0x9d0   :  { %v2518_v15 = vpop.f32.mrf.mxu0 }
 0x9d1   :  { %v6429_v53 = vadd.f32 %v2518_v15, %v5303_v0  ;;  %v7242_v0 = vld [vmem:[#allocation4_spill] sm:$0xff] }
 0x9d2   :  { %v4514_v22 = vpop.f32.mrf.mxu0 }
 0x9d3   :  { %2593 = vmax.xlane.f32.xlu0 %v6425_v2  ;;  %v6433_v52 = vadd.f32 %v4514_v22, %v7240_v59 }
 0x9d4   :  { %v2528_v30 = vpop.f32.mrf.mxu0 }
 0x9d5   :  { %v6459_v36 = vadd.f32 %v2528_v30, %v7246_v25 }
 0x9d6   :  { %v4517_v10 = vpop.f32.mrf.mxu0 }
 0x9d7   :  { %2591 = vmax.xlane.f32.xlu0 %v6429_v53  ;;  %v6437_v12 = vadd.f32 %v4517_v10, %v7241_v58 }
 0x9d8   :  { %v2538_v50 = vpop.f32.mrf.mxu0 }
 0x9d9   :  { %v6463_v32 = vadd.f32 %v2538_v50, %v7247_v9 }
 0x9da   :  { %v4520_v4 = vpop.f32.mrf.mxu0 }
 0x9db   :  { %2597 = vmax.xlane.f32.xlu0 %v6433_v52  ;;  %v6443_v13 = vadd.f32 %v4520_v4, %v7242_v0 }
 0x9dc   :  { %v2548_v6 = vpop.f32.mrf.mxu0 }
 0x9dd   :  { %v6469_v38 = vadd.f32 %v2548_v6, %v7248_v35 }
 0x9de   :  { %2745 = vrot.lane.b32.xlu1 %v5130_v45, %s4974_s21 }
 0x9df   :  { %v4523_v11 = vpop.f32.mrf.mxu0  ;;  %2601 = vmax.xlane.f32.xlu0 %v6437_v12 }
 0x9e0   :  { %v6447_v14 = vadd.f32 %v4523_v11, %v7243_v34 }
 0x9e1   :  { %v2558_v61 = vpop.f32.mrf.mxu0 }
 0x9e2   :  { %v6475_v40 = vadd.f32 %v2558_v61, %v7249_v39 }
 0x9e3   :  { %2605 = vmax.xlane.f32.xlu0 %v6443_v13 }
 0x9e4   :  { %v4526_v63 = vpop.f32.mrf.mxu0 }
 0x9e5   :  { %v6451_v62 = vadd.f32 %v4526_v63, %v7244_v29 }
 0x9e6   :  { %v2568_v54 = vpop.f32.mrf.mxu0 }
 0x9e7   :  { %2609 = vmax.xlane.f32.xlu0 %v6447_v14 }
 0x9e9   :  { %v4529_v45 = vpop.f32.mrf.mxu0 }
 0x9ea   :  { %v6455_v5 = vadd.f32 %v4529_v45, %v7245_v60 }
 0x9eb   :  { %2613 = vmax.xlane.f32.xlu0 %v6451_v62  ;;  %v2578_v42 = vpop.f32.mrf.mxu0 }
 0x9ec   :  { %v6485_v23 = vadd.f32 %v2578_v42, %v7251_v43 }
 0x9ef   :  { %2617 = vmax.xlane.f32.xlu0 %v6455_v5 }
 0xa02   :  { %2595 = vmax.xlane.f32.xlu1 %v6459_v36 }
 0xa05   :  { %2739 = vrot.lane.b32.xlu0 %v5128_v44, %s4974_s21  ;;  %v6481_v44 = vadd.f32 %v2568_v54, %v7250_v41 }
 0xa06   :  { %2599 = vmax.xlane.f32.xlu1 %v6463_v32 }
 0xa09   :  { %2735 = vrot.lane.b32.xlu0 %v5136_v46, %s4974_s21 }
 0xa0a   :  { %2603 = vmax.xlane.f32.xlu1 %v6469_v38 }
 0xa0d   :  { %2731 = vrot.lane.b32.xlu0 %v5088_v20, %s4974_s21  ;;  %v2744_v20 = vpop.permute.xlu0 %2743 }
 0xa0e   :  { %2607 = vmax.xlane.f32.xlu1 %v6475_v40 }
 0xa12   :  { %2611 = vmax.xlane.f32.xlu1 %v6481_v44 }
 0xa16   :  { %2615 = vmax.xlane.f32.xlu1 %v6485_v23 }
 0xa27   :  { %2741 = vrot.lane.b32.xlu1 %v5138_v47, %s4974_s21 }
 0xa2b   :  { %2737 = vrot.lane.b32.xlu1 %v5144_v48, %s4974_s21 }
 0xa2f   :  { %2733 = vrot.lane.b32.xlu1 %v5150_v49, %s4974_s21 }
 0xa56   :  { %v2590_v46 = vpop.xlane.xlu1 %2589 }
 0xa57   :  { %v2620_v33 = vsub.f32 %v2514_v7, %v2590_v46 }
 0xa58   :  { %v2588_v17 = vpop.xlane.xlu0 %2587 }
 0xa59   :  { %v2637_v15 = vmul.f32 1.442695, %v2620_v33  ;;  %v2619_v22 = vsub.f32 %v2509_v8, %v2588_v17 }
 0xa5a   :  { %v2746_v30 = vpop.permute.xlu1 %2745 }
 0xa5b   :  { %4851 = vpow2.f32 %v2637_v15  ;;  %v2635_v10 = vmul.f32 1.442695, %v2619_v22  ;;  %4546 = vmatprep.subr.mxu0 %v2746_v30  ;;  %4620 = vmatprep.subr.mxu1 %v2746_v30 }
 0xa5c   :  { %4547 = vmatpush3.msra.mxu0 %v2746_v30  ;;  %4636 = vmatpush3.msra.mxu1 %v2746_v30  ;;  %v2594_v47 = vpop.xlane.xlu0 %2593 }
 0xa5d   :  { %4853 = vpow2.f32 %v2635_v10  ;;  %v2622_v48 = vsub.f32 %v6425_v2, %v2594_v47  ;;  %4548 = vmatprep.subr.mxu0 %v2744_v20  ;;  %4621 = vmatprep.subr.mxu1 %v2744_v20 }
 0xa5e   :  { %4549 = vmatpush3.msra.mxu0 %v2744_v20  ;;  %4637 = vmatpush3.msra.mxu1 %v2744_v20 }
 0xa5f   :  { %v2641_v49 = vmul.f32 1.442695, %v2622_v48 }
 0xa60   :  { %v2592_v7 = vpop.xlane.xlu0 %2591 }
 0xa61   :  { %4855 = vpow2.f32 %v2641_v49  ;;  %v2621_v8 = vsub.f32 %v6429_v53, %v2592_v7 }
 0xa63   :  { %v2639_v50 = vmul.f32 1.442695, %v2621_v8 }
 0xa64   :  { %v2598_v59 = vpop.xlane.xlu0 %2597 }
 0xa65   :  { %4857 = vpow2.f32 %v2639_v50  ;;  %v2624_v4 = vsub.f32 %v6433_v52, %v2598_v59 }
 0xa67   :  { %v2645_v6 = vmul.f32 1.442695, %v2624_v4 }
 0xa68   :  { %v6497_v58 = vpop.eup %4851  ;;  %v2602_v11 = vpop.xlane.xlu0 %2601 }
 0xa69   :  { %4859 = vpow2.f32 %v2645_v6  ;;  %v2626_v2 = vsub.f32 %v6437_v12, %v2602_v11  ;;  %2669 = vadd.xlane.f32.xlu0 %v6497_v58  ;;  %v7252_v6 = vld [vmem:[#allocation30_spill] sm:$0xff] }
 0xa6a   :  { %v6501_v0 = vpop.eup %4853 }
 0xa6b   :  { %v2649_v61 = vmul.f32 1.442695, %v2626_v2  ;;  %2667 = vadd.xlane.f32.xlu1 %v6501_v0 }
 0xa6c   :  { %v2606_v53 = vpop.xlane.xlu0 %2605 }
 0xa6d   :  { %4861 = vpow2.f32 %v2649_v61  ;;  %v2628_v63 = vsub.f32 %v6443_v13, %v2606_v53 }
 0xa6e   :  { %v6505_v34 = vpop.eup %4855 }
 0xa6f   :  { %v2653_v52 = vmul.f32 1.442695, %v2628_v63  ;;  %2673 = vadd.xlane.f32.xlu0 %v6505_v34 }
 0xa70   :  { %v2610_v54 = vpop.xlane.xlu0 %2609 }
 0xa71   :  { %4863 = vpow2.f32 %v2653_v52  ;;  %v2630_v12 = vsub.f32 %v6447_v14, %v2610_v54 }
 0xa72   :  { %v6509_v29 = vpop.eup %4857 }
 0xa73   :  { %v2657_v45 = vmul.f32 1.442695, %v2630_v12  ;;  %2671 = vadd.xlane.f32.xlu1 %v6509_v29  ;;  %v7254_v12 = vld [vmem:[#allocation35_spill] sm:$0xff] }
 0xa74   :  { %v2614_v60 = vpop.xlane.xlu0 %2613 }
 0xa75   :  { %4865 = vpow2.f32 %v2657_v45  ;;  %v2632_v25 = vsub.f32 %v6451_v62, %v2614_v60  ;;  %v7255_v60 = vld [vmem:[#allocation37_spill] sm:$0xff] }
 0xa76   :  { %v6513_v9 = vpop.eup %4859 }
 0xa77   :  { %v2661_v13 = vmul.f32 1.442695, %v2632_v25  ;;  %2677 = vadd.xlane.f32.xlu0 %v6513_v9  ;;  %v7256_v25 = vld [vmem:[#allocation39_spill] sm:$0xff] }
 0xa78   :  { %v2618_v35 = vpop.xlane.xlu0 %2617 }
 0xa79   :  { %4867 = vpow2.f32 %v2661_v13  ;;  %v2634_v39 = vsub.f32 %v6455_v5, %v2618_v35  ;;  %v7257_v13 = vld [vmem:[#allocation31_spill] sm:$0xff]  ;;  %v7258_v35 = vld [vmem:[#allocation41_spill] sm:$0xff] }
 0xa7a   :  { %v6517_v41 = vpop.eup %4861 }
 0xa7b   :  { %v2665_v14 = vmul.f32 1.442695, %v2634_v39  ;;  %2681 = vadd.xlane.f32.xlu0 %v6517_v41 }
 0xa7d   :  { %4869 = vpow2.f32 %v2665_v14 }
 0xa7e   :  { %v6520_v42 = vpop.eup %4863 }
 0xa7f   :  { %2685 = vadd.xlane.f32.xlu0 %v6520_v42 }
 0xa82   :  { %v6523_v62 = vpop.eup %4865 }
 0xa83   :  { %2689 = vadd.xlane.f32.xlu0 %v6523_v62 }
 0xa86   :  { %v6526_v43 = vpop.eup %4867 }
 0xa87   :  { %2693 = vadd.xlane.f32.xlu0 %v6526_v43 }
 0xa8a   :  { %v6529_v20 = vpop.eup %4869 }
 0xa8b   :  { %v2596_v5 = vpop.xlane.xlu1 %2595  ;;  %2697 = vadd.xlane.f32.xlu0 %v6529_v20 }
 0xa8c   :  { %v2623_v46 = vsub.f32 %v6459_v36, %v2596_v5  ;;  %v7267_v5 = vld [vmem:[#allocation44_spill] sm:$0xff] }
 0xa8e   :  { %v2643_v33 = vmul.f32 1.442695, %v2623_v46 }
 0xa8f   :  { %v2600_v17 = vpop.xlane.xlu1 %2599 }
 0xa90   :  { %4871 = vpow2.f32 %v2643_v33  ;;  %v2625_v15 = vsub.f32 %v6463_v32, %v2600_v17 }
 0xa92   :  { %v2647_v22 = vmul.f32 1.442695, %v2625_v15 }
 0xa93   :  { %v2604_v30 = vpop.xlane.xlu1 %2603 }
 0xa94   :  { %4873 = vpow2.f32 %v2647_v22  ;;  %v2627_v10 = vsub.f32 %v6469_v38, %v2604_v30 }
 0xa96   :  { %v2651_v47 = vmul.f32 1.442695, %v2627_v10 }
 0xa97   :  { %v2608_v48 = vpop.xlane.xlu1 %2607 }
 0xa98   :  { %4875 = vpow2.f32 %v2651_v47  ;;  %v2629_v49 = vsub.f32 %v6475_v40, %v2608_v48 }
 0xa9a   :  { %v2655_v7 = vmul.f32 1.442695, %v2629_v49 }
 0xa9b   :  { %v2612_v8 = vpop.xlane.xlu1 %2611 }
 0xa9c   :  { %4877 = vpow2.f32 %v2655_v7  ;;  %v2631_v36 = vsub.f32 %v6481_v44, %v2612_v8  ;;  %v2740_v44 = vpop.permute.xlu0 %2739 }
 0xa9d   :  { %v6537_v50 = vpop.eup %4871 }
 0xa9e   :  { %v2659_v59 = vmul.f32 1.442695, %v2631_v36  ;;  %2675 = vadd.xlane.f32.xlu1 %v6537_v50  ;;  %v7268_v36 = vld [vmem:[#allocation19_spill] sm:$0xff] }
 0xa9f   :  { %v2616_v32 = vpop.xlane.xlu1 %2615 }
 0xaa0   :  { %4879 = vpow2.f32 %v2659_v59  ;;  %v2633_v4 = vsub.f32 %v6485_v23, %v2616_v32  ;;  %v7253_v23 = vld [vmem:[#allocation33_spill] sm:$0xff]  ;;  %v2736_v63 = vpop.permute.xlu0 %2735 }
 0xaa1   :  { %v6541_v38 = vpop.eup %4873  ;;  %2942 = vrot.lane.b32.xlu0 %v7252_v6, %s4975_s22 }
 0xaa2   :  { %v2663_v40 = vmul.f32 1.442695, %v2633_v4  ;;  %2679 = vadd.xlane.f32.xlu1 %v6541_v38 }
 0xaa3   :  { %v2742_v11 = vpop.permute.xlu1 %2741 }
 0xaa4   :  { %4881 = vpow2.f32 %v2663_v40  ;;  %4550 = vmatprep.subr.mxu0 %v2742_v11  ;;  %4622 = vmatprep.subr.mxu1 %v2742_v11  ;;  %v2732_v45 = vpop.permute.xlu0 %2731  ;;  %v7269_v40 = vld [vmem:[#allocation21_spill] sm:$0xff] }
 0xaa5   :  { %v6546_v2 = vpop.eup %4875  ;;  %4551 = vmatpush3.msra.mxu0 %v2742_v11  ;;  %4638 = vmatpush3.msra.mxu1 %v2742_v11 }
 0xaa6   :  { %2944 = vrot.lane.b32.xlu0 %v7253_v23, %s4975_s22  ;;  %2683 = vadd.xlane.f32.xlu1 %v6546_v2 }
 0xaa7   :  { %4552 = vmatprep.subr.mxu0 %v2740_v44  ;;  %4623 = vmatprep.subr.mxu1 %v2740_v44  ;;  %v2738_v61 = vpop.permute.xlu1 %2737 }
 0xaa8   :  { %4553 = vmatpush3.msra.mxu0 %v2740_v44  ;;  %4639 = vmatpush3.msra.mxu1 %v2740_v44 }
 0xaa9   :  { %v6551_v53 = vpop.eup %4877  ;;  %4554 = vmatprep.subr.mxu0 %v2738_v61  ;;  %4624 = vmatprep.subr.mxu1 %v2738_v61 }
 0xaaa   :  { %3008 = vrot.lane.b32.xlu0 %v6396_v57, %s4976_s23  ;;  %4555 = vmatpush3.msra.mxu0 %v2738_v61 }
 0xaab   :  { %4640 = vmatpush3.msra.mxu1 %v2738_v61  ;;  %2687 = vadd.xlane.f32.xlu1 %v6551_v53  ;;  %v2734_v52 = vpop.permute.xlu1 %2733 }
 0xaac   :  { %4556 = vmatprep.subr.mxu0 %v2736_v63  ;;  %4625 = vmatprep.subr.mxu1 %v2736_v63 }
 0xaad   :  { %v6556_v54 = vpop.eup %4879  ;;  %4557 = vmatpush3.msra.mxu0 %v2736_v63  ;;  %4641 = vmatpush3.msra.mxu1 %v2736_v63 }
 0xaae   :  { %4558 = vmatprep.subr.mxu0 %v2734_v52  ;;  %4626 = vmatprep.subr.mxu1 %v2734_v52 }
 0xaaf   :  { %2948 = vrot.lane.b32.xlu0 %v7254_v12, %s4975_s22  ;;  %4559 = vmatpush3.msra.mxu0 %v2734_v52 }
 0xab0   :  { %4642 = vmatpush3.msra.mxu1 %v2734_v52  ;;  %2691 = vadd.xlane.f32.xlu1 %v6556_v54 }
 0xab1   :  { %v6561_v57 = vpop.eup %4881  ;;  %4560 = vmatprep.subr.mxu0 %v2732_v45  ;;  %4627 = vmatprep.subr.mxu1 %v2732_v45 }
 0xab2   :  { %4561 = vmatpush3.msra.mxu0 %v2732_v45  ;;  %4643 = vmatpush3.msra.mxu1 %v2732_v45 }
 0xab3   :  { %3012 = vrot.lane.b32.xlu0 %v6400_v51, %s4976_s23  ;;  %v7259_v51 = vld [vmem:[#allocation43_spill] sm:$0xff] }
 0xab4   :  { %2695 = vadd.xlane.f32.xlu1 %v6561_v57 }
 0xab7   :  { %2952 = vrot.lane.b32.xlu0 %v7255_v60, %s4975_s22 }
 0xabb   :  { %3016 = vrot.lane.b32.xlu0 %v6404_v31, %s4976_s23  ;;  %v7260_v31 = vld [vmem:[#allocation32_spill] sm:$0xff] }
 0xabf   :  { %2956 = vrot.lane.b32.xlu0 %v7256_v25, %s4975_s22 }
 0xac3   :  { %3020 = vrot.lane.b32.xlu0 %v6408_v21, %s4976_s23  ;;  %v7262_v21 = vld [vmem:[#allocation34_spill] sm:$0xff] }
 0xac5   :  { %2940 = vrot.lane.b32.xlu1 %v7257_v13, %s4975_s22  ;;  %v7270_v13 = vld [vmem:[#allocation23_spill] sm:$0xff] }
 0xac7   :  { %2960 = vrot.lane.b32.xlu0 %v7258_v35, %s4975_s22 }
 0xac9   :  { %3004 = vrot.lane.b32.xlu1 %v6392_v1, %s4976_s23  ;;  %v7261_v1 = vld [vmem:[#allocation45_spill] sm:$0xff] }
 0xacb   :  { %3024 = vrot.lane.b32.xlu0 %v6412_v18, %s4976_s23  ;;  %v7265_v18 = vld [vmem:[#allocation40_spill] sm:$0xff] }
 0xacd   :  { %3006 = vrot.lane.b32.xlu1 %v6390_v28, %s4976_s23  ;;  %v7263_v28 = vld [vmem:[#allocation36_spill] sm:$0xff] }
 0xacf   :  { %2964 = vrot.lane.b32.xlu0 %v7259_v51, %s4975_s22 }
 0xad1   :  { %2946 = vrot.lane.b32.xlu1 %v7260_v31, %s4975_s22 }
 0xad3   :  { %3028 = vrot.lane.b32.xlu0 %v6416_v26, %s4976_s23 }
 0xad5   :  { %3010 = vrot.lane.b32.xlu1 %v6394_v37, %s4976_s23  ;;  %v7264_v37 = vld [vmem:[#allocation38_spill] sm:$0xff] }
 0xad7   :  { %2968 = vrot.lane.b32.xlu0 %v7261_v1, %s4975_s22 }
 0xad9   :  { %2950 = vrot.lane.b32.xlu1 %v7262_v21, %s4975_s22 }
 0xadb   :  { %3032 = vrot.lane.b32.xlu0 %v6420_v27, %s4976_s23 }
 0xadd   :  { %3014 = vrot.lane.b32.xlu1 %v6398_v24, %s4976_s23  ;;  %v7266_v24 = vld [vmem:[#allocation42_spill] sm:$0xff] }
 0xae1   :  { %2954 = vrot.lane.b32.xlu1 %v7263_v28, %s4975_s22 }
 0xae5   :  { %3018 = vrot.lane.b32.xlu1 %v6402_v55, %s4976_s23 }
 0xae9   :  { %2958 = vrot.lane.b32.xlu1 %v7264_v37, %s4975_s22 }
 0xaed   :  { %3022 = vrot.lane.b32.xlu1 %v6406_v3, %s4976_s23 }
 0xaf1   :  { %2962 = vrot.lane.b32.xlu1 %v7265_v18, %s4975_s22 }
 0xaf2   :  { %v2670_v26 = vpop.xlane.xlu0 %2669 }
 0xaf3   :  { %4883 = vrcp.f32 %v2670_v26 }
 0xaf4   :  { %v2668_v27 = vpop.xlane.xlu1 %2667 }
 0xaf5   :  { %3026 = vrot.lane.b32.xlu1 %v6410_v56, %s4976_s23  ;;  %4885 = vrcp.f32 %v2668_v27 }
 0xaf8   :  { %v2674_v55 = vpop.xlane.xlu0 %2673 }
 0xaf9   :  { %2966 = vrot.lane.b32.xlu1 %v7266_v24, %s4975_s22  ;;  %4887 = vrcp.f32 %v2674_v55  ;;  %v7271_v55 = vld [vmem:[#allocation25_spill] sm:$0xff] }
 0xafc   :  { %v2672_v39 = vpop.xlane.xlu1 %2671 }
 0xafd   :  { %3030 = vrot.lane.b32.xlu1 %v6414_v19, %s4976_s23  ;;  %4889 = vrcp.f32 %v2672_v39 }
 0xb00   :  { %v2678_v3 = vpop.xlane.xlu0 %2677  ;;  %v4884_v14 = vpop.eup %4883 }
 0xb01   :  { %2970 = vrot.lane.b32.xlu1 %v7267_v5, %s4975_s22  ;;  %v2716_v17 = vmul.f32 %v4884_v14, %v6497_v58  ;;  %4891 = vrcp.f32 %v2678_v3 }
 0xb02   :  { %v4886_v46 = vpop.eup %4885 }
 0xb03   :  { %v2715_v33 = vmul.f32 %v4886_v46, %v6501_v0 }
 0xb04   :  { %v2682_v56 = vpop.xlane.xlu0 %2681 }
 0xb05   :  { %3034 = vrot.lane.b32.xlu1 %v6418_v16, %s4976_s23  ;;  %4562 = vmatprep.mubr.f32.mxu0 %v2715_v33 }
 0xb06   :  { %4563 = vmatmul.mubr.f32.vlgmr.msra.gmra.mxu0 %v2716_v17  ;;  %v4888_v22 = vpop.eup %4887 }
 0xb07   :  { %v2718_v47 = vmul.f32 %v4888_v22, %v6505_v34 }
 0xb08   :  { %v2686_v15 = vpop.xlane.xlu0 %2685 }
 0xb0a   :  { %v4890_v19 = vpop.eup %4889 }
 0xb0b   :  { %v2717_v30 = vmul.f32 %v4890_v19, %v6509_v29 }
 0xb0c   :  { %v2690_v10 = vpop.xlane.xlu0 %2689 }
 0xb0d   :  { %4565 = vmatprep.mubr.f32.mxu0 %v2717_v30 }
 0xb0e   :  { %4566 = vmatmul.mubr.f32.gmra.mxu0 %v2718_v47  ;;  %v4892_v61 = vpop.eup %4891 }
 0xb0f   :  { %v2720_v60 = vmul.f32 %v4892_v61, %v6513_v9 }
 0xb10   :  { %v2694_v48 = vpop.xlane.xlu0 %2693 }
 0xb14   :  { %v2698_v0 = vpop.xlane.xlu0 %2697 }
 0xb18   :  { %v6624_v49 = vpop.permute.xlu0 %2942 }
 0xb1c   :  { %v6626_v58 = vpop.permute.xlu0 %2944 }
 0xb20   :  { %v6628_v7 = vpop.permute.xlu0 %3008 }
 0xb24   :  { %v2949_v16 = vpop.permute.xlu0 %2948 }
 0xb25   :  { %v3120_v29 = vsel %vm547_vm1, %v7268_v36, %v2949_v16 }
 0xb27   :  { %v2676_v8 = vpop.xlane.xlu1 %2675 }
 0xb28   :  { %4893 = vrcp.f32 %v2676_v8  ;;  %v3013_v59 = vpop.permute.xlu0 %3012 }
 0xb29   :  { %v6633_v34 = vsel %vm3132_vm4, %v3120_v29, %v3013_v59  ;;  %4895 = vrcp.f32 %v2682_v56  ;;  %v7273_v29 = vld [vmem:[#allocation18_spill] sm:$0xff] }
 0xb2b   :  { %v2680_v32 = vpop.xlane.xlu1 %2679 }
 0xb2c   :  { %4897 = vrcp.f32 %v2680_v32  ;;  %v2953_v4 = vpop.permute.xlu0 %2952 }
 0xb2d   :  { %4899 = vrcp.f32 %v2686_v15  ;;  %v3122_v11 = vsel %vm547_vm1, %v7269_v40, %v2953_v4  ;;  %v7272_v15 = vld [vmem:[#allocation27_spill] sm:$0xff] }
 0xb2f   :  { %v2684_v6 = vpop.xlane.xlu1 %2683 }
 0xb30   :  { %4901 = vrcp.f32 %v2684_v6  ;;  %v3017_v44 = vpop.permute.xlu0 %3016  ;;  %v7274_v6 = vld [vmem:[#allocation20_spill] sm:$0xff] }
 0xb31   :  { %v6638_v23 = vsel %vm3132_vm4, %v3122_v11, %v3017_v44  ;;  %4903 = vrcp.f32 %v2690_v10  ;;  %v7275_v44 = vld [vmem:[#allocation22_spill] sm:$0xff] }
 0xb34   :  { %v2688_v63 = vpop.xlane.xlu1 %2687  ;;  %v2957_v52 = vpop.permute.xlu0 %2956 }
 0xb35   :  { %v4894_v12 = vpop.eup %4893  ;;  %4905 = vrcp.f32 %v2688_v63  ;;  %v3124_v35 = vsel %vm547_vm1, %v7270_v13, %v2957_v52 }
 0xb36   :  { %v2719_v45 = vmul.f32 %v4894_v12, %v6537_v50  ;;  %v4896_v25 = vpop.eup %4895  ;;  %4907 = vrcp.f32 %v2694_v48 }
 0xb37   :  { %v2722_v50 = vmul.f32 %v4896_v25, %v6517_v41 }
 0xb38   :  { %4568 = vmatprep.mubr.f32.mxu0 %v2719_v45  ;;  %v3021_v51 = vpop.permute.xlu0 %3020  ;;  %v7276_v45 = vld [vmem:[#allocation24_spill] sm:$0xff] }
 0xb39   :  { %v4898_v31 = vpop.eup %4897  ;;  %v2692_v1 = vpop.xlane.xlu1 %2691  ;;  %v6645_v21 = vsel %vm3132_vm4, %v3124_v35, %v3021_v51  ;;  %4569 = vmatmul.mubr.f32.gmra.mxu0 %v2720_v60  ;;  %v7277_v51 = vld [vmem:[#allocation26_spill] sm:$0xff] }
 0xb3a   :  { %4909 = vrcp.f32 %v2692_v1  ;;  %v2721_v28 = vmul.f32 %v4898_v31, %v6541_v38  ;;  %v4900_v37 = vpop.eup %4899 }
 0xb3b   :  { %4911 = vrcp.f32 %v2698_v0  ;;  %v2724_v24 = vmul.f32 %v4900_v37, %v6520_v42 }
 0xb3c   :  { %4571 = vmatprep.mubr.f32.mxu1 %v2721_v28  ;;  %v2961_v9 = vpop.permute.xlu0 %2960 }
 0xb3d   :  { %v4902_v18 = vpop.eup %4901  ;;  %v2696_v26 = vpop.xlane.xlu1 %2695  ;;  %4572 = vmatmul.mubr.f32.vlgmr.msra.gmra.mxu1 %v2722_v50  ;;  %v3126_v39 = vsel %vm547_vm1, %v7271_v55, %v2961_v9  ;;  %v3166_v50 = vld [vmem:[%s7143_s3] sm:$0xff] }
 0xb3e   :  { %4913 = vrcp.f32 %v2696_v26  ;;  %v2723_v27 = vmul.f32 %v4902_v18, %v6546_v2  ;;  %v4904_v38 = vpop.eup %4903  ;;  %4586 = vmatprep.subr.mxu1 %v3166_v50 }
 0xb3f   :  { %v2726_v2 = vmul.f32 %v4904_v38, %v6523_v62  ;;  %4587 = vmatpush3.msra.mxu1 %v3166_v50 }
 0xb40   :  { %4574 = vmatprep.mubr.f32.mxu1 %v2723_v27  ;;  %v3025_v3 = vpop.permute.xlu0 %3024 }
 0xb41   :  { %v6653_v14 = vpop.permute.xlu1 %2940  ;;  %v6656_v41 = vsel %vm3132_vm4, %v3126_v39, %v3025_v3  ;;  %4575 = vmatmul.mubr.f32.gmra.mxu1 %v2724_v24 }
 0xb42   :  { %v4906_v5 = vpop.eup %4905 }
 0xb43   :  { %v2725_v46 = vmul.f32 %v4906_v5, %v6551_v53  ;;  %v4908_v42 = vpop.eup %4907 }
 0xb44   :  { %v2965_v33 = vpop.permute.xlu0 %2964  ;;  %v2728_v53 = vmul.f32 %v4908_v42, %v6526_v43 }
 0xb45   :  { %v6660_v56 = vpop.permute.xlu1 %3004  ;;  %4577 = vmatprep.mubr.f32.mxu1 %v2725_v46  ;;  %v3128_v22 = vsel %vm547_vm1, %v7272_v15, %v2965_v33 }
 0xb46   :  { %4578 = vmatmul.mubr.f32.gmra.mxu1 %v2726_v2 }
 0xb47   :  { %v4910_v17 = vpop.eup %4909 }
 0xb48   :  { %v2727_v19 = vmul.f32 %v4910_v17, %v6556_v54  ;;  %v3029_v30 = vpop.permute.xlu0 %3028  ;;  %v4912_v62 = vpop.eup %4911 }
 0xb49   :  { %v6665_v10 = vpop.permute.xlu1 %3006  ;;  %v6668_v47 = vsel %vm3132_vm4, %v3128_v22, %v3029_v30  ;;  %v2730_v8 = vmul.f32 %v4912_v62, %v6529_v20 }
 0xb4a   :  { %4580 = vmatprep.mubr.f32.mxu1 %v2727_v19 }
 0xb4b   :  { %v4914_v48 = vpop.eup %4913  ;;  %4581 = vmatmul.mubr.f32.gmra.mxu1 %v2728_v53  ;;  %v7278_v53 = vld [vmem:[#allocation15_spill] sm:$0xff] }
 0xb4c   :  { %v2729_v0 = vmul.f32 %v4914_v48, %v6561_v57  ;;  %v2969_v22 = vpop.permute.xlu0 %2968  ;;  %v3116_v62 = vsel %vm547_vm1, %v7278_v53, %v6653_v14  ;;  %v7280_v14 = vld [vmem:[#allocation17_spill] sm:$0xff] }
 0xb4d   :  { %v6672_v16 = vpop.permute.xlu1 %2946  ;;  %v4949_v53 = vld [vmem:[%s7141_s0 + $0x18] sm:$0xff] }
 0xb4e   :  { %4583 = vmatprep.mubr.f32.mxu1 %v2729_v0  ;;  %v7279_v0 = vld [vmem:[#allocation14_spill] sm:$0xff] }
 0xb4f   :  { %4584 = vmatmul.mubr.f32.gmra.mxu1 %v2730_v8  ;;  %v3117_v8 = vsel %vm547_vm1, %v7279_v0, %v6624_v49  ;;  %v4950_v0 = vld [vmem:[%s7141_s0 + $0x10] sm:$0xff] }
 0xb50   :  { %v3033_v30 = vpop.permute.xlu0 %3032 }
 0xb51   :  { %v6675_v54 = vpop.permute.xlu1 %3010 }
 0xb55   :  { %v2951_v36 = vpop.permute.xlu1 %2950 }
 0xb56   :  { %v3121_v59 = vsel %vm547_vm1, %v7273_v29, %v2951_v36  ;;  %v3133_v36 = vsel %vm3132_vm4, %v3116_v62, %v6660_v56 }
 0xb59   :  { %v3015_v32 = vpop.permute.xlu1 %3014 }
 0xb5a   :  { %v6680_v43 = vsel %vm3132_vm4, %v3121_v59, %v3015_v32  ;;  %v3134_v59 = vsel %vm3132_vm4, %v3117_v8, %v6665_v10 }
 0xb5d   :  { %v2955_v4 = vpop.permute.xlu1 %2954 }
 0xb5e   :  { %v3123_v57 = vsel %vm547_vm1, %v7274_v6, %v2955_v4  ;;  %v3118_v6 = vsel %vm547_vm1, %v7280_v14, %v6626_v58  ;;  %v4951_v14 = vld [vmem:[%s7141_s0 + $0x28] sm:$0xff] }
 0xb5f   :  { %v3135_v56 = vsel %vm3132_vm4, %v3118_v6, %v6628_v7 }
 0xb61   :  { %v3019_v40 = vpop.permute.xlu1 %3018 }
 0xb62   :  { %v6685_v11 = vsel %vm3132_vm4, %v3123_v57, %v3019_v40  ;;  %v7281_v57 = vld [vmem:[#allocation16_spill] sm:$0xff] }
 0xb63   :  { %v3119_v10 = vsel %vm547_vm1, %v7281_v57, %v6672_v16  ;;  %v4952_v57 = vld [vmem:[%s7141_s0 + $0x20] sm:$0xff] }
 0xb65   :  { %v2959_v20 = vpop.permute.xlu1 %2958 }
 0xb66   :  { %v3125_v61 = vsel %vm547_vm1, %v7275_v44, %v2959_v20  ;;  %v3136_v20 = vsel %vm3132_vm4, %v3119_v10, %v6675_v54 }
 0xb69   :  { %v3023_v63 = vpop.permute.xlu1 %3022 }
 0xb6a   :  { %v6690_v52 = vsel %vm3132_vm4, %v3125_v61, %v3023_v63 }
 0xb6d   :  { %v2963_v12 = vpop.permute.xlu1 %2962 }
 0xb6e   :  { %v3127_v60 = vsel %vm547_vm1, %v7276_v45, %v2963_v12 }
 0xb71   :  { %v3027_v25 = vpop.permute.xlu1 %3026 }
 0xb72   :  { %v6695_v13 = vsel %vm3132_vm4, %v3127_v60, %v3027_v25 }
 0xb75   :  { %v2967_v35 = vpop.permute.xlu1 %2966 }
 0xb76   :  { %v3129_v31 = vsel %vm547_vm1, %v7277_v51, %v2967_v35 }
 0xb79   :  { %v3031_v1 = vpop.permute.xlu1 %3030 }
 0xb7a   :  { %v6700_v28 = vsel %vm3132_vm4, %v3129_v31, %v3031_v1 }
 0xb7d   :  { %v2971_v15 = vpop.permute.xlu1 %2970 }
 0xb81   :  { %v3035_v19 = vpop.permute.xlu1 %3034 }
 0xbc6   :  { %v4564_v37 = vpop.f32.mrf.mxu0 }
 0xbc7   :  { %3070 = vrot.lane.b32.xlu1 %v4564_v37, %s4977_s26  ;;  %v7282_v37 = vld [vmem:[#allocation29_spill] sm:$0xff] }
 0xbc8   :  { %v2845_v9 = vpop.f32.mrf.mxu0 }
 0xbc9   :  { %3068 = vrot.lane.b32.xlu0 %v2845_v9, %s4977_s26 }
 0xbce   :  { %v4567_v18 = vpop.f32.mrf.mxu0 }
 0xbcf   :  { %3074 = vrot.lane.b32.xlu1 %v4567_v18, %s4977_s26  ;;  %v7283_v18 = vld [vmem:[#allocation28_spill] sm:$0xff] }
 0xbd0   :  { %v2855_v26 = vpop.f32.mrf.mxu0 }
 0xbd1   :  { %3072 = vrot.lane.b32.xlu0 %v2855_v26, %s4977_s26  ;;  %v3131_v26 = vsel %vm547_vm1, %v7283_v18, %v2971_v15 }
 0xbf9   :  { %v4570_v27 = vpop.f32.mrf.mxu0 }
 0xbfa   :  { %3078 = vrot.lane.b32.xlu1 %v4570_v27, %s4977_s26 }
 0xbfb   :  { %v2865_v24 = vpop.f32.mrf.mxu0 }
 0xbfc   :  { %3076 = vrot.lane.b32.xlu0 %v2865_v24, %s4977_s26  ;;  %v3148_v24 = vsel %vm3132_vm4, %v3131_v26, %v3035_v19 }
 0xbfd   :  { %v4573_v55 = vpop.f32.mrf.mxu1 }
 0xbfe   :  { %3082 = vrot.lane.b32.xlu1 %v4573_v55, %s4977_s26  ;;  %v6792_v55 = vld [vmem:[%s7144_s4] ss:$0 sm:$0xff] }
 0xbff   :  { %v2875_v39 = vpop.f32.mrf.mxu1 }
 0xc00   :  { %3080 = vrot.lane.b32.xlu0 %v2875_v39, %s4977_s26 }
 0xc01   :  { %v4576_v3 = vpop.f32.mrf.mxu1 }
 0xc02   :  { %3086 = vrot.lane.b32.xlu1 %v4576_v3, %s4977_s26 }
 0xc03   :  { %v2885_v38 = vpop.f32.mrf.mxu1 }
 0xc04   :  { %3084 = vrot.lane.b32.xlu0 %v2885_v38, %s4977_s26 }
 0xc06   :  { %v4579_v5 = vpop.f32.mrf.mxu1 }
 0xc07   :  { %3090 = vrot.lane.b32.xlu1 %v4579_v5, %s4977_s26  ;;  %v4947_v5 = vld [vmem:[%s7141_s0 + $0x8] sm:$0xff] }
 0xc08   :  { %v2895_v46 = vpop.f32.mrf.mxu1 }
 0xc09   :  { %3088 = vrot.lane.b32.xlu0 %v2895_v46, %s4977_s26 }
 0xc0b   :  { %v4582_v33 = vpop.f32.mrf.mxu1 }
 0xc0c   :  { %3094 = vrot.lane.b32.xlu1 %v4582_v33, %s4977_s26 }
 0xc0d   :  { %v2905_v2 = vpop.f32.mrf.mxu1 }
 0xc0e   :  { %3092 = vrot.lane.b32.xlu0 %v2905_v2, %s4977_s26  ;;  %v4948_v2 = vld [vmem:[%s7141_s0] sm:$0xff] }
 0xc0f   :  { %v4585_v42 = vpop.f32.mrf.mxu1 }
 0xc10   :  { %3098 = vrot.lane.b32.xlu1 %v4585_v42, %s4977_s26 }
 0xc11   :  { %v2915_v17 = vpop.f32.mrf.mxu1 }
 0xc12   :  { %3096 = vrot.lane.b32.xlu0 %v2915_v17, %s4977_s26 }
 0xc39   :  { %v3071_v48 = vpop.permute.xlu1 %3070 }
 0xc3a   :  { %v3151_v4 = vsel %vm3149_vm5, %v3134_v59, %v3071_v48 }
 0xc3b   :  { %v3069_v29 = vpop.permute.xlu0 %3068 }
 0xc3c   :  { %v3150_v32 = vsel %vm3149_vm5, %v3133_v36, %v3069_v29 }
 0xc3d   :  { %4588 = vmatprep.mubr.msk.f32.mxu1 %vm50_vm0, %v3150_v32 }
 0xc3e   :  { %4589 = vmatmul.mubr.msk.f32.vlgmr.msra.gmra.mxu1 %vm50_vm0, %v3151_v4 }
 0xc41   :  { %v3075_v49 = vpop.permute.xlu1 %3074 }
 0xc42   :  { %v3153_v61 = vsel %vm3149_vm5, %v3136_v20, %v3075_v49 }
 0xc43   :  { %v3073_v40 = vpop.permute.xlu0 %3072 }
 0xc44   :  { %v3152_v44 = vsel %vm3149_vm5, %v3135_v56, %v3073_v40 }
 0xc45   :  { %4591 = vmatprep.mubr.msk.f32.mxu1 %vm50_vm0, %v3152_v44 }
 0xc46   :  { %4592 = vmatmul.mubr.msk.f32.gmra.mxu1 %vm50_vm0, %v3153_v61  ;;  %v4953_v61 = vld [vmem:[%s7141_s0 + $0x38] sm:$0xff] }
 0xc6c   :  { %v3079_v58 = vpop.permute.xlu1 %3078 }
 0xc6d   :  { %v3155_v16 = vsel %vm3149_vm5, %v6680_v43, %v3079_v58 }
 0xc6e   :  { %v3077_v63 = vpop.permute.xlu0 %3076 }
 0xc6f   :  { %v3154_v7 = vsel %vm3149_vm5, %v6633_v34, %v3077_v63 }
 0xc70   :  { %v3083_v12 = vpop.permute.xlu1 %3082  ;;  %4594 = vmatprep.mubr.msk.f32.mxu1 %vm50_vm0, %v3154_v7 }
 0xc71   :  { %4595 = vmatmul.mubr.msk.f32.gmra.mxu1 %vm50_vm0, %v3155_v16  ;;  %v3157_v60 = vsel %vm3149_vm5, %v6685_v11, %v3083_v12  ;;  %v4954_v12 = vld [vmem:[%s7141_s0 + $0x30] sm:$0xff] }
 0xc72   :  { %v3081_v54 = vpop.permute.xlu0 %3080 }
 0xc73   :  { %v3156_v45 = vsel %vm3149_vm5, %v6638_v23, %v3081_v54 }
 0xc74   :  { %v3087_v25 = vpop.permute.xlu1 %3086  ;;  %4597 = vmatprep.mubr.msk.f32.mxu1 %vm50_vm0, %v3156_v45 }
 0xc75   :  { %4598 = vmatmul.mubr.msk.f32.gmra.mxu1 %vm50_vm0, %v3157_v60  ;;  %v3159_v35 = vsel %vm3149_vm5, %v6690_v52, %v3087_v25 }
 0xc76   :  { %v3085_v34 = vpop.permute.xlu0 %3084 }
 0xc77   :  { %v3158_v43 = vsel %vm3149_vm5, %v6645_v21, %v3085_v34  ;;  %v4955_v34 = vld [vmem:[%s7141_s0 + $0x48] sm:$0xff] }
 0xc78   :  { %4600 = vmatprep.mubr.msk.f32.mxu1 %vm50_vm0, %v3158_v43 }
 0xc79   :  { %v3091_v51 = vpop.permute.xlu1 %3090  ;;  %4601 = vmatmul.mubr.msk.f32.gmra.mxu1 %vm50_vm0, %v3159_v35 }
 0xc7a   :  { %v3161_v31 = vsel %vm3149_vm5, %v6695_v13, %v3091_v51 }
 0xc7b   :  { %v3089_v23 = vpop.permute.xlu0 %3088 }
 0xc7c   :  { %v3160_v11 = vsel %vm3149_vm5, %v6656_v41, %v3089_v23  ;;  %v3130_v41 = vsel %vm547_vm1, %v7282_v37, %v2969_v22  ;;  %v4956_v23 = vld [vmem:[%s7141_s0 + $0x40] sm:$0xff]  ;;  %v4957_v37 = vld [vmem:[%s7141_s0 + $0x58] sm:$0xff] }
 0xc7d   :  { %4603 = vmatprep.mubr.msk.f32.mxu1 %vm50_vm0, %v3160_v11  ;;  %v3147_v13 = vsel %vm3132_vm4, %v3130_v41, %v3033_v30 }
 0xc7e   :  { %v3095_v1 = vpop.permute.xlu1 %3094  ;;  %4604 = vmatmul.mubr.msk.f32.gmra.mxu1 %vm50_vm0, %v3161_v31 }
 0xc7f   :  { %v3163_v50 = vsel %vm3149_vm5, %v6700_v28, %v3095_v1 }
 0xc80   :  { %v3093_v21 = vpop.permute.xlu0 %3092 }
 0xc81   :  { %v3162_v52 = vsel %vm3149_vm5, %v6668_v47, %v3093_v21 }
 0xc82   :  { %4606 = vmatprep.mubr.msk.f32.mxu1 %vm50_vm0, %v3162_v52  ;;  %v3099_v9 = vpop.permute.xlu1 %3098 }
 0xc83   :  { %4607 = vmatmul.mubr.msk.f32.gmra.mxu1 %vm50_vm0, %v3163_v50  ;;  %v3165_v28 = vsel %vm3149_vm5, %v3148_v24, %v3099_v9 }
 0xc84   :  { %v3097_v27 = vpop.permute.xlu0 %3096 }
 0xc85   :  { %v3164_v47 = vsel %vm3149_vm5, %v3147_v13, %v3097_v27  ;;  %v4958_v13 = vld [vmem:[%s7141_s0 + $0x50] sm:$0xff] }
 0xc86   :  { %4609 = vmatprep.mubr.msk.f32.mxu1 %vm50_vm0, %v3164_v47 }
 0xc87   :  { %4610 = vmatmul.mubr.msk.f32.gmra.mxu1 %vm50_vm0, %v3165_v28 }
 0xcfe   :  { %v4590_v39 = vpop.f32.mrf.mxu1 }
 0xcff   :  { %v3294_v3 = vadd.f32 %v4590_v39, %v6792_v55  ;;  %v4959_v39 = vld [vmem:[%s7141_s0 + $0x68] sm:$0xff] }
 0xd00   :  { %v3288_v38 = vpop.f32.mrf.mxu1 }
 0xd01   :  { %v6798_v46 = vadd.f32 %v4947_v5, %v3294_v3  ;;  %v3289_v33 = vadd.f32 %v6792_v55, %v3288_v38 }
 0xd03   :  { %v6804_v42 = vadd.f32 %v4948_v2, %v3289_v33  ;;  %v3386_v17 = vsel %vm50_vm0, %v6798_v46, 0.0  ;;  %v4960_v33 = vld [vmem:[%s7141_s0 + $0x60] sm:$0xff] }
 0xd04   :  { %3387 = vadd.xlane.f32.xlu1 %v3386_v17 }
 0xd05   :  { %v3383_v15 = vsel %vm50_vm0, %v6804_v42, 0.0 }
 0xd06   :  { %3384 = vadd.xlane.f32.xlu0 %v3383_v15  ;;  %v4593_v22 = vpop.f32.mrf.mxu1 }
 0xd07   :  { %v3304_v19 = vadd.f32 %v4593_v22, %v6792_v55 }
 0xd08   :  { %v3298_v30 = vpop.f32.mrf.mxu1 }
 0xd09   :  { %v6814_v62 = vadd.f32 %v4949_v53, %v3304_v19  ;;  %v3299_v48 = vadd.f32 %v6792_v55, %v3298_v30  ;;  %v4961_v19 = vld [vmem:[%s7141_s0 + $0x78] sm:$0xff] }
 0xd0b   :  { %v6820_v8 = vadd.f32 %v4950_v0, %v3299_v48  ;;  %v3392_v36 = vsel %vm50_vm0, %v6814_v62, 0.0  ;;  %v4962_v0 = vld [vmem:[%s7141_s0 + $0x70] sm:$0xff] }
 0xd0c   :  { %3393 = vadd.xlane.f32.xlu0 %v3392_v36 }
 0xd0d   :  { %v3389_v29 = vsel %vm50_vm0, %v6820_v8, 0.0 }
 0xd10   :  { %3390 = vadd.xlane.f32.xlu0 %v3389_v29 }
 0xd31   :  { %v4596_v59 = vpop.f32.mrf.mxu1 }
 0xd32   :  { %v3314_v32 = vadd.f32 %v4596_v59, %v6792_v55 }
 0xd33   :  { %v3308_v4 = vpop.f32.mrf.mxu1 }
 0xd34   :  { %v6830_v6 = vadd.f32 %v4951_v14, %v3314_v32  ;;  %v3309_v49 = vadd.f32 %v6792_v55, %v3308_v4 }
 0xd35   :  { %v4599_v56 = vpop.f32.mrf.mxu1 }
 0xd36   :  { %v6836_v10 = vadd.f32 %v4952_v57, %v3309_v49  ;;  %v3324_v40 = vadd.f32 %v4599_v56, %v6792_v55  ;;  %v3398_v20 = vsel %vm50_vm0, %v6830_v6, 0.0 }
 0xd37   :  { %3399 = vadd.xlane.f32.xlu0 %v3398_v20  ;;  %v3318_v44 = vpop.f32.mrf.mxu1 }
 0xd38   :  { %v6844_v58 = vadd.f32 %v4953_v61, %v3324_v40  ;;  %v3319_v63 = vadd.f32 %v6792_v55, %v3318_v44  ;;  %v3395_v7 = vsel %vm50_vm0, %v6836_v10, 0.0 }
 0xd39   :  { %3396 = vadd.xlane.f32.xlu1 %v3395_v7  ;;  %v4602_v16 = vpop.f32.mrf.mxu1 }
 0xd3a   :  { %v6852_v54 = vadd.f32 %v4954_v12, %v3319_v63  ;;  %v3334_v45 = vadd.f32 %v4602_v16, %v6792_v55  ;;  %v3404_v60 = vsel %vm50_vm0, %v6844_v58, 0.0 }
 0xd3b   :  { %3405 = vadd.xlane.f32.xlu0 %v3404_v60  ;;  %v3328_v25 = vpop.f32.mrf.mxu1 }
 0xd3c   :  { %v6860_v43 = vadd.f32 %v4955_v34, %v3334_v45  ;;  %v3329_v35 = vadd.f32 %v6792_v55, %v3328_v25  ;;  %v3401_v51 = vsel %vm50_vm0, %v6852_v54, 0.0 }
 0xd3d   :  { %3402 = vadd.xlane.f32.xlu1 %v3401_v51 }
 0xd3e   :  { %v6868_v11 = vadd.f32 %v4956_v23, %v3329_v35  ;;  %v4605_v31 = vpop.f32.mrf.mxu1  ;;  %v3410_v1 = vsel %vm50_vm0, %v6860_v43, 0.0 }
 0xd3f   :  { %v3344_v21 = vadd.f32 %v4605_v31, %v6792_v55  ;;  %3411 = vadd.xlane.f32.xlu0 %v3410_v1 }
 0xd40   :  { %v3338_v52 = vpop.f32.mrf.mxu1  ;;  %v3407_v50 = vsel %vm50_vm0, %v6868_v11, 0.0 }
 0xd41   :  { %v6878_v41 = vadd.f32 %v4957_v37, %v3344_v21  ;;  %v3339_v9 = vadd.f32 %v6792_v55, %v3338_v52  ;;  %3408 = vadd.xlane.f32.xlu1 %v3407_v50 }
 0xd43   :  { %v6884_v18 = vadd.f32 %v4958_v13, %v3339_v9  ;;  %v4608_v26 = vpop.f32.mrf.mxu1  ;;  %v3416_v27 = vsel %vm50_vm0, %v6878_v41, 0.0 }
 0xd44   :  { %v3354_v24 = vadd.f32 %v4608_v26, %v6792_v55  ;;  %3417 = vadd.xlane.f32.xlu0 %v3416_v27 }
 0xd45   :  { %v3348_v47 = vpop.f32.mrf.mxu1  ;;  %v3413_v28 = vsel %vm50_vm0, %v6884_v18, 0.0 }
 0xd46   :  { %v6894_v3 = vadd.f32 %v4959_v39, %v3354_v24  ;;  %v3349_v38 = vadd.f32 %v6792_v55, %v3348_v47  ;;  %3414 = vadd.xlane.f32.xlu1 %v3413_v28 }
 0xd47   :  { %v4611_v5 = vpop.f32.mrf.mxu1 }
 0xd48   :  { %v6900_v2 = vadd.f32 %v4960_v33, %v3349_v38  ;;  %v3364_v17 = vadd.f32 %v4611_v5, %v6792_v55  ;;  %v3422_v15 = vsel %vm50_vm0, %v6894_v3, 0.0 }
 0xd49   :  { %3423 = vadd.xlane.f32.xlu0 %v3422_v15  ;;  %v3358_v22 = vpop.f32.mrf.mxu1 }
 0xd4a   :  { %v6908_v30 = vadd.f32 %v4961_v19, %v3364_v17  ;;  %v3359_v53 = vadd.f32 %v6792_v55, %v3358_v22  ;;  %v3419_v48 = vsel %vm50_vm0, %v6900_v2, 0.0 }
 0xd4b   :  { %3420 = vadd.xlane.f32.xlu1 %v3419_v48 }
 0xd4c   :  { %v6916_v36 = vadd.f32 %v4962_v0, %v3359_v53  ;;  %v3428_v29 = vsel %vm50_vm0, %v6908_v30, 0.0 }
 0xd4d   :  { %3429 = vadd.xlane.f32.xlu0 %v3428_v29 }
 0xd4e   :  { %v3425_v59 = vsel %vm50_vm0, %v6916_v36, 0.0 }
 0xd4f   :  { %3426 = vadd.xlane.f32.xlu1 %v3425_v59 }
 0xd8d   :  { %v3388_v32 = vpop.xlane.xlu1 %3387 }
 0xd8e   :  { %v3433_v55 = vmul.f32 0.125, %v3388_v32 }
 0xd8f   :  { %v3385_v4 = vpop.xlane.xlu0 %3384 }
 0xd90   :  { %v6923_v14 = vsub.f32 %v6798_v46, %v3433_v55  ;;  %v3432_v49 = vmul.f32 0.125, %v3385_v4 }
 0xd92   :  { %v6926_v56 = vsub.f32 %v6804_v42, %v3432_v49  ;;  %v3465_v57 = vmul.f32 %v6923_v14, %v6923_v14 }
 0xd94   :  { %v3483_v40 = vsel %vm50_vm0, %v3465_v57, 0.0  ;;  %v3464_v20 = vmul.f32 %v6926_v56, %v6926_v56 }
 0xd95   :  { %3484 = vadd.xlane.f32.xlu0 %v3483_v40  ;;  %v3394_v44 = vpop.xlane.xlu0 %3393 }
 0xd96   :  { %v3435_v61 = vmul.f32 0.125, %v3394_v44  ;;  %v3480_v63 = vsel %vm50_vm0, %v3464_v20, 0.0 }
 0xd97   :  { %3481 = vadd.xlane.f32.xlu1 %v3480_v63 }
 0xd98   :  { %v6935_v46 = vsub.f32 %v6814_v62, %v3435_v61 }
 0xd99   :  { %v3391_v7 = vpop.xlane.xlu0 %3390 }
 0xd9a   :  { %v3434_v42 = vmul.f32 0.125, %v3391_v7  ;;  %v3467_v16 = vmul.f32 %v6935_v46, %v6935_v46 }
 0xd9c   :  { %v6940_v12 = vsub.f32 %v6820_v8, %v3434_v42  ;;  %v3489_v45 = vsel %vm50_vm0, %v3467_v16, 0.0 }
 0xd9d   :  { %3490 = vadd.xlane.f32.xlu0 %v3489_v45 }
 0xd9e   :  { %v3466_v60 = vmul.f32 %v6940_v12, %v6940_v12 }
 0xda0   :  { %v3486_v25 = vsel %vm50_vm0, %v3466_v60, 0.0 }
 0xda1   :  { %3487 = vadd.xlane.f32.xlu1 %v3486_v25 }
 0xdc0   :  { %v3400_v34 = vpop.xlane.xlu0 %3399 }
 0xdc1   :  { %v3437_v62 = vmul.f32 0.125, %v3400_v34 }
 0xdc2   :  { %v3397_v35 = vpop.xlane.xlu1 %3396 }
 0xdc3   :  { %v6947_v51 = vsub.f32 %v6830_v6, %v3437_v62  ;;  %v3436_v23 = vmul.f32 0.125, %v3397_v35 }
 0xdc4   :  { %v3406_v31 = vpop.xlane.xlu0 %3405 }
 0xdc5   :  { %v6950_v8 = vsub.f32 %v6836_v10, %v3436_v23  ;;  %v3439_v1 = vmul.f32 0.125, %v3406_v31  ;;  %v3469_v21 = vmul.f32 %v6947_v51, %v6947_v51 }
 0xdc6   :  { %v3403_v52 = vpop.xlane.xlu1 %3402 }
 0xdc7   :  { %v6955_v50 = vsub.f32 %v6844_v58, %v3439_v1  ;;  %v3438_v37 = vmul.f32 0.125, %v3403_v52  ;;  %v3495_v9 = vsel %vm50_vm0, %v3469_v21, 0.0  ;;  %v3468_v6 = vmul.f32 %v6950_v8, %v6950_v8 }
 0xdc8   :  { %3496 = vadd.xlane.f32.xlu0 %v3495_v9  ;;  %v3412_v13 = vpop.xlane.xlu0 %3411 }
 0xdc9   :  { %v6961_v26 = vsub.f32 %v6852_v54, %v3438_v37  ;;  %v3441_v10 = vmul.f32 0.125, %v3412_v13  ;;  %v3492_v27 = vsel %vm50_vm0, %v3468_v6, 0.0  ;;  %v3471_v24 = vmul.f32 %v6955_v50, %v6955_v50 }
 0xdca   :  { %v3409_v47 = vpop.xlane.xlu1 %3408  ;;  %3493 = vadd.xlane.f32.xlu1 %v3492_v27  ;;  %v7021_v27 = vld [vmem:[%s7145_s5] ss:$0 sm:$0xff] }
 0xdcb   :  { %v6967_v58 = vsub.f32 %v6860_v43, %v3441_v10  ;;  %v3440_v28 = vmul.f32 0.125, %v3409_v47  ;;  %v3501_v39 = vsel %vm50_vm0, %v3471_v24, 0.0  ;;  %v3470_v38 = vmul.f32 %v6961_v26, %v6961_v26 }
 0xdcc   :  { %3502 = vadd.xlane.f32.xlu0 %v3501_v39 }
 0xdcd   :  { %v6973_v54 = vsub.f32 %v6868_v11, %v3440_v28  ;;  %v3418_v5 = vpop.xlane.xlu0 %3417  ;;  %v3498_v33 = vsel %vm50_vm0, %v3470_v38, 0.0  ;;  %v3473_v17 = vmul.f32 %v6967_v58, %v6967_v58  ;;  %v7027_v28 = vld [vmem:[%s7146_s6] ss:$0 sm:$0xff] }
 0xdce   :  { %v3443_v15 = vmul.f32 0.125, %v3418_v5  ;;  %3499 = vadd.xlane.f32.xlu1 %v3498_v33 }
 0xdcf   :  { %v3415_v43 = vpop.xlane.xlu1 %3414  ;;  %v3507_v22 = vsel %vm50_vm0, %v3473_v17, 0.0  ;;  %v3472_v19 = vmul.f32 %v6973_v54, %v6973_v54 }
 0xdd0   :  { %v6982_v53 = vsub.f32 %v6878_v41, %v3443_v15  ;;  %v3442_v48 = vmul.f32 0.125, %v3415_v43  ;;  %3508 = vadd.xlane.f32.xlu0 %v3507_v22 }
 0xdd1   :  { %v3504_v11 = vsel %vm50_vm0, %v3472_v19, 0.0 }
 0xdd2   :  { %v6986_v0 = vsub.f32 %v6884_v18, %v3442_v48  ;;  %v3424_v29 = vpop.xlane.xlu0 %3423  ;;  %3505 = vadd.xlane.f32.xlu1 %v3504_v11  ;;  %v3475_v59 = vmul.f32 %v6982_v53, %v6982_v53 }
 0xdd3   :  { %v3445_v32 = vmul.f32 0.125, %v3424_v29 }
 0xdd4   :  { %v3421_v55 = vpop.xlane.xlu1 %3420  ;;  %v3513_v4 = vsel %vm50_vm0, %v3475_v59, 0.0  ;;  %v3474_v41 = vmul.f32 %v6986_v0, %v6986_v0 }
 0xdd5   :  { %v6994_v49 = vsub.f32 %v6894_v3, %v3445_v32  ;;  %v3444_v57 = vmul.f32 0.125, %v3421_v55  ;;  %3514 = vadd.xlane.f32.xlu0 %v3513_v4 }
 0xdd6   :  { %v3430_v40 = vpop.xlane.xlu0 %3429  ;;  %v3510_v18 = vsel %vm50_vm0, %v3474_v41, 0.0 }
 0xdd7   :  { %v6998_v20 = vsub.f32 %v6900_v2, %v3444_v57  ;;  %v3447_v44 = vmul.f32 0.125, %v3430_v40  ;;  %3511 = vadd.xlane.f32.xlu1 %v3510_v18  ;;  %v3477_v61 = vmul.f32 %v6994_v49, %v6994_v49 }
 0xdd8   :  { %v3427_v63 = vpop.xlane.xlu1 %3426 }
 0xdd9   :  { %v7003_v7 = vsub.f32 %v6908_v30, %v3447_v44  ;;  %v3446_v42 = vmul.f32 0.125, %v3427_v63  ;;  %v3519_v3 = vsel %vm50_vm0, %v3477_v61, 0.0  ;;  %v3476_v16 = vmul.f32 %v6998_v20, %v6998_v20 }
 0xdda   :  { %3520 = vadd.xlane.f32.xlu0 %v3519_v3 }
 0xddb   :  { %v7009_v45 = vsub.f32 %v6916_v36, %v3446_v42  ;;  %v3516_v2 = vsel %vm50_vm0, %v3476_v16, 0.0  ;;  %v3479_v60 = vmul.f32 %v7003_v7, %v7003_v7 }
 0xddc   :  { %3517 = vadd.xlane.f32.xlu1 %v3516_v2 }
 0xddd   :  { %v3525_v25 = vsel %vm50_vm0, %v3479_v60, 0.0  ;;  %v3478_v30 = vmul.f32 %v7009_v45, %v7009_v45 }
 0xdde   :  { %3526 = vadd.xlane.f32.xlu0 %v3525_v25 }
 0xddf   :  { %v3522_v34 = vsel %vm50_vm0, %v3478_v30, 0.0 }
 0xde0   :  { %3523 = vadd.xlane.f32.xlu1 %v3522_v34 }
 0xe1e   :  { %v3485_v62 = vpop.xlane.xlu0 %3484 }
 0xe1f   :  { %v3529_v35 = vmul.f32 0.125, %v3485_v62 }
 0xe20   :  { %v3482_v23 = vpop.xlane.xlu1 %3481 }
 0xe21   :  { %v3545_v36 = vadd.f32 1e-05, %v3529_v35  ;;  %v3528_v31 = vmul.f32 0.125, %v3482_v23 }
 0xe23   :  { %4915 = vrsqrt.f32 %v3545_v36  ;;  %v3544_v1 = vadd.f32 1e-05, %v3528_v31 }
 0xe25   :  { %4917 = vrsqrt.f32 %v3544_v1 }
 0xe26   :  { %v3491_v21 = vpop.xlane.xlu0 %3490 }
 0xe27   :  { %v3531_v52 = vmul.f32 0.125, %v3491_v21 }
 0xe29   :  { %v3547_v37 = vadd.f32 1e-05, %v3531_v52 }
 0xe2a   :  { %v3488_v9 = vpop.xlane.xlu1 %3487 }
 0xe2b   :  { %4919 = vrsqrt.f32 %v3547_v37  ;;  %v3530_v6 = vmul.f32 0.125, %v3488_v9 }
 0xe2d   :  { %v3546_v13 = vadd.f32 1e-05, %v3530_v6 }
 0xe2f   :  { %4921 = vrsqrt.f32 %v3546_v13 }
 0xe30   :  { %v4916_v10 = vpop.eup %4915 }
 0xe31   :  { %v3577_v24 = vmul.f32 %v4916_v10, %v6923_v14 }
 0xe32   :  { %v4918_v47 = vpop.eup %4917 }
 0xe33   :  { %v3600_v39 = vmul.f32 %v7021_v27, %v3577_v24  ;;  %v3576_v38 = vmul.f32 %v4918_v47, %v6926_v56 }
 0xe35   :  { %v3623_v5 = vadd.f32 %v7027_v28, %v3600_v39  ;;  %v3599_v33 = vmul.f32 %v7021_v27, %v3576_v38 }
 0xe37   :  { %3639 = vst.msk [vmem:[%s7147_s7 + $0x8] sm:$0xff] %vm50_vm0, %v3623_v5  ;;  %v3622_v14 = vadd.f32 %v7027_v28, %v3599_v33 }
 0xe38   :  { %v4920_v17 = vpop.eup %4919 }
 0xe39   :  { %3638 = vst.msk [vmem:[%s7147_s7] sm:$0xff] %vm50_vm0, %v3622_v14  ;;  %v3579_v15 = vmul.f32 %v4920_v17, %v6935_v46 }
 0xe3b   :  { %v3602_v56 = vmul.f32 %v7021_v27, %v3579_v15 }
 0xe3c   :  { %v4922_v43 = vpop.eup %4921 }
 0xe3d   :  { %v3625_v22 = vadd.f32 %v7027_v28, %v3602_v56  ;;  %v3578_v19 = vmul.f32 %v4922_v43, %v6940_v12 }
 0xe3f   :  { %3641 = vst.msk [vmem:[%s7147_s7 + $0x18] sm:$0xff] %vm50_vm0, %v3625_v22  ;;  %v3601_v48 = vmul.f32 %v7021_v27, %v3578_v19 }
 0xe41   :  { %v3624_v11 = vadd.f32 %v7027_v28, %v3601_v48 }
 0xe43   :  { %3640 = vst.msk [vmem:[%s7147_s7 + $0x10] sm:$0xff] %vm50_vm0, %v3624_v11 }
 0xe51   :  { %v3497_v46 = vpop.xlane.xlu0 %3496 }
 0xe52   :  { %v3533_v29 = vmul.f32 0.125, %v3497_v46 }
 0xe53   :  { %v3494_v59 = vpop.xlane.xlu1 %3493 }
 0xe54   :  { %v3549_v32 = vadd.f32 1e-05, %v3533_v29  ;;  %v3532_v55 = vmul.f32 0.125, %v3494_v59 }
 0xe55   :  { %v3503_v12 = vpop.xlane.xlu0 %3502 }
 0xe56   :  { %4923 = vrsqrt.f32 %v3549_v32  ;;  %v3548_v4 = vadd.f32 1e-05, %v3532_v55  ;;  %v3535_v41 = vmul.f32 0.125, %v3503_v12 }
 0xe57   :  { %v3500_v57 = vpop.xlane.xlu1 %3499 }
 0xe58   :  { %4925 = vrsqrt.f32 %v3548_v4  ;;  %v3551_v40 = vadd.f32 1e-05, %v3535_v41  ;;  %v3534_v18 = vmul.f32 0.125, %v3500_v57 }
 0xe59   :  { %v3509_v44 = vpop.xlane.xlu0 %3508 }
 0xe5a   :  { %4927 = vrsqrt.f32 %v3551_v40  ;;  %v3550_v61 = vadd.f32 1e-05, %v3534_v18  ;;  %v3537_v63 = vmul.f32 0.125, %v3509_v44 }
 0xe5b   :  { %v3506_v42 = vpop.xlane.xlu1 %3505 }
 0xe5c   :  { %4929 = vrsqrt.f32 %v3550_v61  ;;  %v3553_v3 = vadd.f32 1e-05, %v3537_v63  ;;  %v3536_v16 = vmul.f32 0.125, %v3506_v42 }
 0xe5e   :  { %4931 = vrsqrt.f32 %v3553_v3  ;;  %v3552_v2 = vadd.f32 1e-05, %v3536_v16  ;;  %v3515_v60 = vpop.xlane.xlu0 %3514 }
 0xe5f   :  { %v3539_v25 = vmul.f32 0.125, %v3515_v60 }
 0xe60   :  { %4933 = vrsqrt.f32 %v3552_v2  ;;  %v3512_v30 = vpop.xlane.xlu1 %3511 }
 0xe61   :  { %v3555_v34 = vadd.f32 1e-05, %v3539_v25  ;;  %v3538_v62 = vmul.f32 0.125, %v3512_v30 }
 0xe63   :  { %v4924_v35 = vpop.eup %4923  ;;  %4935 = vrsqrt.f32 %v3555_v34  ;;  %v3554_v23 = vadd.f32 1e-05, %v3538_v62  ;;  %v3521_v36 = vpop.xlane.xlu0 %3520 }
 0xe64   :  { %v3581_v31 = vmul.f32 %v4924_v35, %v6947_v51  ;;  %v3541_v1 = vmul.f32 0.125, %v3521_v36 }
 0xe65   :  { %v4926_v21 = vpop.eup %4925  ;;  %4937 = vrsqrt.f32 %v3554_v23  ;;  %v3518_v52 = vpop.xlane.xlu1 %3517 }
 0xe66   :  { %v3604_v37 = vmul.f32 %v7021_v27, %v3581_v31  ;;  %v3580_v9 = vmul.f32 %v4926_v21, %v6950_v8  ;;  %v3557_v6 = vadd.f32 1e-05, %v3541_v1  ;;  %v3540_v13 = vmul.f32 0.125, %v3518_v52 }
 0xe67   :  { %v4928_v10 = vpop.eup %4927  ;;  %v3527_v24 = vpop.xlane.xlu0 %3526 }
 0xe68   :  { %v3627_v47 = vadd.f32 %v7027_v28, %v3604_v37  ;;  %v3603_v39 = vmul.f32 %v7021_v27, %v3580_v9  ;;  %v3583_v38 = vmul.f32 %v4928_v10, %v6955_v50  ;;  %4939 = vrsqrt.f32 %v3557_v6 }
 0xe69   :  { %v4930_v51 = vpop.eup %4929  ;;  %v3556_v5 = vadd.f32 1e-05, %v3540_v13  ;;  %v3543_v33 = vmul.f32 0.125, %v3527_v24  ;;  %v3524_v14 = vpop.xlane.xlu1 %3523 }
 0xe6a   :  { %3643 = vst.msk [vmem:[%s7147_s7 + $0x28] sm:$0xff] %vm50_vm0, %v3627_v47  ;;  %v3626_v8 = vadd.f32 %v7027_v28, %v3603_v39  ;;  %v3606_v17 = vmul.f32 %v7021_v27, %v3583_v38  ;;  %v3582_v15 = vmul.f32 %v4930_v51, %v6961_v26  ;;  %v3542_v56 = vmul.f32 0.125, %v3524_v14 }
 0xe6b   :  { %v4932_v43 = vpop.eup %4931  ;;  %4941 = vrsqrt.f32 %v3556_v5  ;;  %v3559_v50 = vadd.f32 1e-05, %v3543_v33 }
 0xe6c   :  { %3642 = vst.msk [vmem:[%s7147_s7 + $0x20] sm:$0xff] %vm50_vm0, %v3626_v8  ;;  %v3629_v22 = vadd.f32 %v7027_v28, %v3606_v17  ;;  %v3605_v19 = vmul.f32 %v7021_v27, %v3582_v15  ;;  %v3585_v48 = vmul.f32 %v4932_v43, %v6967_v58  ;;  %v3558_v11 = vadd.f32 1e-05, %v3542_v56 }
 0xe6d   :  { %v4934_v46 = vpop.eup %4933  ;;  %4943 = vrsqrt.f32 %v3559_v50 }
 0xe6e   :  { %3645 = vst.msk [vmem:[%s7147_s7 + $0x38] sm:$0xff] %vm50_vm0, %v3629_v22  ;;  %v3628_v26 = vadd.f32 %v7027_v28, %v3605_v19  ;;  %v3608_v29 = vmul.f32 %v7021_v27, %v3585_v48  ;;  %v3584_v59 = vmul.f32 %v4934_v46, %v6973_v54  ;;  %4945 = vrsqrt.f32 %v3558_v11 }
 0xe70   :  { %v4936_v32 = vpop.eup %4935  ;;  %3644 = vst.msk [vmem:[%s7147_s7 + $0x30] sm:$0xff] %vm50_vm0, %v3628_v26  ;;  %v3631_v58 = vadd.f32 %v7027_v28, %v3608_v29  ;;  %v3607_v55 = vmul.f32 %v7021_v27, %v3584_v59 }
 0xe71   :  { %v3587_v12 = vmul.f32 %v4936_v32, %v6982_v53 }
 0xe72   :  { %v4938_v4 = vpop.eup %4937  ;;  %3647 = vst.msk [vmem:[%s7147_s7 + $0x48] sm:$0xff] %vm50_vm0, %v3631_v58  ;;  %v3630_v54 = vadd.f32 %v7027_v28, %v3607_v55 }
 0xe73   :  { %v3610_v41 = vmul.f32 %v7021_v27, %v3587_v12  ;;  %v3586_v57 = vmul.f32 %v4938_v4, %v6986_v0 }
 0xe74   :  { %3646 = vst.msk [vmem:[%s7147_s7 + $0x40] sm:$0xff] %vm50_vm0, %v3630_v54 }
 0xe75   :  { %v4940_v40 = vpop.eup %4939  ;;  %v3633_v53 = vadd.f32 %v7027_v28, %v3610_v41  ;;  %v3609_v18 = vmul.f32 %v7021_v27, %v3586_v57 }
 0xe76   :  { %v3589_v44 = vmul.f32 %v4940_v40, %v6994_v49 }
 0xe77   :  { %3649 = vst.msk [vmem:[%s7147_s7 + $0x58] sm:$0xff] %vm50_vm0, %v3633_v53  ;;  %v3632_v61 = vadd.f32 %v7027_v28, %v3609_v18 }
 0xe78   :  { %v4942_v0 = vpop.eup %4941  ;;  %v3612_v63 = vmul.f32 %v7021_v27, %v3589_v44 }
 0xe79   :  { %3648 = vst.msk [vmem:[%s7147_s7 + $0x50] sm:$0xff] %vm50_vm0, %v3632_v61  ;;  %v3588_v42 = vmul.f32 %v4942_v0, %v6998_v20 }
 0xe7a   :  { %v4944_v3 = vpop.eup %4943  ;;  %v3635_v49 = vadd.f32 %v7027_v28, %v3612_v63 }
 0xe7b   :  { %v4946_v16 = vpop.eup %4945  ;;  %v3611_v2 = vmul.f32 %v7021_v27, %v3588_v42  ;;  %v3591_v60 = vmul.f32 %v4944_v3, %v7003_v7 }
 0xe7c   :  { %3651 = vst.msk [vmem:[%s7147_s7 + $0x68] sm:$0xff] %vm50_vm0, %v3635_v49  ;;  %v3590_v25 = vmul.f32 %v4946_v16, %v7009_v45 }
 0xe7d   :  { %v3634_v30 = vadd.f32 %v7027_v28, %v3611_v2  ;;  %v3614_v34 = vmul.f32 %v7021_v27, %v3591_v60 }
 0xe7e   :  { %v3613_v20 = vmul.f32 %v7021_v27, %v3590_v25 }
 0xe7f   :  { %3650 = vst.msk [vmem:[%s7147_s7 + $0x60] sm:$0xff] %vm50_vm0, %v3634_v30  ;;  %v3637_v7 = vadd.f32 %v7027_v28, %v3614_v34 }
 0xe80   :  { %v3636_v62 = vadd.f32 %v7027_v28, %v3613_v20 }
 0xe81   :  { %3653 = vst.msk [vmem:[%s7147_s7 + $0x78] sm:$0xff] %vm50_vm0, %v3637_v7 }
 0xe82   :  { %3652 = vst.msk [vmem:[%s7147_s7 + $0x70] sm:$0xff] %vm50_vm0, %v3636_v62 }

// kernel: dual_transformer_forward.15
= control target key start
LH: loop header
LB: loop body
LE: loop exit
PB: predicated region body
PF: predicated region fallthrough
CT: control target
= control target key end

     0   :  { %s548_s0 = inlined_call_operand.vmem [shape: f32[128,8], index: 0, kind: input, shape index: {}]   ;;  %s549_s1 = inlined_call_operand.vmem [shape: f32[8,16], index: 1, kind: input, shape index: {}]   ;;  %s550_s2 = inlined_call_operand.vmem [shape: f32[1,16], index: 2, kind: input, shape index: {}]   ;;  %s551_s3 = inlined_call_operand.<no memory space> [shape: f32[1,1], index: 3, kind: input, shape index: {}]   ;;  %s552_s4 = inlined_call_operand.hbm [shape: f32[128,16], index: 4, kind: output, shape index: {}]  }
   0x1   :  { %v9_v0 = vstv %s551_s3 }
   0x2   :  { %10 = vst [vmem:[#allocation2] sm:$0x1] %v9_v0 }
   0x3   :  { %v94_v2 = vld [vmem:[%s549_s1] sm:$0xff]  ;;  %v419_v3 = vmov 0  }
   0x4   :  { %396 = vset.pattern.permute.xlu0 %v419_v3  ;;  %364 = vmatprep.subr.mxu0 %v94_v2 }
   0x5   :  { %390 = vmatprep.subr.mxu1 %v94_v2  ;;  %365 = vmatpush3.msra.mxu0 %v94_v2 }
   0x6   :  { %391 = vmatpush3.msra.mxu1 %v94_v2 }
   0x9   :  { %v329_v1 = vld [vmem:[#allocation2] ss:$0 sm:$0xff] }
   0xa   :  { %59 = vperm.xlu0 %396, %v329_v1  }
   0xb   :  { %11 = vsyncpa [#allocation4], 0  ;;  %v20_v4 = vld [vmem:[%s548_s0] sm:$0xff]  ;;  %v21_v6 = vld [vmem:[%s548_s0 + $0x8] sm:$0xff]  ;;  %vm102_vm1 = vcmask 64512  }
   0xc   :  { %v28_v5 = vld [vmem:[%s548_s0 + $0x40] sm:$0xff]  ;;  %v29_v7 = vld [vmem:[%s548_s0 + $0x48] sm:$0xff]  ;;  %v22_v8 = vld [vmem:[%s548_s0 + $0x10] sm:$0xff]  ;;  %vm37_vm0 = vcmp.ge.f32.partialorder %v20_v4, 0.0  ;;  %vm38_vm3 = vcmp.ge.f32.partialorder %v21_v6, 0.0 }
   0xd   :  { %v30_v9 = vld [vmem:[%s548_s0 + $0x50] sm:$0xff]  ;;  %v23_v10 = vld [vmem:[%s548_s0 + $0x18] sm:$0xff]  ;;  %vm45_vm2 = vcmp.ge.f32.partialorder %v28_v5, 0.0  ;;  %vm46_vm4 = vcmp.ge.f32.partialorder %v29_v7, 0.0  ;;  %vm39_vm5 = vcmp.ge.f32.partialorder %v22_v8, 0.0  ;;  %v24_v20 = vld [vmem:[%s548_s0 + $0x20] sm:$0xff] }
   0xe   :  { %v31_v16 = vld [vmem:[%s548_s0 + $0x58] sm:$0xff]  ;;  %vm47_vm6 = vcmp.ge.f32.partialorder %v30_v9, 0.0  ;;  %v32_v21 = vld [vmem:[%s548_s0 + $0x60] sm:$0xff]  ;;  %vm40_vm7 = vcmp.ge.f32.partialorder %v23_v10, 0.0  ;;  %v25_v28 = vld [vmem:[%s548_s0 + $0x28] sm:$0xff]  ;;  %vm41_vm9 = vcmp.ge.f32.partialorder %v24_v20, 0.0 }
   0xf   :  { %vm48_vm8 = vcmp.ge.f32.partialorder %v31_v16, 0.0  ;;  %v33_v32 = vld [vmem:[%s548_s0 + $0x68] sm:$0xff]  ;;  %v26_v33 = vld [vmem:[%s548_s0 + $0x30] sm:$0xff]  ;;  %vm49_vm10 = vcmp.ge.f32.partialorder %v32_v21, 0.0  ;;  %vm42_vm11 = vcmp.ge.f32.partialorder %v25_v28, 0.0  ;;  %v27_v43 = vld [vmem:[%s548_s0 + $0x38] sm:$0xff] }
  0x10   :  { %v34_v34 = vld [vmem:[%s548_s0 + $0x70] sm:$0xff]  ;;  %vm50_vm12 = vcmp.ge.f32.partialorder %v33_v32, 0.0  ;;  %v35_v44 = vld [vmem:[%s548_s0 + $0x78] sm:$0xff]  ;;  %vm43_vm13 = vcmp.ge.f32.partialorder %v26_v33, 0.0  ;;  %vm44_vm15 = vcmp.ge.f32.partialorder %v27_v43, 0.0 }
  0x11   :  { %vm51_vm14 = vcmp.ge.f32.partialorder %v34_v34, 0.0  ;;  %v330_v53 = vld [vmem:[%s550_s2] ss:$0 sm:$0xff]  ;;  %s420_s2 = smov [#allocation3]  }
  0x12   :  { %s318_s23 = sshll.u32 %s420_s2, 4  ;;  %s319_s23 = int_to_ptr.vmem [resolvable:$true] %s318_s23 }
  0x13   :  { %s397_s1 = scalar_lea.vmem %s319_s23, 2048  ;;  %p402_p1 = scmp.lt.s32.totalorder %s319_s23, %s319_s23 }
  0x14   :  { %p398_p0 = scmp.ne.s32.totalorder %s319_s23, %s397_s1  ;;  %p403_p2 = scmp.lt.s32.totalorder %s397_s1, %s397_s1 }
  0x16   :  { %p404_p3 = por %p403_p2, %p402_p1 }
  0x18   :  { %p405_p4 = pnand %p404_p3, %p398_p0 }
  0x85   :  { %v60_v11 = vpop.permute.xlu0 %59 }
  0x86   :  { %v62_v12 = vmul.f32 %v60_v11, %v20_v4  ;;  %v70_v13 = vmul.f32 %v60_v11, %v28_v5  ;;  %v63_v14 = vmul.f32 %v60_v11, %v21_v6  ;;  %v71_v15 = vmul.f32 %v60_v11, %v29_v7 }
  0x87   :  { %v64_v17 = vmul.f32 %v60_v11, %v22_v8  ;;  %v72_v18 = vmul.f32 %v60_v11, %v30_v9  ;;  %v65_v19 = vmul.f32 %v60_v11, %v23_v10  ;;  %v73_v27 = vmul.f32 %v60_v11, %v31_v16 }
  0x88   :  { %v78_v22 = vsel %vm37_vm0, %v20_v4, %v62_v12  ;;  %v86_v23 = vsel %vm45_vm2, %v28_v5, %v70_v13  ;;  %v79_v24 = vsel %vm38_vm3, %v21_v6, %v63_v14  ;;  %v87_v25 = vsel %vm46_vm4, %v29_v7, %v71_v15 }
  0x89   :  { %366 = vmatprep.mubr.msk.f32.mxu0 %vm102_vm1, %v78_v22  ;;  %378 = vmatprep.mubr.msk.f32.mxu1 %vm102_vm1, %v86_v23  ;;  %v80_v26 = vsel %vm39_vm5, %v22_v8, %v64_v17  ;;  %v88_v29 = vsel %vm47_vm6, %v30_v9, %v72_v18  ;;  %v66_v30 = vmul.f32 %v60_v11, %v24_v20  ;;  %vm52_vm0 = vcmp.ge.f32.partialorder %v35_v44, 0.0 }
  0x8a   :  { %367 = vmatmul.mubr.msk.f32.vlgmr.msra.gmra.mxu0 %vm102_vm1, %v79_v24  ;;  %379 = vmatmul.mubr.msk.f32.vlgmr.msra.gmra.mxu1 %vm102_vm1, %v87_v25  ;;  %v74_v31 = vmul.f32 %v60_v11, %v32_v21  ;;  %v81_v35 = vsel %vm40_vm7, %v23_v10, %v65_v19  ;;  %v89_v36 = vsel %vm48_vm8, %v31_v16, %v73_v27  ;;  %vm296_vm2 = vcmask 130048  }
  0x8b   :  { %369 = vmatprep.mubr.msk.f32.mxu0 %vm102_vm1, %v80_v26  ;;  %381 = vmatprep.mubr.msk.f32.mxu1 %vm102_vm1, %v88_v29  ;;  %v67_v37 = vmul.f32 %v60_v11, %v25_v28  ;;  %v75_v38 = vmul.f32 %v60_v11, %v33_v32  ;;  %v68_v39 = vmul.f32 %v60_v11, %v26_v33 }
  0x8c   :  { %v82_v40 = vsel %vm41_vm9, %v24_v20, %v66_v30  ;;  %v90_v41 = vsel %vm49_vm10, %v32_v21, %v74_v31  ;;  %v76_v42 = vmul.f32 %v60_v11, %v34_v34  ;;  %v69_v47 = vmul.f32 %v60_v11, %v27_v43 }
  0x8d   :  { %v83_v45 = vsel %vm42_vm11, %v25_v28, %v67_v37  ;;  %v91_v46 = vsel %vm50_vm12, %v33_v32, %v75_v38  ;;  %v77_v48 = vmul.f32 %v60_v11, %v35_v44  ;;  %v84_v49 = vsel %vm43_vm13, %v26_v33, %v68_v39 }
  0x8e   :  { %370 = vmatmul.mubr.msk.f32.gmra.mxu0 %vm102_vm1, %v81_v35  ;;  %382 = vmatmul.mubr.msk.f32.gmra.mxu1 %vm102_vm1, %v89_v36  ;;  %v92_v50 = vsel %vm51_vm14, %v34_v34, %v76_v42  ;;  %v85_v51 = vsel %vm44_vm15, %v27_v43, %v69_v47 }
  0x8f   :  { %372 = vmatprep.mubr.msk.f32.mxu0 %vm102_vm1, %v82_v40  ;;  %384 = vmatprep.mubr.msk.f32.mxu1 %vm102_vm1, %v90_v41  ;;  %v93_v52 = vsel %vm52_vm0, %v35_v44, %v77_v48 }
  0x92   :  { %373 = vmatmul.mubr.msk.f32.gmra.mxu0 %vm102_vm1, %v83_v45  ;;  %385 = vmatmul.mubr.msk.f32.gmra.mxu1 %vm102_vm1, %v91_v46 }
  0x93   :  { %375 = vmatprep.mubr.msk.f32.mxu0 %vm102_vm1, %v84_v49  ;;  %387 = vmatprep.mubr.msk.f32.mxu1 %vm102_vm1, %v92_v50 }
  0x96   :  { %376 = vmatmul.mubr.msk.f32.gmra.mxu0 %vm102_vm1, %v85_v51  ;;  %388 = vmatmul.mubr.msk.f32.gmra.mxu1 %vm102_vm1, %v93_v52 }
 0x14a   :  { %v368_v54 = vpop.f32.mrf.mxu0  ;;  %v380_v55 = vpop.f32.mrf.mxu1 }
 0x14b   :  { %v223_v56 = vadd.f32 %v368_v54, %v330_v53  ;;  %v263_v57 = vadd.f32 %v380_v55, %v330_v53 }
 0x14c   :  { %v217_v58 = vpop.f32.mrf.mxu0  ;;  %v257_v59 = vpop.f32.mrf.mxu1 }
 0x14d   :  { %298 = vst.msk [vmem:[#allocation3 + $0x8] sm:$0xff] %vm296_vm2, %v223_v56  ;;  %306 = vst.msk [vmem:[#allocation3 + $0x48] sm:$0xff] %vm296_vm2, %v263_v57  ;;  %v218_v60 = vadd.f32 %v330_v53, %v217_v58  ;;  %v258_v61 = vadd.f32 %v330_v53, %v257_v59 }
 0x14e   :  { %v371_v62 = vpop.f32.mrf.mxu0  ;;  %v383_v63 = vpop.f32.mrf.mxu1 }
 0x14f   :  { %297 = vst.msk [vmem:[#allocation3] sm:$0xff] %vm296_vm2, %v218_v60  ;;  %305 = vst.msk [vmem:[#allocation3 + $0x40] sm:$0xff] %vm296_vm2, %v258_v61  ;;  %v233_v0 = vadd.f32 %v371_v62, %v330_v53  ;;  %v273_v1 = vadd.f32 %v383_v63, %v330_v53 }
 0x150   :  { %v227_v2 = vpop.f32.mrf.mxu0  ;;  %v267_v3 = vpop.f32.mrf.mxu1 }
 0x151   :  { %300 = vst.msk [vmem:[#allocation3 + $0x18] sm:$0xff] %vm296_vm2, %v233_v0  ;;  %308 = vst.msk [vmem:[#allocation3 + $0x58] sm:$0xff] %vm296_vm2, %v273_v1  ;;  %v228_v4 = vadd.f32 %v330_v53, %v227_v2  ;;  %v268_v5 = vadd.f32 %v330_v53, %v267_v3 }
 0x152   :  { %v374_v6 = vpop.f32.mrf.mxu0  ;;  %v386_v7 = vpop.f32.mrf.mxu1 }
 0x153   :  { %299 = vst.msk [vmem:[#allocation3 + $0x10] sm:$0xff] %vm296_vm2, %v228_v4  ;;  %307 = vst.msk [vmem:[#allocation3 + $0x50] sm:$0xff] %vm296_vm2, %v268_v5  ;;  %v243_v8 = vadd.f32 %v374_v6, %v330_v53  ;;  %v283_v9 = vadd.f32 %v386_v7, %v330_v53 }
 0x154   :  { %v237_v10 = vpop.f32.mrf.mxu0  ;;  %v277_v11 = vpop.f32.mrf.mxu1 }
 0x155   :  { %302 = vst.msk [vmem:[#allocation3 + $0x28] sm:$0xff] %vm296_vm2, %v243_v8  ;;  %310 = vst.msk [vmem:[#allocation3 + $0x68] sm:$0xff] %vm296_vm2, %v283_v9  ;;  %v238_v12 = vadd.f32 %v330_v53, %v237_v10  ;;  %v278_v13 = vadd.f32 %v330_v53, %v277_v11 }
 0x156   :  { %v377_v14 = vpop.f32.mrf.mxu0  ;;  %v389_v15 = vpop.f32.mrf.mxu1 }
 0x157   :  { %301 = vst.msk [vmem:[#allocation3 + $0x20] sm:$0xff] %vm296_vm2, %v238_v12  ;;  %309 = vst.msk [vmem:[#allocation3 + $0x60] sm:$0xff] %vm296_vm2, %v278_v13  ;;  %v253_v16 = vadd.f32 %v377_v14, %v330_v53  ;;  %v293_v17 = vadd.f32 %v389_v15, %v330_v53 }
 0x158   :  { %v247_v18 = vpop.f32.mrf.mxu0  ;;  %v287_v19 = vpop.f32.mrf.mxu1 }
 0x159   :  { %304 = vst.msk [vmem:[#allocation3 + $0x38] sm:$0xff] %vm296_vm2, %v253_v16  ;;  %312 = vst.msk [vmem:[#allocation3 + $0x78] sm:$0xff] %vm296_vm2, %v293_v17  ;;  %v248_v20 = vadd.f32 %v330_v53, %v247_v18  ;;  %v288_v21 = vadd.f32 %v330_v53, %v287_v19 }
 0x15b   :  { %303 = vst.msk [vmem:[#allocation3 + $0x30] sm:$0xff] %vm296_vm2, %v248_v20  ;;  %311 = vst.msk [vmem:[#allocation3 + $0x70] sm:$0xff] %vm296_vm2, %v288_v21 }
 0x15c   :  { %408 = shalt.err (!%p405_p4)
}
 0x15d   :  { %s421_s24 = smov 128   ;;  %s422_s25 = smov 8  }
 0x15e   :  { %324 = dma.vmem_to_hbm [thread:$0]  %s319_s23, 2048, %s552_s4, [#allocation4], %s421_s24, %s421_s24, %s422_s25  }
 0x15f   :  { %417 = dma.done.wait [#allocation4], 2048  }
 0x160   :  { %418 = vsyncadd [#allocation4], 4294965248 }
 0x161   :  { %328 = vsyncpa [#allocation4], 1 }

// kernel: dual_transformer_forward.10
= control target key start
LH: loop header
LB: loop body
LE: loop exit
PB: predicated region body
PF: predicated region fallthrough
CT: control target
= control target key end

     0   :  { %vm77_vm0 = vcmask 64512   ;;  %v5807_v18 = vmov 0.0   ;;  %vm271_vm1 = vcmask 195584   ;;  %s5809_s17 = smov 16   ;;  %s5810_s22 = smov 120   ;;  %s7130_s5 = inlined_call_operand.vmem [shape: f32[8,24], index: 5, kind: input, shape index: {}]   ;;  %s7131_s0 = inlined_call_operand.vmem [shape: f32[8,16,8], index: 0, kind: input, shape index: {}]   ;;  %s7132_s6 = inlined_call_operand.vmem [shape: f32[8,24], index: 6, kind: input, shape index: {}]   ;;  %s7133_s7 = inlined_call_operand.vmem [shape: f32[1,24], index: 7, kind: input, shape index: {}]   ;;  %s7134_s8 = inlined_call_operand.vmem [shape: f32[1,24], index: 8, kind: input, shape index: {}]   ;;  %s7135_s1 = inlined_call_operand.vmem [shape: f32[8,24], index: 1, kind: input, shape index: {}]   ;;  %s7136_s2 = inlined_call_operand.vmem [shape: f32[8,24], index: 2, kind: input, shape index: {}]   ;;  %s7137_s3 = inlined_call_operand.vmem [shape: f32[1,24], index: 3, kind: input, shape index: {}]   ;;  %s7138_s4 = inlined_call_operand.vmem [shape: f32[1,24], index: 4, kind: input, shape index: {}]   ;;  %s7139_s9 = inlined_call_operand.vmem [shape: f32[8,24], index: 9, kind: input, shape index: {}]   ;;  %s7140_s10 = inlined_call_operand.vmem [shape: f32[8,24], index: 10, kind: input, shape index: {}]   ;;  %s7141_s11 = inlined_call_operand.vmem [shape: f32[8,24], index: 11, kind: input, shape index: {}]   ;;  %s7142_s12 = inlined_call_operand.vmem [shape: f32[1,24], index: 12, kind: input, shape index: {}]   ;;  %s7143_s13 = inlined_call_operand.vmem [shape: f32[1,24], index: 13, kind: input, shape index: {}]   ;;  %s7144_s14 = inlined_call_operand.vmem [shape: f32[1,8], index: 14, kind: input, shape index: {}]   ;;  %s7145_s15 = inlined_call_operand.vmem [shape: f32[1,8], index: 15, kind: input, shape index: {}]   ;;  %s7146_s16 = inlined_call_operand.vmem [shape: f32[8,16,8], index: 16, kind: output, shape index: {}]  }
   0x1   :  { %7147 = sst [smem:[#allocation8_spill]] %s7130_s5  ;;  %v53_v1 = vld [vmem:[%s7131_s0] sm:$0xff]  ;;  %v5905_v2 = vld [vmem:[%s7131_s0 + $0x8] sm:$0xff]  ;;  %v5916_v4 = vld [vmem:[%s7131_s0 + $0x10] sm:$0xff]  ;;  %s5808_s5 = smov 112  }
   0x2   :  { %s7148_s23 = sld [smem:[#allocation8_spill]]  ;;  %5202 = vmatprep.mubr.msk.f32.mxu1 %vm77_vm0, %v53_v1  ;;  %v5911_v3 = vld [vmem:[%s7132_s6] sm:$0xff]  ;;  %5176 = vmatprep.mubr.msk.f32.mxu0 %vm77_vm0, %v53_v1  ;;  %v5928_v5 = vld [vmem:[%s7131_s0 + $0x18] sm:$0xff]  ;;  %v5943_v7 = vld [vmem:[%s7131_s0 + $0x28] sm:$0xff] }
   0x3   :  { %v5933_v6 = vld [vmem:[%s7131_s0 + $0x20] sm:$0xff]  ;;  %v5948_v8 = vld [vmem:[%s7131_s0 + $0x30] sm:$0xff]  ;;  %v5957_v9 = vld [vmem:[%s7131_s0 + $0x38] sm:$0xff] }
   0x4   :  { %v5962_v10 = vld [vmem:[%s7131_s0 + $0x40] sm:$0xff]  ;;  %v5971_v11 = vld [vmem:[%s7131_s0 + $0x48] sm:$0xff]  ;;  %v5976_v12 = vld [vmem:[%s7131_s0 + $0x50] sm:$0xff] }
   0x5   :  { %v5985_v13 = vld [vmem:[%s7131_s0 + $0x58] sm:$0xff]  ;;  %v5990_v14 = vld [vmem:[%s7131_s0 + $0x60] sm:$0xff]  ;;  %v5999_v15 = vld [vmem:[%s7131_s0 + $0x68] sm:$0xff] }
   0x6   :  { %v6004_v16 = vld [vmem:[%s7131_s0 + $0x70] sm:$0xff]  ;;  %v6013_v17 = vld [vmem:[%s7131_s0 + $0x78] sm:$0xff]  ;;  %v4889_v19 = vld [vmem:[%s7133_s7] ss:$0 sm:$0xff] }
   0x7   :  { %v6043_v53 = vld [vmem:[%s7134_s8] ss:$0 sm:$0xff] }
   0x8   :  { %v288_v0 = vld [vmem:[%s7148_s23] sm:$0xff] }
   0x9   :  { %5200 = vmatprep.subr.mxu1 %v288_v0 }
   0xa   :  { %5201 = vmatpush3.msra.mxu1 %v288_v0 }
   0xb   :  { %5203 = vmatmul.mubr.msk.f32.vlgmr.msra.gmra.mxu1 %vm77_vm0, %v5905_v2  ;;  %5231 = vmatprep.subr.mxu1 %v5911_v3 }
   0xc   :  { %5232 = vmatpush3.msra.mxu1 %v5911_v3  ;;  %5205 = vmatprep.mubr.msk.f32.mxu1 %vm77_vm0, %v5916_v4 }
   0xd   :  { %5241 = vmatprep.subr.mxu1 %v5911_v3 }
   0xf   :  { %5206 = vmatmul.mubr.msk.f32.gmra.mxu1 %vm77_vm0, %v5928_v5 }
  0x10   :  { %5208 = vmatprep.mubr.msk.f32.mxu1 %vm77_vm0, %v5933_v6 }
  0x13   :  { %5209 = vmatmul.mubr.msk.f32.gmra.mxu1 %vm77_vm0, %v5943_v7 }
  0x14   :  { %5211 = vmatprep.mubr.msk.f32.mxu1 %vm77_vm0, %v5948_v8 }
  0x17   :  { %5212 = vmatmul.mubr.msk.f32.gmra.mxu1 %vm77_vm0, %v5957_v9 }
  0x18   :  { %5214 = vmatprep.mubr.msk.f32.mxu1 %vm77_vm0, %v5962_v10 }
  0x1b   :  { %5215 = vmatmul.mubr.msk.f32.gmra.mxu1 %vm77_vm0, %v5971_v11 }
  0x1c   :  { %5217 = vmatprep.mubr.msk.f32.mxu1 %vm77_vm0, %v5976_v12 }
  0x1f   :  { %5218 = vmatmul.mubr.msk.f32.gmra.mxu1 %vm77_vm0, %v5985_v13 }
  0x20   :  { %5220 = vmatprep.mubr.msk.f32.mxu1 %vm77_vm0, %v5990_v14 }
  0x23   :  { %5221 = vmatmul.mubr.msk.f32.gmra.mxu1 %vm77_vm0, %v5999_v15 }
  0x24   :  { %5223 = vmatprep.mubr.msk.f32.mxu1 %vm77_vm0, %v6004_v16 }
  0x27   :  { %5224 = vmatmul.mubr.msk.f32.gmra.mxu1 %vm77_vm0, %v6013_v17 }
  0x28   :  { %5233 = vmatprep.mubr.f32.mxu1 %v5807_v18 }
  0x2b   :  { %5234 = vmatmul.mubr.f32.vlgmr.msra.gmra.mxu1 %v5807_v18 }
  0x2c   :  { %5242 = vmatpush3.msra.mxu1 %v5911_v3 }
  0x2d   :  { %5251 = vmatprep.subr.mxu1 %v5911_v3 }
  0xcb   :  { %v5204_v20 = vpop.f32.mrf.mxu1 }
  0xcc   :  { %v368_v21 = vadd.f32 %v5204_v20, %v4889_v19 }
  0xcd   :  { %v362_v22 = vpop.f32.mrf.mxu1 }
  0xce   :  { %442 = vst.msk [vmem:[#allocation3 + $0x8] sm:$0xff] %vm271_vm1, %v368_v21  ;;  %v363_v23 = vadd.f32 %v4889_v19, %v362_v22 }
  0xcf   :  { %v5207_v24 = vpop.f32.mrf.mxu1 }
  0xd0   :  { %441 = vst.msk [vmem:[#allocation3] sm:$0xff] %vm271_vm1, %v363_v23  ;;  %v378_v25 = vadd.f32 %v5207_v24, %v4889_v19 }
  0xd1   :  { %v372_v26 = vpop.f32.mrf.mxu1 }
  0xd2   :  { %444 = vst.msk [vmem:[#allocation3 + $0x18] sm:$0xff] %vm271_vm1, %v378_v25  ;;  %v373_v27 = vadd.f32 %v4889_v19, %v372_v26 }
  0xd3   :  { %v5210_v28 = vpop.f32.mrf.mxu1 }
  0xd4   :  { %443 = vst.msk [vmem:[#allocation3 + $0x10] sm:$0xff] %vm271_vm1, %v373_v27  ;;  %v388_v29 = vadd.f32 %v5210_v28, %v4889_v19 }
  0xd5   :  { %v382_v30 = vpop.f32.mrf.mxu1 }
  0xd6   :  { %446 = vst.msk [vmem:[#allocation3 + $0x28] sm:$0xff] %vm271_vm1, %v388_v29  ;;  %v383_v31 = vadd.f32 %v4889_v19, %v382_v30  ;;  %v69_v30 = vld [vmem:[%s7135_s1] sm:$0xff] }
  0xd7   :  { %v5213_v32 = vpop.f32.mrf.mxu1  ;;  %5174 = vmatprep.subr.mxu0 %v69_v30 }
  0xd8   :  { %445 = vst.msk [vmem:[#allocation3 + $0x20] sm:$0xff] %vm271_vm1, %v383_v31  ;;  %v398_v33 = vadd.f32 %v5213_v32, %v4889_v19  ;;  %v6057_v31 = vld [vmem:[%s7136_s2] sm:$0xff]  ;;  %5175 = vmatpush3.msra.mxu0 %v69_v30 }
  0xd9   :  { %v392_v34 = vpop.f32.mrf.mxu1  ;;  %5177 = vmatmul.mubr.msk.f32.vlgmr.msra.gmra.mxu0 %vm77_vm0, %v5905_v2  ;;  %5226 = vmatprep.subr.mxu0 %v6057_v31 }
  0xda   :  { %448 = vst.msk [vmem:[#allocation3 + $0x38] sm:$0xff] %vm271_vm1, %v398_v33  ;;  %v393_v35 = vadd.f32 %v4889_v19, %v392_v34  ;;  %5179 = vmatprep.mubr.msk.f32.mxu0 %vm77_vm0, %v5916_v4  ;;  %5227 = vmatpush3.msra.mxu0 %v6057_v31 }
  0xdb   :  { %v5216_v36 = vpop.f32.mrf.mxu1  ;;  %5236 = vmatprep.subr.mxu0 %v6057_v31 }
  0xdc   :  { %447 = vst.msk [vmem:[#allocation3 + $0x30] sm:$0xff] %vm271_vm1, %v393_v35  ;;  %v408_v37 = vadd.f32 %v5216_v36, %v4889_v19 }
  0xdd   :  { %v402_v38 = vpop.f32.mrf.mxu1  ;;  %5180 = vmatmul.mubr.msk.f32.gmra.mxu0 %vm77_vm0, %v5928_v5 }
  0xde   :  { %450 = vst.msk [vmem:[#allocation3 + $0x48] sm:$0xff] %vm271_vm1, %v408_v37  ;;  %v403_v39 = vadd.f32 %v4889_v19, %v402_v38  ;;  %5182 = vmatprep.mubr.msk.f32.mxu0 %vm77_vm0, %v5933_v6 }
  0xdf   :  { %v5219_v40 = vpop.f32.mrf.mxu1 }
  0xe0   :  { %449 = vst.msk [vmem:[#allocation3 + $0x40] sm:$0xff] %vm271_vm1, %v403_v39  ;;  %v418_v41 = vadd.f32 %v5219_v40, %v4889_v19 }
  0xe1   :  { %v412_v42 = vpop.f32.mrf.mxu1  ;;  %5183 = vmatmul.mubr.msk.f32.gmra.mxu0 %vm77_vm0, %v5943_v7 }
  0xe2   :  { %452 = vst.msk [vmem:[#allocation3 + $0x58] sm:$0xff] %vm271_vm1, %v418_v41  ;;  %v413_v43 = vadd.f32 %v4889_v19, %v412_v42  ;;  %5185 = vmatprep.mubr.msk.f32.mxu0 %vm77_vm0, %v5948_v8 }
  0xe3   :  { %v5222_v44 = vpop.f32.mrf.mxu1 }
  0xe4   :  { %451 = vst.msk [vmem:[#allocation3 + $0x50] sm:$0xff] %vm271_vm1, %v413_v43  ;;  %v428_v45 = vadd.f32 %v5222_v44, %v4889_v19 }
  0xe5   :  { %v422_v46 = vpop.f32.mrf.mxu1  ;;  %5186 = vmatmul.mubr.msk.f32.gmra.mxu0 %vm77_vm0, %v5957_v9 }
  0xe6   :  { %454 = vst.msk [vmem:[#allocation3 + $0x68] sm:$0xff] %vm271_vm1, %v428_v45  ;;  %v423_v47 = vadd.f32 %v4889_v19, %v422_v46  ;;  %5188 = vmatprep.mubr.msk.f32.mxu0 %vm77_vm0, %v5962_v10 }
  0xe7   :  { %v5225_v48 = vpop.f32.mrf.mxu1 }
  0xe8   :  { %453 = vst.msk [vmem:[#allocation3 + $0x60] sm:$0xff] %vm271_vm1, %v423_v47  ;;  %v438_v49 = vadd.f32 %v5225_v48, %v4889_v19 }
  0xe9   :  { %v432_v50 = vpop.f32.mrf.mxu1  ;;  %5189 = vmatmul.mubr.msk.f32.gmra.mxu0 %vm77_vm0, %v5971_v11 }
  0xea   :  { %456 = vst.msk [vmem:[#allocation3 + $0x78] sm:$0xff] %vm271_vm1, %v438_v49  ;;  %v433_v51 = vadd.f32 %v4889_v19, %v432_v50  ;;  %5191 = vmatprep.mubr.msk.f32.mxu0 %vm77_vm0, %v5976_v12 }
  0xeb   :  { %v5235_v52 = vpop.f32.mrf.mxu1 }
  0xec   :  { %455 = vst.msk [vmem:[#allocation3 + $0x70] sm:$0xff] %vm271_vm1, %v433_v51  ;;  %v692_v56 = vadd.f32 %v5235_v52, %v6043_v53 }
  0xed   :  { %v686_v54 = vpop.f32.mrf.mxu1  ;;  %5192 = vmatmul.mubr.msk.f32.gmra.mxu0 %vm77_vm0, %v5985_v13  ;;  %v4872_v13 = vld [vmem:[%s7137_s3] ss:$0 sm:$0xff] }
  0xee   :  { %v687_v55 = vadd.f32 %v6043_v53, %v686_v54  ;;  %5194 = vmatprep.mubr.msk.f32.mxu0 %vm77_vm0, %v5990_v14 }
  0xef   :  { %v904_v30 = vld [vmem:[#allocation3 + $0x60] sm:$0xff] }
  0xf0   :  { %711 = vrot.lane.b32.xlu0 %v687_v55, %s5808_s5 }
  0xf1   :  { %v613_v59 = vld [vmem:[#allocation3 + $0x78] sm:$0xff]  ;;  %5195 = vmatmul.mubr.msk.f32.gmra.mxu0 %vm77_vm0, %v5999_v15 }
  0xf2   :  { %v696_v60 = vadd.f32 %v692_v56, %v613_v59  ;;  %5197 = vmatprep.mubr.msk.f32.mxu0 %vm77_vm0, %v6004_v16 }
  0xf3   :  { %v612_v57 = vld [vmem:[#allocation3 + $0x70] sm:$0xff] }
  0xf4   :  { %713 = vrot.lane.b32.xlu0 %v692_v56, %s5808_s5  ;;  %v695_v58 = vadd.f32 %v687_v55, %v612_v57  ;;  %v4911_v62 = vmul.f32 -1.442695, %v696_v60 }
  0xf5   :  { %5198 = vmatmul.mubr.msk.f32.gmra.mxu0 %vm77_vm0, %v6013_v17 }
  0xf6   :  { %v4910_v61 = vmul.f32 -1.442695, %v695_v58  ;;  %5228 = vmatprep.mubr.f32.mxu0 %v5807_v18 }
  0xf8   :  { %5402 = vpow2.f32 %v4910_v61 }
  0xf9   :  { %5404 = vpow2.f32 %v4911_v62  ;;  %5229 = vmatmul.mubr.f32.vlgmr.msra.gmra.mxu0 %v5807_v18 }
  0xfa   :  { %5237 = vmatpush3.msra.mxu0 %v6057_v31 }
  0xfb   :  { %5246 = vmatprep.subr.mxu0 %v6057_v31 }
 0x105   :  { %v5403_v63 = vpop.eup %5402 }
 0x106   :  { %v703_v0 = vadd.f32 1.0, %v5403_v63  ;;  %v5405_v1 = vpop.eup %5404 }
 0x107   :  { %v704_v19 = vadd.f32 1.0, %v5405_v1 }
 0x108   :  { %5406 = vrcp.f32 %v703_v0 }
 0x109   :  { %5408 = vrcp.f32 %v704_v19 }
 0x115   :  { %v5407_v20 = vpop.eup %5406 }
 0x116   :  { %v5409_v23 = vpop.eup %5408  ;;  %v731_v2 = vsub.f32 1.0, %v5407_v20  ;;  %v743_v5 = vmul.f32 0.0, %v5407_v20 }
 0x117   :  { %v732_v8 = vsub.f32 1.0, %v5409_v23  ;;  %v744_v10 = vmul.f32 0.0, %v5409_v23 }
 0x162   :  { %v712_v21 = vpop.permute.xlu0 %711 }
 0x163   :  { %v717_v22 = vmul.f32 %v5407_v20, %v712_v21  ;;  %v6135_v21 = vld [vmem:[%s7138_s4] ss:$0 sm:$0xff] }
 0x165   :  { %721 = vrot.lane.b32.xlu1 %v717_v22, %s5809_s17 }
 0x166   :  { %v714_v24 = vpop.permute.xlu0 %713 }
 0x167   :  { %v718_v25 = vmul.f32 %v5409_v23, %v714_v24 }
 0x169   :  { %723 = vrot.lane.b32.xlu1 %v718_v25, %s5809_s17 }
 0x199   :  { %v5178_v14 = vpop.f32.mrf.mxu0 }
 0x19a   :  { %v198_v15 = vadd.f32 %v5178_v14, %v4872_v13 }
 0x19b   :  { %v192_v16 = vpop.f32.mrf.mxu0 }
 0x19c   :  { %273 = vst.msk [vmem:[#allocation2 + $0x8] sm:$0xff] %vm271_vm1, %v198_v15  ;;  %v193_v17 = vadd.f32 %v4872_v13, %v192_v16 }
 0x19d   :  { %v5181_v34 = vpop.f32.mrf.mxu0 }
 0x19e   :  { %272 = vst.msk [vmem:[#allocation2] sm:$0xff] %vm271_vm1, %v193_v17  ;;  %v208_v35 = vadd.f32 %v5181_v34, %v4872_v13 }
 0x19f   :  { %v202_v36 = vpop.f32.mrf.mxu0 }
 0x1a0   :  { %275 = vst.msk [vmem:[#allocation2 + $0x18] sm:$0xff] %vm271_vm1, %v208_v35  ;;  %v203_v37 = vadd.f32 %v4872_v13, %v202_v36 }
 0x1a1   :  { %v5184_v38 = vpop.f32.mrf.mxu0 }
 0x1a2   :  { %274 = vst.msk [vmem:[#allocation2 + $0x10] sm:$0xff] %vm271_vm1, %v203_v37  ;;  %v218_v39 = vadd.f32 %v5184_v38, %v4872_v13 }
 0x1a3   :  { %v212_v40 = vpop.f32.mrf.mxu0 }
 0x1a4   :  { %277 = vst.msk [vmem:[#allocation2 + $0x28] sm:$0xff] %vm271_vm1, %v218_v39  ;;  %v213_v41 = vadd.f32 %v4872_v13, %v212_v40 }
 0x1a5   :  { %v5187_v42 = vpop.f32.mrf.mxu0 }
 0x1a6   :  { %276 = vst.msk [vmem:[#allocation2 + $0x20] sm:$0xff] %vm271_vm1, %v213_v41  ;;  %v228_v43 = vadd.f32 %v5187_v42, %v4872_v13 }
 0x1a7   :  { %v222_v44 = vpop.f32.mrf.mxu0 }
 0x1a8   :  { %279 = vst.msk [vmem:[#allocation2 + $0x38] sm:$0xff] %vm271_vm1, %v228_v43  ;;  %v223_v45 = vadd.f32 %v4872_v13, %v222_v44 }
 0x1a9   :  { %v5190_v46 = vpop.f32.mrf.mxu0 }
 0x1aa   :  { %278 = vst.msk [vmem:[#allocation2 + $0x30] sm:$0xff] %vm271_vm1, %v223_v45  ;;  %v238_v47 = vadd.f32 %v5190_v46, %v4872_v13 }
 0x1ab   :  { %v232_v48 = vpop.f32.mrf.mxu0 }
 0x1ac   :  { %281 = vst.msk [vmem:[#allocation2 + $0x48] sm:$0xff] %vm271_vm1, %v238_v47  ;;  %v233_v49 = vadd.f32 %v4872_v13, %v232_v48 }
 0x1ad   :  { %v5193_v50 = vpop.f32.mrf.mxu0 }
 0x1ae   :  { %280 = vst.msk [vmem:[#allocation2 + $0x40] sm:$0xff] %vm271_vm1, %v233_v49  ;;  %v248_v51 = vadd.f32 %v5193_v50, %v4872_v13 }
 0x1af   :  { %v242_v52 = vpop.f32.mrf.mxu0 }
 0x1b0   :  { %283 = vst.msk [vmem:[#allocation2 + $0x58] sm:$0xff] %vm271_vm1, %v248_v51  ;;  %v243_v54 = vadd.f32 %v4872_v13, %v242_v52 }
 0x1b1   :  { %v5196_v55 = vpop.f32.mrf.mxu0 }
 0x1b2   :  { %282 = vst.msk [vmem:[#allocation2 + $0x50] sm:$0xff] %vm271_vm1, %v243_v54  ;;  %v258_v56 = vadd.f32 %v5196_v55, %v4872_v13 }
 0x1b4   :  { %285 = vst.msk [vmem:[#allocation2 + $0x68] sm:$0xff] %vm271_vm1, %v258_v56 }
 0x1d7   :  { %v722_v26 = vpop.permute.xlu1 %721 }
 0x1d8   :  { %v727_v27 = vadd.f32 %v722_v26, %v612_v57  ;;  %v252_v57 = vpop.f32.mrf.mxu0 }
 0x1d9   :  { %v253_v58 = vadd.f32 %v4872_v13, %v252_v57 }
 0x1da   :  { %5410 = vtanh.f32 %v727_v27  ;;  %v905_v27 = vld [vmem:[#allocation3 + $0x68] sm:$0xff] }
 0x1db   :  { %v724_v28 = vpop.permute.xlu1 %723  ;;  %284 = vst.msk [vmem:[#allocation2 + $0x60] sm:$0xff] %vm271_vm1, %v253_v58 }
 0x1dc   :  { %v728_v29 = vadd.f32 %v724_v28, %v613_v59  ;;  %v5199_v59 = vpop.f32.mrf.mxu0 }
 0x1dd   :  { %v268_v60 = vadd.f32 %v5199_v59, %v4872_v13 }
 0x1de   :  { %5412 = vtanh.f32 %v728_v29  ;;  %v262_v61 = vpop.f32.mrf.mxu0  ;;  %v464_v29 = vld [vmem:[#allocation2 + $0x8] sm:$0xff] }
 0x1df   :  { %287 = vst.msk [vmem:[#allocation2 + $0x78] sm:$0xff] %vm271_vm1, %v268_v60  ;;  %v263_v62 = vadd.f32 %v4872_v13, %v262_v61 }
 0x1e0   :  { %v5230_v1 = vpop.f32.mrf.mxu0 }
 0x1e1   :  { %286 = vst.msk [vmem:[#allocation2 + $0x70] sm:$0xff] %vm271_vm1, %v263_v62  ;;  %v546_v25 = vadd.f32 %v5230_v1, %v6135_v21 }
 0x1e2   :  { %v540_v24 = vpop.f32.mrf.mxu0 }
 0x1e3   :  { %v541_v26 = vadd.f32 %v6135_v21, %v540_v24 }
 0x1e7   :  { %v5411_v32 = vpop.eup %5410 }
 0x1e8   :  { %735 = vrot.lane.b32.xlu0 %v5411_v32, %s5810_s22 }
 0x1eb   :  { %v5413_v33 = vpop.eup %5412 }
 0x1ec   :  { %737 = vrot.lane.b32.xlu1 %v5413_v33, %s5810_s22  ;;  %v463_v33 = vld [vmem:[#allocation2] sm:$0xff] }
 0x25a   :  { %v736_v4 = vpop.permute.xlu0 %735 }
 0x25b   :  { %v741_v6 = vmul.f32 %v736_v4, %v731_v2  ;;  %v550_v2 = vadd.f32 %v546_v25, %v464_v29 }
 0x25d   :  { %v6098_v7 = vadd.f32 %v743_v5, %v741_v6  ;;  %v549_v5 = vadd.f32 %v541_v26, %v463_v33 }
 0x25e   :  { %v738_v9 = vpop.permute.xlu1 %737 }
 0x25f   :  { %v742_v11 = vmul.f32 %v738_v9, %v732_v8  ;;  %749 = vrot.lane.b32.xlu0 %v6098_v7, %s5810_s22  ;;  %v4908_v8 = vmul.f32 -1.442695, %v550_v2  ;;  %v4907_v9 = vmul.f32 -1.442695, %v549_v5 }
 0x261   :  { %v6102_v12 = vadd.f32 %v744_v10, %v742_v11 }
 0x263   :  { %751 = vrot.lane.b32.xlu1 %v6102_v12, %s5810_s22 }
 0x2d1   :  { %v750_v63 = vpop.permute.xlu0 %749 }
 0x2d2   :  { %756 = vst.msk [vmem:[#allocation6 + $0x70] sm:$0xff] %vm77_vm0, %v750_v63  ;;  %5243 = vmatprep.mubr.msk.f32.mxu1 %vm77_vm0, %v750_v63 }
 0x2d5   :  { %v752_v0 = vpop.permute.xlu1 %751 }
 0x2d6   :  { %757 = vst.msk [vmem:[#allocation6 + $0x78] sm:$0xff] %vm77_vm0, %v752_v0  ;;  %5244 = vmatmul.mubr.msk.f32.vlgmr.msra.gmra.mxu1 %vm77_vm0, %v752_v0 }
 0x2d7   :  { %5252 = vmatpush3.msra.mxu1 %v5911_v3 }
 0x2d8   :  { %5261 = vmatprep.subr.mxu1 %v5911_v3 }
 0x396   :  { %v5245_v19 = vpop.f32.mrf.mxu1 }
 0x397   :  { %v982_v20 = vadd.f32 %v5245_v19, %v6043_v53 }
 0x398   :  { %v976_v22 = vpop.f32.mrf.mxu1 }
 0x399   :  { %v977_v23 = vadd.f32 %v6043_v53, %v976_v22  ;;  %1003 = vrot.lane.b32.xlu1 %v982_v20, %s5808_s5  ;;  %v986_v28 = vadd.f32 %v982_v20, %v905_v27 }
 0x39b   :  { %1001 = vrot.lane.b32.xlu0 %v977_v23, %s5808_s5  ;;  %v985_v32 = vadd.f32 %v977_v23, %v904_v30  ;;  %v4919_v4 = vmul.f32 -1.442695, %v986_v28 }
 0x39d   :  { %567 = vrot.lane.b32.xlu1 %v546_v25, %s5808_s5  ;;  %v4918_v6 = vmul.f32 -1.442695, %v985_v32  ;;  %5414 = vpow2.f32 %v4919_v4 }
 0x39f   :  { %565 = vrot.lane.b32.xlu0 %v541_v26, %s5808_s5  ;;  %5416 = vpow2.f32 %v4918_v6 }
 0x3a0   :  { %5418 = vpow2.f32 %v4908_v8 }
 0x3a1   :  { %5420 = vpow2.f32 %v4907_v9 }
 0x3aa   :  { %v5415_v10 = vpop.eup %5414 }
 0x3ab   :  { %v994_v13 = vadd.f32 1.0, %v5415_v10 }
 0x3ac   :  { %v5417_v11 = vpop.eup %5416 }
 0x3ad   :  { %v5419_v14 = vpop.eup %5418  ;;  %v993_v15 = vadd.f32 1.0, %v5417_v11  ;;  %5422 = vrcp.f32 %v994_v13 }
 0x3ae   :  { %v5421_v16 = vpop.eup %5420  ;;  %v558_v17 = vadd.f32 1.0, %v5419_v14 }
 0x3af   :  { %v557_v34 = vadd.f32 1.0, %v5421_v16  ;;  %5424 = vrcp.f32 %v993_v15  ;;  %v1195_v16 = vld [vmem:[#allocation3 + $0x58] sm:$0xff] }
 0x3b0   :  { %5426 = vrcp.f32 %v558_v17 }
 0x3b1   :  { %5428 = vrcp.f32 %v557_v34  ;;  %v1194_v34 = vld [vmem:[#allocation3 + $0x50] sm:$0xff] }
 0x3ba   :  { %v5423_v35 = vpop.eup %5422 }
 0x3bb   :  { %v1022_v60 = vsub.f32 1.0, %v5423_v35  ;;  %v1034_v62 = vmul.f32 %v5423_v35, %v6102_v12 }
 0x3bc   :  { %v5425_v38 = vpop.eup %5424 }
 0x3bd   :  { %v5427_v41 = vpop.eup %5426  ;;  %v1021_v0 = vsub.f32 1.0, %v5425_v38  ;;  %v1033_v20 = vmul.f32 %v5425_v38, %v6098_v7 }
 0x3be   :  { %v5429_v44 = vpop.eup %5428  ;;  %v586_v23 = vsub.f32 1.0, %v5427_v41  ;;  %v598_v26 = vmul.f32 0.0, %v5427_v41 }
 0x3bf   :  { %v585_v28 = vsub.f32 1.0, %v5429_v44 }
 0x40b   :  { %v1004_v36 = vpop.permute.xlu1 %1003 }
 0x40c   :  { %v1008_v37 = vmul.f32 %v5423_v35, %v1004_v36  ;;  %v760_v36 = vld [vmem:[#allocation2 + $0x18] sm:$0xff] }
 0x40d   :  { %v1002_v39 = vpop.permute.xlu0 %1001 }
 0x40e   :  { %v1007_v40 = vmul.f32 %v5425_v38, %v1002_v39  ;;  %1013 = vrot.lane.b32.xlu1 %v1008_v37, %s5809_s17  ;;  %v759_v39 = vld [vmem:[#allocation2 + $0x10] sm:$0xff] }
 0x40f   :  { %v568_v42 = vpop.permute.xlu1 %567 }
 0x410   :  { %v572_v43 = vmul.f32 %v5427_v41, %v568_v42  ;;  %1011 = vrot.lane.b32.xlu0 %v1007_v40, %s5809_s17 }
 0x411   :  { %v566_v45 = vpop.permute.xlu0 %565 }
 0x412   :  { %v571_v46 = vmul.f32 %v5429_v44, %v566_v45  ;;  %577 = vrot.lane.b32.xlu1 %v572_v43, %s5809_s17 }
 0x414   :  { %575 = vrot.lane.b32.xlu0 %v571_v46, %s5809_s17 }
 0x480   :  { %v1014_v47 = vpop.permute.xlu1 %1013 }
 0x481   :  { %v1018_v48 = vadd.f32 %v1014_v47, %v905_v27 }
 0x482   :  { %v1012_v49 = vpop.permute.xlu0 %1011 }
 0x483   :  { %5430 = vtanh.f32 %v1018_v48  ;;  %v1017_v50 = vadd.f32 %v1012_v49, %v904_v30  ;;  %v597_v30 = vmul.f32 0.0, %v5429_v44 }
 0x484   :  { %v578_v51 = vpop.permute.xlu1 %577 }
 0x485   :  { %5432 = vtanh.f32 %v1017_v50  ;;  %v582_v52 = vadd.f32 %v578_v51, %v464_v29 }
 0x486   :  { %v576_v54 = vpop.permute.xlu0 %575 }
 0x487   :  { %5434 = vtanh.f32 %v582_v52  ;;  %v581_v55 = vadd.f32 %v576_v54, %v463_v33 }
 0x489   :  { %5436 = vtanh.f32 %v581_v55 }
 0x490   :  { %v5431_v56 = vpop.eup %5430 }
 0x491   :  { %1027 = vrot.lane.b32.xlu1 %v5431_v56, %s5810_s22 }
 0x492   :  { %v5433_v57 = vpop.eup %5432 }
 0x493   :  { %1025 = vrot.lane.b32.xlu0 %v5433_v57, %s5810_s22 }
 0x494   :  { %v5435_v58 = vpop.eup %5434 }
 0x495   :  { %591 = vrot.lane.b32.xlu1 %v5435_v58, %s5810_s22 }
 0x496   :  { %v5437_v59 = vpop.eup %5436 }
 0x497   :  { %589 = vrot.lane.b32.xlu0 %v5437_v59, %s5810_s22 }
 0x503   :  { %v1028_v61 = vpop.permute.xlu1 %1027 }
 0x504   :  { %v1032_v63 = vmul.f32 %v1028_v61, %v1022_v60 }
 0x505   :  { %v1026_v1 = vpop.permute.xlu0 %1025 }
 0x506   :  { %v6153_v19 = vadd.f32 %v1034_v62, %v1032_v63  ;;  %v1031_v22 = vmul.f32 %v1026_v1, %v1021_v0 }
 0x507   :  { %v592_v24 = vpop.permute.xlu1 %591 }
 0x508   :  { %v6156_v25 = vadd.f32 %v1033_v20, %v1031_v22  ;;  %v596_v27 = vmul.f32 %v592_v24, %v586_v23  ;;  %1041 = vrot.lane.b32.xlu1 %v6153_v19, %s5810_s22 }
 0x509   :  { %v590_v29 = vpop.permute.xlu0 %589 }
 0x50a   :  { %v6160_v12 = vadd.f32 %v598_v26, %v596_v27  ;;  %v595_v32 = vmul.f32 %v590_v29, %v585_v28  ;;  %1039 = vrot.lane.b32.xlu0 %v6156_v25, %s5810_s22 }
 0x50c   :  { %v6164_v7 = vadd.f32 %v597_v30, %v595_v32  ;;  %605 = vrot.lane.b32.xlu1 %v6160_v12, %s5810_s22 }
 0x50e   :  { %603 = vrot.lane.b32.xlu0 %v6164_v7, %s5810_s22 }
 0x57a   :  { %v1042_v33 = vpop.permute.xlu1 %1041 }
 0x57b   :  { %1047 = vst.msk [vmem:[#allocation6 + $0x68] sm:$0xff] %vm77_vm0, %v1042_v33 }
 0x57c   :  { %v1040_v2 = vpop.permute.xlu0 %1039 }
 0x57d   :  { %1046 = vst.msk [vmem:[#allocation6 + $0x60] sm:$0xff] %vm77_vm0, %v1040_v2  ;;  %5253 = vmatprep.mubr.msk.f32.mxu1 %vm77_vm0, %v1040_v2 }
 0x57e   :  { %v606_v4 = vpop.permute.xlu1 %605  ;;  %5254 = vmatmul.mubr.msk.f32.vlgmr.msra.gmra.mxu1 %vm77_vm0, %v1042_v33 }
 0x57f   :  { %610 = vst.msk [vmem:[#allocation5 + $0x8] sm:$0xff] %vm77_vm0, %v606_v4  ;;  %5262 = vmatpush3.msra.mxu1 %v5911_v3 }
 0x580   :  { %v604_v5 = vpop.permute.xlu0 %603  ;;  %5271 = vmatprep.subr.mxu1 %v5911_v3 }
 0x581   :  { %609 = vst.msk [vmem:[#allocation5] sm:$0xff] %vm77_vm0, %v604_v5  ;;  %5238 = vmatprep.mubr.msk.f32.mxu0 %vm77_vm0, %v604_v5 }
 0x582   :  { %5239 = vmatmul.mubr.msk.f32.vlgmr.msra.gmra.mxu0 %vm77_vm0, %v606_v4 }
 0x583   :  { %5247 = vmatpush3.msra.mxu0 %v6057_v31 }
 0x584   :  { %5256 = vmatprep.subr.mxu0 %v6057_v31 }
 0x63e   :  { %v5255_v6 = vpop.f32.mrf.mxu1 }
 0x63f   :  { %v1272_v8 = vadd.f32 %v5255_v6, %v6043_v53 }
 0x640   :  { %v1266_v9 = vpop.f32.mrf.mxu1 }
 0x641   :  { %v1267_v10 = vadd.f32 %v6043_v53, %v1266_v9  ;;  %1293 = vrot.lane.b32.xlu1 %v1272_v8, %s5808_s5  ;;  %v1276_v17 = vadd.f32 %v1272_v8, %v1195_v16 }
 0x642   :  { %v5240_v11 = vpop.f32.mrf.mxu0 }
 0x643   :  { %v837_v13 = vadd.f32 %v5240_v11, %v6135_v21  ;;  %1291 = vrot.lane.b32.xlu0 %v1267_v10, %s5808_s5  ;;  %v1275_v35 = vadd.f32 %v1267_v10, %v1194_v34  ;;  %v4927_v37 = vmul.f32 -1.442695, %v1276_v17 }
 0x644   :  { %v831_v14 = vpop.f32.mrf.mxu0 }
 0x645   :  { %v832_v15 = vadd.f32 %v6135_v21, %v831_v14  ;;  %858 = vrot.lane.b32.xlu1 %v837_v13, %s5808_s5  ;;  %v841_v38 = vadd.f32 %v837_v13, %v760_v36  ;;  %v4926_v40 = vmul.f32 -1.442695, %v1275_v35  ;;  %5438 = vpow2.f32 %v4927_v37 }
 0x647   :  { %856 = vrot.lane.b32.xlu0 %v832_v15, %s5808_s5  ;;  %v840_v41 = vadd.f32 %v832_v15, %v759_v39  ;;  %v4915_v42 = vmul.f32 -1.442695, %v841_v38  ;;  %5440 = vpow2.f32 %v4926_v40 }
 0x649   :  { %v4914_v43 = vmul.f32 -1.442695, %v840_v41  ;;  %5442 = vpow2.f32 %v4915_v42 }
 0x64b   :  { %5444 = vpow2.f32 %v4914_v43 }
 0x652   :  { %v5439_v44 = vpop.eup %5438 }
 0x653   :  { %v1284_v46 = vadd.f32 1.0, %v5439_v44 }
 0x654   :  { %v5441_v45 = vpop.eup %5440 }
 0x655   :  { %v1283_v48 = vadd.f32 1.0, %v5441_v45  ;;  %5446 = vrcp.f32 %v1284_v46 }
 0x656   :  { %v5443_v47 = vpop.eup %5442 }
 0x657   :  { %v849_v50 = vadd.f32 1.0, %v5443_v47  ;;  %5448 = vrcp.f32 %v1283_v48  ;;  %v1485_v48 = vld [vmem:[#allocation3 + $0x48] sm:$0xff] }
 0x658   :  { %v5445_v49 = vpop.eup %5444 }
 0x659   :  { %v848_v51 = vadd.f32 1.0, %v5445_v49  ;;  %5450 = vrcp.f32 %v849_v50  ;;  %v1484_v50 = vld [vmem:[#allocation3 + $0x40] sm:$0xff] }
 0x65b   :  { %5452 = vrcp.f32 %v848_v51 }
 0x662   :  { %v5447_v52 = vpop.eup %5446 }
 0x663   :  { %v1312_v2 = vsub.f32 1.0, %v5447_v52  ;;  %v1324_v5 = vmul.f32 %v5447_v52, %v6153_v19 }
 0x664   :  { %v5449_v56 = vpop.eup %5448 }
 0x665   :  { %v1311_v8 = vsub.f32 1.0, %v5449_v56  ;;  %v1323_v11 = vmul.f32 %v5449_v56, %v6156_v25 }
 0x666   :  { %v5451_v59 = vpop.eup %5450 }
 0x667   :  { %v877_v14 = vsub.f32 1.0, %v5451_v59  ;;  %v889_v17 = vmul.f32 %v5451_v59, %v6160_v12 }
 0x668   :  { %v5453_v62 = vpop.eup %5452 }
 0x669   :  { %v876_v35 = vsub.f32 1.0, %v5453_v62  ;;  %v888_v37 = vmul.f32 %v5453_v62, %v6164_v7 }
 0x6b3   :  { %v1294_v54 = vpop.permute.xlu1 %1293 }
 0x6b4   :  { %v1298_v55 = vmul.f32 %v5447_v52, %v1294_v54  ;;  %v1050_v52 = vld [vmem:[#allocation2 + $0x28] sm:$0xff] }
 0x6b5   :  { %v1292_v57 = vpop.permute.xlu0 %1291 }
 0x6b6   :  { %v1297_v58 = vmul.f32 %v5449_v56, %v1292_v57  ;;  %1303 = vrot.lane.b32.xlu1 %v1298_v55, %s5809_s17  ;;  %v1049_v56 = vld [vmem:[#allocation2 + $0x20] sm:$0xff] }
 0x6b7   :  { %v859_v60 = vpop.permute.xlu1 %858 }
 0x6b8   :  { %v863_v61 = vmul.f32 %v5451_v59, %v859_v60  ;;  %1301 = vrot.lane.b32.xlu0 %v1297_v58, %s5809_s17 }
 0x6b9   :  { %v857_v63 = vpop.permute.xlu0 %856 }
 0x6ba   :  { %v862_v0 = vmul.f32 %v5453_v62, %v857_v63  ;;  %868 = vrot.lane.b32.xlu1 %v863_v61, %s5809_s17 }
 0x6bc   :  { %866 = vrot.lane.b32.xlu0 %v862_v0, %s5809_s17 }
 0x728   :  { %v1304_v1 = vpop.permute.xlu1 %1303 }
 0x729   :  { %v1308_v20 = vadd.f32 %v1304_v1, %v1195_v16 }
 0x72a   :  { %v1302_v22 = vpop.permute.xlu0 %1301 }
 0x72b   :  { %5454 = vtanh.f32 %v1308_v20  ;;  %v1307_v23 = vadd.f32 %v1302_v22, %v1194_v34 }
 0x72c   :  { %v869_v24 = vpop.permute.xlu1 %868 }
 0x72d   :  { %5456 = vtanh.f32 %v1307_v23  ;;  %v873_v26 = vadd.f32 %v869_v24, %v760_v36 }
 0x72e   :  { %v867_v27 = vpop.permute.xlu0 %866 }
 0x72f   :  { %5458 = vtanh.f32 %v873_v26  ;;  %v872_v28 = vadd.f32 %v867_v27, %v759_v39 }
 0x731   :  { %5460 = vtanh.f32 %v872_v28 }
 0x738   :  { %v5455_v29 = vpop.eup %5454 }
 0x739   :  { %1317 = vrot.lane.b32.xlu1 %v5455_v29, %s5810_s22 }
 0x73a   :  { %v5457_v30 = vpop.eup %5456 }
 0x73b   :  { %1315 = vrot.lane.b32.xlu0 %v5457_v30, %s5810_s22 }
 0x73c   :  { %v5459_v32 = vpop.eup %5458 }
 0x73d   :  { %882 = vrot.lane.b32.xlu1 %v5459_v32, %s5810_s22 }
 0x73e   :  { %v5461_v33 = vpop.eup %5460 }
 0x73f   :  { %880 = vrot.lane.b32.xlu0 %v5461_v33, %s5810_s22 }
 0x7ab   :  { %v1318_v4 = vpop.permute.xlu1 %1317 }
 0x7ac   :  { %v1322_v6 = vmul.f32 %v1318_v4, %v1312_v2 }
 0x7ad   :  { %v1316_v9 = vpop.permute.xlu0 %1315 }
 0x7ae   :  { %v6199_v10 = vadd.f32 %v1324_v5, %v1322_v6  ;;  %v1321_v13 = vmul.f32 %v1316_v9, %v1311_v8 }
 0x7af   :  { %v883_v15 = vpop.permute.xlu1 %882 }
 0x7b0   :  { %v6202_v16 = vadd.f32 %v1323_v11, %v1321_v13  ;;  %v887_v34 = vmul.f32 %v883_v15, %v877_v14  ;;  %1331 = vrot.lane.b32.xlu1 %v6199_v10, %s5810_s22 }
 0x7b1   :  { %v881_v19 = vpop.permute.xlu0 %880 }
 0x7b2   :  { %v6207_v36 = vadd.f32 %v889_v17, %v887_v34  ;;  %v886_v38 = vmul.f32 %v881_v19, %v876_v35  ;;  %1329 = vrot.lane.b32.xlu0 %v6202_v16, %s5810_s22 }
 0x7b4   :  { %v6212_v25 = vadd.f32 %v888_v37, %v886_v38  ;;  %896 = vrot.lane.b32.xlu1 %v6207_v36, %s5810_s22 }
 0x7b6   :  { %894 = vrot.lane.b32.xlu0 %v6212_v25, %s5810_s22 }
 0x822   :  { %v1332_v12 = vpop.permute.xlu1 %1331 }
 0x823   :  { %1337 = vst.msk [vmem:[#allocation6 + $0x58] sm:$0xff] %vm77_vm0, %v1332_v12 }
 0x824   :  { %v1330_v39 = vpop.permute.xlu0 %1329 }
 0x825   :  { %1336 = vst.msk [vmem:[#allocation6 + $0x50] sm:$0xff] %vm77_vm0, %v1330_v39  ;;  %5263 = vmatprep.mubr.msk.f32.mxu1 %vm77_vm0, %v1330_v39 }
 0x826   :  { %v897_v7 = vpop.permute.xlu1 %896  ;;  %5264 = vmatmul.mubr.msk.f32.vlgmr.msra.gmra.mxu1 %vm77_vm0, %v1332_v12 }
 0x827   :  { %902 = vst.msk [vmem:[#allocation5 + $0x18] sm:$0xff] %vm77_vm0, %v897_v7  ;;  %5272 = vmatpush3.msra.mxu1 %v5911_v3 }
 0x828   :  { %v895_v40 = vpop.permute.xlu0 %894  ;;  %5281 = vmatprep.subr.mxu1 %v5911_v3 }
 0x829   :  { %901 = vst.msk [vmem:[#allocation5 + $0x10] sm:$0xff] %vm77_vm0, %v895_v40  ;;  %5248 = vmatprep.mubr.msk.f32.mxu0 %vm77_vm0, %v895_v40 }
 0x82a   :  { %5249 = vmatmul.mubr.msk.f32.vlgmr.msra.gmra.mxu0 %vm77_vm0, %v897_v7 }
 0x82b   :  { %5257 = vmatpush3.msra.mxu0 %v6057_v31 }
 0x82c   :  { %5266 = vmatprep.subr.mxu0 %v6057_v31 }
 0x8e6   :  { %v5265_v41 = vpop.f32.mrf.mxu1 }
 0x8e7   :  { %v1562_v42 = vadd.f32 %v5265_v41, %v6043_v53 }
 0x8e8   :  { %v1556_v43 = vpop.f32.mrf.mxu1 }
 0x8e9   :  { %v1557_v44 = vadd.f32 %v6043_v53, %v1556_v43  ;;  %1583 = vrot.lane.b32.xlu1 %v1562_v42, %s5808_s5  ;;  %v1566_v49 = vadd.f32 %v1562_v42, %v1485_v48 }
 0x8ea   :  { %v5250_v45 = vpop.f32.mrf.mxu0 }
 0x8eb   :  { %v1127_v3 = vadd.f32 %v5250_v45, %v6135_v21  ;;  %1581 = vrot.lane.b32.xlu0 %v1557_v44, %s5808_s5  ;;  %v1565_v51 = vadd.f32 %v1557_v44, %v1484_v50  ;;  %v4935_v54 = vmul.f32 -1.442695, %v1566_v49 }
 0x8ec   :  { %v1121_v46 = vpop.f32.mrf.mxu0 }
 0x8ed   :  { %v1122_v47 = vadd.f32 %v6135_v21, %v1121_v46  ;;  %1148 = vrot.lane.b32.xlu1 %v1127_v3, %s5808_s5  ;;  %v1131_v55 = vadd.f32 %v1127_v3, %v1050_v52  ;;  %v4934_v57 = vmul.f32 -1.442695, %v1565_v51  ;;  %5462 = vpow2.f32 %v4935_v54 }
 0x8ef   :  { %1146 = vrot.lane.b32.xlu0 %v1122_v47, %s5808_s5  ;;  %v1130_v58 = vadd.f32 %v1122_v47, %v1049_v56  ;;  %v4923_v59 = vmul.f32 -1.442695, %v1131_v55  ;;  %5464 = vpow2.f32 %v4934_v57 }
 0x8f1   :  { %v4922_v60 = vmul.f32 -1.442695, %v1130_v58  ;;  %5466 = vpow2.f32 %v4923_v59 }
 0x8f3   :  { %5468 = vpow2.f32 %v4922_v60 }
 0x8fa   :  { %v5463_v61 = vpop.eup %5462 }
 0x8fb   :  { %v1574_v63 = vadd.f32 1.0, %v5463_v61 }
 0x8fc   :  { %v5465_v62 = vpop.eup %5464 }
 0x8fd   :  { %v1573_v1 = vadd.f32 1.0, %v5465_v62  ;;  %5470 = vrcp.f32 %v1574_v63 }
 0x8fe   :  { %v5467_v0 = vpop.eup %5466 }
 0x8ff   :  { %v1139_v22 = vadd.f32 1.0, %v5467_v0  ;;  %5472 = vrcp.f32 %v1573_v1 }
 0x900   :  { %v5469_v20 = vpop.eup %5468 }
 0x901   :  { %v1138_v23 = vadd.f32 1.0, %v5469_v20  ;;  %5474 = vrcp.f32 %v1139_v22  ;;  %v1774_v22 = vld [vmem:[#allocation3 + $0x30] sm:$0xff] }
 0x903   :  { %5476 = vrcp.f32 %v1138_v23 }
 0x90a   :  { %v5471_v24 = vpop.eup %5470 }
 0x90b   :  { %v1602_v12 = vsub.f32 1.0, %v5471_v24  ;;  %v1614_v7 = vmul.f32 %v5471_v24, %v6199_v10 }
 0x90c   :  { %v5473_v28 = vpop.eup %5472 }
 0x90d   :  { %v1601_v41 = vsub.f32 1.0, %v5473_v28  ;;  %v1613_v44 = vmul.f32 %v5473_v28, %v6202_v16 }
 0x90e   :  { %v5475_v32 = vpop.eup %5474 }
 0x90f   :  { %v1167_v3 = vsub.f32 1.0, %v5475_v32 }
 0x910   :  { %v5477_v4 = vpop.eup %5476 }
 0x95b   :  { %v1584_v26 = vpop.permute.xlu1 %1583 }
 0x95c   :  { %v1588_v27 = vmul.f32 %v5471_v24, %v1584_v26  ;;  %v1340_v24 = vld [vmem:[#allocation2 + $0x38] sm:$0xff] }
 0x95d   :  { %v1582_v29 = vpop.permute.xlu0 %1581 }
 0x95e   :  { %v1587_v30 = vmul.f32 %v5473_v28, %v1582_v29  ;;  %1593 = vrot.lane.b32.xlu1 %v1588_v27, %s5809_s17  ;;  %v1339_v27 = vld [vmem:[#allocation2 + $0x30] sm:$0xff] }
 0x95f   :  { %v1149_v33 = vpop.permute.xlu1 %1148 }
 0x960   :  { %v1153_v2 = vmul.f32 %v5475_v32, %v1149_v33  ;;  %1591 = vrot.lane.b32.xlu0 %v1587_v30, %s5809_s17 }
 0x961   :  { %v1147_v5 = vpop.permute.xlu0 %1146 }
 0x962   :  { %v1152_v6 = vmul.f32 %v5477_v4, %v1147_v5  ;;  %1158 = vrot.lane.b32.xlu1 %v1153_v2, %s5809_s17 }
 0x964   :  { %1156 = vrot.lane.b32.xlu0 %v1152_v6, %s5809_s17 }
 0x9d0   :  { %v1594_v8 = vpop.permute.xlu1 %1593 }
 0x9d1   :  { %v1598_v9 = vadd.f32 %v1594_v8, %v1485_v48  ;;  %v1179_v48 = vmul.f32 %v5475_v32, %v6207_v36 }
 0x9d2   :  { %v1592_v11 = vpop.permute.xlu0 %1591 }
 0x9d3   :  { %5478 = vtanh.f32 %v1598_v9  ;;  %v1597_v13 = vadd.f32 %v1592_v11, %v1484_v50  ;;  %v1166_v50 = vsub.f32 1.0, %v5477_v4 }
 0x9d4   :  { %v1159_v14 = vpop.permute.xlu1 %1158 }
 0x9d5   :  { %5480 = vtanh.f32 %v1597_v13  ;;  %v1163_v15 = vadd.f32 %v1159_v14, %v1050_v52  ;;  %v1178_v52 = vmul.f32 %v5477_v4, %v6212_v25 }
 0x9d6   :  { %v1157_v17 = vpop.permute.xlu0 %1156 }
 0x9d7   :  { %5482 = vtanh.f32 %v1163_v15  ;;  %v1162_v34 = vadd.f32 %v1157_v17, %v1049_v56  ;;  %v6274_v56 = vld [vmem:[%s7132_s6] sm:$0xff] }
 0x9d9   :  { %5484 = vtanh.f32 %v1162_v34 }
 0x9e0   :  { %v5479_v35 = vpop.eup %5478 }
 0x9e1   :  { %1607 = vrot.lane.b32.xlu1 %v5479_v35, %s5810_s22 }
 0x9e2   :  { %v5481_v19 = vpop.eup %5480 }
 0x9e3   :  { %1605 = vrot.lane.b32.xlu0 %v5481_v19, %s5810_s22 }
 0x9e4   :  { %v5483_v37 = vpop.eup %5482 }
 0x9e5   :  { %1172 = vrot.lane.b32.xlu1 %v5483_v37, %s5810_s22 }
 0x9e6   :  { %v5485_v38 = vpop.eup %5484 }
 0x9e7   :  { %1170 = vrot.lane.b32.xlu0 %v5485_v38, %s5810_s22 }
 0xa53   :  { %v1608_v39 = vpop.permute.xlu1 %1607 }
 0xa54   :  { %v1612_v40 = vmul.f32 %v1608_v39, %v1602_v12 }
 0xa55   :  { %v1606_v42 = vpop.permute.xlu0 %1605 }
 0xa56   :  { %v6247_v43 = vadd.f32 %v1614_v7, %v1612_v40  ;;  %v1611_v45 = vmul.f32 %v1606_v42, %v1601_v41 }
 0xa57   :  { %v1173_v46 = vpop.permute.xlu1 %1172 }
 0xa58   :  { %v6250_v47 = vadd.f32 %v1613_v44, %v1611_v45  ;;  %v1177_v49 = vmul.f32 %v1173_v46, %v1167_v3  ;;  %1621 = vrot.lane.b32.xlu1 %v6247_v43, %s5810_s22 }
 0xa59   :  { %v1171_v10 = vpop.permute.xlu0 %1170 }
 0xa5a   :  { %v6255_v51 = vadd.f32 %v1179_v48, %v1177_v49  ;;  %v1176_v54 = vmul.f32 %v1171_v10, %v1166_v50  ;;  %1619 = vrot.lane.b32.xlu0 %v6250_v47, %s5810_s22 }
 0xa5c   :  { %v6260_v16 = vadd.f32 %v1178_v52, %v1176_v54  ;;  %1186 = vrot.lane.b32.xlu1 %v6255_v51, %s5810_s22 }
 0xa5e   :  { %1184 = vrot.lane.b32.xlu0 %v6260_v16, %s5810_s22 }
 0xaca   :  { %v1622_v36 = vpop.permute.xlu1 %1621 }
 0xacb   :  { %1627 = vst.msk [vmem:[#allocation6 + $0x48] sm:$0xff] %vm77_vm0, %v1622_v36 }
 0xacc   :  { %v1620_v55 = vpop.permute.xlu0 %1619 }
 0xacd   :  { %1626 = vst.msk [vmem:[#allocation6 + $0x40] sm:$0xff] %vm77_vm0, %v1620_v55  ;;  %5273 = vmatprep.mubr.msk.f32.mxu1 %vm77_vm0, %v1620_v55 }
 0xace   :  { %v1187_v25 = vpop.permute.xlu1 %1186  ;;  %5274 = vmatmul.mubr.msk.f32.vlgmr.msra.gmra.mxu1 %vm77_vm0, %v1622_v36 }
 0xacf   :  { %1192 = vst.msk [vmem:[#allocation5 + $0x28] sm:$0xff] %vm77_vm0, %v1187_v25  ;;  %5282 = vmatpush3.msra.mxu1 %v6274_v56 }
 0xad0   :  { %v1185_v57 = vpop.permute.xlu0 %1184  ;;  %5291 = vmatprep.subr.mxu1 %v6274_v56 }
 0xad1   :  { %1191 = vst.msk [vmem:[#allocation5 + $0x20] sm:$0xff] %vm77_vm0, %v1185_v57  ;;  %5258 = vmatprep.mubr.msk.f32.mxu0 %vm77_vm0, %v1185_v57 }
 0xad2   :  { %5259 = vmatmul.mubr.msk.f32.vlgmr.msra.gmra.mxu0 %vm77_vm0, %v1187_v25 }
 0xad3   :  { %5267 = vmatpush3.msra.mxu0 %v6057_v31 }
 0xad4   :  { %5276 = vmatprep.subr.mxu0 %v6057_v31  ;;  %v1775_v31 = vld [vmem:[#allocation3 + $0x38] sm:$0xff] }
 0xb8e   :  { %v5275_v58 = vpop.f32.mrf.mxu1 }
 0xb8f   :  { %v1852_v59 = vadd.f32 %v5275_v58, %v6043_v53 }
 0xb90   :  { %v1846_v60 = vpop.f32.mrf.mxu1 }
 0xb91   :  { %v1847_v61 = vadd.f32 %v6043_v53, %v1846_v60  ;;  %1873 = vrot.lane.b32.xlu1 %v1852_v59, %s5808_s5  ;;  %v1856_v20 = vadd.f32 %v1852_v59, %v1775_v31 }
 0xb92   :  { %v5260_v62 = vpop.f32.mrf.mxu0 }
 0xb93   :  { %v1417_v63 = vadd.f32 %v5260_v62, %v6135_v21  ;;  %1871 = vrot.lane.b32.xlu0 %v1847_v61, %s5808_s5  ;;  %v1855_v23 = vadd.f32 %v1847_v61, %v1774_v22  ;;  %v4943_v53 = vmul.f32 -1.442695, %v1856_v20 }
 0xb94   :  { %v1411_v0 = vpop.f32.mrf.mxu0 }
 0xb95   :  { %v1412_v1 = vadd.f32 %v6135_v21, %v1411_v0  ;;  %1438 = vrot.lane.b32.xlu1 %v1417_v63, %s5808_s5  ;;  %v1421_v26 = vadd.f32 %v1417_v63, %v1340_v24  ;;  %v4942_v28 = vmul.f32 -1.442695, %v1855_v23  ;;  %5486 = vpow2.f32 %v4943_v53 }
 0xb97   :  { %1436 = vrot.lane.b32.xlu0 %v1412_v1, %s5808_s5  ;;  %v1420_v29 = vadd.f32 %v1412_v1, %v1339_v27  ;;  %v4931_v30 = vmul.f32 -1.442695, %v1421_v26  ;;  %5488 = vpow2.f32 %v4942_v28 }
 0xb99   :  { %v4930_v32 = vmul.f32 -1.442695, %v1420_v29  ;;  %5490 = vpow2.f32 %v4931_v30  ;;  %v6339_v29 = vld [vmem:[%s7134_s8] ss:$0 sm:$0xff] }
 0xb9b   :  { %5492 = vpow2.f32 %v4930_v32 }
 0xba2   :  { %v5487_v33 = vpop.eup %5486 }
 0xba3   :  { %v1864_v4 = vadd.f32 1.0, %v5487_v33 }
 0xba4   :  { %v5489_v2 = vpop.eup %5488 }
 0xba5   :  { %v1863_v6 = vadd.f32 1.0, %v5489_v2  ;;  %5494 = vrcp.f32 %v1864_v4 }
 0xba6   :  { %v5491_v5 = vpop.eup %5490 }
 0xba7   :  { %v1429_v9 = vadd.f32 1.0, %v5491_v5  ;;  %5496 = vrcp.f32 %v1863_v6 }
 0xba8   :  { %v5493_v8 = vpop.eup %5492 }
 0xba9   :  { %v1428_v11 = vadd.f32 1.0, %v5493_v8  ;;  %5498 = vrcp.f32 %v1429_v9  ;;  %v2065_v8 = vld [vmem:[#allocation3 + $0x28] sm:$0xff] }
 0xbab   :  { %5500 = vrcp.f32 %v1428_v11  ;;  %v2064_v11 = vld [vmem:[#allocation3 + $0x20] sm:$0xff] }
 0xbb2   :  { %v5495_v13 = vpop.eup %5494 }
 0xbb3   :  { %v1892_v54 = vsub.f32 1.0, %v5495_v13  ;;  %v1904_v55 = vmul.f32 %v5495_v13, %v6247_v43 }
 0xbb4   :  { %v5497_v17 = vpop.eup %5496 }
 0xbb5   :  { %v1891_v57 = vsub.f32 1.0, %v5497_v17  ;;  %v1903_v60 = vmul.f32 %v5497_v17, %v6250_v47 }
 0xbb6   :  { %v5499_v19 = vpop.eup %5498 }
 0xbb7   :  { %v1457_v62 = vsub.f32 1.0, %v5499_v19  ;;  %v1469_v1 = vmul.f32 %v5499_v19, %v6255_v51 }
 0xbb8   :  { %v5501_v12 = vpop.eup %5500 }
 0xbb9   :  { %v1456_v20 = vsub.f32 1.0, %v5501_v12  ;;  %v1468_v23 = vmul.f32 %v5501_v12, %v6260_v16 }
 0xc03   :  { %v1874_v14 = vpop.permute.xlu1 %1873 }
 0xc04   :  { %v1878_v15 = vmul.f32 %v5495_v13, %v1874_v14  ;;  %v1630_v14 = vld [vmem:[#allocation2 + $0x48] sm:$0xff] }
 0xc05   :  { %v1872_v34 = vpop.permute.xlu0 %1871 }
 0xc06   :  { %v1877_v35 = vmul.f32 %v5497_v17, %v1872_v34  ;;  %1883 = vrot.lane.b32.xlu1 %v1878_v15, %s5809_s17  ;;  %v1629_v34 = vld [vmem:[#allocation2 + $0x40] sm:$0xff] }
 0xc07   :  { %v1439_v37 = vpop.permute.xlu1 %1438 }
 0xc08   :  { %v1443_v38 = vmul.f32 %v5499_v19, %v1439_v37  ;;  %1881 = vrot.lane.b32.xlu0 %v1877_v35, %s5809_s17 }
 0xc09   :  { %v1437_v39 = vpop.permute.xlu0 %1436 }
 0xc0a   :  { %v1442_v7 = vmul.f32 %v5501_v12, %v1437_v39  ;;  %1448 = vrot.lane.b32.xlu1 %v1443_v38, %s5809_s17 }
 0xc0c   :  { %1446 = vrot.lane.b32.xlu0 %v1442_v7, %s5809_s17 }
 0xc78   :  { %v1884_v40 = vpop.permute.xlu1 %1883 }
 0xc79   :  { %v1888_v41 = vadd.f32 %v1884_v40, %v1775_v31 }
 0xc7a   :  { %v1882_v42 = vpop.permute.xlu0 %1881 }
 0xc7b   :  { %5502 = vtanh.f32 %v1888_v41  ;;  %v1887_v44 = vadd.f32 %v1882_v42, %v1774_v22 }
 0xc7c   :  { %v1449_v45 = vpop.permute.xlu1 %1448 }
 0xc7d   :  { %5504 = vtanh.f32 %v1887_v44  ;;  %v1453_v3 = vadd.f32 %v1449_v45, %v1340_v24 }
 0xc7e   :  { %v1447_v46 = vpop.permute.xlu0 %1446 }
 0xc7f   :  { %5506 = vtanh.f32 %v1453_v3  ;;  %v1452_v48 = vadd.f32 %v1447_v46, %v1339_v27  ;;  %v6332_v27 = vld [vmem:[%s7136_s2] sm:$0xff] }
 0xc81   :  { %5508 = vtanh.f32 %v1452_v48 }
 0xc88   :  { %v5503_v49 = vpop.eup %5502 }
 0xc89   :  { %1897 = vrot.lane.b32.xlu1 %v5503_v49, %s5810_s22 }
 0xc8a   :  { %v5505_v50 = vpop.eup %5504 }
 0xc8b   :  { %1895 = vrot.lane.b32.xlu0 %v5505_v50, %s5810_s22 }
 0xc8c   :  { %v5507_v10 = vpop.eup %5506 }
 0xc8d   :  { %1462 = vrot.lane.b32.xlu1 %v5507_v10, %s5810_s22 }
 0xc8e   :  { %v5509_v52 = vpop.eup %5508 }
 0xc8f   :  { %1460 = vrot.lane.b32.xlu0 %v5509_v52, %s5810_s22 }
 0xcfb   :  { %v1898_v36 = vpop.permute.xlu1 %1897 }
 0xcfc   :  { %v1902_v25 = vmul.f32 %v1898_v36, %v1892_v54 }
 0xcfd   :  { %v1896_v58 = vpop.permute.xlu0 %1895 }
 0xcfe   :  { %v6300_v59 = vadd.f32 %v1904_v55, %v1902_v25  ;;  %v1901_v61 = vmul.f32 %v1896_v58, %v1891_v57 }
 0xcff   :  { %v1463_v63 = vpop.permute.xlu1 %1462 }
 0xd00   :  { %v6303_v0 = vadd.f32 %v1903_v60, %v1901_v61  ;;  %v1467_v31 = vmul.f32 %v1463_v63, %v1457_v62  ;;  %1911 = vrot.lane.b32.xlu1 %v6300_v59, %s5810_s22 }
 0xd01   :  { %v1461_v43 = vpop.permute.xlu0 %1460 }
 0xd02   :  { %v6308_v22 = vadd.f32 %v1469_v1, %v1467_v31  ;;  %v1466_v24 = vmul.f32 %v1461_v43, %v1456_v20  ;;  %1909 = vrot.lane.b32.xlu0 %v6303_v0, %s5810_s22 }
 0xd04   :  { %v6313_v47 = vadd.f32 %v1468_v23, %v1466_v24  ;;  %1476 = vrot.lane.b32.xlu1 %v6308_v22, %s5810_s22 }
 0xd06   :  { %1474 = vrot.lane.b32.xlu0 %v6313_v47, %s5810_s22 }
 0xd72   :  { %v1912_v51 = vpop.permute.xlu1 %1911 }
 0xd73   :  { %1917 = vst.msk [vmem:[#allocation6 + $0x38] sm:$0xff] %vm77_vm0, %v1912_v51 }
 0xd74   :  { %v1910_v53 = vpop.permute.xlu0 %1909 }
 0xd75   :  { %1916 = vst.msk [vmem:[#allocation6 + $0x30] sm:$0xff] %vm77_vm0, %v1910_v53  ;;  %5283 = vmatprep.mubr.msk.f32.mxu1 %vm77_vm0, %v1910_v53 }
 0xd76   :  { %v1477_v16 = vpop.permute.xlu1 %1476  ;;  %5284 = vmatmul.mubr.msk.f32.vlgmr.msra.gmra.mxu1 %vm77_vm0, %v1912_v51 }
 0xd77   :  { %1482 = vst.msk [vmem:[#allocation5 + $0x38] sm:$0xff] %vm77_vm0, %v1477_v16  ;;  %5292 = vmatpush3.msra.mxu1 %v6274_v56 }
 0xd78   :  { %v1475_v26 = vpop.permute.xlu0 %1474  ;;  %5301 = vmatprep.subr.mxu1 %v6274_v56 }
 0xd79   :  { %1481 = vst.msk [vmem:[#allocation5 + $0x30] sm:$0xff] %vm77_vm0, %v1475_v26  ;;  %5268 = vmatprep.mubr.msk.f32.mxu0 %vm77_vm0, %v1475_v26 }
 0xd7a   :  { %5269 = vmatmul.mubr.msk.f32.vlgmr.msra.gmra.mxu0 %vm77_vm0, %v1477_v16 }
 0xd7b   :  { %5277 = vmatpush3.msra.mxu0 %v6332_v27 }
 0xd7c   :  { %5286 = vmatprep.subr.mxu0 %v6332_v27 }
 0xe36   :  { %v5285_v28 = vpop.f32.mrf.mxu1 }
 0xe37   :  { %v2142_v30 = vadd.f32 %v6339_v29, %v5285_v28 }
 0xe38   :  { %v2136_v32 = vpop.f32.mrf.mxu1 }
 0xe39   :  { %v2137_v33 = vadd.f32 %v6339_v29, %v2136_v32  ;;  %2163 = vrot.lane.b32.xlu1 %v2142_v30, %s5808_s5  ;;  %v2146_v9 = vadd.f32 %v2142_v30, %v2065_v8 }
 0xe3a   :  { %v5270_v2 = vpop.f32.mrf.mxu0 }
 0xe3b   :  { %v1707_v4 = vadd.f32 %v5270_v2, %v6135_v21  ;;  %2161 = vrot.lane.b32.xlu0 %v2137_v33, %s5808_s5  ;;  %v2145_v13 = vadd.f32 %v2137_v33, %v2064_v11  ;;  %v4951_v15 = vmul.f32 -1.442695, %v2146_v9 }
 0xe3c   :  { %v1701_v5 = vpop.f32.mrf.mxu0 }
 0xe3d   :  { %v1702_v6 = vadd.f32 %v6135_v21, %v1701_v5  ;;  %1728 = vrot.lane.b32.xlu1 %v1707_v4, %s5808_s5  ;;  %v1711_v17 = vadd.f32 %v1707_v4, %v1630_v14  ;;  %v4950_v35 = vmul.f32 -1.442695, %v2145_v13  ;;  %5510 = vpow2.f32 %v4951_v15 }
 0xe3f   :  { %1726 = vrot.lane.b32.xlu0 %v1702_v6, %s5808_s5  ;;  %v1710_v19 = vadd.f32 %v1702_v6, %v1629_v34  ;;  %v4939_v37 = vmul.f32 -1.442695, %v1711_v17  ;;  %5512 = vpow2.f32 %v4950_v35 }
 0xe41   :  { %v4938_v38 = vmul.f32 -1.442695, %v1710_v19  ;;  %5514 = vpow2.f32 %v4939_v37 }
 0xe43   :  { %5516 = vpow2.f32 %v4938_v38 }
 0xe4a   :  { %v5511_v21 = vpop.eup %5510 }
 0xe4b   :  { %v2154_v39 = vadd.f32 1.0, %v5511_v21  ;;  %v6394_v21 = vld [vmem:[%s7138_s4] ss:$0 sm:$0xff] }
 0xe4c   :  { %v5513_v12 = vpop.eup %5512 }
 0xe4d   :  { %v2153_v40 = vadd.f32 1.0, %v5513_v12  ;;  %5518 = vrcp.f32 %v2154_v39 }
 0xe4e   :  { %v5515_v7 = vpop.eup %5514 }
 0xe4f   :  { %v1719_v42 = vadd.f32 1.0, %v5515_v7  ;;  %5520 = vrcp.f32 %v2153_v40  ;;  %v2355_v40 = vld [vmem:[#allocation3 + $0x18] sm:$0xff] }
 0xe50   :  { %v5517_v41 = vpop.eup %5516 }
 0xe51   :  { %v1718_v44 = vadd.f32 1.0, %v5517_v41  ;;  %5522 = vrcp.f32 %v1719_v42  ;;  %v2354_v42 = vld [vmem:[#allocation3 + $0x10] sm:$0xff] }
 0xe53   :  { %5524 = vrcp.f32 %v1718_v44 }
 0xe5a   :  { %v5519_v45 = vpop.eup %5518 }
 0xe5b   :  { %v2182_v51 = vsub.f32 1.0, %v5519_v45  ;;  %v2194_v16 = vmul.f32 %v5519_v45, %v6300_v59 }
 0xe5c   :  { %v5521_v48 = vpop.eup %5520 }
 0xe5d   :  { %v2181_v28 = vsub.f32 1.0, %v5521_v48  ;;  %v2193_v33 = vmul.f32 %v5521_v48, %v6303_v0 }
 0xe5e   :  { %v5523_v10 = vpop.eup %5522 }
 0xe5f   :  { %v1747_v4 = vsub.f32 1.0, %v5523_v10 }
 0xe60   :  { %v5525_v36 = vpop.eup %5524 }
 0xeab   :  { %v2164_v3 = vpop.permute.xlu1 %2163 }
 0xeac   :  { %v2168_v46 = vmul.f32 %v5519_v45, %v2164_v3  ;;  %v1920_v45 = vld [vmem:[#allocation2 + $0x58] sm:$0xff] }
 0xead   :  { %v2162_v49 = vpop.permute.xlu0 %2161 }
 0xeae   :  { %v2167_v50 = vmul.f32 %v5521_v48, %v2162_v49  ;;  %2173 = vrot.lane.b32.xlu1 %v2168_v46, %s5809_s17  ;;  %v1919_v48 = vld [vmem:[#allocation2 + $0x50] sm:$0xff] }
 0xeaf   :  { %v1729_v52 = vpop.permute.xlu1 %1728 }
 0xeb0   :  { %v1733_v54 = vmul.f32 %v5523_v10, %v1729_v52  ;;  %2171 = vrot.lane.b32.xlu0 %v2167_v50, %s5809_s17 }
 0xeb1   :  { %v1727_v55 = vpop.permute.xlu0 %1726 }
 0xeb2   :  { %v1732_v25 = vmul.f32 %v5525_v36, %v1727_v55  ;;  %1738 = vrot.lane.b32.xlu1 %v1733_v54, %s5809_s17 }
 0xeb4   :  { %1736 = vrot.lane.b32.xlu0 %v1732_v25, %s5809_s17 }
 0xf20   :  { %v2174_v57 = vpop.permute.xlu1 %2173 }
 0xf21   :  { %v2178_v58 = vadd.f32 %v2174_v57, %v2065_v8  ;;  %v1759_v8 = vmul.f32 %v5523_v10, %v6308_v22 }
 0xf22   :  { %v2172_v60 = vpop.permute.xlu0 %2171 }
 0xf23   :  { %5526 = vtanh.f32 %v2178_v58  ;;  %v2177_v61 = vadd.f32 %v2172_v60, %v2064_v11  ;;  %v1746_v11 = vsub.f32 1.0, %v5525_v36 }
 0xf24   :  { %v1739_v62 = vpop.permute.xlu1 %1738 }
 0xf25   :  { %5528 = vtanh.f32 %v2177_v61  ;;  %v1743_v63 = vadd.f32 %v1739_v62, %v1630_v14  ;;  %v1758_v14 = vmul.f32 %v5525_v36, %v6313_v47 }
 0xf26   :  { %v1737_v1 = vpop.permute.xlu0 %1736 }
 0xf27   :  { %5530 = vtanh.f32 %v1743_v63  ;;  %v1742_v31 = vadd.f32 %v1737_v1, %v1629_v34 }
 0xf29   :  { %5532 = vtanh.f32 %v1742_v31 }
 0xf30   :  { %v5527_v20 = vpop.eup %5526 }
 0xf31   :  { %2187 = vrot.lane.b32.xlu1 %v5527_v20, %s5810_s22 }
 0xf32   :  { %v5529_v43 = vpop.eup %5528 }
 0xf33   :  { %2185 = vrot.lane.b32.xlu0 %v5529_v43, %s5810_s22 }
 0xf34   :  { %v5531_v23 = vpop.eup %5530 }
 0xf35   :  { %1752 = vrot.lane.b32.xlu1 %v5531_v23, %s5810_s22 }
 0xf36   :  { %v5533_v24 = vpop.eup %5532 }
 0xf37   :  { %1750 = vrot.lane.b32.xlu0 %v5533_v24, %s5810_s22 }
 0xfa3   :  { %v2188_v53 = vpop.permute.xlu1 %2187 }
 0xfa4   :  { %v2192_v26 = vmul.f32 %v2188_v53, %v2182_v51 }
 0xfa5   :  { %v2186_v30 = vpop.permute.xlu0 %2185 }
 0xfa6   :  { %v6358_v32 = vadd.f32 %v2194_v16, %v2192_v26  ;;  %v2191_v2 = vmul.f32 %v2186_v30, %v2181_v28 }
 0xfa7   :  { %v1753_v5 = vpop.permute.xlu1 %1752 }
 0xfa8   :  { %v6361_v6 = vadd.f32 %v2193_v33, %v2191_v2  ;;  %v1757_v9 = vmul.f32 %v1753_v5, %v1747_v4  ;;  %2201 = vrot.lane.b32.xlu1 %v6358_v32, %s5810_s22 }
 0xfa9   :  { %v1751_v59 = vpop.permute.xlu0 %1750 }
 0xfaa   :  { %v6366_v13 = vadd.f32 %v1759_v8, %v1757_v9  ;;  %v1756_v15 = vmul.f32 %v1751_v59, %v1746_v11  ;;  %2199 = vrot.lane.b32.xlu0 %v6361_v6, %s5810_s22 }
 0xfac   :  { %v6371_v0 = vadd.f32 %v1758_v14, %v1756_v15  ;;  %1766 = vrot.lane.b32.xlu1 %v6366_v13, %s5810_s22 }
 0xfae   :  { %1764 = vrot.lane.b32.xlu0 %v6371_v0, %s5810_s22 }
0x101a   :  { %v2202_v22 = vpop.permute.xlu1 %2201 }
0x101b   :  { %2207 = vst.msk [vmem:[#allocation6 + $0x28] sm:$0xff] %vm77_vm0, %v2202_v22 }
0x101c   :  { %v2200_v17 = vpop.permute.xlu0 %2199 }
0x101d   :  { %2206 = vst.msk [vmem:[#allocation6 + $0x20] sm:$0xff] %vm77_vm0, %v2200_v17  ;;  %5293 = vmatprep.mubr.msk.f32.mxu1 %vm77_vm0, %v2200_v17 }
0x101e   :  { %v1767_v47 = vpop.permute.xlu1 %1766  ;;  %5294 = vmatmul.mubr.msk.f32.vlgmr.msra.gmra.mxu1 %vm77_vm0, %v2202_v22  ;;  %v6412_v22 = vld [vmem:[%s7139_s9] sm:$0xff] }
0x101f   :  { %1772 = vst.msk [vmem:[#allocation5 + $0x48] sm:$0xff] %vm77_vm0, %v1767_v47  ;;  %5302 = vmatpush3.msra.mxu1 %v6274_v56 }
0x1020   :  { %v1765_v34 = vpop.permute.xlu0 %1764  ;;  %5332 = vmatprep.subr.mxu1 %v6412_v22 }
0x1021   :  { %1771 = vst.msk [vmem:[#allocation5 + $0x40] sm:$0xff] %vm77_vm0, %v1765_v34  ;;  %5278 = vmatprep.mubr.msk.f32.mxu0 %vm77_vm0, %v1765_v34 }
0x1022   :  { %5279 = vmatmul.mubr.msk.f32.vlgmr.msra.gmra.mxu0 %vm77_vm0, %v1767_v47 }
0x1023   :  { %5287 = vmatpush3.msra.mxu0 %v6332_v27 }
0x1024   :  { %5296 = vmatprep.subr.mxu0 %v6332_v27 }
0x10de   :  { %v5295_v35 = vpop.f32.mrf.mxu1 }
0x10df   :  { %v2432_v19 = vadd.f32 %v6339_v29, %v5295_v35 }
0x10e0   :  { %v2426_v37 = vpop.f32.mrf.mxu1 }
0x10e1   :  { %v2427_v38 = vadd.f32 %v6339_v29, %v2426_v37  ;;  %2453 = vrot.lane.b32.xlu1 %v2432_v19, %s5808_s5  ;;  %v2436_v41 = vadd.f32 %v2432_v19, %v2355_v40 }
0x10e2   :  { %v5280_v56 = vpop.f32.mrf.mxu0 }
0x10e3   :  { %v1997_v12 = vadd.f32 %v6394_v21, %v5280_v56  ;;  %2451 = vrot.lane.b32.xlu0 %v2427_v38, %s5808_s5  ;;  %v2435_v44 = vadd.f32 %v2427_v38, %v2354_v42  ;;  %v4959_v3 = vmul.f32 -1.442695, %v2436_v41 }
0x10e4   :  { %v1991_v39 = vpop.f32.mrf.mxu0 }
0x10e5   :  { %v1992_v7 = vadd.f32 %v6394_v21, %v1991_v39  ;;  %2018 = vrot.lane.b32.xlu1 %v1997_v12, %s5808_s5  ;;  %v2001_v46 = vadd.f32 %v1997_v12, %v1920_v45  ;;  %v4958_v49 = vmul.f32 -1.442695, %v2435_v44  ;;  %5534 = vpow2.f32 %v4959_v3 }
0x10e7   :  { %2016 = vrot.lane.b32.xlu0 %v1992_v7, %s5808_s5  ;;  %v2000_v50 = vadd.f32 %v1992_v7, %v1919_v48  ;;  %v4947_v10 = vmul.f32 -1.442695, %v2001_v46  ;;  %5536 = vpow2.f32 %v4958_v49  ;;  %v2787_v49 = vld [vmem:[#allocation5 + $0x8] sm:$0xff] }
0x10e9   :  { %v4946_v52 = vmul.f32 -1.442695, %v2000_v50  ;;  %5538 = vpow2.f32 %v4947_v10  ;;  %v2788_v50 = vld [vmem:[#allocation5 + $0x10] sm:$0xff]  ;;  %v2819_v10 = vmul.f32 0.70710677, %v2787_v49 }
0x10eb   :  { %5540 = vpow2.f32 %v4946_v52  ;;  %v2820_v52 = vmul.f32 0.70710677, %v2788_v50 }
0x10f2   :  { %v5535_v54 = vpop.eup %5534 }
0x10f3   :  { %v2444_v55 = vadd.f32 1.0, %v5535_v54  ;;  %v2790_v54 = vld [vmem:[#allocation5 + $0x20] sm:$0xff] }
0x10f4   :  { %v5537_v36 = vpop.eup %5536 }
0x10f5   :  { %v2443_v57 = vadd.f32 1.0, %v5537_v36  ;;  %5542 = vrcp.f32 %v2444_v55  ;;  %v2822_v55 = vmul.f32 0.70710677, %v2790_v54 }
0x10f6   :  { %v5539_v25 = vpop.eup %5538 }
0x10f7   :  { %v2009_v60 = vadd.f32 1.0, %v5539_v25  ;;  %5544 = vrcp.f32 %v2443_v57  ;;  %v2791_v25 = vld [vmem:[#allocation5 + $0x28] sm:$0xff]  ;;  %v6435_v57 = vld [vmem:[#allocation5 + $0x30] sm:$0xff] }
0x10f8   :  { %v5541_v58 = vpop.eup %5540 }
0x10f9   :  { %v2008_v61 = vadd.f32 1.0, %v5541_v58  ;;  %5546 = vrcp.f32 %v2009_v60  ;;  %v2823_v58 = vmul.f32 0.70710677, %v2791_v25  ;;  %v2824_v60 = vmul.f32 0.70710677, %v6435_v57 }
0x10fb   :  { %5548 = vrcp.f32 %v2008_v61  ;;  %v6438_v61 = vld [vmem:[#allocation5 + $0x38] sm:$0xff] }
0x1102   :  { %v5543_v62 = vpop.eup %5542 }
0x1103   :  { %v2472_v17 = vsub.f32 1.0, %v5543_v62  ;;  %v2484_v34 = vmul.f32 %v5543_v62, %v6358_v32 }
0x1104   :  { %v5545_v31 = vpop.eup %5544 }
0x1105   :  { %v2471_v19 = vsub.f32 1.0, %v5545_v31  ;;  %v2483_v56 = vmul.f32 %v5545_v31, %v6361_v6 }
0x1106   :  { %v5547_v23 = vpop.eup %5546 }
0x1107   :  { %v2037_v39 = vsub.f32 1.0, %v5547_v23  ;;  %v2049_v41 = vmul.f32 %v5547_v23, %v6366_v13  ;;  %v2786_v13 = vld [vmem:[#allocation5] sm:$0xff] }
0x1108   :  { %v5549_v53 = vpop.eup %5548 }
0x1109   :  { %v2036_v44 = vsub.f32 1.0, %v5549_v53  ;;  %v2048_v3 = vmul.f32 %v5549_v53, %v6371_v0  ;;  %v2789_v0 = vld [vmem:[#allocation5 + $0x18] sm:$0xff] }
0x110a   :  { %v2821_v36 = vmul.f32 0.70710677, %v2789_v0 }
0x1153   :  { %v2454_v63 = vpop.permute.xlu1 %2453 }
0x1154   :  { %v2458_v1 = vmul.f32 %v5543_v62, %v2454_v63  ;;  %v6440_v62 = vld [vmem:[#allocation5 + $0x40] sm:$0xff]  ;;  %v2825_v63 = vmul.f32 0.70710677, %v6438_v61 }
0x1155   :  { %v2452_v20 = vpop.permute.xlu0 %2451 }
0x1156   :  { %v2457_v43 = vmul.f32 %v5545_v31, %v2452_v20  ;;  %2463 = vrot.lane.b32.xlu1 %v2458_v1, %s5809_s17  ;;  %v2826_v1 = vmul.f32 0.70710677, %v6440_v62  ;;  %v6444_v31 = vld [vmem:[#allocation5 + $0x48] sm:$0xff] }
0x1157   :  { %v2019_v24 = vpop.permute.xlu1 %2018 }
0x1158   :  { %v2023_v51 = vmul.f32 %v5547_v23, %v2019_v24  ;;  %2461 = vrot.lane.b32.xlu0 %v2457_v43, %s5809_s17  ;;  %v2827_v43 = vmul.f32 0.70710677, %v6444_v31 }
0x1159   :  { %v2017_v16 = vpop.permute.xlu0 %2016 }
0x115a   :  { %v2022_v26 = vmul.f32 %v5549_v53, %v2017_v16  ;;  %2028 = vrot.lane.b32.xlu1 %v2023_v51, %s5809_s17  ;;  %v2802_v16 = vmul.f32 0.5, %v2786_v13 }
0x115c   :  { %2026 = vrot.lane.b32.xlu0 %v2022_v26, %s5809_s17 }
0x11c8   :  { %v2464_v28 = vpop.permute.xlu1 %2463 }
0x11c9   :  { %v2468_v30 = vadd.f32 %v2464_v28, %v2355_v40 }
0x11ca   :  { %v2462_v33 = vpop.permute.xlu0 %2461 }
0x11cb   :  { %5550 = vtanh.f32 %v2468_v30  ;;  %v2467_v2 = vadd.f32 %v2462_v33, %v2354_v42 }
0x11cc   :  { %v2029_v4 = vpop.permute.xlu1 %2028 }
0x11cd   :  { %5552 = vtanh.f32 %v2467_v2  ;;  %v2033_v5 = vadd.f32 %v2029_v4, %v1920_v45 }
0x11ce   :  { %v2027_v8 = vpop.permute.xlu0 %2026 }
0x11cf   :  { %5554 = vtanh.f32 %v2033_v5  ;;  %v2032_v9 = vadd.f32 %v2027_v8, %v1919_v48  ;;  %v2818_v48 = vmul.f32 0.70710677, %v2786_v13  ;;  %v2803_v8 = vmul.f32 0.5, %v2787_v49 }
0x11d1   :  { %5556 = vtanh.f32 %v2032_v9  ;;  %v2804_v9 = vmul.f32 0.5, %v2788_v50 }
0x11d2   :  { %5558 = verf.f32 %v2818_v48 }
0x11d3   :  { %5560 = verf.f32 %v2819_v10  ;;  %v2809_v10 = vmul.f32 0.5, %v6438_v61 }
0x11d4   :  { %5562 = verf.f32 %v2820_v52  ;;  %v2810_v52 = vmul.f32 0.5, %v6440_v62 }
0x11d5   :  { %5564 = verf.f32 %v2821_v36 }
0x11d6   :  { %5566 = verf.f32 %v2822_v55  ;;  %v2811_v55 = vmul.f32 0.5, %v6444_v31 }
0x11d7   :  { %5568 = verf.f32 %v2823_v58 }
0x11d8   :  { %v5551_v11 = vpop.eup %5550  ;;  %5570 = verf.f32 %v2824_v60 }
0x11d9   :  { %2477 = vrot.lane.b32.xlu1 %v5551_v11, %s5810_s22  ;;  %5572 = verf.f32 %v2825_v63 }
0x11da   :  { %v5553_v59 = vpop.eup %5552  ;;  %5574 = verf.f32 %v2826_v1 }
0x11db   :  { %2475 = vrot.lane.b32.xlu0 %v5553_v59, %s5810_s22  ;;  %5576 = verf.f32 %v2827_v43 }
0x11dc   :  { %v5555_v14 = vpop.eup %5554 }
0x11dd   :  { %2042 = vrot.lane.b32.xlu1 %v5555_v14, %s5810_s22 }
0x11de   :  { %v5557_v15 = vpop.eup %5556 }
0x11df   :  { %2040 = vrot.lane.b32.xlu0 %v5557_v15, %s5810_s22  ;;  %v5559_v20 = vpop.eup %5558 }
0x11e0   :  { %v5561_v23 = vpop.eup %5560  ;;  %v2850_v24 = vadd.f32 1.0, %v5559_v20 }
0x11e1   :  { %v5563_v51 = vpop.eup %5562  ;;  %v2851_v28 = vadd.f32 1.0, %v5561_v23 }
0x11e2   :  { %v5565_v30 = vpop.eup %5564  ;;  %v2866_v33 = vmul.f32 %v2850_v24, %v2802_v16  ;;  %v2852_v2 = vadd.f32 1.0, %v5563_v51 }
0x11e3   :  { %v5567_v4 = vpop.eup %5566  ;;  %v2867_v59 = vmul.f32 %v2851_v28, %v2803_v8  ;;  %v2853_v14 = vadd.f32 1.0, %v5565_v30  ;;  %v2644_v28 = vld [vmem:[#allocation3 + $0x8] sm:$0xff]  ;;  %v2209_v8 = vld [vmem:[#allocation2 + $0x60] sm:$0xff] }
0x11e4   :  { %v5569_v15 = vpop.eup %5568 }
0x124b   :  { %v2478_v47 = vpop.permute.xlu1 %2477 }
0x124c   :  { %v2482_v35 = vmul.f32 %v2478_v47, %v2472_v17  ;;  %v2868_v17 = vmul.f32 %v2852_v2, %v2804_v9  ;;  %v2854_v47 = vadd.f32 1.0, %v5567_v4  ;;  %v2210_v4 = vld [vmem:[#allocation2 + $0x68] sm:$0xff] }
0x124d   :  { %v2476_v37 = vpop.permute.xlu0 %2475 }
0x124e   :  { %v6416_v38 = vadd.f32 %v2484_v34, %v2482_v35  ;;  %v2481_v12 = vmul.f32 %v2476_v37, %v2471_v19  ;;  %v5571_v34 = vpop.eup %5570  ;;  %v2805_v35 = vmul.f32 0.5, %v2789_v0  ;;  %v2855_v37 = vadd.f32 1.0, %v5569_v15 }
0x124f   :  { %v2043_v7 = vpop.permute.xlu1 %2042 }
0x1250   :  { %v6419_v40 = vadd.f32 %v2483_v56, %v2481_v12  ;;  %v2047_v42 = vmul.f32 %v2043_v7, %v2037_v39  ;;  %2491 = vrot.lane.b32.xlu1 %v6416_v38, %s5810_s22  ;;  %v2869_v19 = vmul.f32 %v2853_v14, %v2805_v35  ;;  %v5573_v56 = vpop.eup %5572  ;;  %v2856_v39 = vadd.f32 1.0, %v5571_v34 }
0x1251   :  { %v2041_v32 = vpop.permute.xlu0 %2040  ;;  %v5575_v7 = vpop.eup %5574 }
0x1252   :  { %v6424_v45 = vadd.f32 %v2049_v41, %v2047_v42  ;;  %v2046_v46 = vmul.f32 %v2041_v32, %v2036_v44  ;;  %2489 = vrot.lane.b32.xlu0 %v6419_v40, %s5810_s22  ;;  %v2807_v41 = vmul.f32 0.5, %v2791_v25  ;;  %v2808_v44 = vmul.f32 0.5, %v6435_v57  ;;  %v5577_v48 = vpop.eup %5576 }
0x1253   :  { %v2858_v49 = vadd.f32 1.0, %v5575_v7 }
0x1254   :  { %v6429_v6 = vadd.f32 %v2048_v3, %v2046_v46  ;;  %2056 = vrot.lane.b32.xlu1 %v6424_v45, %s5810_s22  ;;  %v2871_v3 = vmul.f32 %v2855_v37, %v2807_v41  ;;  %v2857_v46 = vadd.f32 1.0, %v5573_v56 }
0x1255   :  { %v2874_v36 = vmul.f32 %v2858_v49, %v2810_v52 }
0x1256   :  { %2054 = vrot.lane.b32.xlu0 %v6429_v6, %s5810_s22  ;;  %v2873_v0 = vmul.f32 %v2857_v46, %v2809_v10 }
0x12c2   :  { %v2492_v53 = vpop.permute.xlu1 %2491 }
0x12c3   :  { %2497 = vst.msk [vmem:[#allocation6 + $0x18] sm:$0xff] %vm77_vm0, %v2492_v53 }
0x12c4   :  { %v2490_v26 = vpop.permute.xlu0 %2489 }
0x12c5   :  { %2496 = vst.msk [vmem:[#allocation6 + $0x10] sm:$0xff] %vm77_vm0, %v2490_v26  ;;  %5303 = vmatprep.mubr.msk.f32.mxu1 %vm77_vm0, %v2490_v26 }
0x12c6   :  { %v2057_v5 = vpop.permute.xlu1 %2056  ;;  %5304 = vmatmul.mubr.msk.f32.vlgmr.msra.gmra.mxu1 %vm77_vm0, %v2492_v53 }
0x12c7   :  { %2062 = vst.msk [vmem:[#allocation5 + $0x58] sm:$0xff] %vm77_vm0, %v2057_v5  ;;  %5334 = vmatprep.mubr.msk.f32.mxu1 %vm77_vm0, %v2866_v33  ;;  %5333 = vmatpush3.msra.mxu1 %v6412_v22  ;;  %v2806_v22 = vmul.f32 0.5, %v2790_v54  ;;  %v2859_v54 = vadd.f32 1.0, %v5577_v48  ;;  %v2643_v33 = vld [vmem:[#allocation3] sm:$0xff] }
0x12c8   :  { %v2055_v11 = vpop.permute.xlu0 %2054 }
0x12c9   :  { %2061 = vst.msk [vmem:[#allocation5 + $0x50] sm:$0xff] %vm77_vm0, %v2055_v11  ;;  %5288 = vmatprep.mubr.msk.f32.mxu0 %vm77_vm0, %v2055_v11  ;;  %v2870_v12 = vmul.f32 %v2854_v47, %v2806_v22  ;;  %v2875_v25 = vmul.f32 %v2859_v54, %v2811_v55 }
0x12ca   :  { %5289 = vmatmul.mubr.msk.f32.vlgmr.msra.gmra.mxu0 %vm77_vm0, %v2057_v5  ;;  %5335 = vmatmul.mubr.msk.f32.vlgmr.msra.gmra.mxu1 %vm77_vm0, %v2867_v59 }
0x12cb   :  { %5337 = vmatprep.mubr.msk.f32.mxu1 %vm77_vm0, %v2868_v17  ;;  %5297 = vmatpush3.msra.mxu0 %v6332_v27  ;;  %v2872_v27 = vmul.f32 %v2856_v39, %v2808_v44 }
0x12ce   :  { %5338 = vmatmul.mubr.msk.f32.gmra.mxu1 %vm77_vm0, %v2869_v19  ;;  %v2797_v42 = vld [vmem:[#allocation5 + $0x58] sm:$0xff] }
0x12cf   :  { %5340 = vmatprep.mubr.msk.f32.mxu1 %vm77_vm0, %v2870_v12  ;;  %v2829_v32 = vmul.f32 0.70710677, %v2797_v42  ;;  %v2813_v1 = vmul.f32 0.5, %v2797_v42 }
0x12d0   :  { %v2796_v13 = vld [vmem:[#allocation5 + $0x50] sm:$0xff] }
0x12d1   :  { %v2828_v50 = vmul.f32 0.70710677, %v2796_v13  ;;  %5578 = verf.f32 %v2829_v32  ;;  %v2812_v61 = vmul.f32 0.5, %v2796_v13 }
0x12d2   :  { %5341 = vmatmul.mubr.msk.f32.gmra.mxu1 %vm77_vm0, %v2871_v3 }
0x12d3   :  { %5343 = vmatprep.mubr.msk.f32.mxu1 %vm77_vm0, %v2872_v27  ;;  %5580 = verf.f32 %v2828_v50 }
0x12d6   :  { %5344 = vmatmul.mubr.msk.f32.gmra.mxu1 %vm77_vm0, %v2873_v0 }
0x12d7   :  { %5346 = vmatprep.mubr.msk.f32.mxu1 %vm77_vm0, %v2874_v36 }
0x12da   :  { %5347 = vmatmul.mubr.msk.f32.gmra.mxu1 %vm77_vm0, %v2875_v25 }
0x12de   :  { %v5579_v57 = vpop.eup %5578 }
0x12df   :  { %v2861_v60 = vadd.f32 1.0, %v5579_v57 }
0x12e0   :  { %v5581_v58 = vpop.eup %5580 }
0x12e1   :  { %v2860_v63 = vadd.f32 1.0, %v5581_v58  ;;  %v2877_v20 = vmul.f32 %v2861_v60, %v2813_v1 }
0x12e3   :  { %v2876_v62 = vmul.f32 %v2860_v63, %v2812_v61  ;;  %v2979_v63 = vld [vmem:[%s7140_s10] sm:$0xff] }
0x12e4   :  { %5306 = vmatprep.subr.mxu0 %v2979_v63 }
0x12e5   :  { %5349 = vmatprep.mubr.msk.f32.mxu1 %vm77_vm0, %v2876_v62 }
0x12e6   :  { %5350 = vmatmul.mubr.msk.f32.gmra.mxu1 %vm77_vm0, %v2877_v20 }
0x1386   :  { %v5305_v43 = vpop.f32.mrf.mxu1 }
0x1387   :  { %v2721_v31 = vadd.f32 %v6339_v29, %v5305_v43 }
0x1388   :  { %v2715_v23 = vpop.f32.mrf.mxu1 }
0x1389   :  { %v2716_v24 = vadd.f32 %v6339_v29, %v2715_v23  ;;  %2742 = vrot.lane.b32.xlu1 %v2721_v31, %s5808_s5  ;;  %v2725_v30 = vadd.f32 %v2721_v31, %v2644_v28 }
0x138a   :  { %v5290_v51 = vpop.f32.mrf.mxu0 }
0x138b   :  { %v2287_v53 = vadd.f32 %v6394_v21, %v5290_v51  ;;  %2740 = vrot.lane.b32.xlu0 %v2716_v24, %s5808_s5  ;;  %v2724_v2 = vadd.f32 %v2716_v24, %v2643_v33  ;;  %v4967_v29 = vmul.f32 -1.442695, %v2725_v30 }
0x138c   :  { %v2281_v16 = vpop.f32.mrf.mxu0 }
0x138d   :  { %v2282_v26 = vadd.f32 %v6394_v21, %v2281_v16  ;;  %2308 = vrot.lane.b32.xlu1 %v2287_v53, %s5808_s5  ;;  %v2291_v5 = vadd.f32 %v2287_v53, %v2210_v4  ;;  %v4966_v9 = vmul.f32 -1.442695, %v2724_v2  ;;  %5582 = vpow2.f32 %v4967_v29 }
0x138f   :  { %2306 = vrot.lane.b32.xlu0 %v2282_v26, %s5808_s5  ;;  %v2290_v11 = vadd.f32 %v2282_v26, %v2209_v8  ;;  %v4955_v59 = vmul.f32 -1.442695, %v2291_v5  ;;  %5584 = vpow2.f32 %v4966_v9  ;;  %v6516_v5 = vld [vmem:[#allocation6 + $0x10] sm:$0xff]  ;;  %v6519_v9 = vld [vmem:[#allocation6 + $0x20] sm:$0xff] }
0x1391   :  { %v4954_v14 = vmul.f32 -1.442695, %v2290_v11  ;;  %5586 = vpow2.f32 %v4955_v59  ;;  %v2916_v59 = vmul.f32 0.70710677, %v6516_v5 }
0x1393   :  { %5588 = vpow2.f32 %v4954_v14  ;;  %v6524_v14 = vld [vmem:[#allocation6 + $0x18] sm:$0xff] }
0x139a   :  { %v5583_v15 = vpop.eup %5582 }
0x139b   :  { %v2733_v47 = vadd.f32 1.0, %v5583_v15 }
0x139c   :  { %v5585_v17 = vpop.eup %5584 }
0x139d   :  { %v2732_v35 = vadd.f32 1.0, %v5585_v17  ;;  %5590 = vrcp.f32 %v2733_v47  ;;  %v2918_v17 = vmul.f32 0.70710677, %v6519_v9 }
0x139e   :  { %v5587_v34 = vpop.eup %5586 }
0x139f   :  { %v2299_v19 = vadd.f32 1.0, %v5587_v34  ;;  %5592 = vrcp.f32 %v2732_v35  ;;  %v2917_v35 = vmul.f32 0.70710677, %v6524_v14 }
0x13a0   :  { %v5589_v22 = vpop.eup %5588 }
0x13a1   :  { %v2298_v37 = vadd.f32 1.0, %v5589_v22  ;;  %5594 = vrcp.f32 %v2299_v19  ;;  %v6530_v19 = vld [vmem:[#allocation6 + $0x28] sm:$0xff] }
0x13a3   :  { %5596 = vrcp.f32 %v2298_v37 }
0x13aa   :  { %v5591_v56 = vpop.eup %5590 }
0x13ab   :  { %v2761_v60 = vsub.f32 1.0, %v5591_v56  ;;  %v2773_v1 = vmul.f32 %v5591_v56, %v6416_v38 }
0x13ac   :  { %v5593_v7 = vpop.eup %5592 }
0x13ad   :  { %v2760_v20 = vsub.f32 1.0, %v5593_v7  ;;  %v2772_v23 = vmul.f32 %v5593_v7, %v6419_v40  ;;  %v6509_v40 = vld [vmem:[%s7141_s11] sm:$0xff] }
0x13ae   :  { %v5595_v44 = vpop.eup %5594  ;;  %5363 = vmatprep.subr.mxu1 %v6509_v40 }
0x13af   :  { %v2327_v51 = vsub.f32 1.0, %v5595_v44  ;;  %v2339_v26 = vmul.f32 %v5595_v44, %v6424_v45  ;;  %5364 = vmatpush3.msra.mxu1 %v6509_v40 }
0x13b0   :  { %v5597_v46 = vpop.eup %5596  ;;  %5373 = vmatprep.subr.mxu1 %v6509_v40 }
0x13b1   :  { %v2326_v30 = vsub.f32 1.0, %v5597_v46  ;;  %v2338_v38 = vmul.f32 %v5597_v46, %v6429_v6 }
0x13fb   :  { %v2743_v12 = vpop.permute.xlu1 %2742 }
0x13fc   :  { %v2747_v39 = vmul.f32 %v5591_v56, %v2743_v12  ;;  %v6532_v56 = vld [vmem:[#allocation6 + $0x30] sm:$0xff] }
0x13fd   :  { %v2741_v41 = vpop.permute.xlu0 %2740 }
0x13fe   :  { %v2746_v42 = vmul.f32 %v5593_v7, %v2741_v41  ;;  %2752 = vrot.lane.b32.xlu1 %v2747_v39, %s5809_s17  ;;  %v2919_v7 = vmul.f32 0.70710677, %v6530_v19 }
0x13ff   :  { %v2309_v32 = vpop.permute.xlu1 %2308 }
0x1400   :  { %v2313_v3 = vmul.f32 %v5595_v44, %v2309_v32  ;;  %2750 = vrot.lane.b32.xlu0 %v2746_v42, %s5809_s17  ;;  %v2920_v42 = vmul.f32 0.70710677, %v6532_v56  ;;  %v6536_v44 = vld [vmem:[#allocation6 + $0x38] sm:$0xff]  ;;  %v6538_v32 = vld [vmem:[#allocation6 + $0x40] sm:$0xff] }
0x1401   :  { %v2307_v13 = vpop.permute.xlu0 %2306 }
0x1402   :  { %v2312_v48 = vmul.f32 %v5597_v46, %v2307_v13  ;;  %2318 = vrot.lane.b32.xlu1 %v2313_v3, %s5809_s17  ;;  %v2921_v3 = vmul.f32 0.70710677, %v6536_v44  ;;  %v2922_v46 = vmul.f32 0.70710677, %v6538_v32  ;;  %v6542_v13 = vld [vmem:[#allocation6 + $0x48] sm:$0xff] }
0x1404   :  { %2316 = vrot.lane.b32.xlu0 %v2312_v48, %s5809_s17  ;;  %v6544_v48 = vld [vmem:[#allocation6 + $0x50] sm:$0xff] }
0x1470   :  { %v2753_v27 = vpop.permute.xlu1 %2752 }
0x1471   :  { %v2757_v49 = vadd.f32 %v2753_v27, %v2644_v28  ;;  %v2923_v27 = vmul.f32 0.70710677, %v6542_v13 }
0x1472   :  { %v2751_v50 = vpop.permute.xlu0 %2750 }
0x1473   :  { %5598 = vtanh.f32 %v2757_v49  ;;  %v2756_v10 = vadd.f32 %v2751_v50, %v2643_v33  ;;  %v6547_v49 = vld [vmem:[#allocation6 + $0x60] sm:$0xff] }
0x1474   :  { %v2319_v52 = vpop.permute.xlu1 %2318 }
0x1475   :  { %5600 = vtanh.f32 %v2756_v10  ;;  %v2323_v0 = vadd.f32 %v2319_v52, %v2210_v4  ;;  %v2924_v10 = vmul.f32 0.70710677, %v6544_v48  ;;  %v6550_v52 = vld [vmem:[#allocation6 + $0x58] sm:$0xff] }
0x1476   :  { %v2317_v54 = vpop.permute.xlu0 %2316 }
0x1477   :  { %5602 = vtanh.f32 %v2323_v0  ;;  %v2322_v36 = vadd.f32 %v2317_v54, %v2209_v8 }
0x1479   :  { %5604 = vtanh.f32 %v2322_v36  ;;  %v2926_v36 = vmul.f32 0.70710677, %v6547_v49 }
0x147a   :  { %5606 = verf.f32 %v2916_v59 }
0x1480   :  { %v5599_v55 = vpop.eup %5598 }
0x1481   :  { %2766 = vrot.lane.b32.xlu1 %v5599_v55, %s5810_s22  ;;  %v6553_v55 = vld [vmem:[#allocation6 + $0x70] sm:$0xff] }
0x1482   :  { %v5601_v25 = vpop.eup %5600 }
0x1483   :  { %2764 = vrot.lane.b32.xlu0 %v5601_v25, %s5810_s22 }
0x1484   :  { %v5603_v57 = vpop.eup %5602 }
0x1485   :  { %2332 = vrot.lane.b32.xlu1 %v5603_v57, %s5810_s22 }
0x1486   :  { %v5605_v58 = vpop.eup %5604 }
0x1487   :  { %2330 = vrot.lane.b32.xlu0 %v5605_v58, %s5810_s22  ;;  %v5607_v50 = vpop.eup %5606  ;;  %v2925_v58 = vmul.f32 0.70710677, %v6550_v52 }
0x14f3   :  { %v2767_v61 = vpop.permute.xlu1 %2766 }
0x14f4   :  { %v2771_v62 = vmul.f32 %v2767_v61, %v2761_v60  ;;  %v6556_v60 = vld [vmem:[#allocation6 + $0x68] sm:$0xff] }
0x14f5   :  { %v2765_v43 = vpop.permute.xlu0 %2764 }
0x14f6   :  { %v2775_v31 = vadd.f32 %v2773_v1, %v2771_v62  ;;  %v2770_v24 = vmul.f32 %v2765_v43, %v2760_v20  ;;  %v2948_v62 = vadd.f32 1.0, %v5607_v50  ;;  %v2905_v50 = vmul.f32 0.5, %v6536_v44 }
0x14f7   :  { %v2333_v53 = vpop.permute.xlu1 %2332 }
0x14f8   :  { %v2774_v16 = vadd.f32 %v2772_v23, %v2770_v24  ;;  %v2337_v28 = vmul.f32 %v2333_v53, %v2327_v51  ;;  %2780 = vrot.lane.b32.xlu1 %v2775_v31, %s5810_s22  ;;  %v2928_v31 = vmul.f32 0.70710677, %v6553_v55  ;;  %v2900_v24 = vmul.f32 0.5, %v6516_v5 }
0x14f9   :  { %v2331_v33 = vpop.permute.xlu0 %2330  ;;  %v2927_v51 = vmul.f32 0.70710677, %v6556_v60  ;;  %v2901_v5 = vmul.f32 0.5, %v6524_v14 }
0x14fa   :  { %v6496_v2 = vadd.f32 %v2339_v26, %v2337_v28  ;;  %v2336_v4 = vmul.f32 %v2331_v33, %v2326_v30  ;;  %2778 = vrot.lane.b32.xlu0 %v2774_v16, %s5810_s22  ;;  %v6561_v30 = vld [vmem:[#allocation6 + $0x78] sm:$0xff] }
0x14fc   :  { %v6500_v29 = vadd.f32 %v2338_v38, %v2336_v4  ;;  %2346 = vrot.lane.b32.xlu1 %v6496_v2, %s5810_s22  ;;  %v2964_v38 = vmul.f32 %v2948_v62, %v2900_v24 }
0x14fe   :  { %2344 = vrot.lane.b32.xlu0 %v6500_v29, %s5810_s22 }
0x156a   :  { %v2781_v45 = vpop.permute.xlu1 %2780 }
0x156b   :  { %2785 = vst.msk [vmem:[#allocation6 + $0x8] sm:$0xff] %vm77_vm0, %v2781_v45 }
0x156c   :  { %v2779_v6 = vpop.permute.xlu0 %2778 }
0x156d   :  { %2784 = vst.msk [vmem:[#allocation6] sm:$0xff] %vm77_vm0, %v2779_v6 }
0x156e   :  { %v2347_v8 = vpop.permute.xlu1 %2346 }
0x156f   :  { %2352 = vst.msk [vmem:[#allocation5 + $0x68] sm:$0xff] %vm77_vm0, %v2347_v8 }
0x1570   :  { %v2345_v11 = vpop.permute.xlu0 %2344 }
0x1571   :  { %2351 = vst.msk [vmem:[#allocation5 + $0x60] sm:$0xff] %vm77_vm0, %v2345_v11  ;;  %5298 = vmatprep.mubr.msk.f32.mxu0 %vm77_vm0, %v2345_v11 }
0x1572   :  { %5299 = vmatmul.mubr.msk.f32.vlgmr.msra.gmra.mxu0 %vm77_vm0, %v2347_v8  ;;  %v2883_v15 = vld [vmem:[#allocation6 + $0x8] sm:$0xff] }
0x1573   :  { %5307 = vmatpush3.msra.mxu0 %v2979_v63  ;;  %v2915_v47 = vmul.f32 0.70710677, %v2883_v15  ;;  %v2899_v43 = vmul.f32 0.5, %v2883_v15  ;;  %v2902_v15 = vmul.f32 0.5, %v6519_v9  ;;  %v2903_v9 = vmul.f32 0.5, %v6530_v19 }
0x1574   :  { %v2882_v34 = vld [vmem:[#allocation6] sm:$0xff]  ;;  %5358 = vmatprep.subr.mxu0 %v6509_v40 }
0x1575   :  { %v2914_v22 = vmul.f32 0.70710677, %v2882_v34  ;;  %5608 = verf.f32 %v2915_v47  ;;  %v2898_v63 = vmul.f32 0.5, %v2882_v34 }
0x1576   :  { %v2799_v37 = vld [vmem:[#allocation5 + $0x68] sm:$0xff]  ;;  %5610 = verf.f32 %v2918_v17  ;;  %v2929_v17 = vmul.f32 0.70710677, %v6561_v30 }
0x1577   :  { %5612 = verf.f32 %v2914_v22  ;;  %v2831_v12 = vmul.f32 0.70710677, %v2799_v37  ;;  %v2815_v11 = vmul.f32 0.5, %v2799_v37 }
0x1578   :  { %v2798_v39 = vld [vmem:[#allocation5 + $0x60] sm:$0xff]  ;;  %5614 = verf.f32 %v2917_v35 }
0x1579   :  { %v2830_v41 = vmul.f32 0.70710677, %v2798_v39  ;;  %5616 = verf.f32 %v2831_v12  ;;  %v2814_v4 = vmul.f32 0.5, %v2798_v39  ;;  %v2904_v39 = vmul.f32 0.5, %v6532_v56 }
0x157b   :  { %5618 = verf.f32 %v2830_v41 }
0x157c   :  { %5620 = verf.f32 %v2919_v7 }
0x157d   :  { %5622 = verf.f32 %v2920_v42 }
0x157e   :  { %5624 = verf.f32 %v2921_v3 }
0x157f   :  { %5626 = verf.f32 %v2922_v46 }
0x1580   :  { %5628 = verf.f32 %v2923_v27 }
0x1581   :  { %5630 = verf.f32 %v2924_v10  ;;  %v2906_v10 = vmul.f32 0.5, %v6538_v32 }
0x1582   :  { %v5609_v0 = vpop.eup %5608  ;;  %5632 = verf.f32 %v2926_v36 }
0x1583   :  { %v5611_v54 = vpop.eup %5610  ;;  %v2947_v57 = vadd.f32 1.0, %v5609_v0  ;;  %5634 = verf.f32 %v2925_v58  ;;  %v2908_v58 = vmul.f32 0.5, %v6544_v48  ;;  %v2911_v48 = vmul.f32 0.5, %v6556_v60 }
0x1584   :  { %v5613_v25 = vpop.eup %5612  ;;  %v2950_v6 = vadd.f32 1.0, %v5611_v54  ;;  %5636 = verf.f32 %v2927_v51 }
0x1585   :  { %v5615_v61 = vpop.eup %5614  ;;  %v2946_v1 = vadd.f32 1.0, %v5613_v25  ;;  %v2963_v16 = vmul.f32 %v2947_v57, %v2899_v43  ;;  %5638 = verf.f32 %v2928_v31  ;;  %v2907_v57 = vmul.f32 0.5, %v6542_v13 }
0x1586   :  { %v5617_v20 = vpop.eup %5616  ;;  %v2949_v26 = vadd.f32 1.0, %v5615_v61  ;;  %v2966_v14 = vmul.f32 %v2950_v6, %v2902_v15  ;;  %5640 = verf.f32 %v2929_v17  ;;  %v2910_v43 = vmul.f32 0.5, %v6547_v49 }
0x1587   :  { %v2962_v23 = vmul.f32 %v2946_v1, %v2898_v63  ;;  %v2863_v28 = vadd.f32 1.0, %v5617_v20  ;;  %v2909_v20 = vmul.f32 0.5, %v6550_v52  ;;  %v2913_v49 = vmul.f32 0.5, %v6561_v30 }
0x1588   :  { %v5619_v53 = vpop.eup %5618  ;;  %v2965_v47 = vmul.f32 %v2949_v26, %v2901_v5 }
0x1589   :  { %v5621_v33 = vpop.eup %5620  ;;  %5308 = vmatprep.mubr.msk.f32.mxu0 %vm77_vm0, %v2962_v23  ;;  %v2862_v45 = vadd.f32 1.0, %v5619_v53  ;;  %v2879_v34 = vmul.f32 %v2863_v28, %v2815_v11  ;;  %v2912_v53 = vmul.f32 0.5, %v6553_v55  ;;  %v6614_v11 = vld [vmem:[%s7142_s12] ss:$0 sm:$0xff] }
0x158a   :  { %v5623_v8 = vpop.eup %5622  ;;  %5309 = vmatmul.mubr.msk.f32.vlgmr.msra.gmra.mxu0 %vm77_vm0, %v2963_v16  ;;  %v2951_v35 = vadd.f32 1.0, %v5621_v33  ;;  %v5336_v33 = vpop.f32.mrf.mxu1 }
0x158b   :  { %5311 = vmatprep.mubr.msk.f32.mxu0 %vm77_vm0, %v2964_v38  ;;  %5359 = vmatpush3.msra.mxu0 %v6509_v40  ;;  %v2878_v59 = vmul.f32 %v2862_v45, %v2814_v4  ;;  %v5625_v22 = vpop.eup %5624  ;;  %v2952_v37 = vadd.f32 1.0, %v5623_v8 }
0x158c   :  { %5368 = vmatprep.subr.mxu0 %v6509_v40  ;;  %v5627_v12 = vpop.eup %5626  ;;  %v2967_v7 = vmul.f32 %v2951_v35, %v2903_v9  ;;  %v2953_v41 = vadd.f32 1.0, %v5625_v22 }
0x158d   :  { %5352 = vmatprep.mubr.msk.f32.mxu1 %vm77_vm0, %v2878_v59  ;;  %v5629_v42 = vpop.eup %5628  ;;  %v2968_v3 = vmul.f32 %v2952_v37, %v2904_v39  ;;  %v2954_v46 = vadd.f32 1.0, %v5627_v12 }
0x158e   :  { %5312 = vmatmul.mubr.msk.f32.gmra.mxu0 %vm77_vm0, %v2965_v47  ;;  %5353 = vmatmul.mubr.msk.f32.gmra.mxu1 %vm77_vm0, %v2879_v34  ;;  %v5631_v27 = vpop.eup %5630  ;;  %v2969_v0 = vmul.f32 %v2953_v41, %v2905_v50  ;;  %v2955_v54 = vadd.f32 1.0, %v5629_v42 }
0x158f   :  { %5314 = vmatprep.mubr.msk.f32.mxu0 %vm77_vm0, %v2966_v14  ;;  %v5633_v19 = vpop.eup %5632  ;;  %v2970_v56 = vmul.f32 %v2954_v46, %v2906_v10  ;;  %v2956_v25 = vadd.f32 1.0, %v5631_v27 }
0x1590   :  { %v5635_v36 = vpop.eup %5634  ;;  %v2971_v61 = vmul.f32 %v2955_v54, %v2907_v57  ;;  %v2958_v62 = vadd.f32 1.0, %v5633_v19 }
0x1591   :  { %v2957_v44 = vadd.f32 1.0, %v5635_v36  ;;  %v5637_v63 = vpop.eup %5636  ;;  %v2972_v1 = vmul.f32 %v2956_v25, %v2908_v58 }
0x1592   :  { %5315 = vmatmul.mubr.msk.f32.gmra.mxu0 %vm77_vm0, %v2967_v7  ;;  %v5639_v32 = vpop.eup %5638  ;;  %v2959_v13 = vadd.f32 1.0, %v5637_v63  ;;  %v2974_v24 = vmul.f32 %v2958_v62, %v2910_v43 }
0x1593   :  { %5317 = vmatprep.mubr.msk.f32.mxu0 %vm77_vm0, %v2968_v3  ;;  %v2973_v31 = vmul.f32 %v2957_v44, %v2909_v20  ;;  %v5641_v23 = vpop.eup %5640  ;;  %v2960_v51 = vadd.f32 1.0, %v5639_v32 }
0x1594   :  { %v2975_v16 = vmul.f32 %v2959_v13, %v2911_v48  ;;  %v2961_v26 = vadd.f32 1.0, %v5641_v23 }
0x1595   :  { %v2976_v52 = vmul.f32 %v2960_v51, %v2912_v53 }
0x1596   :  { %5318 = vmatmul.mubr.msk.f32.gmra.mxu0 %vm77_vm0, %v2969_v0  ;;  %v2977_v28 = vmul.f32 %v2961_v26, %v2913_v49 }
0x1597   :  { %5320 = vmatprep.mubr.msk.f32.mxu0 %vm77_vm0, %v2970_v56 }
0x159a   :  { %5321 = vmatmul.mubr.msk.f32.gmra.mxu0 %vm77_vm0, %v2971_v61 }
0x159b   :  { %5323 = vmatprep.mubr.msk.f32.mxu0 %vm77_vm0, %v2972_v1 }
0x159e   :  { %5324 = vmatmul.mubr.msk.f32.gmra.mxu0 %vm77_vm0, %v2973_v31 }
0x159f   :  { %5326 = vmatprep.mubr.msk.f32.mxu0 %vm77_vm0, %v2974_v24 }
0x15a2   :  { %5327 = vmatmul.mubr.msk.f32.gmra.mxu0 %vm77_vm0, %v2975_v16 }
0x15a3   :  { %5329 = vmatprep.mubr.msk.f32.mxu0 %vm77_vm0, %v2976_v52 }
0x15a6   :  { %5330 = vmatmul.mubr.msk.f32.gmra.mxu0 %vm77_vm0, %v2977_v28 }
0x15a7   :  { %5360 = vmatprep.mubr.f32.mxu0 %v5807_v18 }
0x15aa   :  { %5361 = vmatmul.mubr.f32.vlgmr.msra.gmra.mxu0 %v5807_v18  ;;  %v3287_v18 = vpop.f32.mrf.mxu1 }
0x15ab   :  { %5369 = vmatpush3.msra.mxu0 %v6509_v40 }
0x15ac   :  { %5378 = vmatprep.subr.mxu0 %v6509_v40  ;;  %v5339_v4 = vpop.f32.mrf.mxu1 }
0x15ae   :  { %v3297_v45 = vpop.f32.mrf.mxu1 }
0x15b0   :  { %v5342_v6 = vpop.f32.mrf.mxu1 }
0x15b2   :  { %v3307_v8 = vpop.f32.mrf.mxu1 }
0x1632   :  { %v5300_v55 = vpop.f32.mrf.mxu0 }
0x1633   :  { %v6602_v60 = vadd.f32 %v6394_v21, %v5300_v55 }
0x1634   :  { %v2571_v38 = vpop.f32.mrf.mxu0 }
0x1635   :  { %v6605_v30 = vadd.f32 %v6394_v21, %v2571_v38  ;;  %2598 = vrot.lane.b32.xlu1 %v6602_v60, %s5808_s5  ;;  %v5345_v21 = vpop.f32.mrf.mxu1  ;;  %v6650_v38 = vld [vmem:[%s7143_s13] ss:$0 sm:$0xff] }
0x1637   :  { %2596 = vrot.lane.b32.xlu0 %v6605_v30, %s5808_s5  ;;  %v3317_v14 = vpop.f32.mrf.mxu1 }
0x1639   :  { %v5348_v42 = vpop.f32.mrf.mxu1 }
0x163b   :  { %v3327_v0 = vpop.f32.mrf.mxu1 }
0x163d   :  { %v5351_v25 = vpop.f32.mrf.mxu1 }
0x163f   :  { %v3337_v62 = vpop.f32.mrf.mxu1 }
0x164a   :  { %v5310_v5 = vpop.f32.mrf.mxu0 }
0x164b   :  { %v3293_v59 = vadd.f32 %v5336_v33, %v5310_v5 }
0x164c   :  { %v3094_v15 = vpop.f32.mrf.mxu0 }
0x164d   :  { %v3374_v17 = vadd.f32 %v6614_v11, %v3293_v59  ;;  %v3288_v47 = vadd.f32 %v3287_v18, %v3094_v15  ;;  %v2499_v59 = vld [vmem:[#allocation2 + $0x70] sm:$0xff] }
0x164e   :  { %v5313_v34 = vpop.f32.mrf.mxu0  ;;  %v5354_v31 = vpop.f32.mrf.mxu1 }
0x164f   :  { %3390 = vst.msk [vmem:[#allocation4 + $0x8] sm:$0xff] %vm271_vm1, %v3374_v17  ;;  %v3373_v35 = vadd.f32 %v6614_v11, %v3288_v47  ;;  %v3303_v22 = vadd.f32 %v5339_v4, %v5313_v34 }
0x1650   :  { %v3104_v37 = vpop.f32.mrf.mxu0  ;;  %v3347_v16 = vpop.f32.mrf.mxu1 }
0x1651   :  { %3389 = vst.msk [vmem:[#allocation4] sm:$0xff] %vm271_vm1, %v3373_v35  ;;  %v3376_v12 = vadd.f32 %v6614_v11, %v3303_v22  ;;  %v3298_v9 = vadd.f32 %v3297_v45, %v3104_v37 }
0x1652   :  { %v5316_v39 = vpop.f32.mrf.mxu0 }
0x1653   :  { %3392 = vst.msk [vmem:[#allocation4 + $0x18] sm:$0xff] %vm271_vm1, %v3376_v12  ;;  %v3375_v7 = vadd.f32 %v6614_v11, %v3298_v9  ;;  %v3313_v41 = vadd.f32 %v5342_v6, %v5316_v39 }
0x1654   :  { %v3114_v3 = vpop.f32.mrf.mxu0 }
0x1655   :  { %3391 = vst.msk [vmem:[#allocation4 + $0x10] sm:$0xff] %vm271_vm1, %v3375_v7  ;;  %v3378_v46 = vadd.f32 %v6614_v11, %v3313_v41  ;;  %v3308_v27 = vadd.f32 %v3307_v8, %v3114_v3  ;;  %v2500_v8 = vld [vmem:[#allocation2 + $0x78] sm:$0xff] }
0x1656   :  { %v5319_v50 = vpop.f32.mrf.mxu0  ;;  %v2581_v5 = vadd.f32 %v6602_v60, %v2500_v8  ;;  %v3406_v60 = vld [vmem:[#allocation4 + $0x8] sm:$0xff] }
0x1657   :  { %3394 = vst.msk [vmem:[#allocation4 + $0x28] sm:$0xff] %vm271_vm1, %v3378_v46  ;;  %v3377_v10 = vadd.f32 %v6614_v11, %v3308_v27  ;;  %v3323_v19 = vadd.f32 %v5345_v21, %v5319_v50  ;;  %v2580_v21 = vadd.f32 %v6605_v30, %v2499_v59 }
0x1658   :  { %v3124_v54 = vpop.f32.mrf.mxu0  ;;  %v4963_v15 = vmul.f32 -1.442695, %v2581_v5  ;;  %v3405_v41 = vld [vmem:[#allocation4] sm:$0xff] }
0x1659   :  { %3393 = vst.msk [vmem:[#allocation4 + $0x20] sm:$0xff] %vm271_vm1, %v3377_v10  ;;  %v3380_v36 = vadd.f32 %v6614_v11, %v3323_v19  ;;  %v3318_v56 = vadd.f32 %v3317_v14, %v3124_v54  ;;  %v4962_v17 = vmul.f32 -1.442695, %v2580_v21 }
0x165a   :  { %v5322_v57 = vpop.f32.mrf.mxu0  ;;  %5642 = vpow2.f32 %v4963_v15 }
0x165b   :  { %3396 = vst.msk [vmem:[#allocation4 + $0x38] sm:$0xff] %vm271_vm1, %v3380_v36  ;;  %v3379_v58 = vadd.f32 %v6614_v11, %v3318_v56  ;;  %v3333_v61 = vadd.f32 %v5348_v42, %v5322_v57  ;;  %5644 = vpow2.f32 %v4962_v17 }
0x165c   :  { %v3134_v44 = vpop.f32.mrf.mxu0 }
0x165d   :  { %3395 = vst.msk [vmem:[#allocation4 + $0x30] sm:$0xff] %vm271_vm1, %v3379_v58  ;;  %v3382_v63 = vadd.f32 %v6614_v11, %v3333_v61  ;;  %v3328_v1 = vadd.f32 %v3327_v0, %v3134_v44 }
0x165e   :  { %v5325_v32 = vpop.f32.mrf.mxu0 }
0x165f   :  { %3398 = vst.msk [vmem:[#allocation4 + $0x48] sm:$0xff] %vm271_vm1, %v3382_v63  ;;  %v3381_v20 = vadd.f32 %v6614_v11, %v3328_v1  ;;  %v3343_v43 = vadd.f32 %v5351_v25, %v5325_v32 }
0x1660   :  { %v3144_v13 = vpop.f32.mrf.mxu0 }
0x1661   :  { %3397 = vst.msk [vmem:[#allocation4 + $0x40] sm:$0xff] %vm271_vm1, %v3381_v20  ;;  %v3384_v23 = vadd.f32 %v6614_v11, %v3343_v43  ;;  %v3338_v24 = vadd.f32 %v3337_v62, %v3144_v13 }
0x1662   :  { %v5328_v51 = vpop.f32.mrf.mxu0 }
0x1663   :  { %3400 = vst.msk [vmem:[#allocation4 + $0x58] sm:$0xff] %vm271_vm1, %v3384_v23  ;;  %v3383_v48 = vadd.f32 %v6614_v11, %v3338_v24  ;;  %v3353_v53 = vadd.f32 %v5354_v31, %v5328_v51 }
0x1664   :  { %v3154_v26 = vpop.f32.mrf.mxu0 }
0x1665   :  { %3399 = vst.msk [vmem:[#allocation4 + $0x50] sm:$0xff] %vm271_vm1, %v3383_v48  ;;  %v3386_v52 = vadd.f32 %v6614_v11, %v3353_v53  ;;  %v3348_v49 = vadd.f32 %v3347_v16, %v3154_v26 }
0x1666   :  { %v6641_v28 = vpop.f32.mrf.mxu0 }
0x1667   :  { %3402 = vst.msk [vmem:[#allocation4 + $0x68] sm:$0xff] %vm271_vm1, %v3386_v52  ;;  %v3385_v55 = vadd.f32 %v6614_v11, %v3348_v49  ;;  %v5643_v47 = vpop.eup %5642 }
0x1668   :  { %v6645_v33 = vpop.f32.mrf.mxu0  ;;  %v5645_v34 = vpop.eup %5644  ;;  %v2589_v35 = vadd.f32 1.0, %v5643_v47 }
0x1669   :  { %3401 = vst.msk [vmem:[#allocation4 + $0x60] sm:$0xff] %vm271_vm1, %v3385_v55  ;;  %v2588_v22 = vadd.f32 1.0, %v5645_v34 }
0x166a   :  { %v5362_v18 = vpop.f32.mrf.mxu0  ;;  %5646 = vrcp.f32 %v2589_v35 }
0x166b   :  { %v3485_v4 = vadd.f32 %v5362_v18, %v6650_v38  ;;  %5648 = vrcp.f32 %v2588_v22 }
0x166c   :  { %v3479_v45 = vpop.f32.mrf.mxu0 }
0x166d   :  { %v3480_v6 = vadd.f32 %v6650_v38, %v3479_v45  ;;  %3506 = vrot.lane.b32.xlu1 %v3485_v4, %s5808_s5  ;;  %v3489_v30 = vadd.f32 %v3485_v4, %v3406_v60 }
0x166f   :  { %3504 = vrot.lane.b32.xlu0 %v3480_v6, %s5808_s5  ;;  %v3488_v42 = vadd.f32 %v3480_v6, %v3405_v41  ;;  %v5003_v3 = vmul.f32 -1.442695, %v3489_v30 }
0x1671   :  { %v5002_v46 = vmul.f32 -1.442695, %v3488_v42  ;;  %5650 = vpow2.f32 %v5003_v3 }
0x1673   :  { %5652 = vpow2.f32 %v5002_v46 }
0x1677   :  { %v5647_v14 = vpop.eup %5646 }
0x1678   :  { %v5649_v9 = vpop.eup %5648  ;;  %v2617_v24 = vsub.f32 1.0, %v5647_v14  ;;  %v2629_v48 = vmul.f32 %v5647_v14, %v6496_v2 }
0x1679   :  { %v2616_v16 = vsub.f32 1.0, %v5649_v9  ;;  %v2628_v49 = vmul.f32 %v5649_v9, %v6500_v29 }
0x167e   :  { %v5651_v27 = vpop.eup %5650 }
0x167f   :  { %v3497_v10 = vadd.f32 1.0, %v5651_v27 }
0x1680   :  { %v5653_v50 = vpop.eup %5652 }
0x1681   :  { %v3496_v19 = vadd.f32 1.0, %v5653_v50  ;;  %5654 = vrcp.f32 %v3497_v10 }
0x1683   :  { %5656 = vrcp.f32 %v3496_v19 }
0x168e   :  { %v5655_v0 = vpop.eup %5654 }
0x168f   :  { %v3525_v4 = vsub.f32 1.0, %v5655_v0  ;;  %v3537_v6 = vmul.f32 0.0, %v5655_v0 }
0x1690   :  { %v5657_v56 = vpop.eup %5656 }
0x1691   :  { %v3524_v5 = vsub.f32 1.0, %v5657_v56  ;;  %v3536_v2 = vmul.f32 0.0, %v5657_v56 }
0x16a7   :  { %v2599_v37 = vpop.permute.xlu1 %2598 }
0x16a8   :  { %v2603_v12 = vmul.f32 %v5647_v14, %v2599_v37 }
0x16a9   :  { %v2597_v39 = vpop.permute.xlu0 %2596 }
0x16aa   :  { %v2602_v7 = vmul.f32 %v5649_v9, %v2597_v39  ;;  %2608 = vrot.lane.b32.xlu1 %v2603_v12, %s5809_s17 }
0x16ac   :  { %2606 = vrot.lane.b32.xlu0 %v2602_v7, %s5809_s17 }
0x16df   :  { %v3507_v54 = vpop.permute.xlu1 %3506 }
0x16e0   :  { %v3511_v36 = vmul.f32 %v5655_v0, %v3507_v54 }
0x16e1   :  { %v3505_v25 = vpop.permute.xlu0 %3504 }
0x16e2   :  { %v3510_v57 = vmul.f32 %v5657_v56, %v3505_v25  ;;  %3516 = vrot.lane.b32.xlu1 %v3511_v36, %s5809_s17 }
0x16e4   :  { %3514 = vrot.lane.b32.xlu0 %v3510_v57, %s5809_s17 }
0x171c   :  { %v2609_v58 = vpop.permute.xlu1 %2608 }
0x171d   :  { %v2613_v61 = vadd.f32 %v2609_v58, %v2500_v8  ;;  %v3551_v58 = vld [vmem:[#allocation4 + $0x10] sm:$0xff] }
0x171e   :  { %v2607_v44 = vpop.permute.xlu0 %2606 }
0x171f   :  { %5658 = vtanh.f32 %v2613_v61  ;;  %v2612_v63 = vadd.f32 %v2607_v44, %v2499_v59 }
0x1721   :  { %5660 = vtanh.f32 %v2612_v63 }
0x172c   :  { %v5659_v1 = vpop.eup %5658 }
0x172d   :  { %2622 = vrot.lane.b32.xlu1 %v5659_v1, %s5810_s22 }
0x172e   :  { %v5661_v62 = vpop.eup %5660 }
0x172f   :  { %2620 = vrot.lane.b32.xlu0 %v5661_v62, %s5810_s22 }
0x1754   :  { %v3517_v32 = vpop.permute.xlu1 %3516 }
0x1755   :  { %v3521_v20 = vadd.f32 %v3517_v32, %v3406_v60 }
0x1756   :  { %v3515_v43 = vpop.permute.xlu0 %3514 }
0x1757   :  { %5662 = vtanh.f32 %v3521_v20  ;;  %v3520_v31 = vadd.f32 %v3515_v43, %v3405_v41 }
0x1759   :  { %5664 = vtanh.f32 %v3520_v31 }
0x1764   :  { %v5663_v13 = vpop.eup %5662 }
0x1765   :  { %3530 = vrot.lane.b32.xlu1 %v5663_v13, %s5810_s22 }
0x1766   :  { %v5665_v23 = vpop.eup %5664 }
0x1767   :  { %3528 = vrot.lane.b32.xlu0 %v5665_v23, %s5810_s22 }
0x179f   :  { %v2623_v51 = vpop.permute.xlu1 %2622 }
0x17a0   :  { %v2627_v53 = vmul.f32 %v2623_v51, %v2617_v24 }
0x17a1   :  { %v2621_v26 = vpop.permute.xlu0 %2620 }
0x17a2   :  { %v2631_v52 = vadd.f32 %v2629_v48, %v2627_v53  ;;  %v2626_v55 = vmul.f32 %v2621_v26, %v2616_v16 }
0x17a4   :  { %v2630_v18 = vadd.f32 %v2628_v49, %v2626_v55  ;;  %2636 = vrot.lane.b32.xlu1 %v2631_v52, %s5810_s22 }
0x17a6   :  { %2634 = vrot.lane.b32.xlu0 %v2630_v18, %s5810_s22 }
0x17d7   :  { %v3531_v45 = vpop.permute.xlu1 %3530 }
0x17d8   :  { %v3535_v8 = vmul.f32 %v3531_v45, %v3525_v4 }
0x17d9   :  { %v3529_v59 = vpop.permute.xlu0 %3528 }
0x17da   :  { %v6671_v21 = vadd.f32 %v3537_v6, %v3535_v8  ;;  %v3534_v15 = vmul.f32 %v3529_v59, %v3524_v5 }
0x17dc   :  { %v6673_v17 = vadd.f32 %v3536_v2, %v3534_v15  ;;  %3544 = vrot.lane.b32.xlu1 %v6671_v21, %s5810_s22 }
0x17de   :  { %3542 = vrot.lane.b32.xlu0 %v6673_v17, %s5810_s22 }
0x1816   :  { %v2637_v29 = vpop.permute.xlu1 %2636 }
0x1817   :  { %2642 = vst.msk [vmem:[#allocation5 + $0x78] sm:$0xff] %vm77_vm0, %v2637_v29 }
0x1818   :  { %v2635_v47 = vpop.permute.xlu0 %2634 }
0x1819   :  { %2641 = vst.msk [vmem:[#allocation5 + $0x70] sm:$0xff] %vm77_vm0, %v2635_v47 }
0x181e   :  { %v2801_v34 = vld [vmem:[#allocation5 + $0x78] sm:$0xff] }
0x181f   :  { %v2833_v35 = vmul.f32 0.70710677, %v2801_v34  ;;  %v2817_v60 = vmul.f32 0.5, %v2801_v34  ;;  %v3697_v34 = vld [vmem:[#allocation4 + $0x28] sm:$0xff] }
0x1820   :  { %v2800_v22 = vld [vmem:[#allocation5 + $0x70] sm:$0xff] }
0x1821   :  { %v2832_v14 = vmul.f32 0.70710677, %v2800_v22  ;;  %5666 = verf.f32 %v2833_v35  ;;  %v2816_v39 = vmul.f32 0.5, %v2800_v22  ;;  %v3696_v22 = vld [vmem:[#allocation4 + $0x20] sm:$0xff] }
0x1823   :  { %5668 = verf.f32 %v2832_v14 }
0x182e   :  { %v5667_v37 = vpop.eup %5666 }
0x182f   :  { %v2865_v9 = vadd.f32 1.0, %v5667_v37 }
0x1830   :  { %v5669_v12 = vpop.eup %5668 }
0x1831   :  { %v2864_v7 = vadd.f32 1.0, %v5669_v12  ;;  %v2881_v41 = vmul.f32 %v2865_v9, %v2817_v60 }
0x1833   :  { %v2880_v30 = vmul.f32 %v2864_v7, %v2816_v39 }
0x1835   :  { %5355 = vmatprep.mubr.msk.f32.mxu1 %vm77_vm0, %v2880_v30 }
0x1836   :  { %5356 = vmatmul.mubr.msk.f32.gmra.mxu1 %vm77_vm0, %v2881_v41 }
0x184e   :  { %v3545_v42 = vpop.permute.xlu1 %3544 }
0x184f   :  { %3549 = vst.msk [vmem:[#allocation7 + $0x8] sm:$0xff] %vm77_vm0, %v3545_v42 }
0x1850   :  { %v3543_v3 = vpop.permute.xlu0 %3542 }
0x1851   :  { %3548 = vst.msk [vmem:[#allocation7] sm:$0xff] %vm77_vm0, %v3543_v3  ;;  %5365 = vmatprep.mubr.msk.f32.mxu1 %vm77_vm0, %v3543_v3 }
0x1852   :  { %5366 = vmatmul.mubr.msk.f32.vlgmr.msra.gmra.mxu1 %vm77_vm0, %v3545_v42 }
0x1853   :  { %5374 = vmatpush3.msra.mxu1 %v6509_v40 }
0x1854   :  { %5383 = vmatprep.subr.mxu1 %v6509_v40 }
0x18f6   :  { %v5357_v46 = vpop.f32.mrf.mxu1 }
0x18f7   :  { %v3363_v27 = vadd.f32 %v5357_v46, %v6641_v28  ;;  %v3552_v28 = vld [vmem:[#allocation4 + $0x18] sm:$0xff] }
0x18f8   :  { %v3357_v50 = vpop.f32.mrf.mxu1 }
0x18f9   :  { %v3388_v10 = vadd.f32 %v6614_v11, %v3363_v27  ;;  %v3358_v19 = vadd.f32 %v3357_v50, %v6645_v33 }
0x18fb   :  { %3404 = vst.msk [vmem:[#allocation4 + $0x78] sm:$0xff] %vm271_vm1, %v3388_v10  ;;  %v3387_v0 = vadd.f32 %v6614_v11, %v3358_v19 }
0x18fd   :  { %3403 = vst.msk [vmem:[#allocation4 + $0x70] sm:$0xff] %vm271_vm1, %v3387_v0 }
0x1912   :  { %v5367_v54 = vpop.f32.mrf.mxu1 }
0x1913   :  { %v3629_v36 = vadd.f32 %v5367_v54, %v6650_v38 }
0x1914   :  { %v3623_v56 = vpop.f32.mrf.mxu1 }
0x1915   :  { %v3624_v25 = vadd.f32 %v6650_v38, %v3623_v56  ;;  %3650 = vrot.lane.b32.xlu1 %v3629_v36, %s5808_s5  ;;  %v3633_v57 = vadd.f32 %v3629_v36, %v3552_v28 }
0x1917   :  { %3648 = vrot.lane.b32.xlu0 %v3624_v25, %s5808_s5  ;;  %v3632_v33 = vadd.f32 %v3624_v25, %v3551_v58  ;;  %v5007_v61 = vmul.f32 -1.442695, %v3633_v57 }
0x1919   :  { %v5006_v44 = vmul.f32 -1.442695, %v3632_v33  ;;  %5670 = vpow2.f32 %v5007_v61 }
0x191b   :  { %5672 = vpow2.f32 %v5006_v44 }
0x1926   :  { %v5671_v11 = vpop.eup %5670 }
0x1927   :  { %v3641_v1 = vadd.f32 1.0, %v5671_v11 }
0x1928   :  { %v5673_v63 = vpop.eup %5672 }
0x1929   :  { %v3640_v62 = vadd.f32 1.0, %v5673_v63  ;;  %5674 = vrcp.f32 %v3641_v1 }
0x192b   :  { %5676 = vrcp.f32 %v3640_v62 }
0x1936   :  { %v5675_v32 = vpop.eup %5674 }
0x1937   :  { %v3669_v52 = vsub.f32 1.0, %v5675_v32  ;;  %v3681_v55 = vmul.f32 %v5675_v32, %v6671_v21 }
0x1938   :  { %v5677_v31 = vpop.eup %5676 }
0x1939   :  { %v3668_v4 = vsub.f32 1.0, %v5677_v31  ;;  %v3680_v8 = vmul.f32 %v5677_v31, %v6673_v17 }
0x1987   :  { %v3651_v20 = vpop.permute.xlu1 %3650 }
0x1988   :  { %v3655_v43 = vmul.f32 %v5675_v32, %v3651_v20 }
0x1989   :  { %v3649_v13 = vpop.permute.xlu0 %3648 }
0x198a   :  { %v3654_v23 = vmul.f32 %v5677_v31, %v3649_v13  ;;  %3660 = vrot.lane.b32.xlu1 %v3655_v43, %s5809_s17  ;;  %v3842_v13 = vld [vmem:[#allocation4 + $0x38] sm:$0xff] }
0x198c   :  { %3658 = vrot.lane.b32.xlu0 %v3654_v23, %s5809_s17 }
0x19fc   :  { %v3661_v24 = vpop.permute.xlu1 %3660 }
0x19fd   :  { %v3665_v51 = vadd.f32 %v3661_v24, %v3552_v28  ;;  %v3841_v24 = vld [vmem:[#allocation4 + $0x30] sm:$0xff] }
0x19fe   :  { %v3659_v48 = vpop.permute.xlu0 %3658 }
0x19ff   :  { %5678 = vtanh.f32 %v3665_v51  ;;  %v3664_v53 = vadd.f32 %v3659_v48, %v3551_v58 }
0x1a01   :  { %5680 = vtanh.f32 %v3664_v53 }
0x1a0c   :  { %v5679_v16 = vpop.eup %5678 }
0x1a0d   :  { %3674 = vrot.lane.b32.xlu1 %v5679_v16, %s5810_s22 }
0x1a0e   :  { %v5681_v26 = vpop.eup %5680 }
0x1a0f   :  { %3672 = vrot.lane.b32.xlu0 %v5681_v26, %s5810_s22 }
0x1a7f   :  { %v3675_v49 = vpop.permute.xlu1 %3674 }
0x1a80   :  { %v3679_v18 = vmul.f32 %v3675_v49, %v3669_v52 }
0x1a81   :  { %v3673_v45 = vpop.permute.xlu0 %3672 }
0x1a82   :  { %v3683_v6 = vadd.f32 %v3681_v55, %v3679_v18  ;;  %v3678_v5 = vmul.f32 %v3673_v45, %v3668_v4 }
0x1a84   :  { %v3682_v59 = vadd.f32 %v3680_v8, %v3678_v5  ;;  %3688 = vrot.lane.b32.xlu1 %v3683_v6, %s5810_s22 }
0x1a86   :  { %3686 = vrot.lane.b32.xlu0 %v3682_v59, %s5810_s22 }
0x1af6   :  { %v3689_v2 = vpop.permute.xlu1 %3688 }
0x1af7   :  { %3694 = vst.msk [vmem:[#allocation7 + $0x18] sm:$0xff] %vm77_vm0, %v3689_v2 }
0x1af8   :  { %v3687_v15 = vpop.permute.xlu0 %3686 }
0x1af9   :  { %3693 = vst.msk [vmem:[#allocation7 + $0x10] sm:$0xff] %vm77_vm0, %v3687_v15  ;;  %5370 = vmatprep.mubr.msk.f32.mxu0 %vm77_vm0, %v3687_v15 }
0x1afa   :  { %5371 = vmatmul.mubr.msk.f32.vlgmr.msra.gmra.mxu0 %vm77_vm0, %v3689_v2 }
0x1afb   :  { %5379 = vmatpush3.msra.mxu0 %v6509_v40 }
0x1afc   :  { %5388 = vmatprep.subr.mxu0 %v6509_v40 }
0x1bba   :  { %v5372_v21 = vpop.f32.mrf.mxu0 }
0x1bbb   :  { %v3774_v17 = vadd.f32 %v5372_v21, %v6650_v38 }
0x1bbc   :  { %v3768_v29 = vpop.f32.mrf.mxu0 }
0x1bbd   :  { %v3769_v47 = vadd.f32 %v6650_v38, %v3768_v29  ;;  %3795 = vrot.lane.b32.xlu1 %v3774_v17, %s5808_s5  ;;  %v3778_v35 = vadd.f32 %v3774_v17, %v3697_v34 }
0x1bbf   :  { %3793 = vrot.lane.b32.xlu0 %v3769_v47, %s5808_s5  ;;  %v3777_v14 = vadd.f32 %v3769_v47, %v3696_v22  ;;  %v5011_v37 = vmul.f32 -1.442695, %v3778_v35 }
0x1bc1   :  { %v5010_v12 = vmul.f32 -1.442695, %v3777_v14  ;;  %5682 = vpow2.f32 %v5011_v37 }
0x1bc3   :  { %5684 = vpow2.f32 %v5010_v12 }
0x1bce   :  { %v5683_v9 = vpop.eup %5682 }
0x1bcf   :  { %v3786_v7 = vadd.f32 1.0, %v5683_v9 }
0x1bd0   :  { %v5685_v39 = vpop.eup %5684 }
0x1bd1   :  { %v3785_v60 = vadd.f32 1.0, %v5685_v39  ;;  %5686 = vrcp.f32 %v3786_v7 }
0x1bd3   :  { %5688 = vrcp.f32 %v3785_v60  ;;  %v5790_v60 = vld [vmem:[%s7141_s11] sm:$0xff] }
0x1bde   :  { %v5687_v30 = vpop.eup %5686 }
0x1bdf   :  { %v3814_v56 = vsub.f32 1.0, %v5687_v30  ;;  %v3826_v28 = vmul.f32 %v5687_v30, %v3683_v6 }
0x1be0   :  { %v5689_v3 = vpop.eup %5688 }
0x1be1   :  { %v3813_v58 = vsub.f32 1.0, %v5689_v3  ;;  %v3825_v44 = vmul.f32 %v5689_v3, %v3682_v59 }
0x1c2f   :  { %v3796_v41 = vpop.permute.xlu1 %3795 }
0x1c30   :  { %v3800_v42 = vmul.f32 %v5687_v30, %v3796_v41 }
0x1c31   :  { %v3794_v46 = vpop.permute.xlu0 %3793 }
0x1c32   :  { %v3799_v27 = vmul.f32 %v5689_v3, %v3794_v46  ;;  %3805 = vrot.lane.b32.xlu1 %v3800_v42, %s5809_s17  ;;  %v3987_v46 = vld [vmem:[#allocation4 + $0x48] sm:$0xff] }
0x1c34   :  { %3803 = vrot.lane.b32.xlu0 %v3799_v27, %s5809_s17 }
0x1ca4   :  { %v3806_v50 = vpop.permute.xlu1 %3805 }
0x1ca5   :  { %v3810_v10 = vadd.f32 %v3806_v50, %v3697_v34  ;;  %v3986_v50 = vld [vmem:[#allocation4 + $0x40] sm:$0xff] }
0x1ca6   :  { %v3804_v19 = vpop.permute.xlu0 %3803 }
0x1ca7   :  { %5690 = vtanh.f32 %v3810_v10  ;;  %v3809_v0 = vadd.f32 %v3804_v19, %v3696_v22 }
0x1ca9   :  { %5692 = vtanh.f32 %v3809_v0 }
0x1cb4   :  { %v5691_v54 = vpop.eup %5690 }
0x1cb5   :  { %3819 = vrot.lane.b32.xlu1 %v5691_v54, %s5810_s22 }
0x1cb6   :  { %v5693_v36 = vpop.eup %5692 }
0x1cb7   :  { %3817 = vrot.lane.b32.xlu0 %v5693_v36, %s5810_s22 }
0x1d27   :  { %v3820_v25 = vpop.permute.xlu1 %3819 }
0x1d28   :  { %v3824_v57 = vmul.f32 %v3820_v25, %v3814_v56 }
0x1d29   :  { %v3818_v33 = vpop.permute.xlu0 %3817 }
0x1d2a   :  { %v3828_v61 = vadd.f32 %v3826_v28, %v3824_v57  ;;  %v3823_v11 = vmul.f32 %v3818_v33, %v3813_v58 }
0x1d2c   :  { %v3827_v63 = vadd.f32 %v3825_v44, %v3823_v11  ;;  %3833 = vrot.lane.b32.xlu1 %v3828_v61, %s5810_s22 }
0x1d2e   :  { %3831 = vrot.lane.b32.xlu0 %v3827_v63, %s5810_s22 }
0x1d9e   :  { %v3834_v1 = vpop.permute.xlu1 %3833 }
0x1d9f   :  { %3839 = vst.msk [vmem:[#allocation7 + $0x28] sm:$0xff] %vm77_vm0, %v3834_v1 }
0x1da0   :  { %v3832_v62 = vpop.permute.xlu0 %3831 }
0x1da1   :  { %3838 = vst.msk [vmem:[#allocation7 + $0x20] sm:$0xff] %vm77_vm0, %v3832_v62  ;;  %5375 = vmatprep.mubr.msk.f32.mxu1 %vm77_vm0, %v3832_v62 }
0x1da2   :  { %5376 = vmatmul.mubr.msk.f32.vlgmr.msra.gmra.mxu1 %vm77_vm0, %v3834_v1 }
0x1da3   :  { %5384 = vmatpush3.msra.mxu1 %v6509_v40 }
0x1da4   :  { %5393 = vmatprep.subr.mxu1 %v6509_v40 }
0x1e62   :  { %v5377_v32 = vpop.f32.mrf.mxu1 }
0x1e63   :  { %v3919_v20 = vadd.f32 %v5377_v32, %v6650_v38 }
0x1e64   :  { %v3913_v43 = vpop.f32.mrf.mxu1 }
0x1e65   :  { %v3914_v31 = vadd.f32 %v6650_v38, %v3913_v43  ;;  %3940 = vrot.lane.b32.xlu1 %v3919_v20, %s5808_s5  ;;  %v3923_v23 = vadd.f32 %v3919_v20, %v3842_v13 }
0x1e67   :  { %3938 = vrot.lane.b32.xlu0 %v3914_v31, %s5808_s5  ;;  %v3922_v51 = vadd.f32 %v3914_v31, %v3841_v24  ;;  %v5015_v48 = vmul.f32 -1.442695, %v3923_v23 }
0x1e69   :  { %v5014_v53 = vmul.f32 -1.442695, %v3922_v51  ;;  %5694 = vpow2.f32 %v5015_v48 }
0x1e6b   :  { %5696 = vpow2.f32 %v5014_v53 }
0x1e76   :  { %v5695_v16 = vpop.eup %5694 }
0x1e77   :  { %v3931_v26 = vadd.f32 1.0, %v5695_v16 }
0x1e78   :  { %v5697_v40 = vpop.eup %5696 }
0x1e79   :  { %v3930_v52 = vadd.f32 1.0, %v5697_v40  ;;  %5698 = vrcp.f32 %v3931_v26 }
0x1e7b   :  { %5700 = vrcp.f32 %v3930_v52 }
0x1e86   :  { %v5699_v49 = vpop.eup %5698 }
0x1e87   :  { %v3959_v17 = vsub.f32 1.0, %v5699_v49  ;;  %v3971_v47 = vmul.f32 %v5699_v49, %v3828_v61 }
0x1e88   :  { %v5701_v4 = vpop.eup %5700 }
0x1e89   :  { %v3958_v35 = vsub.f32 1.0, %v5701_v4  ;;  %v3970_v37 = vmul.f32 %v5701_v4, %v3827_v63 }
0x1ed7   :  { %v3941_v55 = vpop.permute.xlu1 %3940 }
0x1ed8   :  { %v3945_v18 = vmul.f32 %v5699_v49, %v3941_v55 }
0x1ed9   :  { %v3939_v45 = vpop.permute.xlu0 %3938 }
0x1eda   :  { %v3944_v6 = vmul.f32 %v5701_v4, %v3939_v45  ;;  %3950 = vrot.lane.b32.xlu1 %v3945_v18, %s5809_s17  ;;  %v4132_v45 = vld [vmem:[#allocation4 + $0x58] sm:$0xff] }
0x1edc   :  { %3948 = vrot.lane.b32.xlu0 %v3944_v6, %s5809_s17 }
0x1f4c   :  { %v3951_v8 = vpop.permute.xlu1 %3950 }
0x1f4d   :  { %v3955_v5 = vadd.f32 %v3951_v8, %v3842_v13  ;;  %v4131_v8 = vld [vmem:[#allocation4 + $0x50] sm:$0xff] }
0x1f4e   :  { %v3949_v59 = vpop.permute.xlu0 %3948 }
0x1f4f   :  { %5702 = vtanh.f32 %v3955_v5  ;;  %v3954_v2 = vadd.f32 %v3949_v59, %v3841_v24 }
0x1f51   :  { %5704 = vtanh.f32 %v3954_v2 }
0x1f5c   :  { %v5703_v15 = vpop.eup %5702 }
0x1f5d   :  { %3964 = vrot.lane.b32.xlu1 %v5703_v15, %s5810_s22 }
0x1f5e   :  { %v5705_v21 = vpop.eup %5704 }
0x1f5f   :  { %3962 = vrot.lane.b32.xlu0 %v5705_v21, %s5810_s22 }
0x1fcf   :  { %v3965_v29 = vpop.permute.xlu1 %3964 }
0x1fd0   :  { %v3969_v34 = vmul.f32 %v3965_v29, %v3959_v17 }
0x1fd1   :  { %v3963_v22 = vpop.permute.xlu0 %3962 }
0x1fd2   :  { %v3973_v14 = vadd.f32 %v3971_v47, %v3969_v34  ;;  %v3968_v12 = vmul.f32 %v3963_v22, %v3958_v35 }
0x1fd4   :  { %v3972_v9 = vadd.f32 %v3970_v37, %v3968_v12  ;;  %3978 = vrot.lane.b32.xlu1 %v3973_v14, %s5810_s22 }
0x1fd6   :  { %3976 = vrot.lane.b32.xlu0 %v3972_v9, %s5810_s22 }
0x2046   :  { %v3979_v39 = vpop.permute.xlu1 %3978 }
0x2047   :  { %3984 = vst.msk [vmem:[#allocation7 + $0x38] sm:$0xff] %vm77_vm0, %v3979_v39 }
0x2048   :  { %v3977_v7 = vpop.permute.xlu0 %3976 }
0x2049   :  { %3983 = vst.msk [vmem:[#allocation7 + $0x30] sm:$0xff] %vm77_vm0, %v3977_v7  ;;  %5380 = vmatprep.mubr.msk.f32.mxu0 %vm77_vm0, %v3977_v7 }
0x204a   :  { %5381 = vmatmul.mubr.msk.f32.vlgmr.msra.gmra.mxu0 %vm77_vm0, %v3979_v39 }
0x204b   :  { %5389 = vmatpush3.msra.mxu0 %v5790_v60 }
0x210a   :  { %v5382_v30 = vpop.f32.mrf.mxu0 }
0x210b   :  { %v4064_v41 = vadd.f32 %v5382_v30, %v6650_v38 }
0x210c   :  { %v4058_v42 = vpop.f32.mrf.mxu0 }
0x210d   :  { %v4059_v3 = vadd.f32 %v6650_v38, %v4058_v42  ;;  %4085 = vrot.lane.b32.xlu1 %v4064_v41, %s5808_s5  ;;  %v4068_v27 = vadd.f32 %v4064_v41, %v3987_v46 }
0x210f   :  { %4083 = vrot.lane.b32.xlu0 %v4059_v3, %s5808_s5  ;;  %v4067_v10 = vadd.f32 %v4059_v3, %v3986_v50  ;;  %v5019_v19 = vmul.f32 -1.442695, %v4068_v27 }
0x2111   :  { %v5018_v0 = vmul.f32 -1.442695, %v4067_v10  ;;  %5706 = vpow2.f32 %v5019_v19 }
0x2113   :  { %5708 = vpow2.f32 %v5018_v0 }
0x211e   :  { %v5707_v54 = vpop.eup %5706 }
0x211f   :  { %v4076_v56 = vadd.f32 1.0, %v5707_v54 }
0x2120   :  { %v5709_v36 = vpop.eup %5708 }
0x2121   :  { %v4075_v25 = vadd.f32 1.0, %v5709_v36  ;;  %5710 = vrcp.f32 %v4076_v56 }
0x2123   :  { %5712 = vrcp.f32 %v4075_v25 }
0x212e   :  { %v5711_v28 = vpop.eup %5710 }
0x212f   :  { %v4104_v43 = vsub.f32 1.0, %v5711_v28  ;;  %v4116_v13 = vmul.f32 %v5711_v28, %v3973_v14 }
0x2130   :  { %v5713_v33 = vpop.eup %5712 }
0x2131   :  { %v4103_v24 = vsub.f32 1.0, %v5713_v33  ;;  %v4115_v53 = vmul.f32 %v5713_v33, %v3972_v9 }
0x217f   :  { %v4086_v57 = vpop.permute.xlu1 %4085 }
0x2180   :  { %v4090_v58 = vmul.f32 %v5711_v28, %v4086_v57 }
0x2181   :  { %v4084_v61 = vpop.permute.xlu0 %4083 }
0x2182   :  { %v4089_v44 = vmul.f32 %v5713_v33, %v4084_v61  ;;  %4095 = vrot.lane.b32.xlu1 %v4090_v58, %s5809_s17  ;;  %v4277_v33 = vld [vmem:[#allocation4 + $0x68] sm:$0xff] }
0x2184   :  { %4093 = vrot.lane.b32.xlu0 %v4089_v44, %s5809_s17  ;;  %v4276_v44 = vld [vmem:[#allocation4 + $0x60] sm:$0xff] }
0x21f4   :  { %v4096_v11 = vpop.permute.xlu1 %4095 }
0x21f5   :  { %v4100_v63 = vadd.f32 %v4096_v11, %v3987_v46 }
0x21f6   :  { %v4094_v1 = vpop.permute.xlu0 %4093 }
0x21f7   :  { %5714 = vtanh.f32 %v4100_v63  ;;  %v4099_v62 = vadd.f32 %v4094_v1, %v3986_v50 }
0x21f9   :  { %5716 = vtanh.f32 %v4099_v62 }
0x2204   :  { %v5715_v32 = vpop.eup %5714 }
0x2205   :  { %4109 = vrot.lane.b32.xlu1 %v5715_v32, %s5810_s22 }
0x2206   :  { %v5717_v20 = vpop.eup %5716 }
0x2207   :  { %4107 = vrot.lane.b32.xlu0 %v5717_v20, %s5810_s22 }
0x2277   :  { %v4110_v31 = vpop.permute.xlu1 %4109 }
0x2278   :  { %v4114_v23 = vmul.f32 %v4110_v31, %v4104_v43 }
0x2279   :  { %v4108_v51 = vpop.permute.xlu0 %4107 }
0x227a   :  { %v4118_v48 = vadd.f32 %v4116_v13, %v4114_v23  ;;  %v4113_v16 = vmul.f32 %v4108_v51, %v4103_v24 }
0x227c   :  { %v4117_v40 = vadd.f32 %v4115_v53, %v4113_v16  ;;  %4123 = vrot.lane.b32.xlu1 %v4118_v48, %s5810_s22 }
0x227e   :  { %4121 = vrot.lane.b32.xlu0 %v4117_v40, %s5810_s22 }
0x22ee   :  { %v4124_v26 = vpop.permute.xlu1 %4123 }
0x22ef   :  { %4129 = vst.msk [vmem:[#allocation7 + $0x48] sm:$0xff] %vm77_vm0, %v4124_v26 }
0x22f0   :  { %v4122_v52 = vpop.permute.xlu0 %4121 }
0x22f1   :  { %4128 = vst.msk [vmem:[#allocation7 + $0x40] sm:$0xff] %vm77_vm0, %v4122_v52  ;;  %5385 = vmatprep.mubr.msk.f32.mxu1 %vm77_vm0, %v4122_v52 }
0x22f2   :  { %5386 = vmatmul.mubr.msk.f32.vlgmr.msra.gmra.mxu1 %vm77_vm0, %v4124_v26 }
0x22f3   :  { %5394 = vmatpush3.msra.mxu1 %v5790_v60 }
0x23b2   :  { %v5387_v49 = vpop.f32.mrf.mxu1 }
0x23b3   :  { %v4209_v55 = vadd.f32 %v5387_v49, %v6650_v38 }
0x23b4   :  { %v4203_v18 = vpop.f32.mrf.mxu1 }
0x23b5   :  { %v4204_v4 = vadd.f32 %v6650_v38, %v4203_v18  ;;  %4230 = vrot.lane.b32.xlu1 %v4209_v55, %s5808_s5  ;;  %v4213_v6 = vadd.f32 %v4209_v55, %v4132_v45 }
0x23b7   :  { %4228 = vrot.lane.b32.xlu0 %v4204_v4, %s5808_s5  ;;  %v4212_v5 = vadd.f32 %v4204_v4, %v4131_v8  ;;  %v5023_v59 = vmul.f32 -1.442695, %v4213_v6 }
0x23b9   :  { %v5022_v2 = vmul.f32 -1.442695, %v4212_v5  ;;  %5718 = vpow2.f32 %v5023_v59 }
0x23bb   :  { %5720 = vpow2.f32 %v5022_v2 }
0x23c6   :  { %v5719_v15 = vpop.eup %5718 }
0x23c7   :  { %v4221_v17 = vadd.f32 1.0, %v5719_v15 }
0x23c8   :  { %v5721_v21 = vpop.eup %5720 }
0x23c9   :  { %v4220_v29 = vadd.f32 1.0, %v5721_v21  ;;  %5722 = vrcp.f32 %v4221_v17 }
0x23cb   :  { %5724 = vrcp.f32 %v4220_v29 }
0x23d6   :  { %v5723_v47 = vpop.eup %5722 }
0x23d7   :  { %v4249_v41 = vsub.f32 1.0, %v5723_v47  ;;  %v4261_v3 = vmul.f32 %v5723_v47, %v4118_v48 }
0x23d8   :  { %v5725_v22 = vpop.eup %5724 }
0x23d9   :  { %v4248_v27 = vsub.f32 1.0, %v5725_v22  ;;  %v4260_v19 = vmul.f32 %v5725_v22, %v4117_v40 }
0x2427   :  { %v4231_v34 = vpop.permute.xlu1 %4230 }
0x2428   :  { %v4235_v35 = vmul.f32 %v5723_v47, %v4231_v34 }
0x2429   :  { %v4229_v14 = vpop.permute.xlu0 %4228 }
0x242a   :  { %v4234_v37 = vmul.f32 %v5725_v22, %v4229_v14  ;;  %4240 = vrot.lane.b32.xlu1 %v4235_v35, %s5809_s17  ;;  %v4422_v22 = vld [vmem:[#allocation4 + $0x78] sm:$0xff] }
0x242c   :  { %4238 = vrot.lane.b32.xlu0 %v4234_v37, %s5809_s17  ;;  %v4421_v37 = vld [vmem:[#allocation4 + $0x70] sm:$0xff] }
0x249c   :  { %v4241_v12 = vpop.permute.xlu1 %4240 }
0x249d   :  { %v4245_v9 = vadd.f32 %v4241_v12, %v4132_v45 }
0x249e   :  { %v4239_v39 = vpop.permute.xlu0 %4238 }
0x249f   :  { %5726 = vtanh.f32 %v4245_v9  ;;  %v4244_v7 = vadd.f32 %v4239_v39, %v4131_v8 }
0x24a1   :  { %5728 = vtanh.f32 %v4244_v7 }
0x24ac   :  { %v5727_v60 = vpop.eup %5726 }
0x24ad   :  { %4254 = vrot.lane.b32.xlu1 %v5727_v60, %s5810_s22 }
0x24ae   :  { %v5729_v30 = vpop.eup %5728 }
0x24af   :  { %4252 = vrot.lane.b32.xlu0 %v5729_v30, %s5810_s22 }
0x251f   :  { %v4255_v42 = vpop.permute.xlu1 %4254 }
0x2520   :  { %v4259_v46 = vmul.f32 %v4255_v42, %v4249_v41 }
0x2521   :  { %v4253_v50 = vpop.permute.xlu0 %4252 }
0x2522   :  { %v4263_v10 = vadd.f32 %v4261_v3, %v4259_v46  ;;  %v4258_v0 = vmul.f32 %v4253_v50, %v4248_v27 }
0x2524   :  { %v4262_v54 = vadd.f32 %v4260_v19, %v4258_v0  ;;  %4268 = vrot.lane.b32.xlu1 %v4263_v10, %s5810_s22 }
0x2526   :  { %4266 = vrot.lane.b32.xlu0 %v4262_v54, %s5810_s22 }
0x2596   :  { %v4269_v36 = vpop.permute.xlu1 %4268 }
0x2597   :  { %4274 = vst.msk [vmem:[#allocation7 + $0x58] sm:$0xff] %vm77_vm0, %v4269_v36 }
0x2598   :  { %v4267_v56 = vpop.permute.xlu0 %4266 }
0x2599   :  { %4273 = vst.msk [vmem:[#allocation7 + $0x50] sm:$0xff] %vm77_vm0, %v4267_v56  ;;  %5390 = vmatprep.mubr.msk.f32.mxu0 %vm77_vm0, %v4267_v56 }
0x259a   :  { %5391 = vmatmul.mubr.msk.f32.vlgmr.msra.gmra.mxu0 %vm77_vm0, %v4269_v36 }
0x265a   :  { %v5392_v25 = vpop.f32.mrf.mxu0 }
0x265b   :  { %v4354_v28 = vadd.f32 %v5392_v25, %v6650_v38 }
0x265c   :  { %v4348_v57 = vpop.f32.mrf.mxu0 }
0x265d   :  { %v4349_v58 = vadd.f32 %v6650_v38, %v4348_v57  ;;  %4375 = vrot.lane.b32.xlu1 %v4354_v28, %s5808_s5  ;;  %v4358_v61 = vadd.f32 %v4354_v28, %v4277_v33 }
0x265f   :  { %4373 = vrot.lane.b32.xlu0 %v4349_v58, %s5808_s5  ;;  %v4357_v11 = vadd.f32 %v4349_v58, %v4276_v44  ;;  %v5027_v63 = vmul.f32 -1.442695, %v4358_v61 }
0x2661   :  { %v5026_v1 = vmul.f32 -1.442695, %v4357_v11  ;;  %5730 = vpow2.f32 %v5027_v63 }
0x2663   :  { %5732 = vpow2.f32 %v5026_v1 }
0x266e   :  { %v5731_v62 = vpop.eup %5730 }
0x266f   :  { %v4366_v20 = vadd.f32 1.0, %v5731_v62  ;;  %v4565_v62 = vld [vmem:[#allocation7] sm:$0xff] }
0x2670   :  { %v5733_v32 = vpop.eup %5732 }
0x2671   :  { %v4365_v43 = vadd.f32 1.0, %v5733_v32  ;;  %5734 = vrcp.f32 %v4366_v20  ;;  %v5791_v32 = vld [vmem:[%s7131_s0] sm:$0xff] }
0x2672   :  { %v6801_v20 = vadd.f32 %v5791_v32, %v4565_v62 }
0x2673   :  { %5736 = vrcp.f32 %v4365_v43  ;;  %v4566_v43 = vld [vmem:[#allocation7 + $0x8] sm:$0xff] }
0x267e   :  { %v5735_v31 = vpop.eup %5734 }
0x267f   :  { %v4394_v55 = vsub.f32 1.0, %v5735_v31  ;;  %v4406_v4 = vmul.f32 %v5735_v31, %v4263_v10 }
0x2680   :  { %v5737_v24 = vpop.eup %5736 }
0x2681   :  { %v4393_v6 = vsub.f32 1.0, %v5737_v24  ;;  %v4405_v59 = vmul.f32 %v5737_v24, %v4262_v54 }
0x26cf   :  { %v4376_v13 = vpop.permute.xlu1 %4375 }
0x26d0   :  { %v4380_v23 = vmul.f32 %v5735_v31, %v4376_v13  ;;  %v4567_v31 = vld [vmem:[#allocation7 + $0x10] sm:$0xff]  ;;  %v5792_v13 = vld [vmem:[%s7131_s0 + $0x8] sm:$0xff] }
0x26d1   :  { %v4374_v51 = vpop.permute.xlu0 %4373 }
0x26d2   :  { %v4379_v48 = vmul.f32 %v5737_v24, %v4374_v51  ;;  %4385 = vrot.lane.b32.xlu1 %v4380_v23, %s5809_s17  ;;  %v6806_v23 = vadd.f32 %v5792_v13, %v4566_v43  ;;  %v4597_v24 = vsel %vm77_vm0, %v6801_v20, 0.0  ;;  %v5793_v51 = vld [vmem:[%s7131_s0 + $0x10] sm:$0xff] }
0x26d4   :  { %4383 = vrot.lane.b32.xlu0 %v4379_v48, %s5809_s17  ;;  %v6813_v48 = vadd.f32 %v5793_v51, %v4567_v31 }
0x2744   :  { %v4386_v53 = vpop.permute.xlu1 %4385 }
0x2745   :  { %v4390_v16 = vadd.f32 %v4386_v53, %v4277_v33  ;;  %v4569_v53 = vld [vmem:[#allocation7 + $0x20] sm:$0xff] }
0x2746   :  { %v4384_v40 = vpop.permute.xlu0 %4383 }
0x2747   :  { %5738 = vtanh.f32 %v4390_v16  ;;  %v4389_v26 = vadd.f32 %v4384_v40, %v4276_v44  ;;  %v4568_v16 = vld [vmem:[#allocation7 + $0x18] sm:$0xff]  ;;  %v4600_v40 = vsel %vm77_vm0, %v6806_v23, 0.0 }
0x2749   :  { %5740 = vtanh.f32 %v4389_v26  ;;  %v5794_v26 = vld [vmem:[%s7131_s0 + $0x20] sm:$0xff] }
0x2754   :  { %v5739_v52 = vpop.eup %5738 }
0x2755   :  { %4399 = vrot.lane.b32.xlu1 %v5739_v52, %s5810_s22  ;;  %v6820_v52 = vadd.f32 %v5794_v26, %v4569_v53 }
0x2756   :  { %v5741_v49 = vpop.eup %5740 }
0x2757   :  { %4397 = vrot.lane.b32.xlu0 %v5741_v49, %s5810_s22  ;;  %v4603_v49 = vsel %vm77_vm0, %v6813_v48, 0.0 }
0x27c7   :  { %v4400_v18 = vpop.permute.xlu1 %4399 }
0x27c8   :  { %v4404_v45 = vmul.f32 %v4400_v18, %v4394_v55  ;;  %v5795_v55 = vld [vmem:[%s7131_s0 + $0x18] sm:$0xff] }
0x27c9   :  { %v4398_v8 = vpop.permute.xlu0 %4397  ;;  %v6827_v18 = vadd.f32 %v5795_v55, %v4568_v16 }
0x27ca   :  { %v4408_v5 = vadd.f32 %v4406_v4, %v4404_v45  ;;  %v4403_v2 = vmul.f32 %v4398_v8, %v4393_v6  ;;  %v4571_v4 = vld [vmem:[#allocation7 + $0x30] sm:$0xff]  ;;  %v4570_v45 = vld [vmem:[#allocation7 + $0x28] sm:$0xff]  ;;  %v4609_v6 = vsel %vm77_vm0, %v6820_v52, 0.0 }
0x27cb   :  { %v5796_v8 = vld [vmem:[%s7131_s0 + $0x30] sm:$0xff] }
0x27cc   :  { %v4407_v15 = vadd.f32 %v4405_v59, %v4403_v2  ;;  %4413 = vrot.lane.b32.xlu1 %v4408_v5, %s5810_s22  ;;  %v4606_v59 = vsel %vm77_vm0, %v6827_v18, 0.0  ;;  %v5797_v2 = vld [vmem:[%s7131_s0 + $0x28] sm:$0xff] }
0x27ce   :  { %4411 = vrot.lane.b32.xlu0 %v4407_v15, %s5810_s22 }
0x283e   :  { %v4414_v21 = vpop.permute.xlu1 %4413 }
0x283f   :  { %4419 = vst.msk [vmem:[#allocation7 + $0x68] sm:$0xff] %vm77_vm0, %v4414_v21 }
0x2840   :  { %v4412_v17 = vpop.permute.xlu0 %4411 }
0x2841   :  { %4418 = vst.msk [vmem:[#allocation7 + $0x60] sm:$0xff] %vm77_vm0, %v4412_v17  ;;  %5395 = vmatprep.mubr.msk.f32.mxu1 %vm77_vm0, %v4412_v17  ;;  %v4572_v17 = vld [vmem:[#allocation7 + $0x38] sm:$0xff] }
0x2842   :  { %5396 = vmatmul.mubr.msk.f32.vlgmr.msra.gmra.mxu1 %vm77_vm0, %v4414_v21  ;;  %v4573_v21 = vld [vmem:[#allocation7 + $0x40] sm:$0xff] }
0x2902   :  { %v5397_v29 = vpop.f32.mrf.mxu1 }
0x2903   :  { %v4499_v47 = vadd.f32 %v5397_v29, %v6650_v38 }
0x2904   :  { %v4493_v34 = vpop.f32.mrf.mxu1 }
0x2905   :  { %v4494_v35 = vadd.f32 %v6650_v38, %v4493_v34  ;;  %4520 = vrot.lane.b32.xlu1 %v4499_v47, %s5808_s5  ;;  %v4503_v14 = vadd.f32 %v4499_v47, %v4422_v22  ;;  %v5798_v47 = vld [vmem:[%s7131_s0 + $0x40] sm:$0xff] }
0x2906   :  { %v6848_v34 = vadd.f32 %v5798_v47, %v4573_v21 }
0x2907   :  { %4518 = vrot.lane.b32.xlu0 %v4494_v35, %s5808_s5  ;;  %v4502_v12 = vadd.f32 %v4494_v35, %v4421_v37  ;;  %v5031_v9 = vmul.f32 -1.442695, %v4503_v14 }
0x2909   :  { %v5030_v39 = vmul.f32 -1.442695, %v4502_v12  ;;  %5742 = vpow2.f32 %v5031_v9  ;;  %v4574_v12 = vld [vmem:[#allocation7 + $0x48] sm:$0xff]  ;;  %v4621_v9 = vsel %vm77_vm0, %v6848_v34, 0.0 }
0x290b   :  { %5744 = vpow2.f32 %v5030_v39  ;;  %v5800_v39 = vld [vmem:[%s7131_s0 + $0x50] sm:$0xff] }
0x2916   :  { %v5743_v7 = vpop.eup %5742 }
0x2917   :  { %v4511_v30 = vadd.f32 1.0, %v5743_v7 }
0x2918   :  { %v5745_v60 = vpop.eup %5744 }
0x2919   :  { %v4510_v41 = vadd.f32 1.0, %v5745_v60  ;;  %5746 = vrcp.f32 %v4511_v30  ;;  %v5801_v30 = vld [vmem:[%s7131_s0 + $0x48] sm:$0xff] }
0x291b   :  { %5748 = vrcp.f32 %v4510_v41  ;;  %v6869_v41 = vadd.f32 %v5801_v30, %v4574_v12 }
0x2926   :  { %v5747_v42 = vpop.eup %5746 }
0x2927   :  { %v4539_v25 = vsub.f32 1.0, %v5747_v42  ;;  %v4551_v57 = vmul.f32 %v5747_v42, %v4408_v5  ;;  %v6834_v5 = vadd.f32 %v5796_v8, %v4571_v4 }
0x2928   :  { %v5749_v46 = vpop.eup %5748 }
0x2929   :  { %v4538_v33 = vsub.f32 1.0, %v5749_v46  ;;  %v4550_v11 = vmul.f32 %v5749_v46, %v4407_v15  ;;  %v6841_v15 = vadd.f32 %v5797_v2, %v4570_v45  ;;  %v4615_v29 = vsel %vm77_vm0, %v6834_v5, 0.0 }
0x292b   :  { %v4612_v35 = vsel %vm77_vm0, %v6841_v15, 0.0 }
0x2977   :  { %v4521_v38 = vpop.permute.xlu1 %4520 }
0x2978   :  { %v4525_v3 = vmul.f32 %v5747_v42, %v4521_v38  ;;  %v4577_v42 = vld [vmem:[#allocation7 + $0x60] sm:$0xff]  ;;  %v4576_v38 = vld [vmem:[#allocation7 + $0x58] sm:$0xff] }
0x2979   :  { %v4519_v27 = vpop.permute.xlu0 %4518 }
0x297a   :  { %v4524_v50 = vmul.f32 %v5749_v46, %v4519_v27  ;;  %4530 = vrot.lane.b32.xlu1 %v4525_v3, %s5809_s17  ;;  %v5802_v46 = vld [vmem:[%s7131_s0 + $0x60] sm:$0xff] }
0x297b   :  { %v6876_v27 = vadd.f32 %v5802_v46, %v4577_v42 }
0x297c   :  { %4528 = vrot.lane.b32.xlu0 %v4524_v50, %s5809_s17  ;;  %v4624_v50 = vsel %vm77_vm0, %v6869_v41, 0.0 }
0x29ec   :  { %v4531_v10 = vpop.permute.xlu1 %4530 }
0x29ed   :  { %v4535_v19 = vadd.f32 %v4531_v10, %v4422_v22  ;;  %v5799_v22 = vld [vmem:[%s7131_s0 + $0x38] sm:$0xff] }
0x29ee   :  { %v4529_v0 = vpop.permute.xlu0 %4528  ;;  %v6855_v14 = vadd.f32 %v5799_v22, %v4572_v17  ;;  %v5803_v10 = vld [vmem:[%s7131_s0 + $0x58] sm:$0xff] }
0x29ef   :  { %5750 = vtanh.f32 %v4535_v19  ;;  %v4534_v54 = vadd.f32 %v4529_v0, %v4421_v37  ;;  %v4575_v37 = vld [vmem:[#allocation7 + $0x50] sm:$0xff]  ;;  %v6883_v19 = vadd.f32 %v5803_v10, %v4576_v38  ;;  %v4578_v0 = vld [vmem:[#allocation7 + $0x68] sm:$0xff] }
0x29f0   :  { %v6862_v7 = vadd.f32 %v5800_v39, %v4575_v37  ;;  %v4618_v60 = vsel %vm77_vm0, %v6855_v14, 0.0 }
0x29f1   :  { %5752 = vtanh.f32 %v4534_v54  ;;  %v4633_v54 = vsel %vm77_vm0, %v6876_v27, 0.0 }
0x29f2   :  { %v4627_v3 = vsel %vm77_vm0, %v6862_v7, 0.0 }
0x29fc   :  { %v5751_v36 = vpop.eup %5750 }
0x29fd   :  { %4544 = vrot.lane.b32.xlu1 %v5751_v36, %s5810_s22  ;;  %v4630_v36 = vsel %vm77_vm0, %v6883_v19, 0.0 }
0x29fe   :  { %v5753_v56 = vpop.eup %5752 }
0x29ff   :  { %4542 = vrot.lane.b32.xlu0 %v5753_v56, %s5810_s22  ;;  %v5804_v56 = vld [vmem:[%s7131_s0 + $0x68] sm:$0xff] }
0x2a6f   :  { %v4545_v28 = vpop.permute.xlu1 %4544 }
0x2a70   :  { %v4549_v58 = vmul.f32 %v4545_v28, %v4539_v25  ;;  %v6892_v25 = vadd.f32 %v5804_v56, %v4578_v0 }
0x2a71   :  { %v4543_v61 = vpop.permute.xlu0 %4542 }
0x2a72   :  { %v4553_v44 = vadd.f32 %v4551_v57, %v4549_v58  ;;  %v4548_v63 = vmul.f32 %v4543_v61, %v4538_v33  ;;  %v4636_v28 = vsel %vm77_vm0, %v6892_v25, 0.0  ;;  %v5805_v61 = vld [vmem:[%s7131_s0 + $0x78] sm:$0xff] }
0x2a74   :  { %v4552_v1 = vadd.f32 %v4550_v11, %v4548_v63  ;;  %4558 = vrot.lane.b32.xlu1 %v4553_v44, %s5810_s22 }
0x2a76   :  { %4556 = vrot.lane.b32.xlu0 %v4552_v1, %s5810_s22  ;;  %v5806_v1 = vld [vmem:[%s7131_s0 + $0x70] sm:$0xff] }
0x2a95   :  { %4598 = vadd.xlane.f32.xlu0 %v4597_v24 }
0x2a98   :  { %4601 = vadd.xlane.f32.xlu1 %v4600_v40 }
0x2a99   :  { %4604 = vadd.xlane.f32.xlu0 %v4603_v49 }
0x2a9c   :  { %4610 = vadd.xlane.f32.xlu1 %v4609_v6 }
0x2a9d   :  { %4607 = vadd.xlane.f32.xlu0 %v4606_v59 }
0x2aa0   :  { %4616 = vadd.xlane.f32.xlu1 %v4615_v29 }
0x2aa1   :  { %4613 = vadd.xlane.f32.xlu0 %v4612_v35 }
0x2aa4   :  { %4622 = vadd.xlane.f32.xlu1 %v4621_v9 }
0x2aa5   :  { %4619 = vadd.xlane.f32.xlu0 %v4618_v60 }
0x2aa8   :  { %4628 = vadd.xlane.f32.xlu1 %v4627_v3 }
0x2aa9   :  { %4625 = vadd.xlane.f32.xlu0 %v4624_v50 }
0x2aac   :  { %4634 = vadd.xlane.f32.xlu1 %v4633_v54 }
0x2aad   :  { %4631 = vadd.xlane.f32.xlu0 %v4630_v36 }
0x2ab1   :  { %4637 = vadd.xlane.f32.xlu0 %v4636_v28 }
0x2ae6   :  { %v4559_v57 = vpop.permute.xlu1 %4558 }
0x2ae7   :  { %4564 = vst.msk [vmem:[#allocation7 + $0x78] sm:$0xff] %vm77_vm0, %v4559_v57 }
0x2ae8   :  { %v4557_v58 = vpop.permute.xlu0 %4556 }
0x2ae9   :  { %4563 = vst.msk [vmem:[#allocation7 + $0x70] sm:$0xff] %vm77_vm0, %v4557_v58 }
0x2aee   :  { %v4580_v33 = vld [vmem:[#allocation7 + $0x78] sm:$0xff] }
0x2aef   :  { %v6901_v44 = vadd.f32 %v5805_v61, %v4580_v33 }
0x2af0   :  { %v4579_v11 = vld [vmem:[#allocation7 + $0x70] sm:$0xff] }
0x2af1   :  { %v4642_v63 = vsel %vm77_vm0, %v6901_v44, 0.0  ;;  %v6908_v62 = vadd.f32 %v5806_v1, %v4579_v11 }
0x2af2   :  { %4643 = vadd.xlane.f32.xlu0 %v4642_v63 }
0x2af3   :  { %v4639_v32 = vsel %vm77_vm0, %v6908_v62, 0.0 }
0x2af4   :  { %4640 = vadd.xlane.f32.xlu1 %v4639_v32 }
0x2b1e   :  { %v4599_v43 = vpop.xlane.xlu0 %4598 }
0x2b1f   :  { %v4646_v31 = vmul.f32 0.125, %v4599_v43 }
0x2b21   :  { %v6913_v13 = vsub.f32 %v6801_v20, %v4646_v31  ;;  %v4602_v24 = vpop.xlane.xlu1 %4601 }
0x2b22   :  { %v4647_v51 = vmul.f32 0.125, %v4602_v24  ;;  %v4605_v53 = vpop.xlane.xlu0 %4604 }
0x2b23   :  { %v4648_v16 = vmul.f32 0.125, %v4605_v53  ;;  %v4678_v40 = vmul.f32 %v6913_v13, %v6913_v13 }
0x2b24   :  { %v6918_v26 = vsub.f32 %v6806_v23, %v4647_v51 }
0x2b25   :  { %v6921_v49 = vsub.f32 %v6813_v48, %v4648_v16  ;;  %v4611_v55 = vpop.xlane.xlu1 %4610  ;;  %v4694_v4 = vsel %vm77_vm0, %v4678_v40, 0.0 }
0x2b26   :  { %v4650_v45 = vmul.f32 0.125, %v4611_v55  ;;  %v4608_v6 = vpop.xlane.xlu0 %4607  ;;  %4695 = vadd.xlane.f32.xlu1 %v4694_v4  ;;  %v4679_v20 = vmul.f32 %v6918_v26, %v6918_v26 }
0x2b27   :  { %v4649_v8 = vmul.f32 0.125, %v4608_v6  ;;  %v4680_v59 = vmul.f32 %v6921_v49, %v6921_v49 }
0x2b28   :  { %v6929_v2 = vsub.f32 %v6820_v52, %v4650_v45  ;;  %v4697_v23 = vsel %vm77_vm0, %v4679_v20, 0.0 }
0x2b29   :  { %v6933_v48 = vsub.f32 %v6827_v18, %v4649_v8  ;;  %v4617_v21 = vpop.xlane.xlu1 %4616  ;;  %4698 = vadd.xlane.f32.xlu0 %v4697_v23  ;;  %v4700_v17 = vsel %vm77_vm0, %v4680_v59, 0.0 }
0x2b2a   :  { %v4652_v29 = vmul.f32 0.125, %v4617_v21  ;;  %v4614_v47 = vpop.xlane.xlu0 %4613  ;;  %4701 = vadd.xlane.f32.xlu1 %v4700_v17  ;;  %v4682_v35 = vmul.f32 %v6929_v2, %v6929_v2 }
0x2b2b   :  { %v4651_v22 = vmul.f32 0.125, %v4614_v47  ;;  %v4681_v52 = vmul.f32 %v6933_v48, %v6933_v48 }
0x2b2c   :  { %v6941_v37 = vsub.f32 %v6834_v5, %v4652_v29  ;;  %v4706_v18 = vsel %vm77_vm0, %v4682_v35, 0.0 }
0x2b2d   :  { %v6945_v12 = vsub.f32 %v6841_v15, %v4651_v22  ;;  %v4623_v9 = vpop.xlane.xlu1 %4622  ;;  %v4703_v39 = vsel %vm77_vm0, %v4681_v52, 0.0 }
0x2b2e   :  { %v4654_v60 = vmul.f32 0.125, %v4623_v9  ;;  %4704 = vadd.xlane.f32.xlu0 %v4703_v39  ;;  %v4620_v30 = vpop.xlane.xlu0 %4619  ;;  %4707 = vadd.xlane.f32.xlu1 %v4706_v18  ;;  %v4684_v42 = vmul.f32 %v6941_v37, %v6941_v37 }
0x2b2f   :  { %v4653_v38 = vmul.f32 0.125, %v4620_v30  ;;  %v4683_v5 = vmul.f32 %v6945_v12, %v6945_v12 }
0x2b30   :  { %v6953_v3 = vsub.f32 %v6848_v34, %v4654_v60  ;;  %v4712_v15 = vsel %vm77_vm0, %v4684_v42, 0.0 }
0x2b31   :  { %v6957_v46 = vsub.f32 %v6855_v14, %v4653_v38  ;;  %v4629_v50 = vpop.xlane.xlu1 %4628  ;;  %v4709_v10 = vsel %vm77_vm0, %v4683_v5, 0.0 }
0x2b32   :  { %v4656_v0 = vmul.f32 0.125, %v4629_v50  ;;  %4710 = vadd.xlane.f32.xlu0 %v4709_v10  ;;  %v4626_v54 = vpop.xlane.xlu0 %4625  ;;  %4713 = vadd.xlane.f32.xlu1 %v4712_v15  ;;  %v4686_v36 = vmul.f32 %v6953_v3, %v6953_v3 }
0x2b33   :  { %v4655_v56 = vmul.f32 0.125, %v4626_v54  ;;  %v4685_v34 = vmul.f32 %v6957_v46, %v6957_v46 }
0x2b34   :  { %v6965_v28 = vsub.f32 %v6862_v7, %v4656_v0  ;;  %v4718_v14 = vsel %vm77_vm0, %v4686_v36, 0.0 }
0x2b35   :  { %v6969_v57 = vsub.f32 %v6869_v41, %v4655_v56  ;;  %v4635_v58 = vpop.xlane.xlu1 %4634  ;;  %v4715_v33 = vsel %vm77_vm0, %v4685_v34, 0.0 }
0x2b36   :  { %v4658_v61 = vmul.f32 0.125, %v4635_v58  ;;  %4716 = vadd.xlane.f32.xlu0 %v4715_v33  ;;  %v4632_v11 = vpop.xlane.xlu0 %4631  ;;  %4719 = vadd.xlane.f32.xlu1 %v4718_v14  ;;  %v4688_v63 = vmul.f32 %v6965_v28, %v6965_v28 }
0x2b37   :  { %v4657_v1 = vmul.f32 0.125, %v4632_v11  ;;  %v4687_v7 = vmul.f32 %v6969_v57, %v6969_v57  ;;  %v7011_v11 = vld [vmem:[%s7144_s14] ss:$0 sm:$0xff] }
0x2b38   :  { %v6977_v32 = vsub.f32 %v6876_v27, %v4658_v61  ;;  %v4724_v41 = vsel %vm77_vm0, %v4688_v63, 0.0 }
0x2b39   :  { %v6981_v43 = vsub.f32 %v6883_v19, %v4657_v1  ;;  %v4721_v31 = vsel %vm77_vm0, %v4687_v7, 0.0 }
0x2b3a   :  { %4722 = vadd.xlane.f32.xlu0 %v4721_v31  ;;  %v4638_v24 = vpop.xlane.xlu0 %4637  ;;  %4725 = vadd.xlane.f32.xlu1 %v4724_v41  ;;  %v4690_v51 = vmul.f32 %v6977_v32, %v6977_v32  ;;  %v7017_v41 = vld [vmem:[%s7145_s15] ss:$0 sm:$0xff] }
0x2b3b   :  { %v4659_v53 = vmul.f32 0.125, %v4638_v24  ;;  %v4689_v16 = vmul.f32 %v6981_v43, %v6981_v43 }
0x2b3c   :  { %v4730_v27 = vsel %vm77_vm0, %v4690_v51, 0.0 }
0x2b3d   :  { %v6990_v40 = vsub.f32 %v6892_v25, %v4659_v53  ;;  %v4727_v19 = vsel %vm77_vm0, %v4689_v16, 0.0 }
0x2b3e   :  { %4728 = vadd.xlane.f32.xlu0 %v4727_v19  ;;  %4731 = vadd.xlane.f32.xlu1 %v4730_v27 }
0x2b3f   :  { %v4691_v55 = vmul.f32 %v6990_v40, %v6990_v40 }
0x2b41   :  { %v4733_v4 = vsel %vm77_vm0, %v4691_v55, 0.0 }
0x2b42   :  { %4734 = vadd.xlane.f32.xlu0 %v4733_v4 }
0x2b7b   :  { %v4644_v45 = vpop.xlane.xlu0 %4643 }
0x2b7c   :  { %v4661_v6 = vmul.f32 0.125, %v4644_v45 }
0x2b7d   :  { %v4641_v20 = vpop.xlane.xlu1 %4640 }
0x2b7e   :  { %v6997_v8 = vsub.f32 %v6901_v44, %v4661_v6  ;;  %v4660_v59 = vmul.f32 0.125, %v4641_v20 }
0x2b80   :  { %v7000_v25 = vsub.f32 %v6908_v62, %v4660_v59  ;;  %v4693_v23 = vmul.f32 %v6997_v8, %v6997_v8 }
0x2b82   :  { %v4739_v21 = vsel %vm77_vm0, %v4693_v23, 0.0  ;;  %v4692_v17 = vmul.f32 %v7000_v25, %v7000_v25 }
0x2b83   :  { %4740 = vadd.xlane.f32.xlu0 %v4739_v21 }
0x2b84   :  { %v4736_v29 = vsel %vm77_vm0, %v4692_v17, 0.0 }
0x2b85   :  { %4737 = vadd.xlane.f32.xlu1 %v4736_v29 }
0x2baf   :  { %v4696_v47 = vpop.xlane.xlu1 %4695 }
0x2bb0   :  { %v4742_v35 = vmul.f32 0.125, %v4696_v47 }
0x2bb2   :  { %v4758_v44 = vadd.f32 1e-05, %v4742_v35  ;;  %v4699_v22 = vpop.xlane.xlu0 %4698 }
0x2bb3   :  { %v4743_v52 = vmul.f32 0.125, %v4699_v22  ;;  %v4702_v18 = vpop.xlane.xlu1 %4701 }
0x2bb4   :  { %5754 = vrsqrt.f32 %v4758_v44  ;;  %v4744_v62 = vmul.f32 0.125, %v4702_v18 }
0x2bb5   :  { %v4759_v9 = vadd.f32 1e-05, %v4743_v52 }
0x2bb6   :  { %v4760_v39 = vadd.f32 1e-05, %v4744_v62 }
0x2bb7   :  { %5756 = vrsqrt.f32 %v4759_v9  ;;  %v4705_v60 = vpop.xlane.xlu0 %4704  ;;  %v4708_v30 = vpop.xlane.xlu1 %4707 }
0x2bb8   :  { %5758 = vrsqrt.f32 %v4760_v39  ;;  %v4745_v42 = vmul.f32 0.125, %v4705_v60  ;;  %v4746_v38 = vmul.f32 0.125, %v4708_v30 }
0x2bba   :  { %v4761_v5 = vadd.f32 1e-05, %v4745_v42  ;;  %v4762_v15 = vadd.f32 1e-05, %v4746_v38 }
0x2bbb   :  { %v4711_v50 = vpop.xlane.xlu0 %4710  ;;  %v4714_v10 = vpop.xlane.xlu1 %4713 }
0x2bbc   :  { %5760 = vrsqrt.f32 %v4761_v5  ;;  %v4747_v0 = vmul.f32 0.125, %v4711_v50  ;;  %v4748_v54 = vmul.f32 0.125, %v4714_v10 }
0x2bbd   :  { %5762 = vrsqrt.f32 %v4762_v15 }
0x2bbe   :  { %v4763_v36 = vadd.f32 1e-05, %v4747_v0  ;;  %v4764_v56 = vadd.f32 1e-05, %v4748_v54 }
0x2bbf   :  { %v4717_v34 = vpop.xlane.xlu0 %4716  ;;  %v4720_v14 = vpop.xlane.xlu1 %4719 }
0x2bc0   :  { %5764 = vrsqrt.f32 %v4763_v36  ;;  %v4749_v58 = vmul.f32 0.125, %v4717_v34  ;;  %v4750_v33 = vmul.f32 0.125, %v4720_v14 }
0x2bc1   :  { %v5755_v61 = vpop.eup %5754  ;;  %5766 = vrsqrt.f32 %v4764_v56 }
0x2bc2   :  { %v4790_v63 = vmul.f32 %v5755_v61, %v6913_v13  ;;  %v4765_v1 = vadd.f32 1e-05, %v4749_v58  ;;  %v4766_v7 = vadd.f32 1e-05, %v4750_v33 }
0x2bc3   :  { %v4723_v31 = vpop.xlane.xlu0 %4722  ;;  %v4726_v24 = vpop.xlane.xlu1 %4725 }
0x2bc4   :  { %v5757_v51 = vpop.eup %5756  ;;  %v4813_v53 = vmul.f32 %v7011_v11, %v4790_v63  ;;  %5768 = vrsqrt.f32 %v4765_v1  ;;  %v4751_v16 = vmul.f32 0.125, %v4723_v31  ;;  %v4752_v27 = vmul.f32 0.125, %v4726_v24 }
0x2bc5   :  { %v5759_v19 = vpop.eup %5758  ;;  %v4791_v55 = vmul.f32 %v5757_v51, %v6918_v26  ;;  %5770 = vrsqrt.f32 %v4766_v7 }
0x2bc6   :  { %v4836_v13 = vadd.f32 %v7017_v41, %v4813_v53  ;;  %v4792_v4 = vmul.f32 %v5759_v19, %v6921_v49  ;;  %v4767_v45 = vadd.f32 1e-05, %v4751_v16  ;;  %v4768_v6 = vadd.f32 1e-05, %v4752_v27 }
0x2bc7   :  { %v4814_v20 = vmul.f32 %v7011_v11, %v4791_v55  ;;  %v4729_v59 = vpop.xlane.xlu0 %4728  ;;  %v4732_v23 = vpop.xlane.xlu1 %4731 }
0x2bc8   :  { %4852 = vst.msk [vmem:[%s7146_s16] sm:$0xff] %vm77_vm0, %v4836_v13  ;;  %v4815_v21 = vmul.f32 %v7011_v11, %v4792_v4  ;;  %5772 = vrsqrt.f32 %v4767_v45  ;;  %v4753_v26 = vmul.f32 0.125, %v4729_v59  ;;  %v4754_v17 = vmul.f32 0.125, %v4732_v23 }
0x2bc9   :  { %v5761_v29 = vpop.eup %5760  ;;  %v4837_v47 = vadd.f32 %v7017_v41, %v4814_v20  ;;  %5774 = vrsqrt.f32 %v4768_v6 }
0x2bca   :  { %v5763_v49 = vpop.eup %5762  ;;  %v4838_v35 = vadd.f32 %v7017_v41, %v4815_v21  ;;  %v4793_v44 = vmul.f32 %v5761_v29, %v6933_v48  ;;  %v4769_v22 = vadd.f32 1e-05, %v4753_v26  ;;  %v4770_v52 = vadd.f32 1e-05, %v4754_v17 }
0x2bcb   :  { %4853 = vst.msk [vmem:[%s7146_s16 + $0x8] sm:$0xff] %vm77_vm0, %v4837_v47  ;;  %v4794_v18 = vmul.f32 %v5763_v49, %v6929_v2  ;;  %v4735_v62 = vpop.xlane.xlu0 %4734 }
0x2bcc   :  { %4854 = vst.msk [vmem:[%s7146_s16 + $0x10] sm:$0xff] %vm77_vm0, %v4838_v35  ;;  %v4816_v9 = vmul.f32 %v7011_v11, %v4793_v44  ;;  %5776 = vrsqrt.f32 %v4769_v22  ;;  %v4755_v39 = vmul.f32 0.125, %v4735_v62 }
0x2bcd   :  { %v5765_v48 = vpop.eup %5764  ;;  %v4817_v60 = vmul.f32 %v7011_v11, %v4794_v18  ;;  %5778 = vrsqrt.f32 %v4770_v52 }
0x2bce   :  { %v5767_v30 = vpop.eup %5766  ;;  %v4839_v42 = vadd.f32 %v7017_v41, %v4816_v9  ;;  %v4795_v38 = vmul.f32 %v5765_v48, %v6945_v12  ;;  %v4771_v2 = vadd.f32 1e-05, %v4755_v39 }
0x2bcf   :  { %v4840_v5 = vadd.f32 %v7017_v41, %v4817_v60  ;;  %v4796_v15 = vmul.f32 %v5767_v30, %v6941_v37 }
0x2bd0   :  { %4855 = vst.msk [vmem:[%s7146_s16 + $0x18] sm:$0xff] %vm77_vm0, %v4839_v42  ;;  %v4818_v50 = vmul.f32 %v7011_v11, %v4795_v38  ;;  %5780 = vrsqrt.f32 %v4771_v2 }
0x2bd1   :  { %v5769_v10 = vpop.eup %5768  ;;  %4856 = vst.msk [vmem:[%s7146_s16 + $0x20] sm:$0xff] %vm77_vm0, %v4840_v5  ;;  %v4819_v12 = vmul.f32 %v7011_v11, %v4796_v15 }
0x2bd2   :  { %v5771_v0 = vpop.eup %5770  ;;  %v4841_v54 = vadd.f32 %v7017_v41, %v4818_v50  ;;  %v4797_v37 = vmul.f32 %v5769_v10, %v6957_v46 }
0x2bd3   :  { %v4842_v36 = vadd.f32 %v7017_v41, %v4819_v12  ;;  %v4798_v56 = vmul.f32 %v5771_v0, %v6953_v3 }
0x2bd4   :  { %4857 = vst.msk [vmem:[%s7146_s16 + $0x28] sm:$0xff] %vm77_vm0, %v4841_v54  ;;  %v4820_v34 = vmul.f32 %v7011_v11, %v4797_v37 }
0x2bd5   :  { %v5773_v14 = vpop.eup %5772  ;;  %4858 = vst.msk [vmem:[%s7146_s16 + $0x30] sm:$0xff] %vm77_vm0, %v4842_v36  ;;  %v4821_v58 = vmul.f32 %v7011_v11, %v4798_v56 }
0x2bd6   :  { %v5775_v46 = vpop.eup %5774  ;;  %v4843_v33 = vadd.f32 %v7017_v41, %v4820_v34  ;;  %v4799_v3 = vmul.f32 %v5773_v14, %v6969_v57 }
0x2bd7   :  { %v4844_v61 = vadd.f32 %v7017_v41, %v4821_v58  ;;  %v4800_v63 = vmul.f32 %v5775_v46, %v6965_v28 }
0x2bd8   :  { %4859 = vst.msk [vmem:[%s7146_s16 + $0x38] sm:$0xff] %vm77_vm0, %v4843_v33  ;;  %v4822_v1 = vmul.f32 %v7011_v11, %v4799_v3 }
0x2bd9   :  { %v5777_v7 = vpop.eup %5776  ;;  %4860 = vst.msk [vmem:[%s7146_s16 + $0x40] sm:$0xff] %vm77_vm0, %v4844_v61  ;;  %v4823_v31 = vmul.f32 %v7011_v11, %v4800_v63 }
0x2bda   :  { %v5779_v57 = vpop.eup %5778  ;;  %v4845_v24 = vadd.f32 %v7017_v41, %v4822_v1  ;;  %v4801_v28 = vmul.f32 %v5777_v7, %v6981_v43 }
0x2bdb   :  { %v4846_v51 = vadd.f32 %v7017_v41, %v4823_v31  ;;  %v4802_v53 = vmul.f32 %v5779_v57, %v6977_v32 }
0x2bdc   :  { %4861 = vst.msk [vmem:[%s7146_s16 + $0x48] sm:$0xff] %vm77_vm0, %v4845_v24  ;;  %v4824_v16 = vmul.f32 %v7011_v11, %v4801_v28 }
0x2bdd   :  { %v5781_v27 = vpop.eup %5780  ;;  %4862 = vst.msk [vmem:[%s7146_s16 + $0x50] sm:$0xff] %vm77_vm0, %v4846_v51  ;;  %v4825_v19 = vmul.f32 %v7011_v11, %v4802_v53 }
0x2bde   :  { %v4847_v43 = vadd.f32 %v7017_v41, %v4824_v16  ;;  %v4803_v55 = vmul.f32 %v5781_v27, %v6990_v40 }
0x2bdf   :  { %v4848_v32 = vadd.f32 %v7017_v41, %v4825_v19 }
0x2be0   :  { %4863 = vst.msk [vmem:[%s7146_s16 + $0x58] sm:$0xff] %vm77_vm0, %v4847_v43  ;;  %v4826_v13 = vmul.f32 %v7011_v11, %v4803_v55 }
0x2be1   :  { %4864 = vst.msk [vmem:[%s7146_s16 + $0x60] sm:$0xff] %vm77_vm0, %v4848_v32 }
0x2be2   :  { %v4849_v4 = vadd.f32 %v7017_v41, %v4826_v13 }
0x2be4   :  { %4865 = vst.msk [vmem:[%s7146_s16 + $0x68] sm:$0xff] %vm77_vm0, %v4849_v4 }
0x2c0c   :  { %v4741_v40 = vpop.xlane.xlu0 %4740 }
0x2c0d   :  { %v4757_v45 = vmul.f32 0.125, %v4741_v40 }
0x2c0e   :  { %v4738_v6 = vpop.xlane.xlu1 %4737 }
0x2c0f   :  { %v4773_v20 = vadd.f32 1e-05, %v4757_v45  ;;  %v4756_v59 = vmul.f32 0.125, %v4738_v6 }
0x2c11   :  { %5782 = vrsqrt.f32 %v4773_v20  ;;  %v4772_v23 = vadd.f32 1e-05, %v4756_v59 }
0x2c13   :  { %5784 = vrsqrt.f32 %v4772_v23 }
0x2c1e   :  { %v5783_v21 = vpop.eup %5782 }
0x2c1f   :  { %v4805_v26 = vmul.f32 %v5783_v21, %v6997_v8 }
0x2c20   :  { %v5785_v17 = vpop.eup %5784 }
0x2c21   :  { %v4828_v29 = vmul.f32 %v7011_v11, %v4805_v26  ;;  %v4804_v47 = vmul.f32 %v5785_v17, %v7000_v25 }
0x2c23   :  { %v4851_v49 = vadd.f32 %v7017_v41, %v4828_v29  ;;  %v4827_v35 = vmul.f32 %v7011_v11, %v4804_v47 }
0x2c25   :  { %4867 = vst.msk [vmem:[%s7146_s16 + $0x78] sm:$0xff] %vm77_vm0, %v4851_v49  ;;  %v4850_v44 = vadd.f32 %v7017_v41, %v4827_v35 }
0x2c27   :  { %4866 = vst.msk [vmem:[%s7146_s16 + $0x70] sm:$0xff] %vm77_vm0, %v4850_v44 }

</bundles_post_ra>
